<compile_context>
chip_gen: v7x
topology: tpu7x:2x2x1
jax: 0.10.0
libtpu: 0.0.40
codegen_flags: <defaults>
</compile_context>

<pallas_src>
import jax
import jax.numpy as jnp
from jax.experimental import pallas as pl
from jax.experimental.pallas import tpu as pltpu

BN_EPS = 1e-5
BN_SCALE = 1.0 / (1.0 + BN_EPS) ** 0.5  # gamma=1, var=1, mean=0, beta=0


# --------------------------------------------------------------------------
# Fused Pallas kernel
# --------------------------------------------------------------------------

def _make_s2enet_kernel(H, W):
    Hp, Wp = H + 2, W + 2
    PP = Hp * Wp                 # padded-flat spatial size
    R0 = Wp + 1                  # margin rows so every 3x3 tap shift is in-bounds
    P = H * W
    OFFS = [(dy - 1) * Wp + (dx - 1) for dy in range(3) for dx in range(3)]

    def kernel(x1_ref, x2_ref, mask_ref,
               w1a_ref, b1a_ref, w2a_ref, b2a_ref, w3a_ref, b3a_ref,
               w1b_ref, b1b_ref, w2b_ref, b2b_ref, w3b_ref, b3b_ref,
               wt1_ref, bt1_ref, wt2_ref, bt2_ref, wdrs_ref,
               ws1_ref, bs1_ref, ws2_ref, bs2_ref, wdre_ref,
               wf1_ref, wf2_ref, bf_ref, wfc_ref, bfc_ref,
               o_ref,
               pbuf_a, pbuf_b, xcol_ref):
        mask = mask_ref[...]                               # (PP, 1) valid pixels

        # Padded-activation buffers: margin / padding rows must be zero.
        pbuf_a[...] = jnp.zeros(pbuf_a.shape, jnp.float32)
        pbuf_b[...] = jnp.zeros(pbuf_b.shape, jnp.float32)

        def conv3x3(load_tap, w_ref, b_ref):
            # Single im2col matmul: rows = output pixels, K = 9*Cin.
            cin = w_ref.shape[0] // 9
            for k, off in enumerate(OFFS):
                xcol_ref[:, k * cin:(k + 1) * cin] = load_tap(R0 + off, cin)
            y = jnp.dot(xcol_ref[:, 0:9 * cin], w_ref[...],
                        preferred_element_type=jnp.float32)
            # BN folded into w/b; mask re-zeroes padding rows for the next conv.
            return jnp.maximum(y + b_ref[...], 0.0) * mask   # (PP, Cout)

        tap_x1 = lambda s, c: x1_ref[0, s:s + PP, :]
        tap_x2 = lambda s, c: x2_ref[0, s:s + PP, :]
        tap_a = lambda s, c: pbuf_a[s:s + PP, 0:c]
        tap_b = lambda s, c: pbuf_b[s:s + PP, 0:c]

        # branch a (x1): C1 -> 128 -> 64 -> 32
        a = conv3x3(tap_x1, w1a_ref, b1a_ref)
        pbuf_a[R0:R0 + PP, 0:a.shape[1]] = a
        a = conv3x3(tap_a, w2a_ref, b2a_ref)
        pbuf_a[R0:R0 + PP, 0:a.shape[1]] = a
        a = conv3x3(tap_a, w3a_ref, b3a_ref)                 # (PP, 32)

        # branch b (x2): C2 -> 8 -> 16 -> 32
        b = conv3x3(tap_x2, w1b_ref, b1b_ref)
        pbuf_b[R0:R0 + PP, 0:b.shape[1]] = b
        b = conv3x3(tap_b, w2b_ref, b2b_ref)
        pbuf_b[R0:R0 + PP, 0:b.shape[1]] = b
        b = conv3x3(tap_b, w3b_ref, b3b_ref)                 # (PP, 32)

        # ---- SAEM: spatial enhancement of branch a using branch b ----
        # m[i] = sum_j wdr[j] * <t1[i,:], t2[j,:]>  ==  t1 @ (t2^T @ wdr)
        t1 = jax.nn.sigmoid(
            jnp.dot(a, wt1_ref[...], preferred_element_type=jnp.float32)
            + bt1_ref[...])                                  # (PP, 16)
        t2 = jax.nn.sigmoid(
            jnp.dot(b, wt2_ref[...], preferred_element_type=jnp.float32)
            + bt2_ref[...])                                  # (PP, 16)
        v = jnp.sum(t2 * wdrs_ref[...], axis=0, keepdims=True)   # (1, 16)
        m1 = jnp.sum(t1 * v, axis=1, keepdims=True)              # (PP, 1)
        ss1 = a * m1                                             # (PP, 32)

        # ---- SEEM: spectral enhancement of branch b using branch a ----
        # m[c] = sum_d wdr[d] * sum_p t1[p,c] t2[p,d]  ==  t1^T @ (t2 @ wdr^T)
        s1 = jax.nn.sigmoid(
            jnp.dot(b, ws1_ref[...], preferred_element_type=jnp.float32)
            + bs1_ref[...])                                  # (PP, 32)
        s2 = jax.nn.sigmoid(
            jnp.dot(a, ws2_ref[...], preferred_element_type=jnp.float32)
            + bs2_ref[...])                                  # (PP, 32)
        u = jnp.sum(s2 * wdre_ref[...], axis=1, keepdims=True)   # (PP, 1)
        m2 = jnp.sum(s1 * (u * mask), axis=0, keepdims=True)     # (1, 32)
        ss2 = b * m2                                             # (PP, 32)

        # ---- Fusion 1x1 conv (concat folded into split weights), pool, fc ----
        y = (jnp.dot(ss1, wf1_ref[...], preferred_element_type=jnp.float32)
             + jnp.dot(ss2, wf2_ref[...], preferred_element_type=jnp.float32)
             + bf_ref[...])
        y = jnp.maximum(y, 0.0)                              # (PP, 32)
        pooled = jnp.sum(y * mask, axis=0, keepdims=True) * (1.0 / P)   # (1, 32)
        logits = (jnp.dot(pooled, wfc_ref[...], preferred_element_type=jnp.float32)
                  + bfc_ref[...])
        o_ref[0] = logits

    return kernel


# --------------------------------------------------------------------------
# Wrapper (single pallas_call, grid over batch)
# --------------------------------------------------------------------------

def s2enet_forward(params, x1_nchw, x2_nchw):
    N, C1, H, W = x1_nchw.shape
    Hp, Wp = H + 2, W + 2
    PP = Hp * Wp
    R0 = Wp + 1
    RB = PP + 2 * R0

    # NCHW -> padded-flat (N, RB, C): zero-pad spatially, flatten rows, margins.
    def to_padded_flat(x):
        n, c = x.shape[0], x.shape[1]
        xi = jnp.transpose(x, (0, 2, 3, 1))
        xi = jnp.pad(xi, ((0, 0), (1, 1), (1, 1), (0, 0)))
        xi = xi.reshape(n, PP, c)
        return jnp.pad(xi, ((0, 0), (R0, R0), (0, 0)))

    x1p = to_padded_flat(x1_nchw)
    x2p = to_padded_flat(x2_nchw)

    # valid-pixel mask in padded-flat coordinates
    yy = jnp.arange(Hp)[:, None]
    xx = jnp.arange(Wp)[None, :]
    mask = ((yy >= 1) & (yy <= H) & (xx >= 1) & (xx <= W)).astype(jnp.float32)
    mask = mask.reshape(PP, 1)

    def imcol_w(wb):      # (9, cin, cout), (cout,) -> (9*cin, cout), (1, cout)
        w, b = wb
        return w.reshape(-1, w.shape[-1]), b.reshape(1, -1)

    w1a, b1a = imcol_w(params['conv1_a'])
    w2a, b2a = imcol_w(params['conv2_a'])
    w3a, b3a = imcol_w(params['conv3_a'])
    w1b, b1b = imcol_w(params['conv1_b'])
    w2b, b2b = imcol_w(params['conv2_b'])
    w3b, b3b = imcol_w(params['conv3_b'])

    wt1, bt1 = params['saem_t1']
    wt2, bt2 = params['saem_t2']
    ws1, bs1 = params['seem_t1']
    ws2, bs2 = params['seem_t2']
    wf, bf = params['fusion']
    wfc, bfc = params['fc']

    # SAEM dim_reduce weight scattered to padded-flat positions (0 on padding)
    wdr_s = params['saem_dr']                                  # (P, 1)
    wdrs = jnp.zeros((Hp, Wp), jnp.float32)
    wdrs = wdrs.at[1:H + 1, 1:W + 1].set(wdr_s.reshape(H, W))
    wdrs = wdrs.reshape(PP, 1)
    wdre = params['seem_dr']                                   # (1, 32)

    half = wf.shape[0] // 2
    wf1, wf2 = wf[:half], wf[half:]
    ncls = wfc.shape[1]

    args = (x1p, x2p, mask,
            w1a, b1a, w2a, b2a, w3a, b3a,
            w1b, b1b, w2b, b2b, w3b, b3b,
            wt1, bt1.reshape(1, -1), wt2, bt2.reshape(1, -1), wdrs,
            ws1, bs1.reshape(1, -1), ws2, bs2.reshape(1, -1), wdre,
            wf1, wf2, bf.reshape(1, -1), wfc, bfc.reshape(1, -1))

    def batched_spec(arr):
        nd = arr.ndim
        return pl.BlockSpec((1,) + arr.shape[1:], lambda n: (n,) + (0,) * (nd - 1))

    def shared_spec(arr):
        nd = arr.ndim
        return pl.BlockSpec(arr.shape, lambda n: (0,) * nd)

    in_specs = [batched_spec(x1p), batched_spec(x2p)]
    in_specs += [shared_spec(a) for a in args[2:]]

    ca = max(w1a.shape[1], w2a.shape[1])          # branch-a pad-buffer channels
    cb = max(w1b.shape[1], w2b.shape[1])          # branch-b pad-buffer channels
    kmax = max(w1a.shape[0], w2a.shape[0], w3a.shape[0],
               w1b.shape[0], w2b.shape[0], w3b.shape[0])   # max 9*Cin

    out = pl.pallas_call(
        _make_s2enet_kernel(H, W),
        out_shape=jax.ShapeDtypeStruct((N, 1, ncls), jnp.float32),
        grid=(N,),
        in_specs=in_specs,
        out_specs=pl.BlockSpec((1, 1, ncls), lambda n: (n, 0, 0)),
        scratch_shapes=[
            pltpu.VMEM((RB, ca), jnp.float32),     # padded activations, branch a
            pltpu.VMEM((RB, cb), jnp.float32),     # padded activations, branch b
            pltpu.VMEM((PP, kmax), jnp.float32),   # im2col staging
        ],
        compiler_params=pltpu.CompilerParams(
            dimension_semantics=("parallel",)),
    )(*args)
    return out.reshape(N, ncls)


# --------------------------------------------------------------------------
# Deterministic parameter init (synthetic; mirrors the module's shapes)
# --------------------------------------------------------------------------

def _kaiming_conv(key, cin, cout, k):
    fan_out = cout * k * k
    std = (2.0 / fan_out) ** 0.5
    shape = (k * k, cin, cout) if k == 3 else (cin, cout)
    return jax.random.normal(key, shape, jnp.float32) * std


def _conv_bn(key, cin, cout, k):
    kw, kb = jax.random.split(key)
    w = _kaiming_conv(kw, cin, cout, k)
    bound = 1.0 / (cin * k * k) ** 0.5
    b = jax.random.uniform(kb, (cout,), jnp.float32, -bound, bound)
    # fold eval-mode BN (gamma=1, beta=0, mean=0, var=1) into weight/bias
    return w * BN_SCALE, b * BN_SCALE


def init_params(key, c1, c2, n_classes, patch):
    P = patch * patch
    ks = jax.random.split(key, 15)
    p = {}
    p['conv1_a'] = _conv_bn(ks[0], c1, 128, 3)
    p['conv1_b'] = _conv_bn(ks[1], c2, 8, 3)
    p['conv2_a'] = _conv_bn(ks[2], 128, 64, 3)
    p['conv2_b'] = _conv_bn(ks[3], 8, 16, 3)
    p['conv3_a'] = _conv_bn(ks[4], 64, 32, 3)
    p['conv3_b'] = _conv_bn(ks[5], 16, 32, 3)
    # SAEM: T1/T2 are 1x1 conv (32 -> 16) + BN + sigmoid; dim_reduce Conv1d(P -> 1)
    p['saem_t1'] = _conv_bn(ks[6], 32, 16, 1)
    p['saem_t2'] = _conv_bn(ks[7], 32, 16, 1)
    p['saem_dr'] = jax.random.normal(ks[8], (P, 1), jnp.float32) * (1.0 / P) ** 0.5
    # SEEM: T1 (net-x2: 32 -> 32), T2 (net-x1: 32 -> 32); dim_reduce Conv1d(32 -> 1)
    p['seem_t1'] = _conv_bn(ks[9], 32, 32, 1)
    p['seem_t2'] = _conv_bn(ks[10], 32, 32, 1)
    p['seem_dr'] = jax.random.normal(ks[11], (1, 32), jnp.float32) * (1.0 / 32) ** 0.5
    # Fusion 1x1 conv (64 -> 32) + BN + ReLU
    p['fusion'] = _conv_bn(ks[12], 64, 32, 1)
    # fc (32 -> n_classes)
    wfc = jax.random.normal(ks[13], (32, n_classes), jnp.float32) * (1.0 / 32) ** 0.5
    bfc = jax.random.uniform(ks[14], (n_classes,), jnp.float32,
                             -1.0 / 32 ** 0.5, 1.0 / 32 ** 0.5)
    p['fc'] = (wfc, bfc)
    return p


# --------------------------------------------------------------------------
# Pure-jnp reference
# --------------------------------------------------------------------------

def s2enet_forward_ref(params, x1_nchw, x2_nchw):
    N, _, H, W = x1_nchw.shape
    P = H * W

    def to_npc(x):
        return jnp.transpose(x, (0, 2, 3, 1)).reshape(N, P, x.shape[1])

    def conv(x, w, b):
        Cin = x.shape[-1]
        xi = x.reshape(N, H, W, Cin)
        xp = jnp.pad(xi, ((0, 0), (1, 1), (1, 1), (0, 0)))
        acc = jnp.zeros((N, P, w.shape[2]), jnp.float32)
        for dy in range(3):
            for dx in range(3):
                tap = xp[:, dy:dy + H, dx:dx + W, :].reshape(N, P, Cin)
                acc = acc + jnp.einsum('npc,cd->npd', tap, w[dy * 3 + dx])
        return jnp.maximum(acc + b, 0.0)

    x1 = to_npc(x1_nchw)
    x2 = to_npc(x2_nchw)
    x1 = conv(x1, *params['conv1_a']); x2 = conv(x2, *params['conv1_b'])
    x1 = conv(x1, *params['conv2_a']); x2 = conv(x2, *params['conv2_b'])
    x1 = conv(x1, *params['conv3_a']); x2 = conv(x2, *params['conv3_b'])
    # SAEM
    w1, b1 = params['saem_t1']; w2, b2 = params['saem_t2']; wdr = params['saem_dr']
    t1 = jax.nn.sigmoid(x1 @ w1 + b1)
    t2 = jax.nn.sigmoid(x2 @ w2 + b2)
    aff = jnp.einsum('nic,njc->nij', t1, t2)
    m = jnp.einsum('nij,jo->nio', aff, wdr)
    ss1 = x1 * m
    # SEEM
    w1, b1 = params['seem_t1']; w2, b2 = params['seem_t2']; wdr = params['seem_dr']
    t1 = jax.nn.sigmoid(x2 @ w1 + b1)
    t2 = jax.nn.sigmoid(x1 @ w2 + b2)
    aff = jnp.einsum('npc,npd->ncd', t1, t2)
    m = jnp.einsum('od,ncd->noc', wdr, aff)
    ss2 = x2 * m
    xcat = jnp.concatenate([ss1, ss2], axis=-1)
    wf, bf = params['fusion']; wfc, bfc = params['fc']
    y = jnp.maximum(xcat @ wf + bf, 0.0)
    pooled = jnp.mean(y, axis=1)
    return pooled @ wfc + bfc


if __name__ == "__main__":
    key = jax.random.PRNGKey(0)
    k_p, k_x1, k_x2 = jax.random.split(key, 3)
    N, C1, C2, NCLS, PATCH = 2, 4, 2, 6, 8
    params = init_params(k_p, C1, C2, NCLS, PATCH)
    x1 = jax.random.normal(k_x1, (N, C1, PATCH, PATCH), jnp.float32)
    x2 = jax.random.normal(k_x2, (N, C2, PATCH, PATCH), jnp.float32)

    out = jax.jit(s2enet_forward)(params, x1, x2)
    out = jax.block_until_ready(out)
    assert out.shape == (N, NCLS)

    ref = s2enet_forward_ref(params, x1, x2)
    max_err = float(jnp.max(jnp.abs(out - ref)))
    assert max_err < 1e-3, f"max abs error {max_err}"
    print("KERNEL_OK")
</pallas_src>

<mosaic_0001>
module attributes {stable_mosaic.version = 11 : i64} {
  func.func @kernel(%arg0: i32, %arg1: memref<1x122x4xf32, #tpu.memory_space<vmem>>, %arg2: memref<1x122x2xf32, #tpu.memory_space<vmem>>, %arg3: memref<100x1xf32, #tpu.memory_space<vmem>>, %arg4: memref<36x128xf32, #tpu.memory_space<vmem>>, %arg5: memref<1x128xf32, #tpu.memory_space<vmem>>, %arg6: memref<1152x64xf32, #tpu.memory_space<vmem>>, %arg7: memref<1x64xf32, #tpu.memory_space<vmem>>, %arg8: memref<576x32xf32, #tpu.memory_space<vmem>>, %arg9: memref<1x32xf32, #tpu.memory_space<vmem>>, %arg10: memref<18x8xf32, #tpu.memory_space<vmem>>, %arg11: memref<1x8xf32, #tpu.memory_space<vmem>>, %arg12: memref<72x16xf32, #tpu.memory_space<vmem>>, %arg13: memref<1x16xf32, #tpu.memory_space<vmem>>, %arg14: memref<144x32xf32, #tpu.memory_space<vmem>>, %arg15: memref<1x32xf32, #tpu.memory_space<vmem>>, %arg16: memref<32x16xf32, #tpu.memory_space<vmem>>, %arg17: memref<1x16xf32, #tpu.memory_space<vmem>>, %arg18: memref<32x16xf32, #tpu.memory_space<vmem>>, %arg19: memref<1x16xf32, #tpu.memory_space<vmem>>, %arg20: memref<100x1xf32, #tpu.memory_space<vmem>>, %arg21: memref<32x32xf32, #tpu.memory_space<vmem>>, %arg22: memref<1x32xf32, #tpu.memory_space<vmem>>, %arg23: memref<32x32xf32, #tpu.memory_space<vmem>>, %arg24: memref<1x32xf32, #tpu.memory_space<vmem>>, %arg25: memref<1x32xf32, #tpu.memory_space<vmem>>, %arg26: memref<32x32xf32, #tpu.memory_space<vmem>>, %arg27: memref<32x32xf32, #tpu.memory_space<vmem>>, %arg28: memref<1x32xf32, #tpu.memory_space<vmem>>, %arg29: memref<32x6xf32, #tpu.memory_space<vmem>>, %arg30: memref<1x6xf32, #tpu.memory_space<vmem>>, %arg31: memref<1x1x6xf32, #tpu.memory_space<vmem>>, %arg32: memref<122x128xf32, #tpu.memory_space<vmem>>, %arg33: memref<122x16xf32, #tpu.memory_space<vmem>>, %arg34: memref<100x1152xf32, #tpu.memory_space<vmem>>) attributes {dimension_semantics = [#tpu.dimension_semantics<parallel>], iteration_bounds = array<i64: 2>, scalar_prefetch = 0 : i64, scratch_operands = 3 : i64, tpu.core_type = #tpu.core_type<tc>, window_params = [{transform_indices = @transform_0, window_bounds = array<i64: 1, 122, 4>}, {transform_indices = @transform_1, window_bounds = array<i64: 1, 122, 2>}, {pipeline_mode = #tpu.pipeline_mode<synchronous>, transform_indices = @transform_2, window_bounds = array<i64: 100, 1>}, {pipeline_mode = #tpu.pipeline_mode<synchronous>, transform_indices = @transform_3, window_bounds = array<i64: 36, 128>}, {pipeline_mode = #tpu.pipeline_mode<synchronous>, transform_indices = @transform_4, window_bounds = array<i64: 1, 128>}, {pipeline_mode = #tpu.pipeline_mode<synchronous>, transform_indices = @transform_5, window_bounds = array<i64: 1152, 64>}, {pipeline_mode = #tpu.pipeline_mode<synchronous>, transform_indices = @transform_6, window_bounds = array<i64: 1, 64>}, {pipeline_mode = #tpu.pipeline_mode<synchronous>, transform_indices = @transform_7, window_bounds = array<i64: 576, 32>}, {pipeline_mode = #tpu.pipeline_mode<synchronous>, transform_indices = @transform_8, window_bounds = array<i64: 1, 32>}, {pipeline_mode = #tpu.pipeline_mode<synchronous>, transform_indices = @transform_9, window_bounds = array<i64: 18, 8>}, {pipeline_mode = #tpu.pipeline_mode<synchronous>, transform_indices = @transform_10, window_bounds = array<i64: 1, 8>}, {pipeline_mode = #tpu.pipeline_mode<synchronous>, transform_indices = @transform_11, window_bounds = array<i64: 72, 16>}, {pipeline_mode = #tpu.pipeline_mode<synchronous>, transform_indices = @transform_12, window_bounds = array<i64: 1, 16>}, {pipeline_mode = #tpu.pipeline_mode<synchronous>, transform_indices = @transform_13, window_bounds = array<i64: 144, 32>}, {pipeline_mode = #tpu.pipeline_mode<synchronous>, transform_indices = @transform_14, window_bounds = array<i64: 1, 32>}, {pipeline_mode = #tpu.pipeline_mode<synchronous>, transform_indices = @transform_15, window_bounds = array<i64: 32, 16>}, {pipeline_mode = #tpu.pipeline_mode<synchronous>, transform_indices = @transform_16, window_bounds = array<i64: 1, 16>}, {pipeline_mode = #tpu.pipeline_mode<synchronous>, transform_indices = @transform_17, window_bounds = array<i64: 32, 16>}, {pipeline_mode = #tpu.pipeline_mode<synchronous>, transform_indices = @transform_18, window_bounds = array<i64: 1, 16>}, {pipeline_mode = #tpu.pipeline_mode<synchronous>, transform_indices = @transform_19, window_bounds = array<i64: 100, 1>}, {pipeline_mode = #tpu.pipeline_mode<synchronous>, transform_indices = @transform_20, window_bounds = array<i64: 32, 32>}, {pipeline_mode = #tpu.pipeline_mode<synchronous>, transform_indices = @transform_21, window_bounds = array<i64: 1, 32>}, {pipeline_mode = #tpu.pipeline_mode<synchronous>, transform_indices = @transform_22, window_bounds = array<i64: 32, 32>}, {pipeline_mode = #tpu.pipeline_mode<synchronous>, transform_indices = @transform_23, window_bounds = array<i64: 1, 32>}, {pipeline_mode = #tpu.pipeline_mode<synchronous>, transform_indices = @transform_24, window_bounds = array<i64: 1, 32>}, {pipeline_mode = #tpu.pipeline_mode<synchronous>, transform_indices = @transform_25, window_bounds = array<i64: 32, 32>}, {pipeline_mode = #tpu.pipeline_mode<synchronous>, transform_indices = @transform_26, window_bounds = array<i64: 32, 32>}, {pipeline_mode = #tpu.pipeline_mode<synchronous>, transform_indices = @transform_27, window_bounds = array<i64: 1, 32>}, {pipeline_mode = #tpu.pipeline_mode<synchronous>, transform_indices = @transform_28, window_bounds = array<i64: 32, 6>}, {pipeline_mode = #tpu.pipeline_mode<synchronous>, transform_indices = @transform_29, window_bounds = array<i64: 1, 6>}, {transform_indices = @transform_30, window_bounds = array<i64: 1, 1, 6>}]} {
    %c0 = arith.constant 0 : index
    %c0_0 = arith.constant 0 : index
    %0 = vector.load %arg3[%c0, %c0_0] : memref<100x1xf32, #tpu.memory_space<vmem>>, vector<100x1xf32>
    %cst = arith.constant 0.000000e+00 : f32
    %1 = vector.broadcast %cst : f32 to vector<122x128xf32>
    %c0_1 = arith.constant 0 : index
    %c0_2 = arith.constant 0 : index
    %2 = vector.load %arg32[%c0_1, %c0_2] : memref<122x128xf32, #tpu.memory_space<vmem>>, vector<122x128xf32>
    tpu.vector_store %arg32[%c0_1, %c0_2], %1 {strides = array<i32>} : memref<122x128xf32, #tpu.memory_space<vmem>>, vector<122x128xf32>,
    %cst_3 = arith.constant 0.000000e+00 : f32
    %3 = vector.broadcast %cst_3 : f32 to vector<122x16xf32>
    %c0_4 = arith.constant 0 : index
    %c0_5 = arith.constant 0 : index
    %4 = vector.load %arg33[%c0_4, %c0_5] : memref<122x16xf32, #tpu.memory_space<vmem>>, vector<122x16xf32>
    tpu.vector_store %arg33[%c0_4, %c0_5], %3 {strides = array<i32>} : memref<122x16xf32, #tpu.memory_space<vmem>>, vector<122x16xf32>,
    %c0_6 = arith.constant 0 : index
    %c0_7 = arith.constant 0 : index
    %c0_8 = arith.constant 0 : index
    %5 = vector.load %arg1[%c0_6, %c0_7, %c0_8] : memref<1x122x4xf32, #tpu.memory_space<vmem>>, vector<1x100x4xf32>
    %6 = vector.shape_cast %5 : vector<1x100x4xf32> to vector<100x4xf32>
    %c0_9 = arith.constant 0 : index
    %c0_10 = arith.constant 0 : index
    %7 = vector.load %arg34[%c0_9, %c0_10] : memref<100x1152xf32, #tpu.memory_space<vmem>>, vector<100x4xf32>
    tpu.vector_store %arg34[%c0_9, %c0_10], %6 {strides = array<i32>} : memref<100x1152xf32, #tpu.memory_space<vmem>>, vector<100x4xf32>,
    %c0_11 = arith.constant 0 : index
    %c1 = arith.constant 1 : index
    %c0_12 = arith.constant 0 : index
    %8 = vector.load %arg1[%c0_11, %c1, %c0_12] : memref<1x122x4xf32, #tpu.memory_space<vmem>>, vector<1x100x4xf32>
    %9 = vector.shape_cast %8 : vector<1x100x4xf32> to vector<100x4xf32>
    %c0_13 = arith.constant 0 : index
    %c4 = arith.constant 4 : index
    %10 = vector.load %arg34[%c0_13, %c4] : memref<100x1152xf32, #tpu.memory_space<vmem>>, vector<100x4xf32>
    tpu.vector_store %arg34[%c0_13, %c4], %9 {strides = array<i32>} : memref<100x1152xf32, #tpu.memory_space<vmem>>, vector<100x4xf32>,
    %c0_14 = arith.constant 0 : index
    %c2 = arith.constant 2 : index
    %c0_15 = arith.constant 0 : index
    %11 = vector.load %arg1[%c0_14, %c2, %c0_15] : memref<1x122x4xf32, #tpu.memory_space<vmem>>, vector<1x100x4xf32>
    %12 = vector.shape_cast %11 : vector<1x100x4xf32> to vector<100x4xf32>
    %c0_16 = arith.constant 0 : index
    %c8 = arith.constant 8 : index
    %13 = vector.load %arg34[%c0_16, %c8] : memref<100x1152xf32, #tpu.memory_space<vmem>>, vector<100x4xf32>
    tpu.vector_store %arg34[%c0_16, %c8], %12 {strides = array<i32>} : memref<100x1152xf32, #tpu.memory_space<vmem>>, vector<100x4xf32>,
    %c0_17 = arith.constant 0 : index
    %c10 = arith.constant 10 : index
    %c0_18 = arith.constant 0 : index
    %14 = vector.load %arg1[%c0_17, %c10, %c0_18] : memref<1x122x4xf32, #tpu.memory_space<vmem>>, vector<1x100x4xf32>
    %15 = vector.shape_cast %14 : vector<1x100x4xf32> to vector<100x4xf32>
    %c0_19 = arith.constant 0 : index
    %c12 = arith.constant 12 : index
    %16 = vector.load %arg34[%c0_19, %c12] : memref<100x1152xf32, #tpu.memory_space<vmem>>, vector<100x4xf32>
    tpu.vector_store %arg34[%c0_19, %c12], %15 {strides = array<i32>} : memref<100x1152xf32, #tpu.memory_space<vmem>>, vector<100x4xf32>,
    %c0_20 = arith.constant 0 : index
    %c11 = arith.constant 11 : index
    %c0_21 = arith.constant 0 : index
    %17 = vector.load %arg1[%c0_20, %c11, %c0_21] : memref<1x122x4xf32, #tpu.memory_space<vmem>>, vector<1x100x4xf32>
    %18 = vector.shape_cast %17 : vector<1x100x4xf32> to vector<100x4xf32>
    %c0_22 = arith.constant 0 : index
    %c16 = arith.constant 16 : index
    %19 = vector.load %arg34[%c0_22, %c16] : memref<100x1152xf32, #tpu.memory_space<vmem>>, vector<100x4xf32>
    tpu.vector_store %arg34[%c0_22, %c16], %18 {strides = array<i32>} : memref<100x1152xf32, #tpu.memory_space<vmem>>, vector<100x4xf32>,
    %c0_23 = arith.constant 0 : index
    %c12_24 = arith.constant 12 : index
    %c0_25 = arith.constant 0 : index
    %20 = vector.load %arg1[%c0_23, %c12_24, %c0_25] : memref<1x122x4xf32, #tpu.memory_space<vmem>>, vector<1x100x4xf32>
    %21 = vector.shape_cast %20 : vector<1x100x4xf32> to vector<100x4xf32>
    %c0_26 = arith.constant 0 : index
    %c20 = arith.constant 20 : index
    %22 = vector.load %arg34[%c0_26, %c20] : memref<100x1152xf32, #tpu.memory_space<vmem>>, vector<100x4xf32>
    tpu.vector_store %arg34[%c0_26, %c20], %21 {strides = array<i32>} : memref<100x1152xf32, #tpu.memory_space<vmem>>, vector<100x4xf32>,
    %c0_27 = arith.constant 0 : index
    %c20_28 = arith.constant 20 : index
    %c0_29 = arith.constant 0 : index
    %23 = vector.load %arg1[%c0_27, %c20_28, %c0_29] : memref<1x122x4xf32, #tpu.memory_space<vmem>>, vector<1x100x4xf32>
    %24 = vector.shape_cast %23 : vector<1x100x4xf32> to vector<100x4xf32>
    %c0_30 = arith.constant 0 : index
    %c24 = arith.constant 24 : index
    %25 = vector.load %arg34[%c0_30, %c24] : memref<100x1152xf32, #tpu.memory_space<vmem>>, vector<100x4xf32>
    tpu.vector_store %arg34[%c0_30, %c24], %24 {strides = array<i32>} : memref<100x1152xf32, #tpu.memory_space<vmem>>, vector<100x4xf32>,
    %c0_31 = arith.constant 0 : index
    %c21 = arith.constant 21 : index
    %c0_32 = arith.constant 0 : index
    %26 = vector.load %arg1[%c0_31, %c21, %c0_32] : memref<1x122x4xf32, #tpu.memory_space<vmem>>, vector<1x100x4xf32>
    %27 = vector.shape_cast %26 : vector<1x100x4xf32> to vector<100x4xf32>
    %c0_33 = arith.constant 0 : index
    %c28 = arith.constant 28 : index
    %28 = vector.load %arg34[%c0_33, %c28] : memref<100x1152xf32, #tpu.memory_space<vmem>>, vector<100x4xf32>
    tpu.vector_store %arg34[%c0_33, %c28], %27 {strides = array<i32>} : memref<100x1152xf32, #tpu.memory_space<vmem>>, vector<100x4xf32>,
    %c0_34 = arith.constant 0 : index
    %c22 = arith.constant 22 : index
    %c0_35 = arith.constant 0 : index
    %29 = vector.load %arg1[%c0_34, %c22, %c0_35] : memref<1x122x4xf32, #tpu.memory_space<vmem>>, vector<1x100x4xf32>
    %30 = vector.shape_cast %29 : vector<1x100x4xf32> to vector<100x4xf32>
    %c0_36 = arith.constant 0 : index
    %c32 = arith.constant 32 : index
    %31 = vector.load %arg34[%c0_36, %c32] : memref<100x1152xf32, #tpu.memory_space<vmem>>, vector<100x4xf32>
    tpu.vector_store %arg34[%c0_36, %c32], %30 {strides = array<i32>} : memref<100x1152xf32, #tpu.memory_space<vmem>>, vector<100x4xf32>,
    %c0_37 = arith.constant 0 : index
    %c0_38 = arith.constant 0 : index
    %32 = vector.load %arg34[%c0_37, %c0_38] : memref<100x1152xf32, #tpu.memory_space<vmem>>, vector<100x36xf32>
    %c0_39 = arith.constant 0 : index
    %c0_40 = arith.constant 0 : index
    %33 = vector.load %arg4[%c0_39, %c0_40] : memref<36x128xf32, #tpu.memory_space<vmem>>, vector<36x128xf32>
    %cst_41 = arith.constant dense<0.000000e+00> : vector<100x128xf32>
    %34 = tpu.matmul %32, %33, %cst_41 {dimension_numbers = #tpu.dot_dimension_numbers<[1], [0], [0], [1], [0, 0, 1, 1], [], []>} : vector<100x36xf32>, vector<36x128xf32>, vector<100x128xf32> -> vector<100x128xf32>
    %c0_42 = arith.constant 0 : index
    %c0_43 = arith.constant 0 : index
    %35 = vector.load %arg5[%c0_42, %c0_43] : memref<1x128xf32, #tpu.memory_space<vmem>>, vector<1x128xf32>
    %36 = vector.broadcast %35 : vector<1x128xf32> to vector<100x128xf32>
    %37 = arith.addf %34, %36 : vector<100x128xf32>
    %cst_44 = arith.constant 0.000000e+00 : f32
    %38 = vector.broadcast %cst_44 : f32 to vector<100x128xf32>
    %39 = arith.maximumf %37, %38 : vector<100x128xf32>
    %40 = vector.broadcast %0 : vector<100x1xf32> to vector<100x128xf32>
    %41 = arith.mulf %39, %40 : vector<100x128xf32>
    %c11_45 = arith.constant 11 : index
    %c0_46 = arith.constant 0 : index
    %42 = vector.load %arg32[%c11_45, %c0_46] : memref<122x128xf32, #tpu.memory_space<vmem>>, vector<100x128xf32>
    tpu.vector_store %arg32[%c11_45, %c0_46], %41 {strides = array<i32>} : memref<122x128xf32, #tpu.memory_space<vmem>>, vector<100x128xf32>,
    %c0_47 = arith.constant 0 : index
    %c0_48 = arith.constant 0 : index
    %43 = vector.load %arg32[%c0_47, %c0_48] : memref<122x128xf32, #tpu.memory_space<vmem>>, vector<100x128xf32>
    %c0_49 = arith.constant 0 : index
    %c0_50 = arith.constant 0 : index
    %44 = vector.load %arg34[%c0_49, %c0_50] : memref<100x1152xf32, #tpu.memory_space<vmem>>, vector<100x128xf32>
    tpu.vector_store %arg34[%c0_49, %c0_50], %43 {strides = array<i32>} : memref<100x1152xf32, #tpu.memory_space<vmem>>, vector<100x128xf32>,
    %c1_51 = arith.constant 1 : index
    %c0_52 = arith.constant 0 : index
    %45 = vector.load %arg32[%c1_51, %c0_52] : memref<122x128xf32, #tpu.memory_space<vmem>>, vector<100x128xf32>
    %c0_53 = arith.constant 0 : index
    %c128 = arith.constant 128 : index
    %46 = vector.load %arg34[%c0_53, %c128] : memref<100x1152xf32, #tpu.memory_space<vmem>>, vector<100x128xf32>
    tpu.vector_store %arg34[%c0_53, %c128], %45 {strides = array<i32>} : memref<100x1152xf32, #tpu.memory_space<vmem>>, vector<100x128xf32>,
    %c2_54 = arith.constant 2 : index
    %c0_55 = arith.constant 0 : index
    %47 = vector.load %arg32[%c2_54, %c0_55] : memref<122x128xf32, #tpu.memory_space<vmem>>, vector<100x128xf32>
    %c0_56 = arith.constant 0 : index
    %c256 = arith.constant 256 : index
    %48 = vector.load %arg34[%c0_56, %c256] : memref<100x1152xf32, #tpu.memory_space<vmem>>, vector<100x128xf32>
    tpu.vector_store %arg34[%c0_56, %c256], %47 {strides = array<i32>} : memref<100x1152xf32, #tpu.memory_space<vmem>>, vector<100x128xf32>,
    %c10_57 = arith.constant 10 : index
    %c0_58 = arith.constant 0 : index
    %49 = vector.load %arg32[%c10_57, %c0_58] : memref<122x128xf32, #tpu.memory_space<vmem>>, vector<100x128xf32>
    %c0_59 = arith.constant 0 : index
    %c384 = arith.constant 384 : index
    %50 = vector.load %arg34[%c0_59, %c384] : memref<100x1152xf32, #tpu.memory_space<vmem>>, vector<100x128xf32>
    tpu.vector_store %arg34[%c0_59, %c384], %49 {strides = array<i32>} : memref<100x1152xf32, #tpu.memory_space<vmem>>, vector<100x128xf32>,
    %c11_60 = arith.constant 11 : index
    %c0_61 = arith.constant 0 : index
    %51 = vector.load %arg32[%c11_60, %c0_61] : memref<122x128xf32, #tpu.memory_space<vmem>>, vector<100x128xf32>
    %c0_62 = arith.constant 0 : index
    %c512 = arith.constant 512 : index
    %52 = vector.load %arg34[%c0_62, %c512] : memref<100x1152xf32, #tpu.memory_space<vmem>>, vector<100x128xf32>
    tpu.vector_store %arg34[%c0_62, %c512], %51 {strides = array<i32>} : memref<100x1152xf32, #tpu.memory_space<vmem>>, vector<100x128xf32>,
    %c12_63 = arith.constant 12 : index
    %c0_64 = arith.constant 0 : index
    %53 = vector.load %arg32[%c12_63, %c0_64] : memref<122x128xf32, #tpu.memory_space<vmem>>, vector<100x128xf32>
    %c0_65 = arith.constant 0 : index
    %c640 = arith.constant 640 : index
    %54 = vector.load %arg34[%c0_65, %c640] : memref<100x1152xf32, #tpu.memory_space<vmem>>, vector<100x128xf32>
    tpu.vector_store %arg34[%c0_65, %c640], %53 {strides = array<i32>} : memref<100x1152xf32, #tpu.memory_space<vmem>>, vector<100x128xf32>,
    %c20_66 = arith.constant 20 : index
    %c0_67 = arith.constant 0 : index
    %55 = vector.load %arg32[%c20_66, %c0_67] : memref<122x128xf32, #tpu.memory_space<vmem>>, vector<100x128xf32>
    %c0_68 = arith.constant 0 : index
    %c768 = arith.constant 768 : index
    %56 = vector.load %arg34[%c0_68, %c768] : memref<100x1152xf32, #tpu.memory_space<vmem>>, vector<100x128xf32>
    tpu.vector_store %arg34[%c0_68, %c768], %55 {strides = array<i32>} : memref<100x1152xf32, #tpu.memory_space<vmem>>, vector<100x128xf32>,
    %c21_69 = arith.constant 21 : index
    %c0_70 = arith.constant 0 : index
    %57 = vector.load %arg32[%c21_69, %c0_70] : memref<122x128xf32, #tpu.memory_space<vmem>>, vector<100x128xf32>
    %c0_71 = arith.constant 0 : index
    %c896 = arith.constant 896 : index
    %58 = vector.load %arg34[%c0_71, %c896] : memref<100x1152xf32, #tpu.memory_space<vmem>>, vector<100x128xf32>
    tpu.vector_store %arg34[%c0_71, %c896], %57 {strides = array<i32>} : memref<100x1152xf32, #tpu.memory_space<vmem>>, vector<100x128xf32>,
    %c22_72 = arith.constant 22 : index
    %c0_73 = arith.constant 0 : index
    %59 = vector.load %arg32[%c22_72, %c0_73] : memref<122x128xf32, #tpu.memory_space<vmem>>, vector<100x128xf32>
    %c0_74 = arith.constant 0 : index
    %c1024 = arith.constant 1024 : index
    %60 = vector.load %arg34[%c0_74, %c1024] : memref<100x1152xf32, #tpu.memory_space<vmem>>, vector<100x128xf32>
    tpu.vector_store %arg34[%c0_74, %c1024], %59 {strides = array<i32>} : memref<100x1152xf32, #tpu.memory_space<vmem>>, vector<100x128xf32>,
    %c0_75 = arith.constant 0 : index
    %c0_76 = arith.constant 0 : index
    %61 = vector.load %arg34[%c0_75, %c0_76] : memref<100x1152xf32, #tpu.memory_space<vmem>>, vector<100x1152xf32>
    %c0_77 = arith.constant 0 : index
    %c0_78 = arith.constant 0 : index
    %62 = vector.load %arg6[%c0_77, %c0_78] : memref<1152x64xf32, #tpu.memory_space<vmem>>, vector<1152x64xf32>
    %cst_79 = arith.constant dense<0.000000e+00> : vector<100x64xf32>
    %63 = tpu.matmul %61, %62, %cst_79 {dimension_numbers = #tpu.dot_dimension_numbers<[1], [0], [0], [1], [0, 0, 1, 1], [], []>} : vector<100x1152xf32>, vector<1152x64xf32>, vector<100x64xf32> -> vector<100x64xf32>
    %c0_80 = arith.constant 0 : index
    %c0_81 = arith.constant 0 : index
    %64 = vector.load %arg7[%c0_80, %c0_81] : memref<1x64xf32, #tpu.memory_space<vmem>>, vector<1x64xf32>
    %65 = vector.broadcast %64 : vector<1x64xf32> to vector<100x64xf32>
    %66 = arith.addf %63, %65 : vector<100x64xf32>
    %cst_82 = arith.constant 0.000000e+00 : f32
    %67 = vector.broadcast %cst_82 : f32 to vector<100x64xf32>
    %68 = arith.maximumf %66, %67 : vector<100x64xf32>
    %69 = vector.broadcast %0 : vector<100x1xf32> to vector<100x64xf32>
    %70 = arith.mulf %68, %69 : vector<100x64xf32>
    %c11_83 = arith.constant 11 : index
    %c0_84 = arith.constant 0 : index
    %71 = vector.load %arg32[%c11_83, %c0_84] : memref<122x128xf32, #tpu.memory_space<vmem>>, vector<100x64xf32>
    tpu.vector_store %arg32[%c11_83, %c0_84], %70 {strides = array<i32>} : memref<122x128xf32, #tpu.memory_space<vmem>>, vector<100x64xf32>,
    %c0_85 = arith.constant 0 : index
    %c0_86 = arith.constant 0 : index
    %72 = vector.load %arg32[%c0_85, %c0_86] : memref<122x128xf32, #tpu.memory_space<vmem>>, vector<100x64xf32>
    %c0_87 = arith.constant 0 : index
    %c0_88 = arith.constant 0 : index
    %73 = vector.load %arg34[%c0_87, %c0_88] : memref<100x1152xf32, #tpu.memory_space<vmem>>, vector<100x64xf32>
    tpu.vector_store %arg34[%c0_87, %c0_88], %72 {strides = array<i32>} : memref<100x1152xf32, #tpu.memory_space<vmem>>, vector<100x64xf32>,
    %c1_89 = arith.constant 1 : index
    %c0_90 = arith.constant 0 : index
    %74 = vector.load %arg32[%c1_89, %c0_90] : memref<122x128xf32, #tpu.memory_space<vmem>>, vector<100x64xf32>
    %c0_91 = arith.constant 0 : index
    %c64 = arith.constant 64 : index
    %75 = vector.load %arg34[%c0_91, %c64] : memref<100x1152xf32, #tpu.memory_space<vmem>>, vector<100x64xf32>
    tpu.vector_store %arg34[%c0_91, %c64], %74 {strides = array<i32>} : memref<100x1152xf32, #tpu.memory_space<vmem>>, vector<100x64xf32>,
    %c2_92 = arith.constant 2 : index
    %c0_93 = arith.constant 0 : index
    %76 = vector.load %arg32[%c2_92, %c0_93] : memref<122x128xf32, #tpu.memory_space<vmem>>, vector<100x64xf32>
    %c0_94 = arith.constant 0 : index
    %c128_95 = arith.constant 128 : index
    %77 = vector.load %arg34[%c0_94, %c128_95] : memref<100x1152xf32, #tpu.memory_space<vmem>>, vector<100x64xf32>
    tpu.vector_store %arg34[%c0_94, %c128_95], %76 {strides = array<i32>} : memref<100x1152xf32, #tpu.memory_space<vmem>>, vector<100x64xf32>,
    %c10_96 = arith.constant 10 : index
    %c0_97 = arith.constant 0 : index
    %78 = vector.load %arg32[%c10_96, %c0_97] : memref<122x128xf32, #tpu.memory_space<vmem>>, vector<100x64xf32>
    %c0_98 = arith.constant 0 : index
    %c192 = arith.constant 192 : index
    %79 = vector.load %arg34[%c0_98, %c192] : memref<100x1152xf32, #tpu.memory_space<vmem>>, vector<100x64xf32>
    tpu.vector_store %arg34[%c0_98, %c192], %78 {strides = array<i32>} : memref<100x1152xf32, #tpu.memory_space<vmem>>, vector<100x64xf32>,
    %c11_99 = arith.constant 11 : index
    %c0_100 = arith.constant 0 : index
    %80 = vector.load %arg32[%c11_99, %c0_100] : memref<122x128xf32, #tpu.memory_space<vmem>>, vector<100x64xf32>
    %c0_101 = arith.constant 0 : index
    %c256_102 = arith.constant 256 : index
    %81 = vector.load %arg34[%c0_101, %c256_102] : memref<100x1152xf32, #tpu.memory_space<vmem>>, vector<100x64xf32>
    tpu.vector_store %arg34[%c0_101, %c256_102], %80 {strides = array<i32>} : memref<100x1152xf32, #tpu.memory_space<vmem>>, vector<100x64xf32>,
    %c12_103 = arith.constant 12 : index
    %c0_104 = arith.constant 0 : index
    %82 = vector.load %arg32[%c12_103, %c0_104] : memref<122x128xf32, #tpu.memory_space<vmem>>, vector<100x64xf32>
    %c0_105 = arith.constant 0 : index
    %c320 = arith.constant 320 : index
    %83 = vector.load %arg34[%c0_105, %c320] : memref<100x1152xf32, #tpu.memory_space<vmem>>, vector<100x64xf32>
    tpu.vector_store %arg34[%c0_105, %c320], %82 {strides = array<i32>} : memref<100x1152xf32, #tpu.memory_space<vmem>>, vector<100x64xf32>,
    %c20_106 = arith.constant 20 : index
    %c0_107 = arith.constant 0 : index
    %84 = vector.load %arg32[%c20_106, %c0_107] : memref<122x128xf32, #tpu.memory_space<vmem>>, vector<100x64xf32>
    %c0_108 = arith.constant 0 : index
    %c384_109 = arith.constant 384 : index
    %85 = vector.load %arg34[%c0_108, %c384_109] : memref<100x1152xf32, #tpu.memory_space<vmem>>, vector<100x64xf32>
    tpu.vector_store %arg34[%c0_108, %c384_109], %84 {strides = array<i32>} : memref<100x1152xf32, #tpu.memory_space<vmem>>, vector<100x64xf32>,
    %c21_110 = arith.constant 21 : index
    %c0_111 = arith.constant 0 : index
    %86 = vector.load %arg32[%c21_110, %c0_111] : memref<122x128xf32, #tpu.memory_space<vmem>>, vector<100x64xf32>
    %c0_112 = arith.constant 0 : index
    %c448 = arith.constant 448 : index
    %87 = vector.load %arg34[%c0_112, %c448] : memref<100x1152xf32, #tpu.memory_space<vmem>>, vector<100x64xf32>
    tpu.vector_store %arg34[%c0_112, %c448], %86 {strides = array<i32>} : memref<100x1152xf32, #tpu.memory_space<vmem>>, vector<100x64xf32>,
    %c22_113 = arith.constant 22 : index
    %c0_114 = arith.constant 0 : index
    %88 = vector.load %arg32[%c22_113, %c0_114] : memref<122x128xf32, #tpu.memory_space<vmem>>, vector<100x64xf32>
    %c0_115 = arith.constant 0 : index
    %c512_116 = arith.constant 512 : index
    %89 = vector.load %arg34[%c0_115, %c512_116] : memref<100x1152xf32, #tpu.memory_space<vmem>>, vector<100x64xf32>
    tpu.vector_store %arg34[%c0_115, %c512_116], %88 {strides = array<i32>} : memref<100x1152xf32, #tpu.memory_space<vmem>>, vector<100x64xf32>,
    %c0_117 = arith.constant 0 : index
    %c0_118 = arith.constant 0 : index
    %90 = vector.load %arg34[%c0_117, %c0_118] : memref<100x1152xf32, #tpu.memory_space<vmem>>, vector<100x576xf32>
    %c0_119 = arith.constant 0 : index
    %c0_120 = arith.constant 0 : index
    %91 = vector.load %arg8[%c0_119, %c0_120] : memref<576x32xf32, #tpu.memory_space<vmem>>, vector<576x32xf32>
    %cst_121 = arith.constant dense<0.000000e+00> : vector<100x32xf32>
    %92 = tpu.matmul %90, %91, %cst_121 {dimension_numbers = #tpu.dot_dimension_numbers<[1], [0], [0], [1], [0, 0, 1, 1], [], []>} : vector<100x576xf32>, vector<576x32xf32>, vector<100x32xf32> -> vector<100x32xf32>
    %c0_122 = arith.constant 0 : index
    %c0_123 = arith.constant 0 : index
    %93 = vector.load %arg9[%c0_122, %c0_123] : memref<1x32xf32, #tpu.memory_space<vmem>>, vector<1x32xf32>
    %94 = vector.broadcast %93 : vector<1x32xf32> to vector<100x32xf32>
    %95 = arith.addf %92, %94 : vector<100x32xf32>
    %cst_124 = arith.constant 0.000000e+00 : f32
    %96 = vector.broadcast %cst_124 : f32 to vector<100x32xf32>
    %97 = arith.maximumf %95, %96 : vector<100x32xf32>
    %98 = vector.broadcast %0 : vector<100x1xf32> to vector<100x32xf32>
    %99 = arith.mulf %97, %98 : vector<100x32xf32>
    %c0_125 = arith.constant 0 : index
    %c0_126 = arith.constant 0 : index
    %c0_127 = arith.constant 0 : index
    %100 = vector.load %arg2[%c0_125, %c0_126, %c0_127] : memref<1x122x2xf32, #tpu.memory_space<vmem>>, vector<1x100x2xf32>
    %101 = vector.shape_cast %100 : vector<1x100x2xf32> to vector<100x2xf32>
    %c0_128 = arith.constant 0 : index
    %c0_129 = arith.constant 0 : index
    %102 = vector.load %arg34[%c0_128, %c0_129] : memref<100x1152xf32, #tpu.memory_space<vmem>>, vector<100x2xf32>
    tpu.vector_store %arg34[%c0_128, %c0_129], %101 {strides = array<i32>} : memref<100x1152xf32, #tpu.memory_space<vmem>>, vector<100x2xf32>,
    %c0_130 = arith.constant 0 : index
    %c1_131 = arith.constant 1 : index
    %c0_132 = arith.constant 0 : index
    %103 = vector.load %arg2[%c0_130, %c1_131, %c0_132] : memref<1x122x2xf32, #tpu.memory_space<vmem>>, vector<1x100x2xf32>
    %104 = vector.shape_cast %103 : vector<1x100x2xf32> to vector<100x2xf32>
    %c0_133 = arith.constant 0 : index
    %c2_134 = arith.constant 2 : index
    %105 = vector.load %arg34[%c0_133, %c2_134] : memref<100x1152xf32, #tpu.memory_space<vmem>>, vector<100x2xf32>
    tpu.vector_store %arg34[%c0_133, %c2_134], %104 {strides = array<i32>} : memref<100x1152xf32, #tpu.memory_space<vmem>>, vector<100x2xf32>,
    %c0_135 = arith.constant 0 : index
    %c2_136 = arith.constant 2 : index
    %c0_137 = arith.constant 0 : index
    %106 = vector.load %arg2[%c0_135, %c2_136, %c0_137] : memref<1x122x2xf32, #tpu.memory_space<vmem>>, vector<1x100x2xf32>
    %107 = vector.shape_cast %106 : vector<1x100x2xf32> to vector<100x2xf32>
    %c0_138 = arith.constant 0 : index
    %c4_139 = arith.constant 4 : index
    %108 = vector.load %arg34[%c0_138, %c4_139] : memref<100x1152xf32, #tpu.memory_space<vmem>>, vector<100x2xf32>
    tpu.vector_store %arg34[%c0_138, %c4_139], %107 {strides = array<i32>} : memref<100x1152xf32, #tpu.memory_space<vmem>>, vector<100x2xf32>,
    %c0_140 = arith.constant 0 : index
    %c10_141 = arith.constant 10 : index
    %c0_142 = arith.constant 0 : index
    %109 = vector.load %arg2[%c0_140, %c10_141, %c0_142] : memref<1x122x2xf32, #tpu.memory_space<vmem>>, vector<1x100x2xf32>
    %110 = vector.shape_cast %109 : vector<1x100x2xf32> to vector<100x2xf32>
    %c0_143 = arith.constant 0 : index
    %c6 = arith.constant 6 : index
    %111 = vector.load %arg34[%c0_143, %c6] : memref<100x1152xf32, #tpu.memory_space<vmem>>, vector<100x2xf32>
    tpu.vector_store %arg34[%c0_143, %c6], %110 {strides = array<i32>} : memref<100x1152xf32, #tpu.memory_space<vmem>>, vector<100x2xf32>,
    %c0_144 = arith.constant 0 : index
    %c11_145 = arith.constant 11 : index
    %c0_146 = arith.constant 0 : index
    %112 = vector.load %arg2[%c0_144, %c11_145, %c0_146] : memref<1x122x2xf32, #tpu.memory_space<vmem>>, vector<1x100x2xf32>
    %113 = vector.shape_cast %112 : vector<1x100x2xf32> to vector<100x2xf32>
    %c0_147 = arith.constant 0 : index
    %c8_148 = arith.constant 8 : index
    %114 = vector.load %arg34[%c0_147, %c8_148] : memref<100x1152xf32, #tpu.memory_space<vmem>>, vector<100x2xf32>
    tpu.vector_store %arg34[%c0_147, %c8_148], %113 {strides = array<i32>} : memref<100x1152xf32, #tpu.memory_space<vmem>>, vector<100x2xf32>,
    %c0_149 = arith.constant 0 : index
    %c12_150 = arith.constant 12 : index
    %c0_151 = arith.constant 0 : index
    %115 = vector.load %arg2[%c0_149, %c12_150, %c0_151] : memref<1x122x2xf32, #tpu.memory_space<vmem>>, vector<1x100x2xf32>
    %116 = vector.shape_cast %115 : vector<1x100x2xf32> to vector<100x2xf32>
    %c0_152 = arith.constant 0 : index
    %c10_153 = arith.constant 10 : index
    %117 = vector.load %arg34[%c0_152, %c10_153] : memref<100x1152xf32, #tpu.memory_space<vmem>>, vector<100x2xf32>
    tpu.vector_store %arg34[%c0_152, %c10_153], %116 {strides = array<i32>} : memref<100x1152xf32, #tpu.memory_space<vmem>>, vector<100x2xf32>,
    %c0_154 = arith.constant 0 : index
    %c20_155 = arith.constant 20 : index
    %c0_156 = arith.constant 0 : index
    %118 = vector.load %arg2[%c0_154, %c20_155, %c0_156] : memref<1x122x2xf32, #tpu.memory_space<vmem>>, vector<1x100x2xf32>
    %119 = vector.shape_cast %118 : vector<1x100x2xf32> to vector<100x2xf32>
    %c0_157 = arith.constant 0 : index
    %c12_158 = arith.constant 12 : index
    %120 = vector.load %arg34[%c0_157, %c12_158] : memref<100x1152xf32, #tpu.memory_space<vmem>>, vector<100x2xf32>
    tpu.vector_store %arg34[%c0_157, %c12_158], %119 {strides = array<i32>} : memref<100x1152xf32, #tpu.memory_space<vmem>>, vector<100x2xf32>,
    %c0_159 = arith.constant 0 : index
    %c21_160 = arith.constant 21 : index
    %c0_161 = arith.constant 0 : index
    %121 = vector.load %arg2[%c0_159, %c21_160, %c0_161] : memref<1x122x2xf32, #tpu.memory_space<vmem>>, vector<1x100x2xf32>
    %122 = vector.shape_cast %121 : vector<1x100x2xf32> to vector<100x2xf32>
    %c0_162 = arith.constant 0 : index
    %c14 = arith.constant 14 : index
    %123 = vector.load %arg34[%c0_162, %c14] : memref<100x1152xf32, #tpu.memory_space<vmem>>, vector<100x2xf32>
    tpu.vector_store %arg34[%c0_162, %c14], %122 {strides = array<i32>} : memref<100x1152xf32, #tpu.memory_space<vmem>>, vector<100x2xf32>,
    %c0_163 = arith.constant 0 : index
    %c22_164 = arith.constant 22 : index
    %c0_165 = arith.constant 0 : index
    %124 = vector.load %arg2[%c0_163, %c22_164, %c0_165] : memref<1x122x2xf32, #tpu.memory_space<vmem>>, vector<1x100x2xf32>
    %125 = vector.shape_cast %124 : vector<1x100x2xf32> to vector<100x2xf32>
    %c0_166 = arith.constant 0 : index
    %c16_167 = arith.constant 16 : index
    %126 = vector.load %arg34[%c0_166, %c16_167] : memref<100x1152xf32, #tpu.memory_space<vmem>>, vector<100x2xf32>
    tpu.vector_store %arg34[%c0_166, %c16_167], %125 {strides = array<i32>} : memref<100x1152xf32, #tpu.memory_space<vmem>>, vector<100x2xf32>,
    %c0_168 = arith.constant 0 : index
    %c0_169 = arith.constant 0 : index
    %127 = vector.load %arg34[%c0_168, %c0_169] : memref<100x1152xf32, #tpu.memory_space<vmem>>, vector<100x18xf32>
    %c0_170 = arith.constant 0 : index
    %c0_171 = arith.constant 0 : index
    %128 = vector.load %arg10[%c0_170, %c0_171] : memref<18x8xf32, #tpu.memory_space<vmem>>, vector<18x8xf32>
    %cst_172 = arith.constant dense<0.000000e+00> : vector<100x8xf32>
    %129 = tpu.matmul %127, %128, %cst_172 {dimension_numbers = #tpu.dot_dimension_numbers<[1], [0], [0], [1], [0, 0, 1, 1], [], []>} : vector<100x18xf32>, vector<18x8xf32>, vector<100x8xf32> -> vector<100x8xf32>
    %c0_173 = arith.constant 0 : index
    %c0_174 = arith.constant 0 : index
    %130 = vector.load %arg11[%c0_173, %c0_174] : memref<1x8xf32, #tpu.memory_space<vmem>>, vector<1x8xf32>
    %131 = vector.broadcast %130 : vector<1x8xf32> to vector<100x8xf32>
    %132 = arith.addf %129, %131 : vector<100x8xf32>
    %cst_175 = arith.constant 0.000000e+00 : f32
    %133 = vector.broadcast %cst_175 : f32 to vector<100x8xf32>
    %134 = arith.maximumf %132, %133 : vector<100x8xf32>
    %135 = vector.broadcast %0 : vector<100x1xf32> to vector<100x8xf32>
    %136 = arith.mulf %134, %135 : vector<100x8xf32>
    %c11_176 = arith.constant 11 : index
    %c0_177 = arith.constant 0 : index
    %137 = vector.load %arg33[%c11_176, %c0_177] : memref<122x16xf32, #tpu.memory_space<vmem>>, vector<100x8xf32>
    tpu.vector_store %arg33[%c11_176, %c0_177], %136 {strides = array<i32>} : memref<122x16xf32, #tpu.memory_space<vmem>>, vector<100x8xf32>,
    %c0_178 = arith.constant 0 : index
    %c0_179 = arith.constant 0 : index
    %138 = vector.load %arg33[%c0_178, %c0_179] : memref<122x16xf32, #tpu.memory_space<vmem>>, vector<100x8xf32>
    %c0_180 = arith.constant 0 : index
    %c0_181 = arith.constant 0 : index
    %139 = vector.load %arg34[%c0_180, %c0_181] : memref<100x1152xf32, #tpu.memory_space<vmem>>, vector<100x8xf32>
    tpu.vector_store %arg34[%c0_180, %c0_181], %138 {strides = array<i32>} : memref<100x1152xf32, #tpu.memory_space<vmem>>, vector<100x8xf32>,
    %c1_182 = arith.constant 1 : index
    %c0_183 = arith.constant 0 : index
    %140 = vector.load %arg33[%c1_182, %c0_183] : memref<122x16xf32, #tpu.memory_space<vmem>>, vector<100x8xf32>
    %c0_184 = arith.constant 0 : index
    %c8_185 = arith.constant 8 : index
    %141 = vector.load %arg34[%c0_184, %c8_185] : memref<100x1152xf32, #tpu.memory_space<vmem>>, vector<100x8xf32>
    tpu.vector_store %arg34[%c0_184, %c8_185], %140 {strides = array<i32>} : memref<100x1152xf32, #tpu.memory_space<vmem>>, vector<100x8xf32>,
    %c2_186 = arith.constant 2 : index
    %c0_187 = arith.constant 0 : index
    %142 = vector.load %arg33[%c2_186, %c0_187] : memref<122x16xf32, #tpu.memory_space<vmem>>, vector<100x8xf32>
    %c0_188 = arith.constant 0 : index
    %c16_189 = arith.constant 16 : index
    %143 = vector.load %arg34[%c0_188, %c16_189] : memref<100x1152xf32, #tpu.memory_space<vmem>>, vector<100x8xf32>
    tpu.vector_store %arg34[%c0_188, %c16_189], %142 {strides = array<i32>} : memref<100x1152xf32, #tpu.memory_space<vmem>>, vector<100x8xf32>,
    %c10_190 = arith.constant 10 : index
    %c0_191 = arith.constant 0 : index
    %144 = vector.load %arg33[%c10_190, %c0_191] : memref<122x16xf32, #tpu.memory_space<vmem>>, vector<100x8xf32>
    %c0_192 = arith.constant 0 : index
    %c24_193 = arith.constant 24 : index
    %145 = vector.load %arg34[%c0_192, %c24_193] : memref<100x1152xf32, #tpu.memory_space<vmem>>, vector<100x8xf32>
    tpu.vector_store %arg34[%c0_192, %c24_193], %144 {strides = array<i32>} : memref<100x1152xf32, #tpu.memory_space<vmem>>, vector<100x8xf32>,
    %c11_194 = arith.constant 11 : index
    %c0_195 = arith.constant 0 : index
    %146 = vector.load %arg33[%c11_194, %c0_195] : memref<122x16xf32, #tpu.memory_space<vmem>>, vector<100x8xf32>
    %c0_196 = arith.constant 0 : index
    %c32_197 = arith.constant 32 : index
    %147 = vector.load %arg34[%c0_196, %c32_197] : memref<100x1152xf32, #tpu.memory_space<vmem>>, vector<100x8xf32>
    tpu.vector_store %arg34[%c0_196, %c32_197], %146 {strides = array<i32>} : memref<100x1152xf32, #tpu.memory_space<vmem>>, vector<100x8xf32>,
    %c12_198 = arith.constant 12 : index
    %c0_199 = arith.constant 0 : index
    %148 = vector.load %arg33[%c12_198, %c0_199] : memref<122x16xf32, #tpu.memory_space<vmem>>, vector<100x8xf32>
    %c0_200 = arith.constant 0 : index
    %c40 = arith.constant 40 : index
    %149 = vector.load %arg34[%c0_200, %c40] : memref<100x1152xf32, #tpu.memory_space<vmem>>, vector<100x8xf32>
    tpu.vector_store %arg34[%c0_200, %c40], %148 {strides = array<i32>} : memref<100x1152xf32, #tpu.memory_space<vmem>>, vector<100x8xf32>,
    %c20_201 = arith.constant 20 : index
    %c0_202 = arith.constant 0 : index
    %150 = vector.load %arg33[%c20_201, %c0_202] : memref<122x16xf32, #tpu.memory_space<vmem>>, vector<100x8xf32>
    %c0_203 = arith.constant 0 : index
    %c48 = arith.constant 48 : index
    %151 = vector.load %arg34[%c0_203, %c48] : memref<100x1152xf32, #tpu.memory_space<vmem>>, vector<100x8xf32>
    tpu.vector_store %arg34[%c0_203, %c48], %150 {strides = array<i32>} : memref<100x1152xf32, #tpu.memory_space<vmem>>, vector<100x8xf32>,
    %c21_204 = arith.constant 21 : index
    %c0_205 = arith.constant 0 : index
    %152 = vector.load %arg33[%c21_204, %c0_205] : memref<122x16xf32, #tpu.memory_space<vmem>>, vector<100x8xf32>
    %c0_206 = arith.constant 0 : index
    %c56 = arith.constant 56 : index
    %153 = vector.load %arg34[%c0_206, %c56] : memref<100x1152xf32, #tpu.memory_space<vmem>>, vector<100x8xf32>
    tpu.vector_store %arg34[%c0_206, %c56], %152 {strides = array<i32>} : memref<100x1152xf32, #tpu.memory_space<vmem>>, vector<100x8xf32>,
    %c22_207 = arith.constant 22 : index
    %c0_208 = arith.constant 0 : index
    %154 = vector.load %arg33[%c22_207, %c0_208] : memref<122x16xf32, #tpu.memory_space<vmem>>, vector<100x8xf32>
    %c0_209 = arith.constant 0 : index
    %c64_210 = arith.constant 64 : index
    %155 = vector.load %arg34[%c0_209, %c64_210] : memref<100x1152xf32, #tpu.memory_space<vmem>>, vector<100x8xf32>
    tpu.vector_store %arg34[%c0_209, %c64_210], %154 {strides = array<i32>} : memref<100x1152xf32, #tpu.memory_space<vmem>>, vector<100x8xf32>,
    %c0_211 = arith.constant 0 : index
    %c0_212 = arith.constant 0 : index
    %156 = vector.load %arg34[%c0_211, %c0_212] : memref<100x1152xf32, #tpu.memory_space<vmem>>, vector<100x72xf32>
    %c0_213 = arith.constant 0 : index
    %c0_214 = arith.constant 0 : index
    %157 = vector.load %arg12[%c0_213, %c0_214] : memref<72x16xf32, #tpu.memory_space<vmem>>, vector<72x16xf32>
    %cst_215 = arith.constant dense<0.000000e+00> : vector<100x16xf32>
    %158 = tpu.matmul %156, %157, %cst_215 {dimension_numbers = #tpu.dot_dimension_numbers<[1], [0], [0], [1], [0, 0, 1, 1], [], []>} : vector<100x72xf32>, vector<72x16xf32>, vector<100x16xf32> -> vector<100x16xf32>
    %c0_216 = arith.constant 0 : index
    %c0_217 = arith.constant 0 : index
    %159 = vector.load %arg13[%c0_216, %c0_217] : memref<1x16xf32, #tpu.memory_space<vmem>>, vector<1x16xf32>
    %160 = vector.broadcast %159 : vector<1x16xf32> to vector<100x16xf32>
    %161 = arith.addf %158, %160 : vector<100x16xf32>
    %cst_218 = arith.constant 0.000000e+00 : f32
    %162 = vector.broadcast %cst_218 : f32 to vector<100x16xf32>
    %163 = arith.maximumf %161, %162 : vector<100x16xf32>
    %164 = vector.broadcast %0 : vector<100x1xf32> to vector<100x16xf32>
    %165 = arith.mulf %163, %164 : vector<100x16xf32>
    %c11_219 = arith.constant 11 : index
    %c0_220 = arith.constant 0 : index
    %166 = vector.load %arg33[%c11_219, %c0_220] : memref<122x16xf32, #tpu.memory_space<vmem>>, vector<100x16xf32>
    tpu.vector_store %arg33[%c11_219, %c0_220], %165 {strides = array<i32>} : memref<122x16xf32, #tpu.memory_space<vmem>>, vector<100x16xf32>,
    %c0_221 = arith.constant 0 : index
    %c0_222 = arith.constant 0 : index
    %167 = vector.load %arg33[%c0_221, %c0_222] : memref<122x16xf32, #tpu.memory_space<vmem>>, vector<100x16xf32>
    %c0_223 = arith.constant 0 : index
    %c0_224 = arith.constant 0 : index
    %168 = vector.load %arg34[%c0_223, %c0_224] : memref<100x1152xf32, #tpu.memory_space<vmem>>, vector<100x16xf32>
    tpu.vector_store %arg34[%c0_223, %c0_224], %167 {strides = array<i32>} : memref<100x1152xf32, #tpu.memory_space<vmem>>, vector<100x16xf32>,
    %c1_225 = arith.constant 1 : index
    %c0_226 = arith.constant 0 : index
    %169 = vector.load %arg33[%c1_225, %c0_226] : memref<122x16xf32, #tpu.memory_space<vmem>>, vector<100x16xf32>
    %c0_227 = arith.constant 0 : index
    %c16_228 = arith.constant 16 : index
    %170 = vector.load %arg34[%c0_227, %c16_228] : memref<100x1152xf32, #tpu.memory_space<vmem>>, vector<100x16xf32>
    tpu.vector_store %arg34[%c0_227, %c16_228], %169 {strides = array<i32>} : memref<100x1152xf32, #tpu.memory_space<vmem>>, vector<100x16xf32>,
    %c2_229 = arith.constant 2 : index
    %c0_230 = arith.constant 0 : index
    %171 = vector.load %arg33[%c2_229, %c0_230] : memref<122x16xf32, #tpu.memory_space<vmem>>, vector<100x16xf32>
    %c0_231 = arith.constant 0 : index
    %c32_232 = arith.constant 32 : index
    %172 = vector.load %arg34[%c0_231, %c32_232] : memref<100x1152xf32, #tpu.memory_space<vmem>>, vector<100x16xf32>
    tpu.vector_store %arg34[%c0_231, %c32_232], %171 {strides = array<i32>} : memref<100x1152xf32, #tpu.memory_space<vmem>>, vector<100x16xf32>,
    %c10_233 = arith.constant 10 : index
    %c0_234 = arith.constant 0 : index
    %173 = vector.load %arg33[%c10_233, %c0_234] : memref<122x16xf32, #tpu.memory_space<vmem>>, vector<100x16xf32>
    %c0_235 = arith.constant 0 : index
    %c48_236 = arith.constant 48 : index
    %174 = vector.load %arg34[%c0_235, %c48_236] : memref<100x1152xf32, #tpu.memory_space<vmem>>, vector<100x16xf32>
    tpu.vector_store %arg34[%c0_235, %c48_236], %173 {strides = array<i32>} : memref<100x1152xf32, #tpu.memory_space<vmem>>, vector<100x16xf32>,
    %c11_237 = arith.constant 11 : index
    %c0_238 = arith.constant 0 : index
    %175 = vector.load %arg33[%c11_237, %c0_238] : memref<122x16xf32, #tpu.memory_space<vmem>>, vector<100x16xf32>
    %c0_239 = arith.constant 0 : index
    %c64_240 = arith.constant 64 : index
    %176 = vector.load %arg34[%c0_239, %c64_240] : memref<100x1152xf32, #tpu.memory_space<vmem>>, vector<100x16xf32>
    tpu.vector_store %arg34[%c0_239, %c64_240], %175 {strides = array<i32>} : memref<100x1152xf32, #tpu.memory_space<vmem>>, vector<100x16xf32>,
    %c12_241 = arith.constant 12 : index
    %c0_242 = arith.constant 0 : index
    %177 = vector.load %arg33[%c12_241, %c0_242] : memref<122x16xf32, #tpu.memory_space<vmem>>, vector<100x16xf32>
    %c0_243 = arith.constant 0 : index
    %c80 = arith.constant 80 : index
    %178 = vector.load %arg34[%c0_243, %c80] : memref<100x1152xf32, #tpu.memory_space<vmem>>, vector<100x16xf32>
    tpu.vector_store %arg34[%c0_243, %c80], %177 {strides = array<i32>} : memref<100x1152xf32, #tpu.memory_space<vmem>>, vector<100x16xf32>,
    %c20_244 = arith.constant 20 : index
    %c0_245 = arith.constant 0 : index
    %179 = vector.load %arg33[%c20_244, %c0_245] : memref<122x16xf32, #tpu.memory_space<vmem>>, vector<100x16xf32>
    %c0_246 = arith.constant 0 : index
    %c96 = arith.constant 96 : index
    %180 = vector.load %arg34[%c0_246, %c96] : memref<100x1152xf32, #tpu.memory_space<vmem>>, vector<100x16xf32>
    tpu.vector_store %arg34[%c0_246, %c96], %179 {strides = array<i32>} : memref<100x1152xf32, #tpu.memory_space<vmem>>, vector<100x16xf32>,
    %c21_247 = arith.constant 21 : index
    %c0_248 = arith.constant 0 : index
    %181 = vector.load %arg33[%c21_247, %c0_248] : memref<122x16xf32, #tpu.memory_space<vmem>>, vector<100x16xf32>
    %c0_249 = arith.constant 0 : index
    %c112 = arith.constant 112 : index
    %182 = vector.load %arg34[%c0_249, %c112] : memref<100x1152xf32, #tpu.memory_space<vmem>>, vector<100x16xf32>
    tpu.vector_store %arg34[%c0_249, %c112], %181 {strides = array<i32>} : memref<100x1152xf32, #tpu.memory_space<vmem>>, vector<100x16xf32>,
    %c22_250 = arith.constant 22 : index
    %c0_251 = arith.constant 0 : index
    %183 = vector.load %arg33[%c22_250, %c0_251] : memref<122x16xf32, #tpu.memory_space<vmem>>, vector<100x16xf32>
    %c0_252 = arith.constant 0 : index
    %c128_253 = arith.constant 128 : index
    %184 = vector.load %arg34[%c0_252, %c128_253] : memref<100x1152xf32, #tpu.memory_space<vmem>>, vector<100x16xf32>
    tpu.vector_store %arg34[%c0_252, %c128_253], %183 {strides = array<i32>} : memref<100x1152xf32, #tpu.memory_space<vmem>>, vector<100x16xf32>,
    %c0_254 = arith.constant 0 : index
    %c0_255 = arith.constant 0 : index
    %185 = vector.load %arg34[%c0_254, %c0_255] : memref<100x1152xf32, #tpu.memory_space<vmem>>, vector<100x144xf32>
    %c0_256 = arith.constant 0 : index
    %c0_257 = arith.constant 0 : index
    %186 = vector.load %arg14[%c0_256, %c0_257] : memref<144x32xf32, #tpu.memory_space<vmem>>, vector<144x32xf32>
    %cst_258 = arith.constant dense<0.000000e+00> : vector<100x32xf32>
    %187 = tpu.matmul %185, %186, %cst_258 {dimension_numbers = #tpu.dot_dimension_numbers<[1], [0], [0], [1], [0, 0, 1, 1], [], []>} : vector<100x144xf32>, vector<144x32xf32>, vector<100x32xf32> -> vector<100x32xf32>
    %c0_259 = arith.constant 0 : index
    %c0_260 = arith.constant 0 : index
    %188 = vector.load %arg15[%c0_259, %c0_260] : memref<1x32xf32, #tpu.memory_space<vmem>>, vector<1x32xf32>
    %189 = vector.broadcast %188 : vector<1x32xf32> to vector<100x32xf32>
    %190 = arith.addf %187, %189 : vector<100x32xf32>
    %cst_261 = arith.constant 0.000000e+00 : f32
    %191 = vector.broadcast %cst_261 : f32 to vector<100x32xf32>
    %192 = arith.maximumf %190, %191 : vector<100x32xf32>
    %193 = vector.broadcast %0 : vector<100x1xf32> to vector<100x32xf32>
    %194 = arith.mulf %192, %193 : vector<100x32xf32>
    %c0_262 = arith.constant 0 : index
    %c0_263 = arith.constant 0 : index
    %195 = vector.load %arg16[%c0_262, %c0_263] : memref<32x16xf32, #tpu.memory_space<vmem>>, vector<32x16xf32>
    %cst_264 = arith.constant dense<0.000000e+00> : vector<100x16xf32>
    %196 = tpu.matmul %99, %195, %cst_264 {dimension_numbers = #tpu.dot_dimension_numbers<[1], [0], [0], [1], [0, 0, 1, 1], [], []>} : vector<100x32xf32>, vector<32x16xf32>, vector<100x16xf32> -> vector<100x16xf32>
    %c0_265 = arith.constant 0 : index
    %c0_266 = arith.constant 0 : index
    %197 = vector.load %arg17[%c0_265, %c0_266] : memref<1x16xf32, #tpu.memory_space<vmem>>, vector<1x16xf32>
    %198 = vector.broadcast %197 : vector<1x16xf32> to vector<100x16xf32>
    %199 = arith.addf %196, %198 : vector<100x16xf32>
    %200 = arith.negf %199 : vector<100x16xf32>
    %201 = math.exp %200 : vector<100x16xf32>
    %cst_267 = arith.constant 1.000000e+00 : f32
    %202 = vector.broadcast %cst_267 : f32 to vector<100x16xf32>
    %203 = arith.addf %202, %201 : vector<100x16xf32>
    %204 = arith.divf %202, %203 : vector<100x16xf32>
    %c0_268 = arith.constant 0 : index
    %c0_269 = arith.constant 0 : index
    %205 = vector.load %arg18[%c0_268, %c0_269] : memref<32x16xf32, #tpu.memory_space<vmem>>, vector<32x16xf32>
    %cst_270 = arith.constant dense<0.000000e+00> : vector<100x16xf32>
    %206 = tpu.matmul %194, %205, %cst_270 {dimension_numbers = #tpu.dot_dimension_numbers<[1], [0], [0], [1], [0, 0, 1, 1], [], []>} : vector<100x32xf32>, vector<32x16xf32>, vector<100x16xf32> -> vector<100x16xf32>
    %c0_271 = arith.constant 0 : index
    %c0_272 = arith.constant 0 : index
    %207 = vector.load %arg19[%c0_271, %c0_272] : memref<1x16xf32, #tpu.memory_space<vmem>>, vector<1x16xf32>
    %208 = vector.broadcast %207 : vector<1x16xf32> to vector<100x16xf32>
    %209 = arith.addf %206, %208 : vector<100x16xf32>
    %210 = arith.negf %209 : vector<100x16xf32>
    %211 = math.exp %210 : vector<100x16xf32>
    %cst_273 = arith.constant 1.000000e+00 : f32
    %212 = vector.broadcast %cst_273 : f32 to vector<100x16xf32>
    %213 = arith.addf %212, %211 : vector<100x16xf32>
    %214 = arith.divf %212, %213 : vector<100x16xf32>
    %c0_274 = arith.constant 0 : index
    %c0_275 = arith.constant 0 : index
    %215 = vector.load %arg20[%c0_274, %c0_275] : memref<100x1xf32, #tpu.memory_space<vmem>>, vector<100x1xf32>
    %216 = vector.broadcast %215 : vector<100x1xf32> to vector<100x16xf32>
    %217 = arith.mulf %214, %216 : vector<100x16xf32>
    %cst_276 = arith.constant dense<0.000000e+00> : vector<16xf32>
    %218 = vector.multi_reduction <add>, %217, %cst_276 [0] : vector<100x16xf32> to vector<16xf32>
    %219 = vector.shape_cast %218 : vector<16xf32> to vector<1x16xf32>
    %220 = vector.broadcast %219 : vector<1x16xf32> to vector<100x16xf32>
    %221 = arith.mulf %204, %220 : vector<100x16xf32>
    %cst_277 = arith.constant dense<0.000000e+00> : vector<100xf32>
    %222 = vector.multi_reduction <add>, %221, %cst_277 [1] : vector<100x16xf32> to vector<100xf32>
    %223 = vector.shape_cast %222 : vector<100xf32> to vector<100x1xf32>
    %224 = vector.broadcast %223 : vector<100x1xf32> to vector<100x32xf32>
    %225 = arith.mulf %99, %224 : vector<100x32xf32>
    %c0_278 = arith.constant 0 : index
    %c0_279 = arith.constant 0 : index
    %226 = vector.load %arg21[%c0_278, %c0_279] : memref<32x32xf32, #tpu.memory_space<vmem>>, vector<32x32xf32>
    %cst_280 = arith.constant dense<0.000000e+00> : vector<100x32xf32>
    %227 = tpu.matmul %194, %226, %cst_280 {dimension_numbers = #tpu.dot_dimension_numbers<[1], [0], [0], [1], [0, 0, 1, 1], [], []>} : vector<100x32xf32>, vector<32x32xf32>, vector<100x32xf32> -> vector<100x32xf32>
    %c0_281 = arith.constant 0 : index
    %c0_282 = arith.constant 0 : index
    %228 = vector.load %arg22[%c0_281, %c0_282] : memref<1x32xf32, #tpu.memory_space<vmem>>, vector<1x32xf32>
    %229 = vector.broadcast %228 : vector<1x32xf32> to vector<100x32xf32>
    %230 = arith.addf %227, %229 : vector<100x32xf32>
    %231 = arith.negf %230 : vector<100x32xf32>
    %232 = math.exp %231 : vector<100x32xf32>
    %cst_283 = arith.constant 1.000000e+00 : f32
    %233 = vector.broadcast %cst_283 : f32 to vector<100x32xf32>
    %234 = arith.addf %233, %232 : vector<100x32xf32>
    %235 = arith.divf %233, %234 : vector<100x32xf32>
    %c0_284 = arith.constant 0 : index
    %c0_285 = arith.constant 0 : index
    %236 = vector.load %arg23[%c0_284, %c0_285] : memref<32x32xf32, #tpu.memory_space<vmem>>, vector<32x32xf32>
    %cst_286 = arith.constant dense<0.000000e+00> : vector<100x32xf32>
    %237 = tpu.matmul %99, %236, %cst_286 {dimension_numbers = #tpu.dot_dimension_numbers<[1], [0], [0], [1], [0, 0, 1, 1], [], []>} : vector<100x32xf32>, vector<32x32xf32>, vector<100x32xf32> -> vector<100x32xf32>
    %c0_287 = arith.constant 0 : index
    %c0_288 = arith.constant 0 : index
    %238 = vector.load %arg24[%c0_287, %c0_288] : memref<1x32xf32, #tpu.memory_space<vmem>>, vector<1x32xf32>
    %239 = vector.broadcast %238 : vector<1x32xf32> to vector<100x32xf32>
    %240 = arith.addf %237, %239 : vector<100x32xf32>
    %241 = arith.negf %240 : vector<100x32xf32>
    %242 = math.exp %241 : vector<100x32xf32>
    %cst_289 = arith.constant 1.000000e+00 : f32
    %243 = vector.broadcast %cst_289 : f32 to vector<100x32xf32>
    %244 = arith.addf %243, %242 : vector<100x32xf32>
    %245 = arith.divf %243, %244 : vector<100x32xf32>
    %c0_290 = arith.constant 0 : index
    %c0_291 = arith.constant 0 : index
    %246 = vector.load %arg25[%c0_290, %c0_291] : memref<1x32xf32, #tpu.memory_space<vmem>>, vector<1x32xf32>
    %247 = vector.broadcast %246 : vector<1x32xf32> to vector<100x32xf32>
    %248 = arith.mulf %245, %247 : vector<100x32xf32>
    %cst_292 = arith.constant dense<0.000000e+00> : vector<100xf32>
    %249 = vector.multi_reduction <add>, %248, %cst_292 [1] : vector<100x32xf32> to vector<100xf32>
    %250 = vector.shape_cast %249 : vector<100xf32> to vector<100x1xf32>
    %251 = arith.mulf %250, %0 : vector<100x1xf32>
    %252 = vector.broadcast %251 : vector<100x1xf32> to vector<100x32xf32>
    %253 = arith.mulf %235, %252 : vector<100x32xf32>
    %cst_293 = arith.constant dense<0.000000e+00> : vector<32xf32>
    %254 = vector.multi_reduction <add>, %253, %cst_293 [0] : vector<100x32xf32> to vector<32xf32>
    %255 = vector.shape_cast %254 : vector<32xf32> to vector<1x32xf32>
    %256 = vector.broadcast %255 : vector<1x32xf32> to vector<100x32xf32>
    %257 = arith.mulf %194, %256 : vector<100x32xf32>
    %c0_294 = arith.constant 0 : index
    %c0_295 = arith.constant 0 : index
    %258 = vector.load %arg26[%c0_294, %c0_295] : memref<32x32xf32, #tpu.memory_space<vmem>>, vector<32x32xf32>
    %cst_296 = arith.constant dense<0.000000e+00> : vector<100x32xf32>
    %259 = tpu.matmul %225, %258, %cst_296 {dimension_numbers = #tpu.dot_dimension_numbers<[1], [0], [0], [1], [0, 0, 1, 1], [], []>} : vector<100x32xf32>, vector<32x32xf32>, vector<100x32xf32> -> vector<100x32xf32>
    %c0_297 = arith.constant 0 : index
    %c0_298 = arith.constant 0 : index
    %260 = vector.load %arg27[%c0_297, %c0_298] : memref<32x32xf32, #tpu.memory_space<vmem>>, vector<32x32xf32>
    %cst_299 = arith.constant dense<0.000000e+00> : vector<100x32xf32>
    %261 = tpu.matmul %257, %260, %cst_299 {dimension_numbers = #tpu.dot_dimension_numbers<[1], [0], [0], [1], [0, 0, 1, 1], [], []>} : vector<100x32xf32>, vector<32x32xf32>, vector<100x32xf32> -> vector<100x32xf32>
    %262 = arith.addf %259, %261 : vector<100x32xf32>
    %c0_300 = arith.constant 0 : index
    %c0_301 = arith.constant 0 : index
    %263 = vector.load %arg28[%c0_300, %c0_301] : memref<1x32xf32, #tpu.memory_space<vmem>>, vector<1x32xf32>
    %264 = vector.broadcast %263 : vector<1x32xf32> to vector<100x32xf32>
    %265 = arith.addf %262, %264 : vector<100x32xf32>
    %cst_302 = arith.constant 0.000000e+00 : f32
    %266 = vector.broadcast %cst_302 : f32 to vector<100x32xf32>
    %267 = arith.maximumf %265, %266 : vector<100x32xf32>
    %268 = vector.broadcast %0 : vector<100x1xf32> to vector<100x32xf32>
    %269 = arith.mulf %267, %268 : vector<100x32xf32>
    %cst_303 = arith.constant dense<0.000000e+00> : vector<32xf32>
    %270 = vector.multi_reduction <add>, %269, %cst_303 [0] : vector<100x32xf32> to vector<32xf32>
    %271 = vector.shape_cast %270 : vector<32xf32> to vector<1x32xf32>
    %cst_304 = arith.constant 1.562500e-02 : f32
    %272 = vector.broadcast %cst_304 : f32 to vector<1x32xf32>
    %273 = arith.mulf %271, %272 : vector<1x32xf32>
    %c0_305 = arith.constant 0 : index
    %c0_306 = arith.constant 0 : index
    %274 = vector.load %arg29[%c0_305, %c0_306] : memref<32x6xf32, #tpu.memory_space<vmem>>, vector<32x6xf32>
    %cst_307 = arith.constant dense<0.000000e+00> : vector<1x6xf32>
    %275 = tpu.matmul %273, %274, %cst_307 {dimension_numbers = #tpu.dot_dimension_numbers<[1], [0], [0], [1], [0, 0, 1, 1], [], []>} : vector<1x32xf32>, vector<32x6xf32>, vector<1x6xf32> -> vector<1x6xf32>
    %c0_308 = arith.constant 0 : index
    %c0_309 = arith.constant 0 : index
    %276 = vector.load %arg30[%c0_308, %c0_309] : memref<1x6xf32, #tpu.memory_space<vmem>>, vector<1x6xf32>
    %277 = arith.addf %275, %276 : vector<1x6xf32>
    %c0_310 = arith.constant 0 : index
    %c0_311 = arith.constant 0 : index
    %c0_312 = arith.constant 0 : index
    %278 = vector.load %arg31[%c0_310, %c0_311, %c0_312] : memref<1x1x6xf32, #tpu.memory_space<vmem>>, vector<1x1x6xf32>
    %279 = vector.shape_cast %278 : vector<1x1x6xf32> to vector<1x6xf32>
    %280 = vector.shape_cast %277 : vector<1x6xf32> to vector<1x1x6xf32>
    tpu.vector_store %arg31[%c0_310, %c0_311, %c0_312], %280 {strides = array<i32>} : memref<1x1x6xf32, #tpu.memory_space<vmem>>, vector<1x1x6xf32>,
    return
  }
  func.func @transform_0(%arg0: i32) -> (i32, i32, i32) {
    %c0_i32 = arith.constant 0 : i32
    %c0_i32_0 = arith.constant 0 : i32
    %c0_i32_1 = arith.constant 0 : i32
    return %arg0, %c0_i32, %c0_i32_0 : i32, i32, i32
  }
  func.func @transform_1(%arg0: i32) -> (i32, i32, i32) {
    %c0_i32 = arith.constant 0 : i32
    %c0_i32_0 = arith.constant 0 : i32
    %c0_i32_1 = arith.constant 0 : i32
    return %arg0, %c0_i32, %c0_i32_0 : i32, i32, i32
  }
  func.func @transform_2(%arg0: i32) -> (i32, i32) {
    %c0_i32 = arith.constant 0 : i32
    %c0_i32_0 = arith.constant 0 : i32
    %c0_i32_1 = arith.constant 0 : i32
    return %c0_i32, %c0_i32_0 : i32, i32
  }
  func.func @transform_3(%arg0: i32) -> (i32, i32) {
    %c0_i32 = arith.constant 0 : i32
    %c0_i32_0 = arith.constant 0 : i32
    %c0_i32_1 = arith.constant 0 : i32
    return %c0_i32, %c0_i32_0 : i32, i32
  }
  func.func @transform_4(%arg0: i32) -> (i32, i32) {
    %c0_i32 = arith.constant 0 : i32
    %c0_i32_0 = arith.constant 0 : i32
    %c0_i32_1 = arith.constant 0 : i32
    return %c0_i32, %c0_i32_0 : i32, i32
  }
  func.func @transform_5(%arg0: i32) -> (i32, i32) {
    %c0_i32 = arith.constant 0 : i32
    %c0_i32_0 = arith.constant 0 : i32
    %c0_i32_1 = arith.constant 0 : i32
    return %c0_i32, %c0_i32_0 : i32, i32
  }
  func.func @transform_6(%arg0: i32) -> (i32, i32) {
    %c0_i32 = arith.constant 0 : i32
    %c0_i32_0 = arith.constant 0 : i32
    %c0_i32_1 = arith.constant 0 : i32
    return %c0_i32, %c0_i32_0 : i32, i32
  }
  func.func @transform_7(%arg0: i32) -> (i32, i32) {
    %c0_i32 = arith.constant 0 : i32
    %c0_i32_0 = arith.constant 0 : i32
    %c0_i32_1 = arith.constant 0 : i32
    return %c0_i32, %c0_i32_0 : i32, i32
  }
  func.func @transform_8(%arg0: i32) -> (i32, i32) {
    %c0_i32 = arith.constant 0 : i32
    %c0_i32_0 = arith.constant 0 : i32
    %c0_i32_1 = arith.constant 0 : i32
    return %c0_i32, %c0_i32_0 : i32, i32
  }
  func.func @transform_9(%arg0: i32) -> (i32, i32) {
    %c0_i32 = arith.constant 0 : i32
    %c0_i32_0 = arith.constant 0 : i32
    %c0_i32_1 = arith.constant 0 : i32
    return %c0_i32, %c0_i32_0 : i32, i32
  }
  func.func @transform_10(%arg0: i32) -> (i32, i32) {
    %c0_i32 = arith.constant 0 : i32
    %c0_i32_0 = arith.constant 0 : i32
    %c0_i32_1 = arith.constant 0 : i32
    return %c0_i32, %c0_i32_0 : i32, i32
  }
  func.func @transform_11(%arg0: i32) -> (i32, i32) {
    %c0_i32 = arith.constant 0 : i32
    %c0_i32_0 = arith.constant 0 : i32
    %c0_i32_1 = arith.constant 0 : i32
    return %c0_i32, %c0_i32_0 : i32, i32
  }
  func.func @transform_12(%arg0: i32) -> (i32, i32) {
    %c0_i32 = arith.constant 0 : i32
    %c0_i32_0 = arith.constant 0 : i32
    %c0_i32_1 = arith.constant 0 : i32
    return %c0_i32, %c0_i32_0 : i32, i32
  }
  func.func @transform_13(%arg0: i32) -> (i32, i32) {
    %c0_i32 = arith.constant 0 : i32
    %c0_i32_0 = arith.constant 0 : i32
    %c0_i32_1 = arith.constant 0 : i32
    return %c0_i32, %c0_i32_0 : i32, i32
  }
  func.func @transform_14(%arg0: i32) -> (i32, i32) {
    %c0_i32 = arith.constant 0 : i32
    %c0_i32_0 = arith.constant 0 : i32
    %c0_i32_1 = arith.constant 0 : i32
    return %c0_i32, %c0_i32_0 : i32, i32
  }
  func.func @transform_15(%arg0: i32) -> (i32, i32) {
    %c0_i32 = arith.constant 0 : i32
    %c0_i32_0 = arith.constant 0 : i32
    %c0_i32_1 = arith.constant 0 : i32
    return %c0_i32, %c0_i32_0 : i32, i32
  }
  func.func @transform_16(%arg0: i32) -> (i32, i32) {
    %c0_i32 = arith.constant 0 : i32
    %c0_i32_0 = arith.constant 0 : i32
    %c0_i32_1 = arith.constant 0 : i32
    return %c0_i32, %c0_i32_0 : i32, i32
  }
  func.func @transform_17(%arg0: i32) -> (i32, i32) {
    %c0_i32 = arith.constant 0 : i32
    %c0_i32_0 = arith.constant 0 : i32
    %c0_i32_1 = arith.constant 0 : i32
    return %c0_i32, %c0_i32_0 : i32, i32
  }
  func.func @transform_18(%arg0: i32) -> (i32, i32) {
    %c0_i32 = arith.constant 0 : i32
    %c0_i32_0 = arith.constant 0 : i32
    %c0_i32_1 = arith.constant 0 : i32
    return %c0_i32, %c0_i32_0 : i32, i32
  }
  func.func @transform_19(%arg0: i32) -> (i32, i32) {
    %c0_i32 = arith.constant 0 : i32
    %c0_i32_0 = arith.constant 0 : i32
    %c0_i32_1 = arith.constant 0 : i32
    return %c0_i32, %c0_i32_0 : i32, i32
  }
  func.func @transform_20(%arg0: i32) -> (i32, i32) {
    %c0_i32 = arith.constant 0 : i32
    %c0_i32_0 = arith.constant 0 : i32
    %c0_i32_1 = arith.constant 0 : i32
    return %c0_i32, %c0_i32_0 : i32, i32
  }
  func.func @transform_21(%arg0: i32) -> (i32, i32) {
    %c0_i32 = arith.constant 0 : i32
    %c0_i32_0 = arith.constant 0 : i32
    %c0_i32_1 = arith.constant 0 : i32
    return %c0_i32, %c0_i32_0 : i32, i32
  }
  func.func @transform_22(%arg0: i32) -> (i32, i32) {
    %c0_i32 = arith.constant 0 : i32
    %c0_i32_0 = arith.constant 0 : i32
    %c0_i32_1 = arith.constant 0 : i32
    return %c0_i32, %c0_i32_0 : i32, i32
  }
  func.func @transform_23(%arg0: i32) -> (i32, i32) {
    %c0_i32 = arith.constant 0 : i32
    %c0_i32_0 = arith.constant 0 : i32
    %c0_i32_1 = arith.constant 0 : i32
    return %c0_i32, %c0_i32_0 : i32, i32
  }
  func.func @transform_24(%arg0: i32) -> (i32, i32) {
    %c0_i32 = arith.constant 0 : i32
    %c0_i32_0 = arith.constant 0 : i32
    %c0_i32_1 = arith.constant 0 : i32
    return %c0_i32, %c0_i32_0 : i32, i32
  }
  func.func @transform_25(%arg0: i32) -> (i32, i32) {
    %c0_i32 = arith.constant 0 : i32
    %c0_i32_0 = arith.constant 0 : i32
    %c0_i32_1 = arith.constant 0 : i32
    return %c0_i32, %c0_i32_0 : i32, i32
  }
  func.func @transform_26(%arg0: i32) -> (i32, i32) {
    %c0_i32 = arith.constant 0 : i32
    %c0_i32_0 = arith.constant 0 : i32
    %c0_i32_1 = arith.constant 0 : i32
    return %c0_i32, %c0_i32_0 : i32, i32
  }
  func.func @transform_27(%arg0: i32) -> (i32, i32) {
    %c0_i32 = arith.constant 0 : i32
    %c0_i32_0 = arith.constant 0 : i32
    %c0_i32_1 = arith.constant 0 : i32
    return %c0_i32, %c0_i32_0 : i32, i32
  }
  func.func @transform_28(%arg0: i32) -> (i32, i32) {
    %c0_i32 = arith.constant 0 : i32
    %c0_i32_0 = arith.constant 0 : i32
    %c0_i32_1 = arith.constant 0 : i32
    return %c0_i32, %c0_i32_0 : i32, i32
  }
  func.func @transform_29(%arg0: i32) -> (i32, i32) {
    %c0_i32 = arith.constant 0 : i32
    %c0_i32_0 = arith.constant 0 : i32
    %c0_i32_1 = arith.constant 0 : i32
    return %c0_i32, %c0_i32_0 : i32, i32
  }
  func.func @transform_30(%arg0: i32) -> (i32, i32, i32) {
    %c0_i32 = arith.constant 0 : i32
    %c0_i32_0 = arith.constant 0 : i32
    %c0_i32_1 = arith.constant 0 : i32
    return %arg0, %c0_i32, %c0_i32_0 : i32, i32, i32
  }
}

</mosaic_0001>

<bundles_post_ra>
// kernel: s2enet_forward.1
= control target key start
LH: loop header
LB: loop body
LE: loop exit
PB: predicated region body
PF: predicated region fallthrough
CT: control target
= control target key end

     0   :  { %s10984_s6 = smov 1   ;;  %s10985_s10 = smov 2   ;;  %s14752_s0 = inlined_call_operand.smem [shape: u32[31], index: -1, kind: input, shape index: {}] }
   0x1   :  { %s11046_s5 = sld [smem:[%s14752_s0]]   ;;  %s10986_s14 = smov 3  }
   0x2   :  { %s11051_s9 = sld [smem:[%s14752_s0 + %s10984_s6]]   ;;  %s10987_s18 = smov 4  }
   0x3   :  { %s11056_s13 = sld [smem:[%s14752_s0 + %s10985_s10]]   ;;  %s10988_s22 = smov 5  }
   0x4   :  { %s11061_s17 = sld [smem:[%s14752_s0 + %s10986_s14]]   ;;  %s10989_s26 = smov 6  }
   0x5   :  { %s11066_s21 = sld [smem:[%s14752_s0 + %s10987_s18]]   ;;  %s10990_s30 = smov 7  }
   0x6   :  { %s11071_s25 = sld [smem:[%s14752_s0 + %s10988_s22]]   ;;  %s10991_s4 = smov 8  }
   0x7   :  { %14850 = sst [smem:[#allocation8_spill]] %s11046_s5  ;;  %s10992_s10 = smov 9  }
   0x8   :  { %14851 = sst [smem:[#allocation9_spill]] %s11051_s9  ;;  %s10993_s15 = smov 10  }
   0x9   :  { %s11076_s29 = sld [smem:[%s14752_s0 + %s10989_s26]]   ;;  %s10994_s20 = smov 11  }
   0xa   :  { %14852 = sst [smem:[#allocation10_spill]] %s11061_s17  ;;  %s10995_s26 = smov 12  }
   0xb   :  { %14853 = sst [smem:[#allocation11_spill]] %s11066_s21  ;;  %s10996_s1 = smov 13  }
   0xc   :  { %s11081_s3 = sld [smem:[%s14752_s0 + %s10990_s30]]   ;;  %s10997_s7 = smov 14  }
   0xd   :  { %s11086_s8 = sld [smem:[%s14752_s0 + %s10991_s4]]   ;;  %s10999_s22 = smov 16  }
   0xe   :  { %s11091_s14 = sld [smem:[%s14752_s0 + %s10992_s10]]   ;;  %s11000_s28 = smov 17  }
   0xf   :  { %s11096_s19 = sld [smem:[%s14752_s0 + %s10993_s15]]   ;;  %s10998_s15 = smov 15  }
  0x10   :  { %s11101_s24 = sld [smem:[%s14752_s0 + %s10994_s20]]  }
  0x11   :  { %s11106_s30 = sld [smem:[%s14752_s0 + %s10995_s26]]  }
  0x12   :  { %14854 = sst [smem:[#allocation12_spill]] %s11081_s3 }
  0x13   :  { %s11111_s6 = sld [smem:[%s14752_s0 + %s10996_s1]]  }
  0x14   :  { %s11116_s12 = sld [smem:[%s14752_s0 + %s10997_s7]]   ;;  %s11001_s7 = smov 18  }
  0x15   :  { %s11121_s20 = sld [smem:[%s14752_s0 + %s10998_s15]]   ;;  %s11002_s15 = smov 19  }
  0x16   :  { %s11126_s27 = sld [smem:[%s14752_s0 + %s10999_s22]]   ;;  %s11003_s22 = smov 20  }
  0x17   :  { %s11131_s4 = sld [smem:[%s14752_s0 + %s11000_s28]]   ;;  %s11004_s28 = smov 21  }
  0x19   :  { %14855 = sst [smem:[#allocation13_spill]] %s11111_s6 }
  0x1a   :  { %14856 = sst [smem:[#allocation14_spill]] %s11116_s12 }
  0x1b   :  { %14857 = sst [smem:[#allocation15_spill]] %s11121_s20 }
  0x1c   :  { %14858 = sst [smem:[#allocation16_spill]] %s11126_s27 }
  0x1d   :  { %14859 = sst [smem:[#allocation17_spill]] %s11131_s4 }
  0x1e   :  { %s11136_s12 = sld [smem:[%s14752_s0 + %s11001_s7]]   ;;  %s11005_s7 = smov 22  }
  0x1f   :  { %s11141_s20 = sld [smem:[%s14752_s0 + %s11002_s15]]   ;;  %s11006_s15 = smov 23  }
  0x20   :  { %s11146_s27 = sld [smem:[%s14752_s0 + %s11003_s22]]   ;;  %s11007_s22 = smov 24  }
  0x21   :  { %s11151_s4 = sld [smem:[%s14752_s0 + %s11004_s28]]   ;;  %s11008_s28 = smov 25  }
  0x24   :  { %14860 = sst [smem:[#allocation18_spill]] %s11136_s12 }
  0x25   :  { %14861 = sst [smem:[#allocation19_spill]] %s11141_s20 }
  0x26   :  { %14862 = sst [smem:[#allocation20_spill]] %s11146_s27 }
  0x27   :  { %14863 = sst [smem:[#allocation21_spill]] %s11151_s4 }
  0x28   :  { %s11156_s12 = sld [smem:[%s14752_s0 + %s11005_s7]]   ;;  %s11009_s7 = smov 26  }
  0x29   :  { %s11161_s20 = sld [smem:[%s14752_s0 + %s11006_s15]]   ;;  %s11010_s15 = smov 27  }
  0x2a   :  { %s11166_s27 = sld [smem:[%s14752_s0 + %s11007_s22]]   ;;  %s11011_s22 = smov 28  }
  0x2b   :  { %s11171_s4 = sld [smem:[%s14752_s0 + %s11008_s28]]   ;;  %s11012_s28 = smov 29  }
  0x2e   :  { %14864 = sst [smem:[#allocation22_spill]] %s11156_s12 }
  0x2f   :  { %14865 = sst [smem:[#allocation23_spill]] %s11161_s20 }
  0x30   :  { %14866 = sst [smem:[#allocation24_spill]] %s11166_s27 }
  0x31   :  { %14867 = sst [smem:[#allocation25_spill]] %s11171_s4 }
  0x32   :  { %s11176_s12 = sld [smem:[%s14752_s0 + %s11009_s7]]   ;;  %s11013_s7 = smov 30  }
  0x33   :  { %s11181_s20 = sld [smem:[%s14752_s0 + %s11010_s15]]  }
  0x34   :  { %s11186_s27 = sld [smem:[%s14752_s0 + %s11011_s22]]  }
  0x35   :  { %s11191_s4 = sld [smem:[%s14752_s0 + %s11012_s28]]  }
  0x38   :  { %14868 = sst [smem:[#allocation26_spill]] %s11176_s12 }
  0x39   :  { %s11196_s12 = sld [smem:[%s14752_s0 + %s11013_s7]]  }
  0x3b   :  { %14869 = sst [smem:[#allocation27_spill]] %s11191_s4 }
  0x3c   :  { %66 = vsyncpa [#allocation6], 0 }
  0x3d   :  { %68 = vsyncpa [#allocation6 + $0x1], 0  ;;  %s11198_s15 = smov 0   ;;  %s11200_s16 = smov 0  }
  0x3e   :  { %s11202_s18 = smov 0   ;;  %s11204_s22 = smov 0  }
  0x3f LB: > { %s14870_s6 = sld [smem:[#allocation13_spill]]  ;;  %s14871_s3 = sld [smem:[#allocation12_spill]]  ;;  %s10978_s18 = sphi %s11202_s18, %s15053_s18   ;;  %s10974_s16 = sphi %s11200_s16, %s15052_s16   ;;  %s10970_s15 = sphi %s11198_s15, %s15051_s15   ;;  %s10982_s22 = sphi %s11204_s22, %s15048_s22  }
  0x40   : > { %s14872_s17 = sld [smem:[#allocation10_spill]]  ;;  %14873 = sst [smem:[#allocation28_spill]] %s10978_s18 }
  0x41   : > { %s11219_s0 = sadd.s32 4294967295, %s10982_s22   ;;  %s8822_s23 = sadd.s32 4294967294, %s10982_s22  }
  0x42   : > { %s11223_s26 = sadd.s32 1, %s10982_s22   ;;  %s721_s28 = sadd.s32 1, %s10978_s18 }
  0x43   : > { %14874 = sst [smem:[#allocation29_spill]] %s11223_s26  ;;  %s718_s1 = ssub.s32 %s10982_s22, %s11223_s26 }
  0x44   : > { %p731_p0 = scmp.ne.s32.totalorder %s10978_s18, %s10974_s16  ;;  %p719_p1 = scmp.eq.s32.totalorder %s718_s1, 0 }
  0x45   : > { %p732_p2 = scmp.eq.s32.totalorder %s11219_s0, 1  ;;  %p737_p3 = scmp.ne.s32.totalorder %s10974_s16, %s10970_s15 }
  0x46   : > { %p738_p4 = scmp.eq.s32.totalorder %s8822_s23, 1  ;;  %p8825_p7 = scmp.ge.s32.totalorder %s10982_s22, 1 }
  0x47   : > { %s11234_s2 = scalar_select %p719_p1, %s10978_s18, %s721_s28  }
  0x48   : > { %p11236_p5 = por %p732_p2, %p731_p0  ;;  %p11240_p6 = por %p738_p4, %p737_p3 }
  0x49   : > { %14875 = sst [smem:[#allocation30_spill]] %s11234_s2  ;;  %p856_p8 = scmp.lt.s32.totalorder %s10982_s22, 3 }
  0x4a   : > { %s14877_s10 = scalar_select %p11240_p6, 1, 0 }
  0x4b   : > { %p857_p9 = pnand %p8825_p7, %p856_p8 }
  0x4c   : > { %14878 = sst [smem:[#allocation31_spill]] %s14877_s10 }
  0x4d   : > { %860 = sbr.rel (%p857_p9) target bundleno = 3477 (0xd95), region = 140 }
  0x54   : > { %s14879_s5 = sld [smem:[#allocation8_spill]]  ;;  %p938_p10 = scmp.lt.s32.totalorder %s11219_s0, 1  ;;  %v14782_v6 = vmov 0.0|0.0   ;;  %vm1008_vm0 = vcmask 31744   ;;  %v11021_v10 = vmov 0.0   ;;  %vm11022_vm1 = vmmov 0  }
  0x55   : > { %s14761_s1 = smov 12   ;;  %s14768_s2 = smov 4   ;;  %10254 = vmatprep.subr.bf16.mxu0 %v14782_v6  ;;  %961 = vst [vmem:[#allocation2] sm:$0xff] %v11021_v10  ;;  %962 = vst [vmem:[#allocation2 + $0x8] sm:$0xff] %v11021_v10  ;;  %9694 = vmatprep.mubr.msk.f32.mxu0 %vm11022_vm1, %v11021_v10  ;;  %v1676_v15 = vld [vmem:[%s14872_s17] sm:$0xff]  ;;  %v1677_v16 = vld [vmem:[%s14872_s17 + $0x8] sm:$0xff] }
  0x56   : > { %s11248_s11 = scalar_select %p938_p10, %s11219_s0, 1  ;;  %963 = vst [vmem:[#allocation2 + $0x10] sm:$0xff] %v11021_v10  ;;  %964 = vst [vmem:[#allocation2 + $0x18] sm:$0xff] %v11021_v10  ;;  %v10255_v17 = vpack.c.bf16 %v1677_v16, %v1676_v15  ;;  %v1678_v18 = vld [vmem:[%s14872_s17 + $0x10] sm:$0xff]  ;;  %v1679_v19 = vld [vmem:[%s14872_s17 + $0x18] sm:$0xff]  ;;  %vm1728_vm2 = vcmask 1043456  }
  0x57   : > { %s14766_s18 = smov 24   ;;  %965 = vst [vmem:[#allocation2 + $0x20] sm:$0xff] %v11021_v10  ;;  %966 = vst [vmem:[#allocation2 + $0x28] sm:$0xff] %v11021_v10  ;;  %v10258_v22 = vpack.c.bf16 %v1679_v19, %v1678_v18  ;;  %v1680_v25 = vld [vmem:[%s14872_s17 + $0x20] sm:$0xf]  ;;  %s14885_s17 = smov 32  }
  0x58   : > { %s14760_s23 = sshll.u32 %s11248_s11, 7  ;;  %967 = vst [vmem:[#allocation2 + $0x30] sm:$0xff] %v11021_v10  ;;  %968 = vst [vmem:[#allocation2 + $0x38] sm:$0xff] %v11021_v10  ;;  %10256 = vmatpush3.bf16.msra.mxu0 %v10255_v17  ;;  %s14886_s26 = smov 16   ;;  %v11025_v59 = vmov 0   ;;  %vm1088_vm3 = vcmask 64544  }
  0x59   : > { %969 = vst [vmem:[#allocation2 + $0x40] sm:$0xff] %v11021_v10  ;;  %970 = vst [vmem:[#allocation2 + $0x48] sm:$0xff] %v11021_v10  ;;  %10257 = vmatprep.subr.bf16.mxu0 %v14782_v6  ;;  %s14887_s10 = smov 20   ;;  %10682 = vset.pattern.permute.xlu0 %v11025_v59  ;;  %vm1168_vm4 = vcmask 97344   ;;  %vm1248_vm5 = vcmask 130144   ;;  %vm1328_vm6 = vcmask 162944  }
  0x5a   : > { %s11254_s28 = scalar_lea.vmem %s14879_s5, %s14760_s23  ;;  %s14772_s23 = smov 16   ;;  %971 = vst [vmem:[#allocation2 + $0x50] sm:$0xff] %v11021_v10  ;;  %972 = vst [vmem:[#allocation2 + $0x58] sm:$0xff] %v11021_v10  ;;  %10683 = vset.pattern.permute.xlu1 %v11025_v59  ;;  %vm1408_vm7 = vcmask 195744   ;;  %vm1488_vm8 = vcmask 228544   ;;  %vm1568_vm9 = vcmask 261344  }
  0x5b   : > { %v1183_v0 = vld [vmem:[%s11254_s28 + $0xa] sm:$0xff]  ;;  %v1023_v1 = vld [vmem:[%s11254_s28 + $0x1] sm:$0xff]  ;;  %s14764_s5 = smov 8   ;;  %v1423_v7 = vld [vmem:[%s11254_s28 + $0x14] sm:$0xff]  ;;  %973 = vst [vmem:[#allocation2 + $0x60] sm:$0xff] %v11021_v10  ;;  %vm1648_vm10 = vcmask 294144  }
  0x5c   : > { %1209 = vrot.lane.b32.xlu1 %v1183_v0, %s14761_s1  ;;  %1049 = vrot.lane.b32.xlu0 %v1023_v1, %s14768_s2  ;;  %v1263_v2 = vld [vmem:[%s11254_s28 + $0xb] sm:$0xff]  ;;  %v1103_v3 = vld [vmem:[%s11254_s28 + $0x2] sm:$0xff]  ;;  %s14776_s1 = smov 20   ;;  %974 = vst [vmem:[#allocation2 + $0x68] sm:$0xff] %v11021_v10  ;;  %975 = vst [vmem:[#allocation2 + $0x70] sm:$0xff] %v11021_v10  ;;  %vm1688_vm11 = vcmask 293888  }
  0x5d   : > { %v1343_v4 = vld [vmem:[%s11254_s28 + $0xc] sm:$0xff]  ;;  %v1503_v8 = vld [vmem:[%s11254_s28 + $0x15] sm:$0xff]  ;;  %976 = vst [vmem:[#allocation2 + $0x78] sm:$0x3] %v11021_v10  ;;  %v995_v11 = vld [vmem:[%s11254_s28] sm:$0xff]  ;;  %10259 = vmatpush3.bf16.msra.mxu0 %v10258_v22  ;;  %vm1021_vm12 = vcmask 27648  }
  0x5e   : > { %v1024_v5 = vld [vmem:[%s11254_s28 + $0x9] sm:$0xff]  ;;  %v1184_v9 = vld [vmem:[%s11254_s28 + $0x12] sm:$0xff]  ;;  %1009 = vst.msk [vmem:[#allocation4] sm:$0xff] %vm1008_vm0, %v995_v11  ;;  %v1424_v23 = vld [vmem:[%s11254_s28 + $0x1c] sm:$0xff]  ;;  %9692 = vmatprep.subr.mxu0 %v11021_v10  ;;  %vm3144_vm13 = vcmask 523264   ;;  %vm1101_vm14 = vcmask 60448  }
  0x5f   : > { %v1583_v12 = vld [vmem:[%s11254_s28 + $0x16] sm:$0xff]  ;;  %v996_v14 = vld [vmem:[%s11254_s28 + $0x8] sm:$0xff]  ;;  %v1584_v28 = vld [vmem:[%s11254_s28 + $0x1e] sm:$0xff]  ;;  %vm1181_vm15 = vcmask 93248   ;;  %s14888_s21 = sld [smem:[#allocation11_spill]]  ;;  %s14901_s9 = sld [smem:[#allocation9_spill]] }
  0x60   : > { %1289 = vrot.lane.b32.xlu1 %v1263_v2, %s14772_s23  ;;  %1129 = vrot.lane.b32.xlu0 %v1103_v3, %s14764_s5  ;;  %v1264_v13 = vld [vmem:[%s11254_s28 + $0x13] sm:$0xff]  ;;  %1010 = vst.msk [vmem:[#allocation4 + $0x48] sm:$0xff] %vm1008_vm0, %v996_v14  ;;  %v1504_v26 = vld [vmem:[%s11254_s28 + $0x1d] sm:$0xff]  ;;  %s15045_s4 = sld [smem:[#allocation27_spill]] }
  0x61   : > { %v1025_v20 = vld [vmem:[%s11254_s28 + $0x11] sm:$0xff]  ;;  %v1185_v27 = vld [vmem:[%s11254_s28 + $0x1a] sm:$0xff]  ;;  %9693 = vmatpush3.msk.msra.mxu0 %vm1728_vm2, %v1680_v25  ;;  %v1425_v31 = vld [vmem:[%s11254_s28 + $0x24] sm:$0xff]  ;;  %vm1341_vm2 = vcmask 158848  }
  0x62   : > { %v997_v21 = vld [vmem:[%s11254_s28 + $0x10] sm:$0xff]  ;;  %v998_v24 = vld [vmem:[%s11254_s28 + $0x18] sm:$0xff]  ;;  %v999_v32 = vld [vmem:[%s11254_s28 + $0x20] sm:$0xff] }
  0x63   : > { %1011 = vst.msk [vmem:[#allocation4 + $0x90] sm:$0xff] %vm1008_vm0, %v997_v21  ;;  %1012 = vst.msk [vmem:[#allocation4 + $0xd8] sm:$0xff] %vm1008_vm0, %v998_v24  ;;  %v1265_v29 = vld [vmem:[%s11254_s28 + $0x1b] sm:$0xff]  ;;  %v1505_v33 = vld [vmem:[%s11254_s28 + $0x25] sm:$0xff] }
  0x64   : > { %1369 = vrot.lane.b32.xlu1 %v1343_v4, %s14776_s1  ;;  %1051 = vrot.lane.b32.xlu0 %v1024_v5, %s14768_s2  ;;  %s14774_s2 = smov 32   ;;  %v1026_v30 = vld [vmem:[%s11254_s28 + $0x19] sm:$0xff]  ;;  %1013 = vst.msk [vmem:[#allocation4 + $0x120] sm:$0xff] %vm1008_vm0, %v999_v32  ;;  %v1186_v34 = vld [vmem:[%s11254_s28 + $0x22] sm:$0xff] }
  0x65   : > { %v1585_v35 = vld [vmem:[%s11254_s28 + $0x26] sm:$0xff]  ;;  %v1586_v42 = vld [vmem:[%s11254_s28 + $0x2e] sm:$0xff]  ;;  %v1587_v49 = vld [vmem:[%s11254_s28 + $0x36] sm:$0xff] }
  0x66   : > { %v1266_v36 = vld [vmem:[%s11254_s28 + $0x23] sm:$0xff]  ;;  %v1426_v38 = vld [vmem:[%s11254_s28 + $0x2c] sm:$0xff]  ;;  %v1427_v45 = vld [vmem:[%s11254_s28 + $0x34] sm:$0xff] }
  0x67   : > { %v1027_v37 = vld [vmem:[%s11254_s28 + $0x21] sm:$0xff]  ;;  %v1506_v40 = vld [vmem:[%s11254_s28 + $0x2d] sm:$0xff]  ;;  %v1507_v47 = vld [vmem:[%s11254_s28 + $0x35] sm:$0xff] }
  0x68   : > { %1449 = vrot.lane.b32.xlu1 %v1423_v7, %s14766_s18  ;;  %1131 = vrot.lane.b32.xlu0 %v1183_v0, %s14764_s5  ;;  %s14770_s5 = smov 28   ;;  %s14880_s18 = smov 12   ;;  %v1000_v39 = vld [vmem:[%s11254_s28 + $0x28] sm:$0xff]  ;;  %v1001_v46 = vld [vmem:[%s11254_s28 + $0x30] sm:$0xff] }
  0x69   : > { %1014 = vst.msk [vmem:[#allocation4 + $0x168] sm:$0xff] %vm1008_vm0, %v1000_v39  ;;  %v1187_v41 = vld [vmem:[%s11254_s28 + $0x2a] sm:$0xff]  ;;  %1015 = vst.msk [vmem:[#allocation4 + $0x1b0] sm:$0xff] %vm1008_vm0, %v1001_v46  ;;  %v1188_v48 = vld [vmem:[%s11254_s28 + $0x32] sm:$0xff] }
  0x6a   : > { %v1267_v43 = vld [vmem:[%s11254_s28 + $0x2b] sm:$0xff]  ;;  %v1268_v50 = vld [vmem:[%s11254_s28 + $0x33] sm:$0xff]  ;;  %v1428_v52 = vld [vmem:[%s11254_s28 + $0x3c] sm:$0xff] }
  0x6b   : > { %v1028_v44 = vld [vmem:[%s11254_s28 + $0x29] sm:$0xff]  ;;  %v1029_v51 = vld [vmem:[%s11254_s28 + $0x31] sm:$0xff]  ;;  %v1508_v54 = vld [vmem:[%s11254_s28 + $0x3d] sm:$0xff] }
  0x6c   : > { %1529 = vrot.lane.b32.xlu1 %v1503_v8, %s14770_s5  ;;  %1211 = vrot.lane.b32.xlu0 %v1184_v9, %s14880_s18  ;;  %s14881_s5 = smov 4   ;;  %v1002_v53 = vld [vmem:[%s11254_s28 + $0x38] sm:$0xff]  ;;  %v1429_v60 = vld [vmem:[%s11254_s28 + $0x44] sm:$0xff] }
  0x6d   : > { %1016 = vst.msk [vmem:[#allocation4 + $0x1f8] sm:$0xff] %vm1008_vm0, %v1002_v53  ;;  %v1189_v55 = vld [vmem:[%s11254_s28 + $0x3a] sm:$0xff]  ;;  %v1509_v62 = vld [vmem:[%s11254_s28 + $0x45] sm:$0xff]  ;;  %v1590_v17 = vld [vmem:[%s11254_s28 + $0x4e] sm:$0xff] }
  0x6e   : > { %v1588_v56 = vld [vmem:[%s11254_s28 + $0x3e] sm:$0xff]  ;;  %v1589_v0 = vld [vmem:[%s11254_s28 + $0x46] sm:$0xff]  ;;  %v1431_v24 = vld [vmem:[%s11254_s28 + $0x54] sm:$0xff] }
  0x6f   : > { %v1269_v57 = vld [vmem:[%s11254_s28 + $0x3b] sm:$0xff]  ;;  %v1270_v1 = vld [vmem:[%s11254_s28 + $0x43] sm:$0xff]  ;;  %v1430_v8 = vld [vmem:[%s11254_s28 + $0x4c] sm:$0xff] }
  0x70   : > { %1609 = vrot.lane.b32.xlu1 %v1583_v12, %s14774_s2  ;;  %1291 = vrot.lane.b32.xlu0 %v1264_v13, %s14772_s23  ;;  %s14882_s23 = smov 24   ;;  %s14883_s2 = smov 8   ;;  %v1030_v58 = vld [vmem:[%s11254_s28 + $0x39] sm:$0xff]  ;;  %v1190_v63 = vld [vmem:[%s11254_s28 + $0x42] sm:$0xff] }
  0x71   : > { %v1003_v61 = vld [vmem:[%s11254_s28 + $0x40] sm:$0xff]  ;;  %v1510_v13 = vld [vmem:[%s11254_s28 + $0x4d] sm:$0xff] }
  0x72   : > { %1017 = vst.msk [vmem:[#allocation4 + $0x240] sm:$0xff] %vm1008_vm0, %v1003_v61  ;;  %v1031_v4 = vld [vmem:[%s11254_s28 + $0x41] sm:$0xff]  ;;  %v1191_v14 = vld [vmem:[%s11254_s28 + $0x4a] sm:$0xff]  ;;  %v1034_v53 = vld [vmem:[%s11254_s28 + $0x59] sm:$0xff] }
  0x73   : > { %v1271_v18 = vld [vmem:[%s11254_s28 + $0x4b] sm:$0xff] }
  0x74   : > { %1371 = vrot.lane.b32.xlu1 %v1423_v7, %s14776_s1  ;;  %1053 = vrot.lane.b32.xlu0 %v1025_v20, %s14881_s5  ;;  %s14884_s1 = smov 28   ;;  %v1032_v21 = vld [vmem:[%s11254_s28 + $0x49] sm:$0xff] }
  0x75   : > { %v1005_v25 = vld [vmem:[%s11254_s28 + $0x50] sm:$0xff]  ;;  %v1513_v59 = vld [vmem:[%s11254_s28 + $0x65] sm:$0xff] }
  0x76   : > { %1019 = vst.msk [vmem:[#allocation4 + $0x2d0] sm:$0xff] %vm1008_vm0, %v1005_v25 }
  0x78   : > { %1451 = vrot.lane.b32.xlu1 %v1424_v23, %s14882_s23  ;;  %1133 = vrot.lane.b32.xlu0 %v1184_v9, %s14883_s2  ;;  %v1004_v9 = vld [vmem:[%s11254_s28 + $0x48] sm:$0xff] }
  0x79   : > { %1018 = vst.msk [vmem:[#allocation4 + $0x288] sm:$0xff] %vm1008_vm0, %v1004_v9  ;;  %v1514_v9 = vld [vmem:[%s11254_s28 + $0x6d] sm:$0xff] }
  0x7c   : > { %1531 = vrot.lane.b32.xlu1 %v1504_v26, %s14884_s1  ;;  %1213 = vrot.lane.b32.xlu0 %v1185_v27, %s14880_s18 }
  0x80   : > { %1611 = vrot.lane.b32.xlu1 %v1584_v28, %s14885_s17  ;;  %1293 = vrot.lane.b32.xlu0 %v1265_v29, %s14886_s26  ;;  %v1511_v28 = vld [vmem:[%s11254_s28 + $0x55] sm:$0xff] }
  0x81   : > { %v1192_v29 = vld [vmem:[%s11254_s28 + $0x52] sm:$0xff] }
  0x84   : > { %1373 = vrot.lane.b32.xlu1 %v1424_v23, %s14887_s10  ;;  %1055 = vrot.lane.b32.xlu0 %v1026_v30, %s14881_s5 }
  0x88   : > { %1453 = vrot.lane.b32.xlu1 %v1425_v31, %s14882_s23  ;;  %1135 = vrot.lane.b32.xlu0 %v1185_v27, %s14883_s2 }
  0x8c   : > { %1533 = vrot.lane.b32.xlu1 %v1505_v33, %s14884_s1  ;;  %1215 = vrot.lane.b32.xlu0 %v1186_v34, %s14880_s18  ;;  %v1591_v33 = vld [vmem:[%s11254_s28 + $0x56] sm:$0xff] }
  0x90   : > { %1613 = vrot.lane.b32.xlu1 %v1585_v35, %s14885_s17  ;;  %1295 = vrot.lane.b32.xlu0 %v1266_v36, %s14886_s26 }
  0x94   : > { %1375 = vrot.lane.b32.xlu1 %v1425_v31, %s14887_s10  ;;  %1057 = vrot.lane.b32.xlu0 %v1027_v37, %s14881_s5  ;;  %v1033_v37 = vld [vmem:[%s11254_s28 + $0x51] sm:$0xff] }
  0x98   : > { %1455 = vrot.lane.b32.xlu1 %v1426_v38, %s14882_s23  ;;  %1137 = vrot.lane.b32.xlu0 %v1186_v34, %s14883_s2  ;;  %v1272_v34 = vld [vmem:[%s11254_s28 + $0x53] sm:$0xff] }
  0x9c   : > { %1535 = vrot.lane.b32.xlu1 %v1506_v40, %s14884_s1  ;;  %1217 = vrot.lane.b32.xlu0 %v1187_v41, %s14880_s18  ;;  %v1432_v40 = vld [vmem:[%s11254_s28 + $0x5c] sm:$0xff] }
  0xa0   : > { %1615 = vrot.lane.b32.xlu1 %v1586_v42, %s14885_s17  ;;  %1297 = vrot.lane.b32.xlu0 %v1267_v43, %s14886_s26 }
  0xa4   : > { %1377 = vrot.lane.b32.xlu1 %v1426_v38, %s14887_s10  ;;  %1059 = vrot.lane.b32.xlu0 %v1028_v44, %s14881_s5  ;;  %v1512_v44 = vld [vmem:[%s11254_s28 + $0x5d] sm:$0xff] }
  0xa8   : > { %1457 = vrot.lane.b32.xlu1 %v1427_v45, %s14882_s23  ;;  %1139 = vrot.lane.b32.xlu0 %v1187_v41, %s14883_s2  ;;  %v1006_v41 = vld [vmem:[%s11254_s28 + $0x58] sm:$0xff] }
  0xa9   : > { %1020 = vst.msk [vmem:[#allocation4 + $0x318] sm:$0xff] %vm1008_vm0, %v1006_v41  ;;  %v2320_v41 = vld [vmem:[%s11071_s25 + $0x18] sm:$0xff]  ;;  %vm1261_vm0 = vcmask 126048  }
  0xac   : > { %1537 = vrot.lane.b32.xlu1 %v1507_v47, %s14884_s1  ;;  %1219 = vrot.lane.b32.xlu0 %v1188_v48, %s14880_s18 }
  0xb0   : > { %1617 = vrot.lane.b32.xlu1 %v1587_v49, %s14885_s17  ;;  %1299 = vrot.lane.b32.xlu0 %v1268_v50, %s14886_s26  ;;  %v1592_v49 = vld [vmem:[%s11254_s28 + $0x5e] sm:$0xff] }
  0xb1   : > { %v1273_v50 = vld [vmem:[%s11254_s28 + $0x5b] sm:$0xff] }
  0xb4   : > { %1379 = vrot.lane.b32.xlu1 %v1427_v45, %s14887_s10  ;;  %1061 = vrot.lane.b32.xlu0 %v1029_v51, %s14881_s5  ;;  %v1193_v45 = vld [vmem:[%s11254_s28 + $0x5a] sm:$0xff] }
  0xb8   : > { %1459 = vrot.lane.b32.xlu1 %v1428_v52, %s14882_s23  ;;  %1141 = vrot.lane.b32.xlu0 %v1188_v48, %s14883_s2 }
  0xbc   : > { %1539 = vrot.lane.b32.xlu1 %v1508_v54, %s14884_s1  ;;  %1221 = vrot.lane.b32.xlu0 %v1189_v55, %s14880_s18 }
  0xc0   : > { %1619 = vrot.lane.b32.xlu1 %v1588_v56, %s14885_s17  ;;  %1301 = vrot.lane.b32.xlu0 %v1269_v57, %s14886_s26  ;;  %v1433_v56 = vld [vmem:[%s11254_s28 + $0x64] sm:$0xff] }
  0xc4   : > { %1381 = vrot.lane.b32.xlu1 %v1428_v52, %s14887_s10  ;;  %1063 = vrot.lane.b32.xlu0 %v1030_v58, %s14881_s5 }
  0xc8   : > { %1461 = vrot.lane.b32.xlu1 %v1429_v60, %s14882_s23  ;;  %1143 = vrot.lane.b32.xlu0 %v1189_v55, %s14883_s2 }
  0xcc   : > { %1541 = vrot.lane.b32.xlu1 %v1509_v62, %s14884_s1  ;;  %1223 = vrot.lane.b32.xlu0 %v1190_v63, %s14880_s18 }
  0xce   : > { %v1210_v2 = vpop.permute.xlu1 %1209  ;;  %v1050_v3 = vpop.permute.xlu0 %1049 }
  0xcf   : > { %1089 = vst.msk [vmem:[#allocation4] sm:$0xff] %vm1088_vm3, %v1050_v3 }
  0xd0   : > { %1621 = vrot.lane.b32.xlu1 %v1589_v0, %s14885_s17  ;;  %1303 = vrot.lane.b32.xlu0 %v1270_v1, %s14886_s26  ;;  %v1593_v0 = vld [vmem:[%s11254_s28 + $0x66] sm:$0xff] }
  0xd1   : > { %v1274_v1 = vld [vmem:[%s11254_s28 + $0x63] sm:$0xff] }
  0xd2   : > { %v1290_v5 = vpop.permute.xlu1 %1289  ;;  %v1130_v7 = vpop.permute.xlu0 %1129 }
  0xd3   : > { %1169 = vst.msk [vmem:[#allocation4] sm:$0xff] %vm1168_vm4, %v1130_v7 }
  0xd4   : > { %1249 = vst.msk [vmem:[#allocation4] sm:$0xff] %vm1248_vm5, %v1210_v2  ;;  %1383 = vrot.lane.b32.xlu1 %v1429_v60, %s14887_s10  ;;  %1065 = vrot.lane.b32.xlu0 %v1031_v4, %s14881_s5  ;;  %v1194_v60 = vld [vmem:[%s11254_s28 + $0x62] sm:$0xff] }
  0xd5   : > { %1329 = vst.msk [vmem:[#allocation4] sm:$0xff] %vm1328_vm6, %v1290_v5  ;;  %v1007_v4 = vld [vmem:[%s11254_s28 + $0x60] sm:$0xf]  ;;  %v1434_v5 = vld [vmem:[%s11254_s28 + $0x6c] sm:$0xff] }
  0xd6   : > { %v1370_v11 = vpop.permute.xlu1 %1369  ;;  %v1052_v12 = vpop.permute.xlu0 %1051  ;;  %1022 = vst.msk [vmem:[#allocation4 + $0x360] sm:$0xf] %vm1021_vm12, %v1007_v4  ;;  %vm4455_vm12 = vcmask 64560  }
  0xd7   : > { %1409 = vst.msk [vmem:[#allocation4] sm:$0xff] %vm1408_vm7, %v1370_v11  ;;  %v1594_v11 = vld [vmem:[%s11254_s28 + $0x6e] sm:$0xff] }
  0xd8   : > { %1090 = vst.msk [vmem:[#allocation4 + $0x48] sm:$0xff] %vm1088_vm3, %v1052_v12  ;;  %1463 = vrot.lane.b32.xlu1 %v1430_v8, %s14882_s23  ;;  %1145 = vrot.lane.b32.xlu0 %v1190_v63, %s14883_s2 }
  0xda   : > { %v1450_v15 = vpop.permute.xlu1 %1449  ;;  %v1132_v16 = vpop.permute.xlu0 %1131 }
  0xdb   : > { %1489 = vst.msk [vmem:[#allocation4] sm:$0xff] %vm1488_vm8, %v1450_v15  ;;  %v1115_v15 = vld [vmem:[%s11254_s28 + $0x62] sm:$0xf] }
  0xdc   : > { %1170 = vst.msk [vmem:[#allocation4 + $0x48] sm:$0xff] %vm1168_vm4, %v1132_v16  ;;  %1543 = vrot.lane.b32.xlu1 %v1510_v13, %s14884_s1  ;;  %1225 = vrot.lane.b32.xlu0 %v1191_v14, %s14880_s18 }
  0xde   : > { %v1530_v19 = vpop.permute.xlu1 %1529  ;;  %v1212_v20 = vpop.permute.xlu0 %1211 }
  0xdf   : > { %1569 = vst.msk [vmem:[#allocation4] sm:$0xff] %vm1568_vm9, %v1530_v19  ;;  %v1195_v19 = vld [vmem:[%s11254_s28 + $0x6a] sm:$0xf] }
  0xe0   : > { %1250 = vst.msk [vmem:[#allocation4 + $0x48] sm:$0xff] %vm1248_vm5, %v1212_v20  ;;  %1623 = vrot.lane.b32.xlu1 %v1590_v17, %s14885_s17  ;;  %1305 = vrot.lane.b32.xlu0 %v1271_v18, %s14886_s26  ;;  %v1275_v20 = vld [vmem:[%s11254_s28 + $0x6b] sm:$0xf] }
  0xe2   : > { %v1610_v22 = vpop.permute.xlu1 %1609  ;;  %v1292_v23 = vpop.permute.xlu0 %1291 }
  0xe3   : > { %1649 = vst.msk [vmem:[#allocation4] sm:$0xff] %vm1648_vm10, %v1610_v22 }
  0xe4   : > { %1330 = vst.msk [vmem:[#allocation4 + $0x48] sm:$0xff] %vm1328_vm6, %v1292_v23  ;;  %1385 = vrot.lane.b32.xlu1 %v1430_v8, %s14887_s10  ;;  %1067 = vrot.lane.b32.xlu0 %v1032_v21, %s14881_s5  ;;  %v1355_v23 = vld [vmem:[%s11254_s28 + $0x6c] sm:$0xf] }
  0xe6   : > { %v1372_v26 = vpop.permute.xlu1 %1371  ;;  %v1054_v27 = vpop.permute.xlu0 %1053 }
  0xe7   : > { %1410 = vst.msk [vmem:[#allocation4 + $0x48] sm:$0xff] %vm1408_vm7, %v1372_v26 }
  0xe8   : > { %1091 = vst.msk [vmem:[#allocation4 + $0x90] sm:$0xff] %vm1088_vm3, %v1054_v27  ;;  %1465 = vrot.lane.b32.xlu1 %v1431_v24, %s14882_s23  ;;  %1147 = vrot.lane.b32.xlu0 %v1191_v14, %s14883_s2  ;;  %v1035_v14 = vld [vmem:[%s11254_s28 + $0x61] sm:$0xf]  ;;  %v1515_v27 = vld [vmem:[%s11254_s28 + $0x75] sm:$0xf] }
  0xea   : > { %v1452_v30 = vpop.permute.xlu1 %1451  ;;  %v1134_v31 = vpop.permute.xlu0 %1133  ;;  %v1663_v32 = vld [vmem:[#allocation4] sm:$0xff] }
  0xeb   : > { %1490 = vst.msk [vmem:[#allocation4 + $0x48] sm:$0xff] %vm1488_vm8, %v1452_v30  ;;  %9695 = vmatmul.mubr.msk.f32.vlgmr.msra.gmra.mrb[0].mxu0 %vm1688_vm11, %v1663_v32  ;;  %1979 = vst [vmem:[#allocation4] sm:$0xff] %v11021_v10  ;;  %v1595_v30 = vld [vmem:[%s11254_s28 + $0x76] sm:$0xf]  ;;  %v2317_v32 = vld [vmem:[%s11071_s25] sm:$0xff] }
  0xec   : > { %1171 = vst.msk [vmem:[#allocation4 + $0x90] sm:$0xff] %vm1168_vm4, %v1134_v31  ;;  %1545 = vrot.lane.b32.xlu1 %v1511_v28, %s14884_s1  ;;  %1227 = vrot.lane.b32.xlu0 %v1192_v29, %s14880_s18  ;;  %v2333_v28 = vld [vmem:[%s11071_s25 + $0x80] sm:$0xff] }
  0xed   : > { %9697 = vmatprep.mubr.msk.f32.mxu0 %vm11022_vm1, %v11021_v10 }
  0xee   : > { %v1532_v35 = vpop.permute.xlu1 %1531  ;;  %v1214_v36 = vpop.permute.xlu0 %1213 }
  0xef   : > { %1570 = vst.msk [vmem:[#allocation4 + $0x48] sm:$0xff] %vm1568_vm9, %v1532_v35 }
  0xf0   : > { %1251 = vst.msk [vmem:[#allocation4 + $0x90] sm:$0xff] %vm1248_vm5, %v1214_v36  ;;  %1625 = vrot.lane.b32.xlu1 %v1591_v33, %s14885_s17  ;;  %1307 = vrot.lane.b32.xlu0 %v1272_v34, %s14886_s26  ;;  %v2318_v33 = vld [vmem:[%s11071_s25 + $0x8] sm:$0xff] }
  0xf1   : > { %v10262_v36 = vpack.c.bf16 %v2318_v33, %v2317_v32  ;;  %v2327_v32 = vld [vmem:[%s11071_s25 + $0x50] sm:$0xff]  ;;  %v2328_v33 = vld [vmem:[%s11071_s25 + $0x58] sm:$0xff] }
  0xf2   : > { %v1612_v38 = vpop.permute.xlu1 %1611  ;;  %v1294_v39 = vpop.permute.xlu0 %1293 }
  0xf3   : > { %1650 = vst.msk [vmem:[#allocation4 + $0x48] sm:$0xff] %vm1648_vm10, %v1612_v38  ;;  %v2336_v38 = vld [vmem:[%s11071_s25 + $0x98] sm:$0xff] }
  0xf4   : > { %1331 = vst.msk [vmem:[#allocation4 + $0x90] sm:$0xff] %vm1328_vm6, %v1294_v39  ;;  %1387 = vrot.lane.b32.xlu1 %v1431_v24, %s14887_s10  ;;  %1069 = vrot.lane.b32.xlu0 %v1033_v37, %s14881_s5  ;;  %v1435_v24 = vld [vmem:[%s11254_s28 + $0x74] sm:$0xf]  ;;  %s14902_s28 = sshll.u32 %s11248_s11, 7  ;;  %s14806_s11 = smov 2  }
  0xf5   : > { %v2335_v37 = vld [vmem:[%s11071_s25 + $0x90] sm:$0xff] }
  0xf6   : > { %v1374_v42 = vpop.permute.xlu1 %1373  ;;  %v1056_v43 = vpop.permute.xlu0 %1055  ;;  %v2319_v39 = vld [vmem:[%s11071_s25 + $0x10] sm:$0xff] }
  0xf7   : > { %1411 = vst.msk [vmem:[#allocation4 + $0x90] sm:$0xff] %vm1408_vm7, %v1374_v42  ;;  %v2337_v42 = vld [vmem:[%s11071_s25 + $0xa0] sm:$0xff] }
  0xf8   : > { %1092 = vst.msk [vmem:[#allocation4 + $0xd8] sm:$0xff] %vm1088_vm3, %v1056_v43  ;;  %1467 = vrot.lane.b32.xlu1 %v1432_v40, %s14882_s23  ;;  %1149 = vrot.lane.b32.xlu0 %v1192_v29, %s14883_s2  ;;  %v2334_v29 = vld [vmem:[%s11071_s25 + $0x88] sm:$0xff] }
  0xf9   : > { %v10260_v31 = vpack.c.bf16 %v2334_v29, %v2333_v28  ;;  %v2338_v43 = vld [vmem:[%s11071_s25 + $0xa8] sm:$0xff]  ;;  %v2344_v28 = vld [vmem:[%s11071_s25 + $0xd8] sm:$0xff]  ;;  %v2367_v29 = vld [vmem:[%s11071_s25 + $0x190] sm:$0xff] }
  0xfa   : > { %v1454_v46 = vpop.permute.xlu1 %1453  ;;  %v1136_v47 = vpop.permute.xlu0 %1135  ;;  %v1664_v48 = vld [vmem:[#allocation4 + $0x48] sm:$0xff] }
  0xfb   : > { %1491 = vst.msk [vmem:[#allocation4 + $0x90] sm:$0xff] %vm1488_vm8, %v1454_v46  ;;  %9698 = vmatmul.mubr.msk.f32.gmra.mrb[2].mxu0 %vm1688_vm11, %v1664_v48  ;;  %10261 = vmatprep.subr.bf16.mxu1 %v10260_v31  ;;  %v10266_v46 = vpack.c.bf16 %v2320_v41, %v2319_v39  ;;  %v2368_v31 = vld [vmem:[%s11071_s25 + $0x198] sm:$0xff]  ;;  %v2346_v41 = vld [vmem:[%s11071_s25 + $0xe8] sm:$0xff] }
  0xfc   : > { %1172 = vst.msk [vmem:[#allocation4 + $0xd8] sm:$0xff] %vm1168_vm4, %v1136_v47  ;;  %1547 = vrot.lane.b32.xlu1 %v1512_v44, %s14884_s1  ;;  %1229 = vrot.lane.b32.xlu0 %v1193_v45, %s14880_s18  ;;  %v948_v44 = vld [vmem:[%s11056_s13] sm:$0xff] }
  0xfd   : > { %9700 = vmatprep.mubr.msk.f32.mxu0 %vm11022_vm1, %v11021_v10  ;;  %10263 = vmatpush3.bf16.msra.mxu1 %v10262_v36  ;;  %v2351_v36 = vld [vmem:[%s11071_s25 + $0x110] sm:$0xff] }
  0xfe   : > { %v1534_v51 = vpop.permute.xlu1 %1533  ;;  %v1216_v52 = vpop.permute.xlu0 %1215 }
  0xff   : > { %1571 = vst.msk [vmem:[#allocation4 + $0x90] sm:$0xff] %vm1568_vm9, %v1534_v51  ;;  %v2321_v51 = vld [vmem:[%s11071_s25 + $0x20] sm:$0xff] }
 0x100   : > { %1252 = vst.msk [vmem:[#allocation4 + $0xd8] sm:$0xff] %vm1248_vm5, %v1216_v52  ;;  %1627 = vrot.lane.b32.xlu1 %v1592_v49, %s14885_s17  ;;  %1309 = vrot.lane.b32.xlu0 %v1273_v50, %s14886_s26  ;;  %v10268_v50 = vpack.c.bf16 %v2338_v43, %v2337_v42  ;;  %v2322_v52 = vld [vmem:[%s11071_s25 + $0x28] sm:$0xff]  ;;  %v2369_v42 = vld [vmem:[%s11071_s25 + $0x1a0] sm:$0xff] }
 0x102   : > { %v1614_v54 = vpop.permute.xlu1 %1613  ;;  %v1296_v55 = vpop.permute.xlu0 %1295 }
 0x103   : > { %1651 = vst.msk [vmem:[#allocation4 + $0x90] sm:$0xff] %vm1648_vm10, %v1614_v54  ;;  %v10270_v54 = vpack.c.bf16 %v2322_v52, %v2321_v51  ;;  %v2353_v51 = vld [vmem:[%s11071_s25 + $0x120] sm:$0xff] }
 0x104   : > { %1332 = vst.msk [vmem:[#allocation4 + $0xd8] sm:$0xff] %vm1328_vm6, %v1296_v55  ;;  %1389 = vrot.lane.b32.xlu1 %v1432_v40, %s14887_s10  ;;  %1071 = vrot.lane.b32.xlu0 %v1034_v53, %s14881_s5  ;;  %v10264_v40 = vpack.c.bf16 %v2336_v38, %v2335_v37  ;;  %v951_v53 = vld [vmem:[%s11056_s13 + $0x18] sm:$0xff] }
 0x105   : > { %v2352_v37 = vld [vmem:[%s11071_s25 + $0x118] sm:$0xff] }
 0x106   : > { %v1376_v57 = vpop.permute.xlu1 %1375  ;;  %v1058_v58 = vpop.permute.xlu0 %1057  ;;  %10265 = vmatprep.subr.bf16.mxu1 %v10264_v40  ;;  %v10298_v39 = vpack.c.bf16 %v2352_v37, %v2351_v36  ;;  %v2345_v40 = vld [vmem:[%s11071_s25 + $0xe0] sm:$0xff]  ;;  %v2380_v36 = vld [vmem:[%s11071_s25 + $0x1f8] sm:$0xff] }
 0x107   : > { %1412 = vst.msk [vmem:[#allocation4 + $0xd8] sm:$0xff] %vm1408_vm7, %v1376_v57  ;;  %10267 = vmatpush3.bf16.msra.mxu1 %v10266_v46  ;;  %v950_v57 = vld [vmem:[%s11056_s13 + $0x10] sm:$0xff]  ;;  %v10284_v43 = vpack.c.bf16 %v2346_v41, %v2345_v40  ;;  %v2330_v46 = vld [vmem:[%s11071_s25 + $0x68] sm:$0xff] }
 0x108   : > { %1093 = vst.msk [vmem:[#allocation4 + $0x120] sm:$0xff] %vm1088_vm3, %v1058_v58  ;;  %1469 = vrot.lane.b32.xlu1 %v1433_v56, %s14882_s23  ;;  %1151 = vrot.lane.b32.xlu0 %v1193_v45, %s14883_s2  ;;  %v949_v45 = vld [vmem:[%s11056_s13 + $0x8] sm:$0xff] }
 0x109   : > { %10269 = vmatprep.subr.bf16.mxu1 %v10268_v50  ;;  %v953_v58 = vld [vmem:[%s11056_s13 + $0x28] sm:$0xff] }
 0x10a   : > { %v1456_v61 = vpop.permute.xlu1 %1455  ;;  %v1138_v62 = vpop.permute.xlu0 %1137  ;;  %v1665_v63 = vld [vmem:[#allocation4 + $0x90] sm:$0xff] }
 0x10b   : > { %1492 = vst.msk [vmem:[#allocation4 + $0xd8] sm:$0xff] %vm1488_vm8, %v1456_v61  ;;  %9701 = vmatmul.mubr.msk.f32.gmra.mrb[4].mxu0 %vm1688_vm11, %v1665_v63  ;;  %10271 = vmatpush3.bf16.msra.mxu1 %v10270_v54  ;;  %v952_v61 = vld [vmem:[%s11056_s13 + $0x20] sm:$0xff]  ;;  %v2340_v63 = vld [vmem:[%s11071_s25 + $0xb8] sm:$0xff]  ;;  %v2354_v54 = vld [vmem:[%s11071_s25 + $0x128] sm:$0xff] }
 0x10c   : > { %1173 = vst.msk [vmem:[#allocation4 + $0x120] sm:$0xff] %vm1168_vm4, %v1138_v62  ;;  %1549 = vrot.lane.b32.xlu1 %v1513_v59, %s14884_s1  ;;  %1231 = vrot.lane.b32.xlu0 %v1194_v60, %s14880_s18  ;;  %v2339_v62 = vld [vmem:[%s11071_s25 + $0xb0] sm:$0xff] }
 0x10d   : > { %9703 = vmatprep.mubr.msk.f32.mxu0 %vm11022_vm1, %v11021_v10 }
 0x10e   : > { %v1536_v2 = vpop.permute.xlu1 %1535  ;;  %v1218_v3 = vpop.permute.xlu0 %1217 }
 0x10f   : > { %1572 = vst.msk [vmem:[#allocation4 + $0xd8] sm:$0xff] %vm1568_vm9, %v1536_v2  ;;  %v2324_v2 = vld [vmem:[%s11071_s25 + $0x38] sm:$0xff] }
 0x110   : > { %1253 = vst.msk [vmem:[#allocation4 + $0x120] sm:$0xff] %vm1248_vm5, %v1218_v3  ;;  %1629 = vrot.lane.b32.xlu1 %v1593_v0, %s14885_s17  ;;  %1311 = vrot.lane.b32.xlu0 %v1274_v1, %s14886_s26  ;;  %v10272_v0 = vpack.c.bf16 %v2340_v63, %v2339_v62  ;;  %v2323_v1 = vld [vmem:[%s11071_s25 + $0x30] sm:$0xff]  ;;  %v955_v3 = vld [vmem:[%s11056_s13 + $0x38] sm:$0xff] }
 0x111   : > { %v10274_v4 = vpack.c.bf16 %v2324_v2, %v2323_v1  ;;  %v2332_v62 = vld [vmem:[%s11071_s25 + $0x78] sm:$0xff]  ;;  %v960_v63 = vld [vmem:[%s11056_s13 + $0x60] sm:$0xf]  ;;  %v2355_v2 = vld [vmem:[%s11071_s25 + $0x130] sm:$0xff] }
 0x112   : > { %v1616_v7 = vpop.permute.xlu1 %1615  ;;  %v1298_v8 = vpop.permute.xlu0 %1297  ;;  %10273 = vmatprep.subr.bf16.mxu1 %v10272_v0 }
 0x113   : > { %1652 = vst.msk [vmem:[#allocation4 + $0xd8] sm:$0xff] %vm1648_vm10, %v1616_v7  ;;  %10275 = vmatpush3.bf16.msra.mxu1 %v10274_v4 }
 0x114   : > { %1333 = vst.msk [vmem:[#allocation4 + $0x120] sm:$0xff] %vm1328_vm6, %v1298_v8  ;;  %1391 = vrot.lane.b32.xlu0 %v1433_v56, %s14887_s10  ;;  %1471 = vrot.lane.b32.xlu1 %v1434_v5, %s14882_s23  ;;  %v954_v8 = vld [vmem:[%s11056_s13 + $0x30] sm:$0xff] }
 0x116   : > { %v1378_v12 = vpop.permute.xlu1 %1377  ;;  %v1060_v13 = vpop.permute.xlu0 %1059 }
 0x117   : > { %1413 = vst.msk [vmem:[#allocation4 + $0x120] sm:$0xff] %vm1408_vm7, %v1378_v12  ;;  %v2365_v12 = vld [vmem:[%s11071_s25 + $0x180] sm:$0xff] }
 0x118   : > { %1094 = vst.msk [vmem:[#allocation4 + $0x168] sm:$0xff] %vm1088_vm3, %v1060_v13  ;;  %1551 = vrot.lane.b32.xlu0 %v1514_v9, %s14884_s1  ;;  %1631 = vrot.lane.b32.xlu1 %v1594_v11, %s14885_s17  ;;  %v2341_v9 = vld [vmem:[%s11071_s25 + $0xc0] sm:$0xff]  ;;  %v2342_v11 = vld [vmem:[%s11071_s25 + $0xc8] sm:$0xff] }
 0x119   : > { %v10276_v13 = vpack.c.bf16 %v2342_v11, %v2341_v9  ;;  %v1992_v11 = vld [vmem:[#allocation2 + $0x1] sm:$0xff] }
 0x11a   : > { %v1458_v16 = vpop.permute.xlu1 %1457  ;;  %v1140_v17 = vpop.permute.xlu0 %1139  ;;  %v1666_v18 = vld [vmem:[#allocation4 + $0xd8] sm:$0xff]  ;;  %2005 = vst [vmem:[#allocation4 + $0x8] sm:$0xff] %v1992_v11  ;;  %2532 = vmatprep.mubr.f32.mxu1 %v1992_v11 }
 0x11b   : > { %1493 = vst.msk [vmem:[#allocation4 + $0x120] sm:$0xff] %vm1488_vm8, %v1458_v16  ;;  %9704 = vmatmul.mubr.msk.f32.gmra.mrb[6].mxu0 %vm1688_vm11, %v1666_v18  ;;  %v2326_v16 = vld [vmem:[%s11071_s25 + $0x48] sm:$0xff]  ;;  %10277 = vmatprep.subr.bf16.mxu1 %v10276_v13  ;;  %v2357_v13 = vld [vmem:[%s11071_s25 + $0x140] sm:$0xff] }
 0x11c   : > { %1174 = vst.msk [vmem:[#allocation4 + $0x168] sm:$0xff] %vm1168_vm4, %v1140_v17  ;;  %1073 = vrot.lane.b32.xlu0 %v1035_v14, %s14881_s5  ;;  %1153 = vrot.lane.b32.xlu1 %v1115_v15, %s14883_s2  ;;  %v2366_v14 = vld [vmem:[%s11071_s25 + $0x188] sm:$0xff]  ;;  %v2325_v15 = vld [vmem:[%s11071_s25 + $0x40] sm:$0xff] }
 0x11d   : > { %9706 = vmatprep.mubr.msk.f32.mxu0 %vm11022_vm1, %v11021_v10  ;;  %v957_v17 = vld [vmem:[%s11056_s13 + $0x48] sm:$0xff]  ;;  %v10292_v18 = vpack.c.bf16 %v2366_v14, %v2365_v12 }
 0x11e   : > { %v1538_v21 = vpop.permute.xlu1 %1537  ;;  %v1220_v22 = vpop.permute.xlu0 %1219  ;;  %v2358_v14 = vld [vmem:[%s11071_s25 + $0x148] sm:$0xff] }
 0x11f   : > { %1573 = vst.msk [vmem:[#allocation4 + $0x120] sm:$0xff] %vm1568_vm9, %v1538_v21  ;;  %v2350_v21 = vld [vmem:[%s11071_s25 + $0x108] sm:$0xff]  ;;  %10293 = vmatprep.subr.bf16.mxu0 %v10292_v18  ;;  %v2375_v18 = vld [vmem:[%s11071_s25 + $0x1d0] sm:$0xff] }
 0x120   : > { %1254 = vst.msk [vmem:[#allocation4 + $0x168] sm:$0xff] %vm1248_vm5, %v1220_v22  ;;  %1233 = vrot.lane.b32.xlu0 %v1195_v19, %s14880_s18  ;;  %1313 = vrot.lane.b32.xlu1 %v1275_v20, %s14886_s26  ;;  %v10278_v19 = vpack.c.bf16 %v2326_v16, %v2325_v15  ;;  %v2349_v20 = vld [vmem:[%s11071_s25 + $0x100] sm:$0xff] }
 0x122   : > { %v1618_v25 = vpop.permute.xlu1 %1617  ;;  %v1300_v26 = vpop.permute.xlu0 %1299  ;;  %10279 = vmatpush3.bf16.msra.mxu1 %v10278_v19  ;;  %v2376_v19 = vld [vmem:[%s11071_s25 + $0x1d8] sm:$0xff] }
 0x123   : > { %1653 = vst.msk [vmem:[#allocation4 + $0x120] sm:$0xff] %vm1648_vm10, %v1618_v25  ;;  %v956_v25 = vld [vmem:[%s11056_s13 + $0x40] sm:$0xff] }
 0x124   : > { %1334 = vst.msk [vmem:[#allocation4 + $0x168] sm:$0xff] %vm1328_vm6, %v1300_v26  ;;  %1393 = vrot.lane.b32.xlu0 %v1355_v23, %s14887_s10  ;;  %1473 = vrot.lane.b32.xlu1 %v1435_v24, %s14882_s23  ;;  %v10294_v26 = vpack.c.bf16 %v2350_v21, %v2349_v20  ;;  %v11644_v20 = vld [vmem:[#allocation2] sm:$0xff]  ;;  %v10310_v21 = vpack.c.bf16 %v2358_v14, %v2357_v13  ;;  %s14792_s10 = smov 64  }
 0x125   : > { %3172 = vst.msk [vmem:[#allocation4] sm:$0xff] %vm3144_vm13, %v11644_v20 }
 0x126   : > { %v1380_v34 = vpop.permute.xlu1 %1379  ;;  %v1062_v35 = vpop.permute.xlu0 %1061  ;;  %10295 = vmatpush3.bf16.msra.mxu0 %v10294_v26 }
 0x127   : > { %1414 = vst.msk [vmem:[#allocation4 + $0x168] sm:$0xff] %vm1408_vm7, %v1380_v34  ;;  %v10296_v34 = vpack.c.bf16 %v2368_v31, %v2367_v29  ;;  %v2361_v31 = vld [vmem:[%s11071_s25 + $0x160] sm:$0xff] }
 0x128   : > { %1095 = vst.msk [vmem:[#allocation4 + $0x1b0] sm:$0xff] %vm1088_vm3, %v1062_v35  ;;  %1553 = vrot.lane.b32.xlu0 %v1515_v27, %s14884_s1  ;;  %1633 = vrot.lane.b32.xlu1 %v1595_v30, %s14885_s17  ;;  %v2343_v27 = vld [vmem:[%s11071_s25 + $0xd0] sm:$0xff]  ;;  %v10282_v35 = vpack.c.bf16 %v2328_v33, %v2327_v32  ;;  %v2362_v32 = vld [vmem:[%s11071_s25 + $0x168] sm:$0xff]  ;;  %s11949_s1 = scalar_lea.vmem %s14901_s9, %s14902_s28  ;;  %s14808_s28 = smov 6  }
 0x129   : > { %v10280_v30 = vpack.c.bf16 %v2344_v28, %v2343_v27  ;;  %10297 = vmatprep.subr.bf16.mxu0 %v10296_v34  ;;  %v2377_v27 = vld [vmem:[%s11071_s25 + $0x1e0] sm:$0xff]  ;;  %v2378_v28 = vld [vmem:[%s11071_s25 + $0x1e8] sm:$0xff]  ;;  %v10318_v37 = vpack.c.bf16 %v2362_v32, %v2361_v31  ;;  %s14908_s9 = smov 14  }
 0x12a   : > { %v1460_v47 = vpop.permute.xlu1 %1459  ;;  %v1142_v48 = vpop.permute.xlu0 %1141  ;;  %v1667_v49 = vld [vmem:[#allocation4 + $0x120] sm:$0xff]  ;;  %10299 = vmatpush3.bf16.msra.mxu0 %v10298_v39  ;;  %v2364_v39 = vld [vmem:[%s11071_s25 + $0x178] sm:$0xff] }
 0x12b   : > { %1494 = vst.msk [vmem:[#allocation4 + $0x168] sm:$0xff] %vm1488_vm8, %v1460_v47  ;;  %9707 = vmatmul.mubr.msk.f32.gmra.mrb[8].mxu0 %vm1688_vm11, %v1667_v49  ;;  %10281 = vmatprep.subr.bf16.mxu1 %v10280_v30  ;;  %v958_v47 = vld [vmem:[%s11056_s13 + $0x50] sm:$0xff]  ;;  %v10316_v30 = vpack.c.bf16 %v2378_v28, %v2377_v27 }
 0x12c   : > { %1175 = vst.msk [vmem:[#allocation4 + $0x1b0] sm:$0xff] %vm1168_vm4, %v1142_v48  ;;  %9709 = vmatprep.mubr.msk.f32.mxu0 %vm11022_vm1, %v11021_v10  ;;  %1877 = vperm.xlu0 %10682, %v948_v44   ;;  %v2370_v44 = vld [vmem:[%s11071_s25 + $0x1a8] sm:$0xff]  ;;  %v959_v48 = vld [vmem:[%s11056_s13 + $0x58] sm:$0xff] }
 0x12d   : > { %1882 = vperm.xlu1 %10683, %v949_v45   ;;  %v2329_v45 = vld [vmem:[%s11071_s25 + $0x60] sm:$0xff]  ;;  %10283 = vmatpush3.bf16.msra.mxu1 %v10282_v35  ;;  %v10300_v49 = vpack.c.bf16 %v2370_v44, %v2369_v42  ;;  %v2379_v35 = vld [vmem:[%s11071_s25 + $0x1f0] sm:$0xff] }
 0x12e   : > { %v1540_v55 = vpop.permute.xlu1 %1539  ;;  %v1222_v56 = vpop.permute.xlu0 %1221  ;;  %v10286_v50 = vpack.c.bf16 %v2330_v46, %v2329_v45  ;;  %10285 = vmatprep.subr.bf16.mxu1 %v10284_v43  ;;  %v11667_v43 = vld [vmem:[#allocation2 + $0x2] sm:$0xff] }
 0x12f   : > { %1574 = vst.msk [vmem:[#allocation4 + $0x168] sm:$0xff] %vm1568_vm9, %v1540_v55  ;;  %v10302_v55 = vpack.c.bf16 %v2354_v54, %v2353_v51  ;;  %10301 = vmatprep.subr.bf16.mxu0 %v10300_v49  ;;  %2031 = vst [vmem:[#allocation4 + $0x10] sm:$0xff] %v11667_v43 }
 0x130   : > { %1255 = vst.msk [vmem:[#allocation4 + $0x1b0] sm:$0xff] %vm1248_vm5, %v1222_v56  ;;  %1892 = vperm.xlu0 %10682, %v951_v53   ;;  %v2347_v56 = vld [vmem:[%s11071_s25 + $0xf0] sm:$0xff] }
 0x131   : > { %1887 = vperm.xlu1 %10683, %v950_v57   ;;  %v2348_v57 = vld [vmem:[%s11071_s25 + $0xf8] sm:$0xff]  ;;  %10287 = vmatpush3.bf16.msra.mxu1 %v10286_v50 }
 0x132   : > { %v1620_v59 = vpop.permute.xlu1 %1619  ;;  %v1302_v60 = vpop.permute.xlu0 %1301  ;;  %10303 = vmatpush3.bf16.msra.mxu0 %v10302_v55 }
 0x133   : > { %1654 = vst.msk [vmem:[#allocation4 + $0x168] sm:$0xff] %vm1648_vm10, %v1620_v59  ;;  %v10288_v59 = vpack.c.bf16 %v2348_v57, %v2347_v56 }
 0x134   : > { %1335 = vst.msk [vmem:[#allocation4 + $0x1b0] sm:$0xff] %vm1328_vm6, %v1302_v60  ;;  %1902 = vperm.xlu0 %10682, %v953_v58   ;;  %v2371_v58 = vld [vmem:[%s11071_s25 + $0x1b0] sm:$0xff]  ;;  %v2372_v60 = vld [vmem:[%s11071_s25 + $0x1b8] sm:$0xff] }
 0x135   : > { %1897 = vperm.xlu1 %10683, %v952_v61   ;;  %v2331_v61 = vld [vmem:[%s11071_s25 + $0x70] sm:$0xff]  ;;  %v10304_v0 = vpack.c.bf16 %v2372_v60, %v2371_v58  ;;  %10289 = vmatprep.subr.bf16.mxu1 %v10288_v59 }
 0x136   : > { %v1382_v5 = vpop.permute.xlu1 %1381  ;;  %v1064_v7 = vpop.permute.xlu0 %1063  ;;  %v10290_v1 = vpack.c.bf16 %v2332_v62, %v2331_v61 }
 0x137   : > { %1415 = vst.msk [vmem:[#allocation4 + $0x1b0] sm:$0xff] %vm1408_vm7, %v1382_v5  ;;  %10305 = vmatprep.subr.bf16.mxu0 %v10304_v0 }
 0x138   : > { %1096 = vst.msk [vmem:[#allocation4 + $0x1f8] sm:$0xff] %vm1088_vm3, %v1064_v7  ;;  %1912 = vperm.xlu0 %10682, %v955_v3   ;;  %v2356_v3 = vld [vmem:[%s11071_s25 + $0x138] sm:$0xff]  ;;  %v2373_v7 = vld [vmem:[%s11071_s25 + $0x1c0] sm:$0xff]  ;;  %10291 = vmatpush3.bf16.msra.mxu1 %v10290_v1 }
 0x139   : > { %1907 = vperm.xlu1 %10683, %v954_v8   ;;  %v2374_v8 = vld [vmem:[%s11071_s25 + $0x1c8] sm:$0xff]  ;;  %v10306_v9 = vpack.c.bf16 %v2356_v3, %v2355_v2 }
 0x13a   : > { %v1462_v22 = vpop.permute.xlu1 %1461  ;;  %v1144_v23 = vpop.permute.xlu0 %1143  ;;  %v1668_v24 = vld [vmem:[#allocation4 + $0x168] sm:$0xff]  ;;  %v10308_v12 = vpack.c.bf16 %v2374_v8, %v2373_v7 }
 0x13b   : > { %1495 = vst.msk [vmem:[#allocation4 + $0x1b0] sm:$0xff] %vm1488_vm8, %v1462_v22  ;;  %9710 = vmatmul.mubr.msk.f32.gmra.mrb[10].mxu0 %vm1688_vm11, %v1668_v24  ;;  %2533 = vmatmul.mubr.f32.vlgmr.msra.gmra.mrb[0].mxu1 %v11644_v20  ;;  %v10312_v22 = vpack.c.bf16 %v2376_v19, %v2375_v18  ;;  %v2360_v24 = vld [vmem:[%s11071_s25 + $0x158] sm:$0xff] }
 0x13c   : > { %1176 = vst.msk [vmem:[#allocation4 + $0x1f8] sm:$0xff] %vm1168_vm4, %v1144_v23  ;;  %9712 = vmatprep.mubr.msk.f32.mxu0 %vm11022_vm1, %v11021_v10  ;;  %1922 = vperm.xlu0 %10682, %v957_v17   ;;  %v2359_v23 = vld [vmem:[%s11071_s25 + $0x150] sm:$0xff] }
 0x13d   : > { %1917 = vperm.xlu1 %10683, %v956_v25   ;;  %10307 = vmatpush3.bf16.msra.mxu0 %v10306_v9  ;;  %v10314_v29 = vpack.c.bf16 %v2360_v24, %v2359_v23  ;;  %v11713_v23 = vld [vmem:[%s14888_s21] ss:$0 sm:$0xff]  ;;  %s14910_s21 = smov 64  }
 0x13e   : > { %v1542_v38 = vpop.permute.xlu1 %1541  ;;  %v1224_v10 = vpop.permute.xlu0 %1223  ;;  %10309 = vmatprep.subr.bf16.mxu0 %v10308_v12 }
 0x13f   : > { %1575 = vst.msk [vmem:[#allocation4 + $0x1b0] sm:$0xff] %vm1568_vm9, %v1542_v38  ;;  %v10320_v38 = vpack.c.bf16 %v2380_v36, %v2379_v35 }
 0x140   : > { %1256 = vst.msk [vmem:[#allocation4 + $0x1f8] sm:$0xff] %vm1248_vm5, %v1224_v10  ;;  %1932 = vperm.xlu0 %10682, %v959_v48   ;;  %v2363_v10 = vld [vmem:[%s11071_s25 + $0x170] sm:$0xff] }
 0x141   : > { %1927 = vperm.xlu1 %10683, %v958_v47   ;;  %10311 = vmatpush3.bf16.msra.mxu0 %v10310_v21  ;;  %v10322_v42 = vpack.c.bf16 %v2364_v39, %v2363_v10  ;;  %v2398_v10 = vld [vmem:[%s11071_s25 + $0x288] sm:$0xff]  ;;  %v2381_v39 = vld [vmem:[%s11071_s25 + $0x200] sm:$0xff] }
 0x142   : > { %v1622_v52 = vpop.permute.xlu1 %1621  ;;  %v1304_v53 = vpop.permute.xlu0 %1303  ;;  %10313 = vmatprep.subr.bf16.mxu0 %v10312_v22 }
 0x143   : > { %1655 = vst.msk [vmem:[#allocation4 + $0x1b0] sm:$0xff] %vm1648_vm10, %v1622_v52 }
 0x144   : > { %1336 = vst.msk [vmem:[#allocation4 + $0x1f8] sm:$0xff] %vm1328_vm6, %v1304_v53 }
 0x145   : > { %1937 = vperm.xlu1 %10683, %v960_v63   ;;  %10315 = vmatpush3.bf16.msra.mxu0 %v10314_v29 }
 0x146   : > { %v1384_v4 = vpop.permute.xlu1 %1383  ;;  %v1066_v5 = vpop.permute.xlu0 %1065  ;;  %10317 = vmatprep.subr.bf16.mxu0 %v10316_v30 }
 0x147   : > { %1416 = vst.msk [vmem:[#allocation4 + $0x1f8] sm:$0xff] %vm1408_vm7, %v1384_v4 }
 0x148   : > { %1097 = vst.msk [vmem:[#allocation4 + $0x240] sm:$0xff] %vm1088_vm3, %v1066_v5 }
 0x149   : > { %10319 = vmatpush3.bf16.msra.mxu0 %v10318_v37 }
 0x14a   : > { %v1464_v15 = vpop.permute.xlu1 %1463  ;;  %v1146_v16 = vpop.permute.xlu0 %1145  ;;  %v1669_v17 = vld [vmem:[#allocation4 + $0x1b0] sm:$0xff]  ;;  %10321 = vmatprep.subr.bf16.mxu0 %v10320_v38  ;;  %v2397_v38 = vld [vmem:[%s11071_s25 + $0x280] sm:$0xff] }
 0x14b   : > { %1496 = vst.msk [vmem:[#allocation4 + $0x1f8] sm:$0xff] %vm1488_vm8, %v1464_v15  ;;  %9713 = vmatmul.mubr.msk.f32.gmra.mrb[12].mxu0 %vm1688_vm11, %v1669_v17 }
 0x14c   : > { %1177 = vst.msk [vmem:[#allocation4 + $0x240] sm:$0xff] %vm1168_vm4, %v1146_v16  ;;  %9715 = vmatprep.mubr.msk.f32.mxu0 %vm11022_vm1, %v11644_v20 }
 0x14d   : > { %10323 = vmatpush3.bf16.msra.mxu0 %v10322_v42  ;;  %v2399_v42 = vld [vmem:[%s11071_s25 + $0x290] sm:$0xff] }
 0x14e   : > { %v1544_v25 = vpop.permute.xlu1 %1543  ;;  %v1226_v26 = vpop.permute.xlu0 %1225 }
 0x14f   : > { %1576 = vst.msk [vmem:[#allocation4 + $0x1f8] sm:$0xff] %vm1568_vm9, %v1544_v25 }
 0x150   : > { %1257 = vst.msk [vmem:[#allocation4 + $0x240] sm:$0xff] %vm1248_vm5, %v1226_v26 }
 0x152   : > { %v1624_v33 = vpop.permute.xlu1 %1623  ;;  %v1306_v34 = vpop.permute.xlu0 %1305 }
 0x153   : > { %1656 = vst.msk [vmem:[#allocation4 + $0x1f8] sm:$0xff] %vm1648_vm10, %v1624_v33 }
 0x154   : > { %1337 = vst.msk [vmem:[#allocation4 + $0x240] sm:$0xff] %vm1328_vm6, %v1306_v34 }
 0x156   : > { %v1386_v40 = vpop.permute.xlu1 %1385  ;;  %v1068_v41 = vpop.permute.xlu0 %1067 }
 0x157   : > { %1417 = vst.msk [vmem:[#allocation4 + $0x240] sm:$0xff] %vm1408_vm7, %v1386_v40  ;;  %v10324_v40 = vpack.c.bf16 %v2398_v10, %v2397_v38  ;;  %v2407_v38 = vld [vmem:[%s11071_s25 + $0x2d0] sm:$0xff]  ;;  %v2408_v10 = vld [vmem:[%s11071_s25 + $0x2d8] sm:$0xff] }
 0x158   : > { %1098 = vst.msk [vmem:[#allocation4 + $0x288] sm:$0xff] %vm1088_vm3, %v1068_v41  ;;  %v2382_v41 = vld [vmem:[%s11071_s25 + $0x208] sm:$0xff] }
 0x159   : > { %10325 = vmatprep.subr.bf16.mxu1 %v10324_v40  ;;  %v10344_v40 = vpack.c.bf16 %v2408_v10, %v2407_v38  ;;  %v2422_v38 = vld [vmem:[%s11071_s25 + $0x348] sm:$0xff] }
 0x15a   : > { %v1466_v44 = vpop.permute.xlu1 %1465  ;;  %v1148_v45 = vpop.permute.xlu0 %1147  ;;  %v1670_v46 = vld [vmem:[#allocation4 + $0x1f8] sm:$0xff] }
 0x15b   : > { %1497 = vst.msk [vmem:[#allocation4 + $0x240] sm:$0xff] %vm1488_vm8, %v1466_v44  ;;  %9716 = vmatmul.mubr.msk.f32.gmra.mrb[14].mxu0 %vm1688_vm11, %v1670_v46  ;;  %v10326_v44 = vpack.c.bf16 %v2382_v41, %v2381_v39  ;;  %v2383_v46 = vld [vmem:[%s11071_s25 + $0x210] sm:$0xff] }
 0x15c   : > { %1178 = vst.msk [vmem:[#allocation4 + $0x288] sm:$0xff] %vm1168_vm4, %v1148_v45  ;;  %9718 = vmatprep.mubr.msk.f32.mxu0 %vm11022_vm1, %v11644_v20  ;;  %v2431_v39 = vld [vmem:[%s11071_s25 + $0x390] sm:$0xff] }
 0x15d   : > { %10327 = vmatpush3.bf16.msra.mxu1 %v10326_v44  ;;  %v2391_v41 = vld [vmem:[%s11071_s25 + $0x250] sm:$0xff] }
 0x15e   : > { %v1546_v47 = vpop.permute.xlu1 %1545  ;;  %v1228_v48 = vpop.permute.xlu0 %1227 }
 0x15f   : > { %1577 = vst.msk [vmem:[#allocation4 + $0x240] sm:$0xff] %vm1568_vm9, %v1546_v47  ;;  %v2384_v47 = vld [vmem:[%s11071_s25 + $0x218] sm:$0xff] }
 0x160   : > { %1258 = vst.msk [vmem:[#allocation4 + $0x288] sm:$0xff] %vm1248_vm5, %v1228_v48  ;;  %v2401_v48 = vld [vmem:[%s11071_s25 + $0x2a0] sm:$0xff] }
 0x162   : > { %v1626_v49 = vpop.permute.xlu1 %1625  ;;  %v1308_v50 = vpop.permute.xlu0 %1307 }
 0x163   : > { %1657 = vst.msk [vmem:[#allocation4 + $0x240] sm:$0xff] %vm1648_vm10, %v1626_v49  ;;  %v2402_v49 = vld [vmem:[%s11071_s25 + $0x2a8] sm:$0xff] }
 0x164   : > { %1338 = vst.msk [vmem:[#allocation4 + $0x288] sm:$0xff] %vm1328_vm6, %v1308_v50  ;;  %v10330_v50 = vpack.c.bf16 %v2384_v47, %v2383_v46  ;;  %v2415_v46 = vld [vmem:[%s11071_s25 + $0x310] sm:$0xff]  ;;  %v2416_v47 = vld [vmem:[%s11071_s25 + $0x318] sm:$0xff] }
 0x166   : > { %v1388_v51 = vpop.permute.xlu1 %1387  ;;  %v1070_v52 = vpop.permute.xlu0 %1069 }
 0x167   : > { %1418 = vst.msk [vmem:[#allocation4 + $0x288] sm:$0xff] %vm1408_vm7, %v1388_v51  ;;  %v2385_v51 = vld [vmem:[%s11071_s25 + $0x220] sm:$0xff] }
 0x168   : > { %1099 = vst.msk [vmem:[#allocation4 + $0x2d0] sm:$0xff] %vm1088_vm3, %v1070_v52  ;;  %v2386_v52 = vld [vmem:[%s11071_s25 + $0x228] sm:$0xff] }
 0x16a   : > { %v1468_v53 = vpop.permute.xlu1 %1467  ;;  %v1150_v54 = vpop.permute.xlu0 %1149  ;;  %v1671_v55 = vld [vmem:[#allocation4 + $0x240] sm:$0xff] }
 0x16b   : > { %1498 = vst.msk [vmem:[#allocation4 + $0x288] sm:$0xff] %vm1488_vm8, %v1468_v53  ;;  %9719 = vmatmul.mubr.msk.f32.gmra.mrb[16].mxu0 %vm1688_vm11, %v1671_v55 }
 0x16c   : > { %1179 = vst.msk [vmem:[#allocation4 + $0x2d0] sm:$0xff] %vm1168_vm4, %v1150_v54  ;;  %9721 = vmatprep.mubr.msk.f32.mxu0 %vm11022_vm1, %v11644_v20 }
 0x16e   : > { %v1548_v56 = vpop.permute.xlu1 %1547  ;;  %v1230_v57 = vpop.permute.xlu0 %1229 }
 0x16f   : > { %1578 = vst.msk [vmem:[#allocation4 + $0x288] sm:$0xff] %vm1568_vm9, %v1548_v56  ;;  %v10332_v56 = vpack.c.bf16 %v2402_v49, %v2401_v48  ;;  %v10362_v48 = vpack.c.bf16 %v2416_v47, %v2415_v46  ;;  %v2409_v49 = vld [vmem:[%s11071_s25 + $0x2e0] sm:$0xff]  ;;  %v2442_v47 = vld [vmem:[%s11071_s25 + $0x3e8] sm:$0xff] }
 0x170   : > { %1259 = vst.msk [vmem:[#allocation4 + $0x2d0] sm:$0xff] %vm1248_vm5, %v1230_v57  ;;  %v2441_v46 = vld [vmem:[%s11071_s25 + $0x3e0] sm:$0xff] }
 0x172   : > { %v1628_v58 = vpop.permute.xlu1 %1627  ;;  %v1310_v59 = vpop.permute.xlu0 %1309 }
 0x173   : > { %1658 = vst.msk [vmem:[#allocation4 + $0x288] sm:$0xff] %vm1648_vm10, %v1628_v58 }
 0x174   : > { %1339 = vst.msk [vmem:[#allocation4 + $0x2d0] sm:$0xff] %vm1328_vm6, %v1310_v59 }
 0x176   : > { %v1390_v60 = vpop.permute.xlu1 %1389  ;;  %v1072_v61 = vpop.permute.xlu0 %1071 }
 0x177   : > { %1419 = vst.msk [vmem:[#allocation4 + $0x2d0] sm:$0xff] %vm1408_vm7, %v1390_v60 }
 0x178   : > { %1100 = vst.msk [vmem:[#allocation4 + $0x318] sm:$0xff] %vm1088_vm3, %v1072_v61  ;;  %vm1421_vm3 = vcmask 191648   ;;  %v10334_v61 = vpack.c.bf16 %v2386_v52, %v2385_v51  ;;  %v2433_v51 = vld [vmem:[%s11071_s25 + $0x3a0] sm:$0xff] }
 0x17a   : > { %v1470_v62 = vpop.permute.xlu1 %1469  ;;  %v1152_v63 = vpop.permute.xlu0 %1151  ;;  %v1672_v0 = vld [vmem:[#allocation4 + $0x288] sm:$0xff] }
 0x17b   : > { %1499 = vst.msk [vmem:[#allocation4 + $0x2d0] sm:$0xff] %vm1488_vm8, %v1470_v62  ;;  %9722 = vmatmul.mubr.msk.f32.gmra.mrb[18].mxu0 %vm1688_vm11, %v1672_v0 }
 0x17c   : > { %1180 = vst.msk [vmem:[#allocation4 + $0x318] sm:$0xff] %vm1168_vm4, %v1152_v63  ;;  %9724 = vmatprep.mubr.msk.f32.mxu0 %vm11022_vm1, %v11644_v20  ;;  %vm1501_vm4 = vcmask 224448  }
 0x17e   : > { %v1550_v1 = vpop.permute.xlu1 %1549  ;;  %v1232_v2 = vpop.permute.xlu0 %1231 }
 0x17f   : > { %1579 = vst.msk [vmem:[#allocation4 + $0x2d0] sm:$0xff] %vm1568_vm9, %v1550_v1  ;;  %v2403_v1 = vld [vmem:[%s11071_s25 + $0x2b0] sm:$0xff] }
 0x180   : > { %1260 = vst.msk [vmem:[#allocation4 + $0x318] sm:$0xff] %vm1248_vm5, %v1232_v2  ;;  %vm1581_vm5 = vcmask 257248   ;;  %v2404_v2 = vld [vmem:[%s11071_s25 + $0x2b8] sm:$0xff] }
 0x182   : > { %v1630_v3 = vpop.permute.xlu1 %1629  ;;  %v1312_v4 = vpop.permute.xlu0 %1311 }
 0x183   : > { %1659 = vst.msk [vmem:[#allocation4 + $0x2d0] sm:$0xff] %vm1648_vm10, %v1630_v3  ;;  %v2387_v3 = vld [vmem:[%s11071_s25 + $0x230] sm:$0xff] }
 0x184   : > { %1340 = vst.msk [vmem:[#allocation4 + $0x318] sm:$0xff] %vm1328_vm6, %v1312_v4  ;;  %vm1661_vm6 = vcmask 290048   ;;  %v10336_v4 = vpack.c.bf16 %v2404_v2, %v2403_v1 }
 0x186   : > { %v1392_v5 = vpop.permute.xlu0 %1391  ;;  %v1472_v7 = vpop.permute.xlu1 %1471 }
 0x187   : > { %1420 = vst.msk [vmem:[#allocation4 + $0x318] sm:$0xff] %vm1408_vm7, %v1392_v5  ;;  %v2388_v5 = vld [vmem:[%s11071_s25 + $0x238] sm:$0xff]  ;;  %vm3157_vm7 = vcmask 519168  }
 0x188   : > { %1500 = vst.msk [vmem:[#allocation4 + $0x318] sm:$0xff] %vm1488_vm8, %v1472_v7  ;;  %v10338_v7 = vpack.c.bf16 %v2388_v5, %v2387_v3  ;;  %v2411_v3 = vld [vmem:[%s11071_s25 + $0x2f0] sm:$0xff]  ;;  %vm3250_vm8 = vcmask 1048064  }
 0x189   : > { %v2395_v5 = vld [vmem:[%s11071_s25 + $0x270] sm:$0xff] }
 0x18a   : > { %v1552_v8 = vpop.permute.xlu0 %1551  ;;  %v1632_v9 = vpop.permute.xlu1 %1631  ;;  %v1673_v11 = vld [vmem:[#allocation4 + $0x2d0] sm:$0xff] }
 0x18b   : > { %1580 = vst.msk [vmem:[#allocation4 + $0x318] sm:$0xff] %vm1568_vm9, %v1552_v8  ;;  %9725 = vmatmul.mubr.msk.f32.gmra.mrb[20].mxu0 %vm1688_vm11, %v1673_v11  ;;  %vm4215_vm9 = vcmask 15360  }
 0x18c   : > { %1660 = vst.msk [vmem:[#allocation4 + $0x318] sm:$0xff] %vm1648_vm10, %v1632_v9  ;;  %9727 = vmatprep.mubr.msk.f32.mxu0 %vm11022_vm1, %v11644_v20  ;;  %vm4295_vm10 = vcmask 31760  }
 0x18e   : > { %v1074_v12 = vpop.permute.xlu0 %1073  ;;  %v1154_v13 = vpop.permute.xlu1 %1153 }
 0x18f   : > { %1102 = vst.msk [vmem:[#allocation4 + $0x360] sm:$0xf] %vm1101_vm14, %v1074_v12  ;;  %vm4535_vm14 = vcmask 80960  }
 0x190   : > { %1182 = vst.msk [vmem:[#allocation4 + $0x360] sm:$0xf] %vm1181_vm15, %v1154_v13  ;;  %vm4615_vm15 = vcmask 97360  }
 0x192   : > { %v1234_v14 = vpop.permute.xlu0 %1233  ;;  %v1314_v15 = vpop.permute.xlu1 %1313 }
 0x193   : > { %1262 = vst.msk [vmem:[#allocation4 + $0x360] sm:$0xf] %vm1261_vm0, %v1234_v14  ;;  %v1674_v16 = vld [vmem:[#allocation4 + $0x318] sm:$0xff]  ;;  %vm4695_vm0 = vcmask 113760  }
 0x194   : > { %1342 = vst.msk [vmem:[#allocation4 + $0x360] sm:$0xf] %vm1341_vm2, %v1314_v15  ;;  %9728 = vmatmul.mubr.msk.f32.gmra.mrb[22].mxu0 %vm1688_vm11, %v1674_v16  ;;  %vm3263_vm2 = vcmask 1043968  }
 0x195   : > { %9730 = vmatprep.mubr.msk.f32.mxu0 %vm11022_vm1, %v11644_v20 }
 0x196   : > { %v1394_v17 = vpop.permute.xlu0 %1393  ;;  %v1474_v18 = vpop.permute.xlu1 %1473 }
 0x197   : > { %1422 = vst.msk [vmem:[#allocation4 + $0x360] sm:$0xf] %vm1421_vm3, %v1394_v17  ;;  %vm4775_vm3 = vcmask 130160  }
 0x198   : > { %1502 = vst.msk [vmem:[#allocation4 + $0x360] sm:$0xf] %vm1501_vm4, %v1474_v18  ;;  %vm4855_vm4 = vcmask 146560  }
 0x19a   : > { %v1554_v19 = vpop.permute.xlu0 %1553  ;;  %v1634_v21 = vpop.permute.xlu1 %1633 }
 0x19b   : > { %1582 = vst.msk [vmem:[#allocation4 + $0x360] sm:$0xf] %vm1581_vm5, %v1554_v19  ;;  %v2405_v19 = vld [vmem:[%s11071_s25 + $0x2c0] sm:$0xff]  ;;  %vm977_vm5 = vcmask 130048  }
 0x19c   : > { %1662 = vst.msk [vmem:[#allocation4 + $0x360] sm:$0xf] %vm1661_vm6, %v1634_v21  ;;  %v2406_v21 = vld [vmem:[%s11071_s25 + $0x2c8] sm:$0xff]  ;;  %vm4933_vm6 = vcmask 1041408  }
 0x1a3   : > { %v1675_v22 = vld [vmem:[#allocation4 + $0x360] sm:$0xf] }
 0x1a4   : > { %9731 = vmatmul.mubr.msk.f32.gmra.mrb[24].mxu0 %vm1688_vm11, %v1675_v22  ;;  %v2429_v22 = vld [vmem:[%s11071_s25 + $0x380] sm:$0xff]  ;;  %vm4375_vm11 = vcmask 48160  }
 0x1ab   : > { %v11716_v20 = vpop.permute.xlu0 %1877 }
 0x1ac   : > { %14889 = vst [vmem:[#allocation32_spill] sm:$0xff] %v11716_v20  ;;  %v11725_v35 = vpop.permute.xlu1 %1882 }
 0x1ad   : > { %14890 = vst [vmem:[#allocation33_spill] sm:$0xff] %v11725_v35 }
 0x1af   : > { %v11768_v18 = vpop.permute.xlu0 %1892 }
 0x1b0   : > { %v11747_v62 = vpop.permute.xlu1 %1887  ;;  %14892 = vst [vmem:[#allocation35_spill] sm:$0xff] %v11768_v18 }
 0x1b1   : > { %14891 = vst [vmem:[#allocation34_spill] sm:$0xff] %v11747_v62 }
 0x1be   : > { %v1798_v24 = vpop.f32.mrb[0].mxu0 }
 0x1bf   : > { %v1799_v25 = vadd.f32 %v11713_v23, %v1798_v24  ;;  %v9696_v26 = vpop.f32.mrb[1].mxu0 }
 0x1c0   : > { %v2389_v26 = vld [vmem:[%s11071_s25 + $0x240] sm:$0xff] }
 0x1c1   : > { %v1862_v27 = vmax.f32 %v1799_v25, 0.0  ;;  %v10340_v25 = vpack.c.bf16 %v2406_v21, %v2405_v19 }
 0x1c3   : > { %v11719_v28 = vmul.f32 %v11716_v20, %v1862_v27  ;;  %v2390_v27 = vld [vmem:[%s11071_s25 + $0x248] sm:$0xff] }
 0x1c5   : > { %1953 = vst [vmem:[#allocation2 + $0xb] sm:$0xff] %v11719_v28  ;;  %2083 = vst [vmem:[#allocation4 + $0x20] sm:$0xff] %v11719_v28 }
 0x1cc   : > { %v1993_v29 = vld [vmem:[#allocation2 + $0x9] sm:$0xff] }
 0x1cd   : > { %v1967_v30 = vld [vmem:[#allocation2 + $0x8] sm:$0xff]  ;;  %2006 = vst [vmem:[#allocation4 + $0x50] sm:$0xff] %v1993_v29  ;;  %2537 = vmatprep.mubr.f32.mxu1 %v1993_v29 }
 0x1ce   : > { %v2044_v31 = vld [vmem:[#allocation2 + $0xa] sm:$0xff]  ;;  %1980 = vst [vmem:[#allocation4 + $0x48] sm:$0xff] %v1967_v30  ;;  %v1803_v32 = vpop.f32.mrb[2].mxu0  ;;  %2538 = vmatmul.mubr.f32.gmra.mrb[2].mxu1 %v1967_v30  ;;  %v10342_v30 = vpack.c.bf16 %v2390_v27, %v2389_v26  ;;  %v11816_v26 = vpop.permute.xlu1 %1897 }
 0x1cf   : > { %2057 = vst [vmem:[#allocation4 + $0x18] sm:$0xff] %v2044_v31  ;;  %2662 = vmatprep.mubr.f32.mxu0 %v2044_v31  ;;  %2032 = vst [vmem:[#allocation4 + $0x58] sm:$0xff] %v2044_v31  ;;  %v1804_v33 = vadd.f32 %v11713_v23, %v1803_v32  ;;  %v9699_v34 = vpop.f32.mrb[3].mxu0  ;;  %v2430_v29 = vld [vmem:[%s11071_s25 + $0x388] sm:$0xff]  ;;  %v2413_v32 = vld [vmem:[%s11071_s25 + $0x300] sm:$0xff] }
 0x1d0   : > { %2663 = vmatmul.mubr.f32.vlgmr.msra.gmra.mrb[26].mxu0 %v11667_v43  ;;  %v2400_v43 = vld [vmem:[%s11071_s25 + $0x298] sm:$0xff]  ;;  %14893 = vst [vmem:[#allocation36_spill] sm:$0xff] %v11816_v26 }
 0x1d1   : > { %v1863_v36 = vmax.f32 %v1804_v33, 0.0  ;;  %v10328_v45 = vpack.c.bf16 %v2400_v43, %v2399_v42  ;;  %v2414_v33 = vld [vmem:[%s11071_s25 + $0x308] sm:$0xff]  ;;  %v2392_v42 = vld [vmem:[%s11071_s25 + $0x258] sm:$0xff] }
 0x1d2   : > { %v2432_v43 = vld [vmem:[%s11071_s25 + $0x398] sm:$0xff]  ;;  %v10346_v44 = vpack.c.bf16 %v2392_v42, %v2391_v41 }
 0x1d3   : > { %v11728_v37 = vmul.f32 %v11725_v35, %v1863_v36  ;;  %10329 = vmatprep.subr.bf16.mxu1 %v10328_v45  ;;  %v10358_v36 = vpack.c.bf16 %v2414_v33, %v2413_v32  ;;  %v10360_v45 = vpack.c.bf16 %v2432_v43, %v2431_v39  ;;  %v2438_v32 = vld [vmem:[%s11071_s25 + $0x3c8] sm:$0xff]  ;;  %v2440_v41 = vld [vmem:[%s11071_s25 + $0x3d8] sm:$0xff]  ;;  %v2423_v43 = vld [vmem:[%s11071_s25 + $0x350] sm:$0xff] }
 0x1d4   : > { %10331 = vmatpush3.bf16.msra.mxu1 %v10330_v50  ;;  %v2410_v50 = vld [vmem:[%s11071_s25 + $0x2e8] sm:$0xff] }
 0x1d5   : > { %1954 = vst [vmem:[#allocation2 + $0x13] sm:$0xff] %v11728_v37  ;;  %2084 = vst [vmem:[#allocation4 + $0x68] sm:$0xff] %v11728_v37  ;;  %10333 = vmatprep.subr.bf16.mxu1 %v10332_v56  ;;  %v10348_v52 = vpack.c.bf16 %v2410_v50, %v2409_v49 }
 0x1d8   : > { %10335 = vmatpush3.bf16.msra.mxu1 %v10334_v61 }
 0x1d9   : > { %10337 = vmatprep.subr.bf16.mxu1 %v10336_v4  ;;  %v2412_v4 = vld [vmem:[%s11071_s25 + $0x2f8] sm:$0xff] }
 0x1dc   : > { %v1994_v53 = vld [vmem:[#allocation2 + $0x11] sm:$0xff]  ;;  %10339 = vmatpush3.bf16.msra.mxu1 %v10338_v7 }
 0x1dd   : > { %v2045_v54 = vld [vmem:[#allocation2 + $0x12] sm:$0xff]  ;;  %2007 = vst [vmem:[#allocation4 + $0x98] sm:$0xff] %v1994_v53  ;;  %2542 = vmatprep.mubr.f32.mxu1 %v1994_v53  ;;  %10341 = vmatprep.subr.bf16.mxu1 %v10340_v25  ;;  %v2393_v53 = vld [vmem:[%s11071_s25 + $0x260] sm:$0xff] }
 0x1de   : > { %v1968_v55 = vld [vmem:[#allocation2 + $0x10] sm:$0xff]  ;;  %2058 = vst [vmem:[#allocation4 + $0x60] sm:$0xff] %v2045_v54  ;;  %2667 = vmatprep.mubr.f32.mxu0 %v2045_v54  ;;  %2033 = vst [vmem:[#allocation4 + $0xa0] sm:$0xff] %v2045_v54  ;;  %v1808_v58 = vpop.f32.mrb[4].mxu0 }
 0x1df   : > { %1981 = vst [vmem:[#allocation4 + $0x90] sm:$0xff] %v1968_v55  ;;  %v11744_v57 = vld [vmem:[#allocation2 + $0xc] sm:$0xff]  ;;  %2543 = vmatmul.mubr.f32.gmra.mrb[4].mxu1 %v1968_v55  ;;  %2668 = vmatmul.mubr.f32.gmra.mrb[28].mxu0 %v2044_v31  ;;  %v1809_v59 = vadd.f32 %v11713_v23, %v1808_v58  ;;  %v9702_v60 = vpop.f32.mrb[5].mxu0  ;;  %v10356_v31 = vpack.c.bf16 %v2430_v29, %v2429_v22 }
 0x1e0   : > { %10343 = vmatpush3.bf16.msra.mxu1 %v10342_v30  ;;  %v2434_v55 = vld [vmem:[%s11071_s25 + $0x3a8] sm:$0xff]  ;;  %v2419_v22 = vld [vmem:[%s11071_s25 + $0x330] sm:$0xff] }
 0x1e1   : > { %v1864_v63 = vmax.f32 %v1809_v59, 0.0  ;;  %10357 = vmatprep.subr.bf16.mxu0 %v10356_v31  ;;  %10345 = vmatprep.subr.bf16.mxu1 %v10344_v40  ;;  %v10364_v58 = vpack.c.bf16 %v2434_v55, %v2433_v51  ;;  %v2417_v59 = vld [vmem:[%s11071_s25 + $0x320] sm:$0xff]  ;;  %v2418_v60 = vld [vmem:[%s11071_s25 + $0x328] sm:$0xff]  ;;  %v2439_v40 = vld [vmem:[%s11071_s25 + $0x3d0] sm:$0xff]  ;;  %v10380_v51 = vpack.c.bf16 %v2442_v47, %v2441_v46 }
 0x1e2   : > { %10359 = vmatpush3.bf16.msra.mxu0 %v10358_v36  ;;  %v10366_v61 = vpack.c.bf16 %v2418_v60, %v2417_v59  ;;  %v2437_v31 = vld [vmem:[%s11071_s25 + $0x3c0] sm:$0xff]  ;;  %v10376_v42 = vpack.c.bf16 %v2440_v41, %v2439_v40 }
 0x1e3   : > { %v11750_v0 = vmul.f32 %v11747_v62, %v1864_v63  ;;  %10361 = vmatprep.subr.bf16.mxu0 %v10360_v45  ;;  %v10372_v33 = vpack.c.bf16 %v2438_v32, %v2437_v31  ;;  %v2421_v36 = vld [vmem:[%s11071_s25 + $0x340] sm:$0xff] }
 0x1e4   : > { %10347 = vmatpush3.bf16.msra.mxu1 %v10346_v44  ;;  %v10374_v39 = vpack.c.bf16 %v2422_v38, %v2421_v36  ;;  %v2424_v44 = vld [vmem:[%s11071_s25 + $0x358] sm:$0xff] }
 0x1e5   : > { %1955 = vst [vmem:[#allocation2 + $0x1b] sm:$0xff] %v11750_v0  ;;  %2085 = vst [vmem:[#allocation4 + $0xb0] sm:$0xff] %v11750_v0  ;;  %10349 = vmatprep.subr.bf16.mxu1 %v10348_v52  ;;  %v10378_v45 = vpack.c.bf16 %v2424_v44, %v2423_v43 }
 0x1e6   : > { %10363 = vmatpush3.bf16.msra.mxu0 %v10362_v48 }
 0x1e7   : > { %10365 = vmatprep.subr.bf16.mxu0 %v10364_v58 }
 0x1ea   : > { %10367 = vmatpush3.bf16.msra.mxu0 %v10366_v61 }
 0x1ec   : > { %v1995_v8 = vld [vmem:[#allocation2 + $0x19] sm:$0xff] }
 0x1ed   : > { %v11758_v9 = vld [vmem:[#allocation2 + $0x1a] sm:$0xff]  ;;  %2008 = vst [vmem:[#allocation4 + $0xe0] sm:$0xff] %v1995_v8  ;;  %2547 = vmatprep.mubr.f32.mxu1 %v1995_v8  ;;  %v10352_v8 = vpack.c.bf16 %v2412_v4, %v2411_v3  ;;  %v11850_v3 = vpop.permute.xlu0 %1902 }
 0x1ee   : > { %v1969_v11 = vld [vmem:[#allocation2 + $0x18] sm:$0xff]  ;;  %2059 = vst [vmem:[#allocation4 + $0xa8] sm:$0xff] %v11758_v9  ;;  %2672 = vmatprep.mubr.f32.mxu0 %v11758_v9  ;;  %2034 = vst [vmem:[#allocation4 + $0xe8] sm:$0xff] %v11758_v9  ;;  %v1813_v15 = vpop.f32.mrb[6].mxu0 }
 0x1ef   : > { %1982 = vst [vmem:[#allocation4 + $0xd8] sm:$0xff] %v1969_v11  ;;  %v11763_v12 = vld [vmem:[#allocation2 + $0x14] sm:$0xff]  ;;  %2548 = vmatmul.mubr.f32.gmra.mrb[6].mxu1 %v1969_v11  ;;  %2673 = vmatmul.mubr.f32.gmra.mrb[30].mxu0 %v2045_v54  ;;  %v1814_v16 = vadd.f32 %v11713_v23, %v1813_v15  ;;  %v9705_v17 = vpop.f32.mrb[7].mxu0  ;;  %v2394_v54 = vld [vmem:[%s11071_s25 + $0x268] sm:$0xff]  ;;  %14894 = vst [vmem:[#allocation37_spill] sm:$0xff] %v11850_v3 }
 0x1f0   : > { %v11765_v13 = vld [vmem:[#allocation2 + $0x15] sm:$0xff]  ;;  %v10350_v56 = vpack.c.bf16 %v2394_v54, %v2393_v53  ;;  %v2425_v53 = vld [vmem:[%s11071_s25 + $0x360] sm:$0xff]  ;;  %v2426_v54 = vld [vmem:[%s11071_s25 + $0x368] sm:$0xff] }
 0x1f1   : > { %v2174_v14 = vld [vmem:[#allocation2 + $0x16] sm:$0xff]  ;;  %v1865_v24 = vmax.f32 %v1814_v16, 0.0 }
 0x1f2   : > { %2187 = vst [vmem:[#allocation4 + $0x40] sm:$0xff] %v2174_v14  ;;  %10351 = vmatpush3.bf16.msra.mxu1 %v10350_v56  ;;  %v2396_v11 = vld [vmem:[%s11071_s25 + $0x278] sm:$0xff]  ;;  %v2435_v14 = vld [vmem:[%s11071_s25 + $0x3b0] sm:$0xff]  ;;  %v10382_v56 = vpack.c.bf16 %v2426_v54, %v2425_v53 }
 0x1f3   : > { %v11779_v34 = vmul.f32 %v11768_v18, %v1865_v24  ;;  %v2436_v15 = vld [vmem:[%s11071_s25 + $0x3b8] sm:$0xff]  ;;  %v10354_v19 = vpack.c.bf16 %v2396_v11, %v2395_v5  ;;  %10353 = vmatprep.subr.bf16.mxu1 %v10352_v8  ;;  %v2427_v5 = vld [vmem:[%s11071_s25 + $0x370] sm:$0xff] }
 0x1f4   : > { %v10368_v21 = vpack.c.bf16 %v2436_v15, %v2435_v14  ;;  %v2420_v24 = vld [vmem:[%s11071_s25 + $0x338] sm:$0xff] }
 0x1f5   : > { %1956 = vst [vmem:[#allocation2 + $0x23] sm:$0xff] %v11779_v34  ;;  %2086 = vst [vmem:[#allocation4 + $0xf8] sm:$0xff] %v11779_v34 }
 0x1f6   : > { %10355 = vmatpush3.bf16.msra.mxu1 %v10354_v19  ;;  %10369 = vmatprep.subr.bf16.mxu0 %v10368_v21 }
 0x1f7   : > { %10388 = vmatprep.subr.bf16.mxu1 %v14782_v6  ;;  %v4230_v6 = vld [vmem:[%s11949_s1 + $0x1] sm:$0xff] }
 0x1fc   : > { %v1996_v63 = vld [vmem:[#allocation2 + $0x21] sm:$0xff] }
 0x1fd   : > { %v11799_v1 = vld [vmem:[#allocation2 + $0x22] sm:$0xff]  ;;  %2009 = vst [vmem:[#allocation4 + $0x128] sm:$0xff] %v1996_v63  ;;  %2552 = vmatprep.mubr.f32.mxu1 %v1996_v63  ;;  %v2443_v63 = vld [vmem:[%s11071_s25 + $0x3f0] sm:$0xff] }
 0x1fe   : > { %v1970_v2 = vld [vmem:[#allocation2 + $0x20] sm:$0xff]  ;;  %2060 = vst [vmem:[#allocation4 + $0xf0] sm:$0xff] %v11799_v1  ;;  %2677 = vmatprep.mubr.f32.mxu0 %v11799_v1  ;;  %2035 = vst [vmem:[#allocation4 + $0x130] sm:$0xff] %v11799_v1  ;;  %v1818_v7 = vpop.f32.mrb[8].mxu0 }
 0x1ff   : > { %1983 = vst [vmem:[#allocation4 + $0x120] sm:$0xff] %v1970_v2  ;;  %2553 = vmatmul.mubr.f32.gmra.mrb[8].mxu1 %v1970_v2  ;;  %2678 = vmatmul.mubr.f32.gmra.mrb[32].mxu0 %v11758_v9  ;;  %v1819_v16 = vadd.f32 %v11713_v23, %v1818_v7  ;;  %v9708_v17 = vpop.f32.mrb[9].mxu0  ;;  %v11814_v25 = vld [vmem:[#allocation2 + $0x1c] sm:$0xff]  ;;  %v10370_v9 = vpack.c.bf16 %v2420_v24, %v2419_v22 }
 0x200   : > { %v11818_v27 = vld [vmem:[#allocation2 + $0x1d] sm:$0xff] }
 0x201   : > { %v11820_v29 = vld [vmem:[#allocation2 + $0x1e] sm:$0xff]  ;;  %v1866_v30 = vmax.f32 %v1819_v16, 0.0  ;;  %10371 = vmatpush3.bf16.msra.mxu0 %v10370_v9 }
 0x202   : > { %10373 = vmatprep.subr.bf16.mxu0 %v10372_v33  ;;  %v2444_v2 = vld [vmem:[%s11071_s25 + $0x3f8] sm:$0xff] }
 0x203   : > { %v11828_v10 = vmul.f32 %v11816_v26, %v1866_v30  ;;  %v10384_v4 = vpack.c.bf16 %v2444_v2, %v2443_v63  ;;  %v2428_v7 = vld [vmem:[%s11071_s25 + $0x378] sm:$0xff]  ;;  %v11866_v30 = vpop.permute.xlu1 %1907  ;;  %v2134_v63 = vld [vmem:[#allocation2 + $0x74] sm:$0xf]  ;;  %v2454_v26 = vld [vmem:[%s11071_s25 + $0x448] sm:$0xff] }
 0x204   : > { %v10386_v11 = vpack.c.bf16 %v2428_v7, %v2427_v5  ;;  %14895 = vst [vmem:[#allocation38_spill] sm:$0xff] %v11866_v30  ;;  %2147 = vst [vmem:[#allocation4 + $0x390] sm:$0xf] %v2134_v63 }
 0x205   : > { %1957 = vst [vmem:[#allocation2 + $0x2b] sm:$0xff] %v11828_v10  ;;  %2087 = vst [vmem:[#allocation4 + $0x140] sm:$0xff] %v11828_v10  ;;  %10375 = vmatpush3.bf16.msra.mxu0 %v10374_v39 }
 0x206   : > { %10377 = vmatprep.subr.bf16.mxu0 %v10376_v42 }
 0x207   : > { %v11896_v7 = vpop.permute.xlu1 %1917 }
 0x208   : > { %14897 = vst [vmem:[#allocation40_spill] sm:$0xff] %v11896_v7 }
 0x209   : > { %10379 = vmatpush3.bf16.msra.mxu0 %v10378_v45 }
 0x20a   : > { %10381 = vmatprep.subr.bf16.mxu0 %v10380_v51 }
 0x20c   : > { %v1997_v48 = vld [vmem:[#allocation2 + $0x29] sm:$0xff] }
 0x20d   : > { %v2048_v49 = vld [vmem:[#allocation2 + $0x2a] sm:$0xff]  ;;  %2010 = vst [vmem:[#allocation4 + $0x170] sm:$0xff] %v1997_v48  ;;  %2557 = vmatprep.mubr.f32.mxu1 %v1997_v48  ;;  %10383 = vmatpush3.bf16.msra.mxu0 %v10382_v56  ;;  %v11882_v48 = vpop.permute.xlu0 %1912 }
 0x20e   : > { %v1971_v50 = vld [vmem:[#allocation2 + $0x28] sm:$0xff]  ;;  %2061 = vst [vmem:[#allocation4 + $0x138] sm:$0xff] %v2048_v49  ;;  %2682 = vmatprep.mubr.f32.mxu0 %v2048_v49  ;;  %2036 = vst [vmem:[#allocation4 + $0x178] sm:$0xff] %v2048_v49  ;;  %v1823_v55 = vpop.f32.mrb[10].mxu0  ;;  %10385 = vmatprep.subr.bf16.mxu0 %v10384_v4  ;;  %v9095_v33 = vpop.f32.mrb[0].mxu1 }
 0x20f   : > { %1984 = vst [vmem:[#allocation4 + $0x168] sm:$0xff] %v1971_v50  ;;  %v11838_v52 = vld [vmem:[#allocation2 + $0x24] sm:$0xff]  ;;  %2558 = vmatmul.mubr.f32.gmra.mrb[10].mxu1 %v1971_v50  ;;  %2683 = vmatmul.mubr.f32.gmra.mrb[34].mxu0 %v11799_v1  ;;  %v1824_v60 = vadd.f32 %v11713_v23, %v1823_v55  ;;  %v9711_v61 = vpop.f32.mrb[11].mxu0  ;;  %v9096_v36 = vpop.f32.mrb[1].mxu1  ;;  %14896 = vst [vmem:[#allocation39_spill] sm:$0xff] %v11882_v48 }
 0x210   : > { %v11843_v58 = vld [vmem:[#allocation2 + $0x25] sm:$0xff]  ;;  %v11873_v38 = vadd.f32 %v9096_v36, %v9095_v33 }
 0x211   : > { %v11845_v59 = vld [vmem:[#allocation2 + $0x26] sm:$0xff]  ;;  %v1867_v8 = vmax.f32 %v1824_v60, 0.0  ;;  %10387 = vmatpush3.bf16.msra.mxu0 %v10386_v11  ;;  %v2160_v60 = vld [vmem:[#allocation2 + $0x75] sm:$0xf] }
 0x212   : > { %2173 = vst [vmem:[#allocation4 + $0x398] sm:$0xf] %v2160_v60 }
 0x213   : > { %v11855_v1 = vmul.f32 %v11850_v3, %v1867_v8  ;;  %v2453_v3 = vld [vmem:[%s11071_s25 + $0x440] sm:$0xff] }
 0x215   : > { %1958 = vst [vmem:[#allocation2 + $0x33] sm:$0xff] %v11855_v1  ;;  %2088 = vst [vmem:[#allocation4 + $0x188] sm:$0xff] %v11855_v1 }
 0x21c   : > { %v1998_v14 = vld [vmem:[#allocation2 + $0x31] sm:$0xff] }
 0x21d   : > { %v2049_v15 = vld [vmem:[#allocation2 + $0x32] sm:$0xff]  ;;  %2011 = vst [vmem:[#allocation4 + $0x1b8] sm:$0xff] %v1998_v14  ;;  %2562 = vmatprep.mubr.f32.mxu1 %v1998_v14 }
 0x21e   : > { %v1972_v16 = vld [vmem:[#allocation2 + $0x30] sm:$0xff]  ;;  %2062 = vst [vmem:[#allocation4 + $0x180] sm:$0xff] %v2049_v15  ;;  %2687 = vmatprep.mubr.f32.mxu0 %v2049_v15  ;;  %2037 = vst [vmem:[#allocation4 + $0x1c0] sm:$0xff] %v2049_v15  ;;  %v1828_v21 = vpop.f32.mrb[12].mxu0 }
 0x21f   : > { %1985 = vst [vmem:[#allocation4 + $0x1b0] sm:$0xff] %v1972_v16  ;;  %v11859_v17 = vld [vmem:[#allocation2 + $0x2c] sm:$0xff]  ;;  %2563 = vmatmul.mubr.f32.gmra.mrb[12].mxu1 %v1972_v16  ;;  %2688 = vmatmul.mubr.f32.gmra.mrb[36].mxu0 %v2048_v49  ;;  %v1829_v24 = vadd.f32 %v11713_v23, %v1828_v21  ;;  %v9714_v9 = vpop.f32.mrb[13].mxu0 }
 0x220   : > { %v11861_v19 = vld [vmem:[#allocation2 + $0x2d] sm:$0xff] }
 0x221   : > { %v11863_v22 = vld [vmem:[#allocation2 + $0x2e] sm:$0xff]  ;;  %v1868_v31 = vmax.f32 %v1829_v24, 0.0 }
 0x223   : > { %v11869_v32 = vmul.f32 %v11866_v30, %v1868_v31  ;;  %v3485_v30 = vld [vmem:[#allocation2 + $0x74] sm:$0xf] }
 0x225   : > { %1959 = vst [vmem:[#allocation2 + $0x3b] sm:$0xff] %v11869_v32  ;;  %2089 = vst [vmem:[#allocation4 + $0x1d0] sm:$0xff] %v11869_v32 }
 0x22c   : > { %v1999_v39 = vld [vmem:[#allocation2 + $0x39] sm:$0xff] }
 0x22d   : > { %v2050_v40 = vld [vmem:[#allocation2 + $0x3a] sm:$0xff]  ;;  %2012 = vst [vmem:[#allocation4 + $0x200] sm:$0xff] %v1999_v39  ;;  %2567 = vmatprep.mubr.f32.mxu1 %v1999_v39 }
 0x22e   : > { %v1973_v41 = vld [vmem:[#allocation2 + $0x38] sm:$0xff]  ;;  %2063 = vst [vmem:[#allocation4 + $0x1c8] sm:$0xff] %v2050_v40  ;;  %2692 = vmatprep.mubr.f32.mxu0 %v2050_v40  ;;  %2038 = vst [vmem:[#allocation4 + $0x208] sm:$0xff] %v2050_v40  ;;  %v1833_v45 = vpop.f32.mrb[14].mxu0 }
 0x22f   : > { %1986 = vst [vmem:[#allocation4 + $0x1f8] sm:$0xff] %v1973_v41  ;;  %v11875_v42 = vld [vmem:[#allocation2 + $0x34] sm:$0xff]  ;;  %2568 = vmatmul.mubr.f32.gmra.mrb[14].mxu1 %v1973_v41  ;;  %2693 = vmatmul.mubr.f32.gmra.mrb[38].mxu0 %v2049_v15  ;;  %v1834_v46 = vadd.f32 %v11713_v23, %v1833_v45  ;;  %v9717_v47 = vpop.f32.mrb[15].mxu0 }
 0x230   : > { %v11877_v43 = vld [vmem:[#allocation2 + $0x35] sm:$0xff] }
 0x231   : > { %v11879_v44 = vld [vmem:[#allocation2 + $0x36] sm:$0xff]  ;;  %v1869_v49 = vmax.f32 %v1834_v46, 0.0 }
 0x233   : > { %v11885_v50 = vmul.f32 %v11882_v48, %v1869_v49  ;;  %v14904_v48 = vmov 0.0|0.0  }
 0x235   : > { %1960 = vst [vmem:[#allocation2 + $0x43] sm:$0xff] %v11885_v50  ;;  %2090 = vst [vmem:[#allocation4 + $0x218] sm:$0xff] %v11885_v50 }
 0x23c   : > { %v2000_v51 = vld [vmem:[#allocation2 + $0x41] sm:$0xff] }
 0x23d   : > { %v2051_v53 = vld [vmem:[#allocation2 + $0x42] sm:$0xff]  ;;  %2013 = vst [vmem:[#allocation4 + $0x248] sm:$0xff] %v2000_v51  ;;  %2572 = vmatprep.mubr.f32.mxu1 %v2000_v51 }
 0x23e   : > { %v1974_v54 = vld [vmem:[#allocation2 + $0x40] sm:$0xff]  ;;  %2064 = vst [vmem:[#allocation4 + $0x210] sm:$0xff] %v2051_v53  ;;  %2697 = vmatprep.mubr.f32.mxu0 %v2051_v53  ;;  %2039 = vst [vmem:[#allocation4 + $0x250] sm:$0xff] %v2051_v53  ;;  %v1838_v61 = vpop.f32.mrb[16].mxu0 }
 0x23f   : > { %1987 = vst [vmem:[#allocation4 + $0x240] sm:$0xff] %v1974_v54  ;;  %v11889_v55 = vld [vmem:[#allocation2 + $0x3c] sm:$0xff]  ;;  %2573 = vmatmul.mubr.f32.gmra.mrb[16].mxu1 %v1974_v54  ;;  %2698 = vmatmul.mubr.f32.gmra.mrb[40].mxu0 %v2050_v40  ;;  %v1839_v4 = vadd.f32 %v11713_v23, %v1838_v61  ;;  %v9720_v5 = vpop.f32.mrb[17].mxu0  ;;  %v11910_v40 = vpop.permute.xlu0 %1922 }
 0x240   : > { %v11891_v56 = vld [vmem:[#allocation2 + $0x3d] sm:$0xff]  ;;  %14898 = vst [vmem:[#allocation41_spill] sm:$0xff] %v11910_v40  ;;  %v2186_v5 = vld [vmem:[#allocation2 + $0x76] sm:$0xf] }
 0x241   : > { %v11893_v2 = vld [vmem:[#allocation2 + $0x3e] sm:$0xff]  ;;  %v1870_v8 = vmax.f32 %v1839_v4, 0.0  ;;  %v11924_v4 = vpop.permute.xlu1 %1927  ;;  %2199 = vst [vmem:[#allocation4 + $0x3a0] sm:$0xf] %v2186_v5 }
 0x242   : > { %14899 = vst [vmem:[#allocation42_spill] sm:$0xff] %v11924_v4 }
 0x243   : > { %v11899_v11 = vmul.f32 %v11896_v7, %v1870_v8  ;;  %v2446_v7 = vld [vmem:[%s11071_s25 + $0x408] sm:$0xff] }
 0x245   : > { %1961 = vst [vmem:[#allocation2 + $0x4b] sm:$0xff] %v11899_v11  ;;  %2091 = vst [vmem:[#allocation4 + $0x260] sm:$0xff] %v11899_v11 }
 0x24c   : > { %v2001_v14 = vld [vmem:[#allocation2 + $0x49] sm:$0xff] }
 0x24d   : > { %v2052_v15 = vld [vmem:[#allocation2 + $0x4a] sm:$0xff]  ;;  %2014 = vst [vmem:[#allocation4 + $0x290] sm:$0xff] %v2001_v14  ;;  %2577 = vmatprep.mubr.f32.mxu1 %v2001_v14 }
 0x24e   : > { %v1975_v16 = vld [vmem:[#allocation2 + $0x48] sm:$0xff]  ;;  %2065 = vst [vmem:[#allocation4 + $0x258] sm:$0xff] %v2052_v15  ;;  %2702 = vmatprep.mubr.f32.mxu0 %v2052_v15  ;;  %2040 = vst [vmem:[#allocation4 + $0x298] sm:$0xff] %v2052_v15  ;;  %v1843_v31 = vpop.f32.mrb[18].mxu0 }
 0x24f   : > { %1988 = vst [vmem:[#allocation4 + $0x288] sm:$0xff] %v1975_v16  ;;  %v11903_v21 = vld [vmem:[#allocation2 + $0x44] sm:$0xff]  ;;  %2578 = vmatmul.mubr.f32.gmra.mrb[18].mxu1 %v1975_v16  ;;  %2703 = vmatmul.mubr.f32.gmra.mrb[42].mxu0 %v2051_v53  ;;  %v1844_v33 = vadd.f32 %v11713_v23, %v1843_v31  ;;  %v9723_v36 = vpop.f32.mrb[19].mxu0  ;;  %v3511_v31 = vld [vmem:[#allocation2 + $0x75] sm:$0xf] }
 0x250   : > { %v11905_v24 = vld [vmem:[#allocation2 + $0x45] sm:$0xff] }
 0x251   : > { %v11907_v9 = vld [vmem:[#allocation2 + $0x46] sm:$0xff]  ;;  %v1871_v39 = vmax.f32 %v1844_v33, 0.0 }
 0x252   : > { %v3185_v16 = vld [vmem:[#allocation2 + $0x1] sm:$0xff] }
 0x253   : > { %v11913_v41 = vmul.f32 %v11910_v40, %v1871_v39  ;;  %v10684_v36 = vpack.i.bf16 %v3511_v31, %v3185_v16  ;;  %v2445_v40 = vld [vmem:[%s11071_s25 + $0x400] sm:$0xff] }
 0x255   : > { %1962 = vst [vmem:[#allocation2 + $0x53] sm:$0xff] %v11913_v41  ;;  %2092 = vst [vmem:[#allocation4 + $0x2a8] sm:$0xff] %v11913_v41  ;;  %10685 = vrot.lane.b32.xlu1 %v10684_v36, %s14792_s10  ;;  %s14804_s10 = smov 10  }
 0x259   : > { %4256 = vrot.lane.b32.xlu1 %v4230_v6, %s14806_s11 }
 0x25c   : > { %v2002_v45 = vld [vmem:[#allocation2 + $0x51] sm:$0xff] }
 0x25d   : > { %v2053_v46 = vld [vmem:[#allocation2 + $0x52] sm:$0xff]  ;;  %2015 = vst [vmem:[#allocation4 + $0x2d8] sm:$0xff] %v2002_v45  ;;  %2582 = vmatprep.mubr.f32.mxu1 %v2002_v45  ;;  %v11933_v45 = vpop.permute.xlu0 %1932 }
 0x25e   : > { %v1976_v47 = vld [vmem:[#allocation2 + $0x50] sm:$0xff]  ;;  %2066 = vst [vmem:[#allocation4 + $0x2a0] sm:$0xff] %v2053_v46  ;;  %2707 = vmatprep.mubr.f32.mxu0 %v2053_v46  ;;  %2041 = vst [vmem:[#allocation4 + $0x2e0] sm:$0xff] %v2053_v46  ;;  %v1848_v54 = vpop.f32.mrb[20].mxu0 }
 0x25f   : > { %1989 = vst [vmem:[#allocation4 + $0x2d0] sm:$0xff] %v1976_v47  ;;  %v11917_v49 = vld [vmem:[#allocation2 + $0x4c] sm:$0xff]  ;;  %2583 = vmatmul.mubr.f32.gmra.mrb[20].mxu1 %v1976_v47  ;;  %2708 = vmatmul.mubr.f32.gmra.mrb[44].mxu0 %v2052_v15  ;;  %v1849_v60 = vadd.f32 %v11713_v23, %v1848_v54  ;;  %v9726_v61 = vpop.f32.mrb[21].mxu0  ;;  %14900 = vst [vmem:[#allocation43_spill] sm:$0xff] %v11933_v45 }
 0x260   : > { %v11919_v51 = vld [vmem:[#allocation2 + $0x4d] sm:$0xff] }
 0x261   : > { %v11921_v53 = vld [vmem:[#allocation2 + $0x4e] sm:$0xff]  ;;  %v1872_v63 = vmax.f32 %v1849_v60, 0.0 }
 0x263   : > { %v11927_v8 = vmul.f32 %v11924_v4, %v1872_v63 }
 0x265   : > { %1963 = vst [vmem:[#allocation2 + $0x5b] sm:$0xff] %v11927_v8  ;;  %2093 = vst [vmem:[#allocation4 + $0x2f0] sm:$0xff] %v11927_v8 }
 0x267   : > { %v1853_v14 = vpop.f32.mrb[22].mxu0 }
 0x268   : > { %v1854_v15 = vadd.f32 %v11713_v23, %v1853_v14  ;;  %v9729_v33 = vpop.f32.mrb[23].mxu0 }
 0x26a   : > { %v1873_v39 = vmax.f32 %v1854_v15, 0.0 }
 0x26c   : > { %v11936_v47 = vmul.f32 %v11933_v45, %v1873_v39  ;;  %v2003_v54 = vld [vmem:[#allocation2 + $0x59] sm:$0xff]  ;;  %v11964_v45 = vld [vmem:[%s11949_s1 + $0xa] sm:$0xff] }
 0x26d   : > { %v2054_v60 = vld [vmem:[#allocation2 + $0x5a] sm:$0xff]  ;;  %2016 = vst [vmem:[#allocation4 + $0x320] sm:$0xff] %v2003_v54  ;;  %2587 = vmatprep.mubr.f32.mxu1 %v2003_v54  ;;  %4416 = vrot.lane.b32.xlu1 %v11964_v45, %s14808_s28 }
 0x26e   : > { %v1977_v61 = vld [vmem:[#allocation2 + $0x58] sm:$0xff]  ;;  %2067 = vst [vmem:[#allocation4 + $0x2e8] sm:$0xff] %v2054_v60  ;;  %2712 = vmatprep.mubr.f32.mxu0 %v2054_v60  ;;  %2042 = vst [vmem:[#allocation4 + $0x328] sm:$0xff] %v2054_v60 }
 0x26f   : > { %1990 = vst [vmem:[#allocation4 + $0x318] sm:$0xff] %v1977_v61  ;;  %v11938_v63 = vld [vmem:[#allocation2 + $0x54] sm:$0xff]  ;;  %1964 = vst [vmem:[#allocation2 + $0x63] sm:$0xff] %v11936_v47  ;;  %2588 = vmatmul.mubr.f32.gmra.mrb[22].mxu1 %v1977_v61  ;;  %2713 = vmatmul.mubr.f32.gmra.mrb[46].mxu0 %v2053_v46  ;;  %v4310_v61 = vld [vmem:[%s11949_s1 + $0x2] sm:$0xff] }
 0x270   : > { %v11940_v5 = vld [vmem:[#allocation2 + $0x55] sm:$0xff]  ;;  %2094 = vst [vmem:[#allocation4 + $0x338] sm:$0xff] %v11936_v47  ;;  %4336 = vrot.lane.b32.xlu0 %v4310_v61, %s14881_s5 }
 0x271   : > { %v11942_v14 = vld [vmem:[#allocation2 + $0x56] sm:$0xff] }
 0x272   : > { %v2447_v61 = vld [vmem:[%s11071_s25 + $0x410] sm:$0xff] }
 0x276   : > { %v1978_v16 = vld [vmem:[#allocation2 + $0x60] sm:$0xf] }
 0x277   : > { %v2004_v31 = vld [vmem:[#allocation2 + $0x61] sm:$0xf]  ;;  %1991 = vst [vmem:[#allocation4 + $0x360] sm:$0xf] %v1978_v16  ;;  %v1858_v39 = vpop.f32.mrb[24].mxu0 }
 0x278   : > { %v2055_v15 = vld [vmem:[#allocation2 + $0x62] sm:$0xff]  ;;  %2017 = vst [vmem:[#allocation4 + $0x368] sm:$0xf] %v2004_v31  ;;  %v1859_v16 = vadd.f32 %v11713_v23, %v1858_v39  ;;  %v9732_v31 = vpop.f32.mrb[25].mxu0  ;;  %v4550_v39 = vld [vmem:[%s11949_s1 + $0xc] sm:$0xff] }
 0x279   : > { %2068 = vst [vmem:[#allocation4 + $0x330] sm:$0xff] %v2055_v15  ;;  %2717 = vmatprep.mubr.f32.mxu0 %v2055_v15  ;;  %v2030_v33 = vld [vmem:[#allocation2 + $0x62] sm:$0xf]  ;;  %v4470_v15 = vld [vmem:[%s11949_s1 + $0xb] sm:$0xff] }
 0x27a   : > { %v11951_v36 = vld [vmem:[#allocation2 + $0x5c] sm:$0xff]  ;;  %2718 = vmatmul.mubr.f32.gmra.mrb[48].mxu0 %v2054_v60  ;;  %2043 = vst [vmem:[#allocation4 + $0x370] sm:$0xf] %v2030_v33  ;;  %v1874_v4 = vmax.f32 %v1859_v16, 0.0  ;;  %v11966_v60 = vpop.permute.xlu1 %1937  ;;  %4496 = vrot.lane.b32.xlu0 %v4470_v15, %s14883_s2 }
 0x27b   : > { %v11953_v46 = vld [vmem:[#allocation2 + $0x5d] sm:$0xff]  ;;  %14903 = vst [vmem:[#allocation44_spill] sm:$0xff] %v11966_v60 }
 0x27c   : > { %v11955_v54 = vld [vmem:[#allocation2 + $0x5e] sm:$0xff]  ;;  %v1952_v33 = vmul.f32 %v11966_v60, %v1874_v4  ;;  %v10389_v4 = vpack.c.bf16 %v2446_v7, %v2445_v40  ;;  %v2450_v60 = vld [vmem:[%s11071_s25 + $0x428] sm:$0xff] }
 0x27d   : > { %v2448_v16 = vld [vmem:[%s11071_s25 + $0x418] sm:$0xff]  ;;  %v2449_v15 = vld [vmem:[%s11071_s25 + $0x420] sm:$0xff] }
 0x27e   : > { %v2308_v23 = vld [vmem:[#allocation4 + $0x360] sm:$0xf]  ;;  %1965 = vst [vmem:[#allocation2 + $0x6b] sm:$0xf] %v1952_v33  ;;  %4576 = vrot.lane.b32.xlu0 %v4550_v39, %s14804_s10  ;;  %v10392_v31 = vpack.c.bf16 %v2448_v16, %v2447_v61  ;;  %v10395_v61 = vpack.c.bf16 %v2450_v60, %v2449_v15  ;;  %v4630_v16 = vld [vmem:[%s11949_s1 + $0x14] sm:$0xff]  ;;  %s14810_s10 = smov 14  }
 0x27f   : > { %v2309_v6 = vld [vmem:[#allocation4 + $0x368] sm:$0xf]  ;;  %v3589_v60 = vld [vmem:[#allocation2 + $0x76] sm:$0xf] }
 0x280   : > { %2592 = vmatprep.mubr.f32.mxu1 %v2309_v6 }
 0x281   : > { %2593 = vmatmul.mubr.f32.gmra.mrb[24].mxu1 %v2308_v23 }
 0x282   : > { %2792 = vmatprep.mubr.f32.mxu1 %v11744_v57  ;;  %4656 = vrot.lane.b32.xlu0 %v4630_v16, %s14880_s18 }
 0x285   : > { %2793 = vmatmul.mubr.f32.vlgmr.msra.gmra.mrb[26].mxu1 %v11719_v28  ;;  %v2056_v33 = vld [vmem:[#allocation2 + $0x6a] sm:$0xf] }
 0x286   : > { %10390 = vmatpush3.bf16.msra.mxu1 %v10389_v4  ;;  %2797 = vmatprep.mubr.f32.mxu1 %v11763_v12  ;;  %v11984_v23 = vld [vmem:[#allocation2 + $0x64] sm:$0xff]  ;;  %v2108_v57 = vld [vmem:[#allocation2 + $0x6c] sm:$0xf]  ;;  %2069 = vst [vmem:[#allocation4 + $0x378] sm:$0xf] %v2056_v33 }
 0x287   : > { %10391 = vmatprep.subr.bf16.mxu1 %v14904_v48  ;;  %2121 = vst [vmem:[#allocation4 + $0x388] sm:$0xf] %v2108_v57  ;;  %v2082_v7 = vld [vmem:[#allocation2 + $0x6b] sm:$0xf]  ;;  %v2452_v57 = vld [vmem:[%s11071_s25 + $0x438] sm:$0xff] }
 0x288   : > { %v11986_v28 = vld [vmem:[#allocation2 + $0x65] sm:$0xff]  ;;  %v11988_v40 = vld [vmem:[#allocation2 + $0x6d] sm:$0xff]  ;;  %2095 = vst [vmem:[#allocation4 + $0x380] sm:$0xf] %v2082_v7  ;;  %v4710_v7 = vld [vmem:[%s11949_s1 + $0x15] sm:$0xff] }
 0x289   : > { %2798 = vmatmul.mubr.f32.gmra.mrb[28].mxu1 %v11728_v37  ;;  %v11991_v6 = vld [vmem:[#allocation2 + $0x6c] sm:$0xff]  ;;  %4736 = vrot.lane.b32.xlu0 %v4710_v7, %s14810_s10 }
 0x28a   : > { %v11993_v39 = vld [vmem:[#allocation2 + $0x66] sm:$0xff]  ;;  %v11995_v4 = vld [vmem:[#allocation2 + $0x6e] sm:$0xff]  ;;  %2802 = vmatprep.mubr.f32.mxu1 %v11814_v25  ;;  %10393 = vmatpush3.bf16.msra.mxu1 %v10392_v31 }
 0x28b   : > { %v4231_v33 = vld [vmem:[%s11949_s1 + $0x9] sm:$0xff]  ;;  %10394 = vmatprep.subr.bf16.mxu1 %v14904_v48 }
 0x28c   : > { %v2451_v37 = vld [vmem:[%s11071_s25 + $0x430] sm:$0xff]  ;;  %4258 = vrot.lane.b32.xlu1 %v4231_v33, %s14806_s11  ;;  %v2458_v7 = vld [vmem:[%s11071_s25 + $0x468] sm:$0xff] }
 0x28d   : > { %2803 = vmatmul.mubr.f32.gmra.mrb[30].mxu1 %v11750_v0  ;;  %v2311_v31 = vld [vmem:[#allocation4 + $0x378] sm:$0xf]  ;;  %v10398_v15 = vpack.c.bf16 %v2452_v57, %v2451_v37  ;;  %v2310_v0 = vld [vmem:[#allocation4 + $0x370] sm:$0xf] }
 0x28e   : > { %2807 = vmatprep.mubr.f32.mxu1 %v11838_v52  ;;  %10396 = vmatpush3.bf16.msra.mxu1 %v10395_v61  ;;  %3498 = vst.msk [vmem:[#allocation4 + $0x378] sm:$0xf] %vm3157_vm7, %v3485_v30  ;;  %v4471_v61 = vld [vmem:[%s11949_s1 + $0x13] sm:$0xff]  ;;  %v10401_v30 = vpack.c.bf16 %v2454_v26, %v2453_v3  ;;  %v2457_v3 = vld [vmem:[%s11071_s25 + $0x460] sm:$0xff] }
 0x28f   : > { %10397 = vmatprep.subr.bf16.mxu1 %v14904_v48  ;;  %2722 = vmatprep.mubr.f32.mxu0 %v2311_v31  ;;  %v12013_v33 = vld [vmem:[#allocation4 + $0x380] sm:$0xf]  ;;  %v4391_v37 = vld [vmem:[%s11949_s1 + $0x12] sm:$0xff] }
 0x290   : > { %4338 = vrot.lane.b32.xlu1 %v11964_v45, %s14881_s5  ;;  %2723 = vmatmul.mubr.f32.gmra.mrb[50].mxu0 %v2310_v0  ;;  %3602 = vst.msk [vmem:[#allocation4 + $0x380] sm:$0xf] %vm3157_vm7, %v3589_v60  ;;  %v2455_v45 = vld [vmem:[%s11071_s25 + $0x450] sm:$0xff]  ;;  %v2456_v57 = vld [vmem:[%s11071_s25 + $0x458] sm:$0xff] }
 0x291   : > { %2808 = vmatmul.mubr.f32.gmra.mrb[32].mxu1 %v11779_v34  ;;  %2922 = vmatprep.mubr.f32.mxu0 %v11765_v13  ;;  %v4232_v34 = vld [vmem:[%s11949_s1 + $0x11] sm:$0xff]  ;;  %v10404_v13 = vpack.c.bf16 %v2456_v57, %v2455_v45  ;;  %v4392_v60 = vld [vmem:[%s11949_s1 + $0x1a] sm:$0xff]  ;;  %v4792_v57 = vld [vmem:[%s11949_s1 + $0x26] sm:$0xff] }
 0x292   : > { %2812 = vmatprep.mubr.f32.mxu1 %v11859_v17  ;;  %10399 = vmatpush3.bf16.msra.mxu1 %v10398_v15  ;;  %v4790_v26 = vld [vmem:[%s11949_s1 + $0x16] sm:$0xff] }
 0x293   : > { %4498 = vrot.lane.b32.xlu0 %v4471_v61, %s14883_s2  ;;  %10400 = vmatprep.subr.bf16.mxu1 %v14904_v48  ;;  %v4472_v0 = vld [vmem:[%s11949_s1 + $0x1b] sm:$0xff]  ;;  %v4632_v61 = vld [vmem:[%s11949_s1 + $0x24] sm:$0xff] }
 0x294   : > { %4418 = vrot.lane.b32.xlu1 %v4391_v37, %s14808_s28  ;;  %2923 = vmatmul.mubr.f32.vlgmr.msra.gmra.mrb[52].mxu0 %v11763_v12  ;;  %v10407_v12 = vpack.c.bf16 %v2458_v7, %v2457_v3 }
 0x295   : > { %2813 = vmatmul.mubr.f32.gmra.mrb[34].mxu1 %v11828_v10  ;;  %2927 = vmatprep.mubr.f32.mxu0 %v11818_v27  ;;  %v2459_v27 = vld [vmem:[%s11071_s25 + $0x470] sm:$0xff]  ;;  %v2460_v10 = vld [vmem:[%s11071_s25 + $0x478] sm:$0xff] }
 0x296   : > { %2817 = vmatprep.mubr.f32.mxu1 %v11875_v42  ;;  %10402 = vmatpush3.bf16.msra.mxu1 %v10401_v30 }
 0x297   : > { %4260 = vrot.lane.b32.xlu0 %v4232_v34, %s14806_s11  ;;  %10403 = vmatprep.subr.bf16.mxu1 %v14904_v48  ;;  %s14905_s11 = smov 10   ;;  %v4713_v34 = vld [vmem:[%s11949_s1 + $0x2d] sm:$0xff] }
 0x298   : > { %4816 = vrot.lane.b32.xlu1 %v4790_v26, %s14886_s26  ;;  %2928 = vmatmul.mubr.f32.gmra.mrb[54].mxu0 %v11814_v25  ;;  %v4631_v25 = vld [vmem:[%s11949_s1 + $0x1c] sm:$0xff] }
 0x299   : > { %2818 = vmatmul.mubr.f32.gmra.mrb[36].mxu1 %v11855_v1  ;;  %2932 = vmatprep.mubr.f32.mxu0 %v11843_v58  ;;  %v10410_v58 = vpack.c.bf16 %v2460_v10, %v2459_v27  ;;  %v4791_v1 = vld [vmem:[%s11949_s1 + $0x1e] sm:$0xff]  ;;  %v4634_v27 = vld [vmem:[%s11949_s1 + $0x34] sm:$0xff]  ;;  %v4235_v10 = vld [vmem:[%s11949_s1 + $0x29] sm:$0xff] }
 0x29a   : > { %2822 = vmatprep.mubr.f32.mxu1 %v11889_v55  ;;  %10405 = vmatpush3.bf16.msra.mxu1 %v10404_v13 }
 0x29b   : > { %4340 = vrot.lane.b32.xlu0 %v4391_v37, %s14881_s5  ;;  %10406 = vmatprep.subr.bf16.mxu1 %v14904_v48  ;;  %v4234_v37 = vld [vmem:[%s11949_s1 + $0x21] sm:$0xff] }
 0x29c   : > { %4578 = vrot.lane.b32.xlu1 %v4630_v16, %s14905_s11  ;;  %2933 = vmatmul.mubr.f32.gmra.mrb[56].mxu0 %v11838_v52  ;;  %v12064_v52 = vld [vmem:[%s11076_s29] ss:$0 sm:$0xff] }
 0x29d   : > { %2823 = vmatmul.mubr.f32.gmra.mrb[38].mxu1 %v11869_v32  ;;  %2937 = vmatprep.mubr.f32.mxu0 %v11861_v19  ;;  %v4711_v32 = vld [vmem:[%s11949_s1 + $0x1d] sm:$0xff]  ;;  %v2535_v19 = vadd.f32 %v11873_v38, %v12064_v52 }
 0x29e   : > { %2827 = vmatprep.mubr.f32.mxu1 %v11903_v21  ;;  %10408 = vmatpush3.bf16.msra.mxu1 %v10407_v12  ;;  %v4474_v12 = vld [vmem:[%s11949_s1 + $0x2b] sm:$0xff] }
 0x29f   : > { %4420 = vrot.lane.b32.xlu0 %v4392_v60, %s14808_s28  ;;  %10409 = vmatprep.subr.bf16.mxu1 %v14904_v48  ;;  %s14906_s28 = smov 2  }
 0x2a0   : > { %4658 = vrot.lane.b32.xlu1 %v4631_v25, %s14880_s18  ;;  %2938 = vmatmul.mubr.f32.gmra.mrb[58].mxu0 %v11859_v17 }
 0x2a1   : > { %2828 = vmatmul.mubr.f32.gmra.mrb[40].mxu1 %v11885_v50  ;;  %2942 = vmatprep.mubr.f32.mxu0 %v11877_v43  ;;  %v9098_v16 = vpop.f32.mrb[2].mxu1 }
 0x2a2   : > { %2832 = vmatprep.mubr.f32.mxu1 %v11917_v49  ;;  %10411 = vmatpush3.bf16.msra.mxu1 %v10410_v58  ;;  %v9099_v50 = vpop.f32.mrb[3].mxu1 }
 0x2a3   : > { %v9166_v31 = vpop.f32.mrb[26].mxu0  ;;  %4818 = vrot.lane.b32.xlu0 %v4791_v1, %s14886_s26  ;;  %v9100_v43 = vadd.f32 %v9099_v50, %v9098_v16  ;;  %v4395_v16 = vld [vmem:[%s11949_s1 + $0x32] sm:$0xff] }
 0x2a4   : > { %v9167_v17 = vpop.f32.mrb[27].mxu0  ;;  %4738 = vrot.lane.b32.xlu1 %v4711_v32, %s14810_s10  ;;  %2943 = vmatmul.mubr.f32.gmra.mrb[60].mxu0 %v11875_v42  ;;  %v4233_v42 = vld [vmem:[%s11949_s1 + $0x19] sm:$0xff] }
 0x2a5   : > { %2833 = vmatmul.mubr.f32.gmra.mrb[42].mxu1 %v11899_v11  ;;  %v9168_v15 = vadd.f32 %v9167_v17, %v9166_v31  ;;  %2947 = vmatprep.mubr.f32.mxu0 %v11891_v56  ;;  %v4712_v56 = vld [vmem:[%s11949_s1 + $0x25] sm:$0xff]  ;;  %v2540_v30 = vadd.f32 %v9100_v43, %v12064_v52  ;;  %v4236_v31 = vld [vmem:[%s11949_s1 + $0x31] sm:$0xff]  ;;  %v4396_v43 = vld [vmem:[%s11949_s1 + $0x3a] sm:$0xff] }
 0x2a6   : > { %2837 = vmatprep.mubr.f32.mxu1 %v11938_v63  ;;  %v2313_v11 = vld [vmem:[#allocation4 + $0x388] sm:$0xf] }
 0x2a7   : > { %v12074_v38 = vadd.f32 %v9168_v15, %v2535_v19  ;;  %4580 = vrot.lane.b32.xlu0 %v4631_v25, %s14905_s11  ;;  %v4475_v19 = vld [vmem:[%s11949_s1 + $0x33] sm:$0xff] }
 0x2a8   : > { %4500 = vrot.lane.b32.xlu1 %v4472_v0, %s14883_s2  ;;  %2948 = vmatmul.mubr.f32.gmra.mrb[62].mxu0 %v11889_v55  ;;  %v4473_v55 = vld [vmem:[%s11949_s1 + $0x23] sm:$0xff] }
 0x2a9   : > { %2838 = vmatmul.mubr.f32.gmra.mrb[44].mxu1 %v11913_v41  ;;  %2952 = vmatprep.mubr.f32.mxu0 %v11905_v24  ;;  %v4393_v24 = vld [vmem:[%s11949_s1 + $0x22] sm:$0xff] }
 0x2aa   : > { %2842 = vmatprep.mubr.f32.mxu1 %v11951_v36 }
 0x2ab   : > { %4660 = vrot.lane.b32.xlu0 %v4632_v61, %s14880_s18 }
 0x2ac   : > { %4262 = vrot.lane.b32.xlu1 %v4233_v42, %s14906_s28  ;;  %2953 = vmatmul.mubr.f32.gmra.mrb[64].mxu0 %v11903_v21 }
 0x2ad   : > { %2843 = vmatmul.mubr.f32.gmra.mrb[46].mxu1 %v11927_v8  ;;  %2957 = vmatprep.mubr.f32.mxu0 %v11919_v51 }
 0x2ae   : > { %2847 = vmatprep.mubr.f32.mxu1 %v11984_v23 }
 0x2af   : > { %4740 = vrot.lane.b32.xlu0 %v4712_v56, %s14810_s10  ;;  %s14907_s10 = smov 6   ;;  %v4635_v56 = vld [vmem:[%s11949_s1 + $0x3c] sm:$0xff] }
 0x2b0   : > { %4342 = vrot.lane.b32.xlu1 %v4392_v60, %s14881_s5  ;;  %2958 = vmatmul.mubr.f32.gmra.mrb[66].mxu0 %v11917_v49 }
 0x2b1   : > { %2848 = vmatmul.mubr.f32.gmra.mrb[48].mxu1 %v11936_v47  ;;  %2962 = vmatprep.mubr.f32.mxu0 %v11940_v5  ;;  %v12106_v5 = vld [vmem:[#allocation2] sm:$0xff] }
 0x2b2   : > { %2852 = vmatprep.mubr.f32.mxu1 %v2313_v11  ;;  %v9101_v21 = vpop.f32.mrb[4].mxu1  ;;  %v9169_v41 = vpop.f32.mrb[28].mxu0 }
 0x2b3   : > { %4502 = vrot.lane.b32.xlu0 %v4473_v55, %s14883_s2  ;;  %v9102_v51 = vpop.f32.mrb[5].mxu1  ;;  %v9170_v8 = vpop.f32.mrb[29].mxu0  ;;  %v4795_v55 = vld [vmem:[%s11949_s1 + $0x3e] sm:$0xff] }
 0x2b4   : > { %4422 = vrot.lane.b32.xlu1 %v4393_v24, %s14907_s10  ;;  %2963 = vmatmul.mubr.f32.gmra.mrb[68].mxu0 %v11938_v63  ;;  %v9103_v49 = vadd.f32 %v9102_v51, %v9101_v21  ;;  %v9171_v47 = vadd.f32 %v9170_v8, %v9169_v41  ;;  %v10899_v63 = vld [vmem:[#allocation4 + $0x40] sm:$0xff] }
 0x2b5   : > { %2853 = vmatmul.mubr.f32.gmra.mrb[50].mxu1 %v12013_v33  ;;  %2967 = vmatprep.mubr.f32.mxu0 %v11953_v46  ;;  %v4394_v46 = vld [vmem:[%s11949_s1 + $0x2a] sm:$0xff]  ;;  %v4476_v21 = vld [vmem:[%s11949_s1 + $0x3b] sm:$0xff] }
 0x2b6   : > { %9765 = vmatprep.mubr.msk.f32.mxu1 %vm11022_vm1, %v12106_v5  ;;  %v12110_v45 = vadd.f32 %v9171_v47, %v2540_v30  ;;  %v4633_v33 = vld [vmem:[%s11949_s1 + $0x2c] sm:$0xff]  ;;  %v4636_v41 = vld [vmem:[%s11949_s1 + $0x44] sm:$0xff] }
 0x2b7   : > { %4264 = vrot.lane.b32.xlu0 %v4234_v37, %s14906_s28  ;;  %v4716_v47 = vld [vmem:[%s11949_s1 + $0x45] sm:$0xff] }
 0x2b8   : > { %4820 = vrot.lane.b32.xlu1 %v4792_v57, %s14886_s26  ;;  %2968 = vmatmul.mubr.f32.gmra.mrb[70].mxu0 %v11951_v36  ;;  %v2315_v36 = vld [vmem:[#allocation4 + $0x398] sm:$0xf] }
 0x2b9   : > { %9766 = vmatmul.mubr.f32.vlgmr.msra.gmra.mrb[52].mxu1 %v10899_v63  ;;  %2972 = vmatprep.mubr.f32.mxu0 %v11986_v28  ;;  %v4793_v28 = vld [vmem:[%s11949_s1 + $0x2e] sm:$0xff] }
 0x2ba   : > { %9768 = vmatprep.mubr.msk.f32.mxu1 %vm11022_vm1, %v12106_v5 }
 0x2bb   : > { %4344 = vrot.lane.b32.xlu0 %v4393_v24, %s14881_s5 }
 0x2bc   : > { %4582 = vrot.lane.b32.xlu1 %v4632_v61, %s14905_s11  ;;  %2973 = vmatmul.mubr.f32.gmra.mrb[72].mxu0 %v11984_v23  ;;  %v2316_v61 = vld [vmem:[#allocation4 + $0x3a0] sm:$0xf] }
 0x2bd   : > { %9769 = vmatmul.mubr.f32.gmra.mrb[54].mxu1 %v11820_v29  ;;  %2977 = vmatprep.mubr.f32.mxu0 %v11988_v40  ;;  %v2314_v29 = vld [vmem:[#allocation4 + $0x390] sm:$0xf] }
 0x2be   : > { %9771 = vmatprep.mubr.msk.f32.mxu1 %vm11022_vm1, %v12106_v5 }
 0x2bf   : > { %4424 = vrot.lane.b32.xlu0 %v4394_v46, %s14907_s10 }
 0x2c0   : > { %4662 = vrot.lane.b32.xlu1 %v4633_v33, %s14880_s18  ;;  %2978 = vmatmul.mubr.f32.gmra.mrb[74].mxu0 %v11991_v6  ;;  %v2545_v6 = vadd.f32 %v9103_v49, %v12064_v52  ;;  %v4237_v49 = vld [vmem:[%s11949_s1 + $0x39] sm:$0xff] }
 0x2c1   : > { %9772 = vmatmul.mubr.f32.gmra.mrb[56].mxu1 %v11845_v59  ;;  %2982 = vmatprep.mubr.f32.mxu0 %v2315_v36  ;;  %v4477_v36 = vld [vmem:[%s11949_s1 + $0x43] sm:$0xff] }
 0x2c2   : > { %9774 = vmatprep.mubr.msk.f32.mxu1 %vm11022_vm1, %v12106_v5  ;;  %v9104_v23 = vpop.f32.mrb[6].mxu1  ;;  %v9172_v40 = vpop.f32.mrb[30].mxu0 }
 0x2c3   : > { %4822 = vrot.lane.b32.xlu0 %v4793_v28, %s14886_s26  ;;  %v9105_v13 = vpop.f32.mrb[7].mxu1  ;;  %v9173_v26 = vpop.f32.mrb[31].mxu0 }
 0x2c4   : > { %4742 = vrot.lane.b32.xlu1 %v4713_v34, %s14908_s9  ;;  %2983 = vmatmul.mubr.f32.gmra.mrb[76].mxu0 %v2314_v29  ;;  %v9106_v59 = vadd.f32 %v9105_v13, %v9104_v23  ;;  %v9174_v3 = vadd.f32 %v9173_v26, %v9172_v40  ;;  %v4202_v34 = vld [vmem:[%s11949_s1] sm:$0xff] }
 0x2c5   : > { %9775 = vmatmul.mubr.f32.gmra.mrb[58].mxu1 %v11863_v22  ;;  %v4714_v22 = vld [vmem:[%s11949_s1 + $0x35] sm:$0xff]  ;;  %v4397_v40 = vld [vmem:[%s11949_s1 + $0x42] sm:$0xff] }
 0x2c6   : > { %9777 = vmatprep.mubr.msk.f32.mxu1 %vm11022_vm1, %v12106_v5  ;;  %v12142_v7 = vadd.f32 %v9174_v3, %v2545_v6  ;;  %v4238_v13 = vld [vmem:[%s11949_s1 + $0x41] sm:$0xff] }
 0x2c7   : > { %4584 = vrot.lane.b32.xlu0 %v4633_v33, %s14905_s11  ;;  %v10686_v11 = vpop.permute.xlu1 %10685  ;;  %v4796_v3 = vld [vmem:[%s11949_s1 + $0x46] sm:$0xff] }
 0x2c8   : > { %4504 = vrot.lane.b32.xlu1 %v4474_v12, %s14883_s2  ;;  %v10687_v24 = vunpack.i.l.bf16 %v10686_v11  ;;  %v10688_v6 = vunpack.i.h.bf16 %v10686_v11  ;;  %v4239_v11 = vld [vmem:[%s11949_s1 + $0x49] sm:$0xff] }
 0x2c9   : > { %9778 = vmatmul.mubr.f32.gmra.mrb[60].mxu1 %v11879_v44 }
 0x2ca   : > { %9780 = vmatprep.mubr.msk.f32.mxu1 %vm11022_vm1, %v12106_v5  ;;  %3251 = vst.msk [vmem:[#allocation4] sm:$0xff] %vm3250_vm8, %v10687_v24  ;;  %v4718_v24 = vld [vmem:[%s11949_s1 + $0x55] sm:$0xff] }
 0x2cb   : > { %4664 = vrot.lane.b32.xlu0 %v4634_v27, %s14880_s18  ;;  %v4257_v28 = vpop.permute.xlu1 %4256  ;;  %3576 = vst.msk [vmem:[#allocation4 + $0x378] sm:$0xf] %vm3263_vm2, %v10688_v6 }
 0x2cc   : > { %4266 = vrot.lane.b32.xlu1 %v4235_v10, %s14906_s28 }
 0x2cd   : > { %9781 = vmatmul.mubr.f32.gmra.mrb[62].mxu1 %v11893_v2  ;;  %v2550_v2 = vadd.f32 %v9106_v59, %v12064_v52 }
 0x2ce   : > { %9783 = vmatprep.mubr.msk.f32.mxu1 %vm11022_vm1, %v12106_v5 }
 0x2cf   : > { %4744 = vrot.lane.b32.xlu0 %v4714_v22, %s14908_s9 }
 0x2d0   : > { %4346 = vrot.lane.b32.xlu1 %v4394_v46, %s14881_s5 }
 0x2d1   : > { %9784 = vmatmul.mubr.f32.gmra.mrb[64].mxu1 %v11907_v9  ;;  %v12219_v23 = vld [vmem:[#allocation4] sm:$0xff] }
 0x2d2   : > { %9786 = vmatprep.mubr.msk.f32.mxu1 %vm11022_vm1, %v12106_v5  ;;  %v9107_v44 = vpop.f32.mrb[8].mxu1  ;;  %v9175_v60 = vpop.f32.mrb[32].mxu0  ;;  %14909 = vst [vmem:[#allocation45_spill] sm:$0xff] %v12219_v23  ;;  %4216 = vst.msk [vmem:[#allocation4] sm:$0xff] %vm4215_vm9, %v4202_v34 }
 0x2d3   : > { %v9108_v25 = vpop.f32.mrb[9].mxu1  ;;  %v9176_v58 = vpop.f32.mrb[33].mxu0  ;;  %4506 = vrot.lane.b32.xlu0 %v4475_v19, %s14883_s2  ;;  %4296 = vst.msk [vmem:[#allocation4] sm:$0xff] %vm4295_vm10, %v4257_v28 }
 0x2d4   : > { %v9109_v1 = vadd.f32 %v9108_v25, %v9107_v44  ;;  %v9177_v32 = vadd.f32 %v9176_v58, %v9175_v60  ;;  %4426 = vrot.lane.b32.xlu1 %v4395_v16, %s14907_s10  ;;  %v4398_v60 = vld [vmem:[%s11949_s1 + $0x4a] sm:$0xff] }
 0x2d5   : > { %9787 = vmatmul.mubr.f32.gmra.mrb[66].mxu1 %v11921_v53  ;;  %v4794_v53 = vld [vmem:[%s11949_s1 + $0x36] sm:$0xff] }
 0x2d6   : > { %9789 = vmatprep.mubr.msk.f32.mxu1 %vm11022_vm1, %v12106_v5  ;;  %v12167_v9 = vadd.f32 %v9177_v32, %v2550_v2  ;;  %v2555_v15 = vadd.f32 %v9109_v1, %v12064_v52 }
 0x2d7   : > { %4268 = vrot.lane.b32.xlu0 %v4236_v31, %s14906_s28  ;;  %v4797_v31 = vld [vmem:[%s11949_s1 + $0x4e] sm:$0xff] }
 0x2d8   : > { %4824 = vrot.lane.b32.xlu1 %v4794_v53, %s14886_s26 }
 0x2d9   : > { %9790 = vmatmul.mubr.f32.gmra.mrb[68].mxu1 %v11942_v14 }
 0x2da   : > { %9792 = vmatprep.mubr.msk.f32.mxu1 %vm11022_vm1, %v12106_v5 }
 0x2db   : > { %4348 = vrot.lane.b32.xlu0 %v4395_v16, %s14881_s5  ;;  %v4637_v16 = vld [vmem:[%s11949_s1 + $0x4c] sm:$0xff] }
 0x2dc   : > { %4586 = vrot.lane.b32.xlu1 %v4634_v27, %s14905_s11 }
 0x2dd   : > { %9793 = vmatmul.mubr.f32.gmra.mrb[70].mxu1 %v11955_v54 }
 0x2de   : > { %9795 = vmatprep.mubr.msk.f32.mxu1 %vm11022_vm1, %v12106_v5 }
 0x2df   : > { %4428 = vrot.lane.b32.xlu0 %v4396_v43, %s14907_s10  ;;  %v4417_v26 = vpop.permute.xlu1 %4416 }
 0x2e0   : > { %4666 = vrot.lane.b32.xlu1 %v4635_v56, %s14880_s18 }
 0x2e1   : > { %9796 = vmatmul.mubr.f32.gmra.mrb[72].mxu1 %v11993_v39 }
 0x2e2   : > { %9798 = vmatprep.mubr.msk.f32.mxu1 %vm11022_vm1, %v12106_v5  ;;  %v9110_v14 = vpop.f32.mrb[10].mxu1  ;;  %v9178_v54 = vpop.f32.mrb[34].mxu0 }
 0x2e3   : > { %v9111_v50 = vpop.f32.mrb[11].mxu1  ;;  %v9179_v17 = vpop.f32.mrb[35].mxu0  ;;  %4826 = vrot.lane.b32.xlu0 %v4795_v55, %s14886_s26 }
 0x2e4   : > { %v9112_v39 = vadd.f32 %v9111_v50, %v9110_v14  ;;  %v9180_v0 = vadd.f32 %v9179_v17, %v9178_v54  ;;  %v4337_v46 = vpop.permute.xlu0 %4336  ;;  %v4717_v14 = vld [vmem:[%s11949_s1 + $0x4d] sm:$0xff] }
 0x2e5   : > { %9799 = vmatmul.mubr.f32.gmra.mrb[74].mxu1 %v11995_v4  ;;  %v4715_v4 = vld [vmem:[%s11949_s1 + $0x3d] sm:$0xff]  ;;  %4376 = vst.msk [vmem:[#allocation4] sm:$0xff] %vm4375_vm11, %v4337_v46  ;;  %v4478_v50 = vld [vmem:[%s11949_s1 + $0x4b] sm:$0xff]  ;;  %v4638_v17 = vld [vmem:[%s11949_s1 + $0x54] sm:$0xff] }
 0x2e6   : > { %9801 = vmatprep.mubr.msk.f32.mxu1 %vm11022_vm1, %v12106_v5  ;;  %v12194_v42 = vadd.f32 %v9180_v0, %v2555_v15  ;;  %4746 = vrot.lane.b32.xlu1 %v4715_v4, %s14908_s9  ;;  %v2560_v5 = vadd.f32 %v9112_v39, %v12064_v52  ;;  %4456 = vst.msk [vmem:[#allocation4] sm:$0xff] %vm4455_vm12, %v4417_v26 }
 0x2e7   : > { %4588 = vrot.lane.b32.xlu0 %v4635_v56, %s14905_s11 }
 0x2e9   : > { %9802 = vmatmul.mubr.f32.gmra.mrb[76].mxu1 %v2316_v61 }
 0x2ea   : > { %4508 = vrot.lane.b32.xlu1 %v4476_v21, %s14883_s2 }
 0x2eb   : > { %4668 = vrot.lane.b32.xlu0 %v4636_v41, %s14880_s18 }
 0x2ec   : > { %v4497_v29 = vpop.permute.xlu0 %4496 }
 0x2ed   : > { %4536 = vst.msk [vmem:[#allocation4] sm:$0xff] %vm4535_vm14, %v4497_v29 }
 0x2ee   : > { %4270 = vrot.lane.b32.xlu1 %v4237_v49, %s14906_s28 }
 0x2ef   : > { %4748 = vrot.lane.b32.xlu0 %v4716_v47, %s14908_s9 }
 0x2f0   : > { %v4577_v59 = vpop.permute.xlu0 %4576 }
 0x2f1   : > { %4616 = vst.msk [vmem:[#allocation4] sm:$0xff] %vm4615_vm15, %v4577_v59 }
 0x2f2   : > { %v9113_v51 = vpop.f32.mrb[12].mxu1  ;;  %v9181_v8 = vpop.f32.mrb[36].mxu0  ;;  %4350 = vrot.lane.b32.xlu1 %v4396_v43, %s14881_s5 }
 0x2f3   : > { %v9114_v37 = vpop.f32.mrb[13].mxu1  ;;  %v9182_v30 = vpop.f32.mrb[37].mxu0  ;;  %4510 = vrot.lane.b32.xlu0 %v4477_v36, %s14883_s2 }
 0x2f4   : > { %v9115_v57 = vadd.f32 %v9114_v37, %v9113_v51  ;;  %v9183_v63 = vadd.f32 %v9182_v30, %v9181_v8  ;;  %v4657_v12 = vpop.permute.xlu0 %4656  ;;  %v4399_v51 = vld [vmem:[%s11949_s1 + $0x52] sm:$0xff] }
 0x2f5   : > { %4696 = vst.msk [vmem:[#allocation4] sm:$0xff] %vm4695_vm0, %v4657_v12 }
 0x2f6   : > { %v12213_v33 = vadd.f32 %v9183_v63, %v2560_v5  ;;  %4430 = vrot.lane.b32.xlu1 %v4397_v40, %s14907_s10  ;;  %v2565_v25 = vadd.f32 %v9115_v57, %v12064_v52 }
 0x2f7   : > { %4272 = vrot.lane.b32.xlu0 %v4238_v13, %s14906_s28 }
 0x2fa   : > { %4828 = vrot.lane.b32.xlu1 %v4796_v3, %s14886_s26 }
 0x2fb   : > { %4352 = vrot.lane.b32.xlu0 %v4397_v40, %s14881_s5  ;;  %v4737_v32 = vpop.permute.xlu0 %4736 }
 0x2fc   : > { %4776 = vst.msk [vmem:[#allocation4] sm:$0xff] %vm4775_vm3, %v4737_v32 }
 0x2fe   : > { %4590 = vrot.lane.b32.xlu1 %v4636_v41, %s14905_s11  ;;  %v12239_v1 = vpop.permute.xlu1 %4258  ;;  %v4479_v41 = vld [vmem:[%s11949_s1 + $0x53] sm:$0xff] }
 0x2ff   : > { %4432 = vrot.lane.b32.xlu0 %v4398_v60, %s14907_s10 }
 0x302   : > { %v9116_v27 = vpop.f32.mrb[14].mxu1  ;;  %v9184_v10 = vpop.f32.mrb[38].mxu0  ;;  %4670 = vrot.lane.b32.xlu1 %v4637_v16, %s14880_s18 }
 0x303   : > { %v9117_v22 = vpop.f32.mrb[15].mxu1  ;;  %v9185_v44 = vpop.f32.mrb[39].mxu0  ;;  %4830 = vrot.lane.b32.xlu0 %v4797_v31, %s14886_s26 }
 0x304   : > { %v9118_v58 = vadd.f32 %v9117_v22, %v9116_v27  ;;  %v9186_v2 = vadd.f32 %v9185_v44, %v9184_v10  ;;  %v12249_v53 = vpop.permute.xlu1 %4338 }
 0x305   : > { %v12279_v6 = vpop.permute.xlu0 %4498 }
 0x306   : > { %v12243_v19 = vadd.f32 %v9186_v2, %v2565_v25  ;;  %4750 = vrot.lane.b32.xlu1 %v4717_v14, %s14908_s9  ;;  %v2570_v61 = vadd.f32 %v9118_v58, %v12064_v52 }
 0x307   : > { %4592 = vrot.lane.b32.xlu0 %v4637_v16, %s14905_s11 }
 0x308   : > { %v12254_v54 = vpop.permute.xlu1 %4418 }
 0x309   : > { %v12281_v59 = vpop.permute.xlu0 %4260 }
 0x30a   : > { %4512 = vrot.lane.b32.xlu1 %v4478_v50, %s14883_s2 }
 0x30b   : > { %4672 = vrot.lane.b32.xlu0 %v4638_v17, %s14880_s18 }
 0x30c   : > { %v4817_v4 = vpop.permute.xlu1 %4816 }
 0x30d   : > { %4856 = vst.msk [vmem:[#allocation4] sm:$0xff] %vm4855_vm4, %v4817_v4  ;;  %v12284_v25 = vpop.permute.xlu0 %4340 }
 0x30e   : > { %4274 = vrot.lane.b32.xlu1 %v4239_v11, %s14906_s28 }
 0x30f   : > { %4752 = vrot.lane.b32.xlu0 %v4718_v24, %s14908_s9 }
 0x310   : > { %v12288_v2 = vpop.permute.xlu1 %4578 }
 0x311   : > { %v12290_v32 = vpop.permute.xlu0 %4420 }
 0x312   : > { %v9119_v43 = vpop.f32.mrb[16].mxu1  ;;  %v9187_v15 = vpop.f32.mrb[40].mxu0  ;;  %4354 = vrot.lane.b32.xlu1 %v4398_v60, %s14881_s5 }
 0x313   : > { %v9120_v39 = vpop.f32.mrb[17].mxu1  ;;  %v9188_v0 = vpop.f32.mrb[41].mxu0  ;;  %4514 = vrot.lane.b32.xlu0 %v4479_v41, %s14883_s2 }
 0x314   : > { %v9121_v56 = vadd.f32 %v9120_v39, %v9119_v43  ;;  %v9189_v55 = vadd.f32 %v9188_v0, %v9187_v15  ;;  %v12293_v17 = vpop.permute.xlu1 %4658 }
 0x315   : > { %v12297_v15 = vpop.permute.xlu0 %4818 }
 0x316   : > { %v12263_v21 = vadd.f32 %v9189_v55, %v2570_v61  ;;  %4434 = vrot.lane.b32.xlu1 %v4399_v51, %s14907_s10  ;;  %v2575_v47 = vadd.f32 %v9121_v56, %v12064_v52 }
 0x318   : > { %v12299_v61 = vpop.permute.xlu1 %4738 }
 0x319   : > { %v12301_v55 = vpop.permute.xlu0 %4580 }
 0x31c   : > { %v12303_v41 = vpop.permute.xlu1 %4500 }
 0x322   : > { %v9122_v8 = vpop.f32.mrb[18].mxu1  ;;  %v9190_v37 = vpop.f32.mrb[42].mxu0 }
 0x323   : > { %v9123_v30 = vpop.f32.mrb[19].mxu1  ;;  %v9191_v49 = vpop.f32.mrb[43].mxu0 }
 0x324   : > { %v9124_v5 = vadd.f32 %v9123_v30, %v9122_v8  ;;  %v9192_v57 = vadd.f32 %v9191_v49, %v9190_v37  ;;  %v12306_v30 = vpop.permute.xlu0 %4660 }
 0x326   : > { %v12274_v63 = vadd.f32 %v9192_v57, %v2575_v47  ;;  %v2580_v29 = vadd.f32 %v9124_v5, %v12064_v52 }
 0x332   : > { %v9125_v46 = vpop.f32.mrb[20].mxu1  ;;  %v9193_v36 = vpop.f32.mrb[44].mxu0 }
 0x333   : > { %v9126_v28 = vpop.f32.mrb[21].mxu1  ;;  %v9194_v34 = vpop.f32.mrb[45].mxu0 }
 0x334   : > { %v9127_v40 = vadd.f32 %v9126_v28, %v9125_v46  ;;  %v9195_v13 = vadd.f32 %v9194_v34, %v9193_v36  ;;  %v12309_v46 = vpop.permute.xlu1 %4262  ;;  %v12311_v28 = vpop.permute.xlu0 %4740 }
 0x336   : > { %v12277_v26 = vadd.f32 %v9195_v13, %v2580_v29  ;;  %v2585_v22 = vadd.f32 %v9127_v40, %v12064_v52 }
 0x342   : > { %v9128_v3 = vpop.f32.mrb[22].mxu1  ;;  %v9196_v12 = vpop.f32.mrb[46].mxu0 }
 0x343   : > { %v9129_v27 = vpop.f32.mrb[23].mxu1  ;;  %v9197_v10 = vpop.f32.mrb[47].mxu0 }
 0x344   : > { %v9130_v44 = vadd.f32 %v9129_v27, %v9128_v3  ;;  %v9198_v60 = vadd.f32 %v9197_v10, %v9196_v12  ;;  %v12315_v10 = vpop.permute.xlu1 %4342 }
 0x346   : > { %v12286_v58 = vadd.f32 %v9198_v60, %v2585_v22  ;;  %v2590_v14 = vadd.f32 %v9130_v44, %v12064_v52 }
 0x34d   : > { %v9199_v16 = vpop.f32.mrb[48].mxu0 }
 0x34e   : > { %v9200_v31 = vpop.f32.mrb[49].mxu0 }
 0x34f   : > { %v9201_v50 = vadd.f32 %v9200_v31, %v9199_v16 }
 0x351   : > { %v12295_v43 = vadd.f32 %v9201_v50, %v2590_v14  ;;  %v12320_v50 = vpop.permute.xlu0 %4502 }
 0x354   : > { %v9131_v39 = vpop.f32.mrb[24].mxu1 }
 0x355   : > { %v9132_v0 = vpop.f32.mrb[25].mxu1 }
 0x356   : > { %v9133_v56 = vadd.f32 %v9132_v0, %v9131_v39 }
 0x358   : > { %v9237_v4 = vpop.f32.mrb[26].mxu1  ;;  %v2595_v3 = vadd.f32 %v9133_v56, %v12064_v52 }
 0x359   : > { %v9238_v11 = vpop.f32.mrb[27].mxu1 }
 0x35a   : > { %v9239_v24 = vadd.f32 %v9238_v11, %v9237_v4 }
 0x35c   : > { %v2795_v51 = vadd.f32 %v9239_v24, %v12074_v38  ;;  %v9240_v8 = vpop.f32.mrb[28].mxu1 }
 0x35d   : > { %v9241_v37 = vpop.f32.mrb[29].mxu1 }
 0x35e   : > { %v9242_v49 = vadd.f32 %v9241_v37, %v9240_v8  ;;  %v12325_v37 = vpop.permute.xlu1 %4422 }
 0x360   : > { %v2800_v47 = vadd.f32 %v9242_v49, %v12110_v45  ;;  %v9243_v5 = vpop.f32.mrb[30].mxu1 }
 0x361   : > { %v9244_v57 = vpop.f32.mrb[31].mxu1 }
 0x362   : > { %v9245_v36 = vadd.f32 %v9244_v57, %v9243_v5 }
 0x363   : > { %v9202_v29 = vpop.f32.mrb[50].mxu0 }
 0x364   : > { %v2805_v34 = vadd.f32 %v9245_v36, %v12142_v7  ;;  %v9246_v40 = vpop.f32.mrb[32].mxu1  ;;  %v9203_v13 = vpop.f32.mrb[51].mxu0 }
 0x365   : > { %v9247_v38 = vpop.f32.mrb[33].mxu1  ;;  %v9204_v12 = vadd.f32 %v9203_v13, %v9202_v29  ;;  %v12330_v13 = vpop.permute.xlu0 %4264 }
 0x366   : > { %v9248_v27 = vadd.f32 %v9247_v38, %v9246_v40 }
 0x367   : > { %v12317_v45 = vadd.f32 %v9204_v12, %v2595_v3  ;;  %v9308_v60 = vpop.f32.mrb[52].mxu0 }
 0x368   : > { %v2810_v22 = vadd.f32 %v9248_v27, %v12167_v9  ;;  %v9249_v44 = vpop.f32.mrb[34].mxu1  ;;  %v9309_v31 = vpop.f32.mrb[53].mxu0 }
 0x369   : > { %v9250_v16 = vpop.f32.mrb[35].mxu1  ;;  %v9310_v7 = vadd.f32 %v9309_v31, %v9308_v60 }
 0x36a   : > { %v9251_v14 = vadd.f32 %v9250_v16, %v9249_v44 }
 0x36b   : > { %v9311_v52 = vpop.f32.mrb[54].mxu0  ;;  %v12323_v56 = vadd.f32 %v9310_v7, %v2795_v51 }
 0x36c   : > { %v2815_v39 = vadd.f32 %v9251_v14, %v12194_v42  ;;  %v9252_v0 = vpop.f32.mrb[36].mxu1  ;;  %v9312_v11 = vpop.f32.mrb[55].mxu0 }
 0x36d   : > { %v9253_v4 = vpop.f32.mrb[37].mxu1  ;;  %v9313_v8 = vadd.f32 %v9312_v11, %v9311_v52  ;;  %v3716_v11 = vld [vmem:[%s14871_s3 + $0x180] sm:$0xff] }
 0x36e   : > { %v9254_v24 = vadd.f32 %v9253_v4, %v9252_v0 }
 0x36f   : > { %v9314_v5 = vpop.f32.mrb[56].mxu0  ;;  %v12328_v57 = vadd.f32 %v9313_v8, %v2800_v47  ;;  %v12335_v47 = vpop.permute.xlu1 %4820 }
 0x370   : > { %v2820_v9 = vadd.f32 %v9254_v24, %v12213_v33  ;;  %v9255_v49 = vpop.f32.mrb[38].mxu1  ;;  %v9315_v29 = vpop.f32.mrb[57].mxu0  ;;  %v3717_v24 = vld [vmem:[%s14871_s3 + $0x188] sm:$0xff] }
 0x371   : > { %v9256_v36 = vpop.f32.mrb[39].mxu1  ;;  %v9316_v42 = vadd.f32 %v9315_v29, %v9314_v5 }
 0x372   : > { %v9257_v40 = vadd.f32 %v9256_v36, %v9255_v49 }
 0x373   : > { %v9317_v3 = vpop.f32.mrb[58].mxu0  ;;  %v12333_v12 = vadd.f32 %v9316_v42, %v2805_v34  ;;  %v12340_v34 = vpop.permute.xlu0 %4344 }
 0x374   : > { %v2825_v51 = vadd.f32 %v9257_v40, %v12243_v19  ;;  %v9258_v38 = vpop.f32.mrb[40].mxu1  ;;  %v9318_v33 = vpop.f32.mrb[59].mxu0 }
 0x375   : > { %v9259_v27 = vpop.f32.mrb[41].mxu1  ;;  %v9319_v60 = vadd.f32 %v9318_v33, %v9317_v3  ;;  %v3700_v3 = vld [vmem:[%s14871_s3 + $0x100] sm:$0xff]  ;;  %v3718_v33 = vld [vmem:[%s14871_s3 + $0x190] sm:$0xff] }
 0x376   : > { %v9260_v44 = vadd.f32 %v9259_v27, %v9258_v38  ;;  %v12349_v38 = vpop.permute.xlu1 %4582  ;;  %v3701_v27 = vld [vmem:[%s14871_s3 + $0x108] sm:$0xff] }
 0x377   : > { %v9320_v14 = vpop.f32.mrb[60].mxu0  ;;  %v12338_v7 = vadd.f32 %v9319_v60, %v2810_v22  ;;  %v10444_v22 = vpack.c.bf16 %v3717_v24, %v3716_v11  ;;  %v12360_v24 = vpop.permute.xlu0 %4424 }
 0x378   : > { %v2830_v16 = vadd.f32 %v9260_v44, %v12263_v21  ;;  %v9261_v31 = vpop.f32.mrb[42].mxu1  ;;  %v9321_v19 = vpop.f32.mrb[61].mxu0 }
 0x379   : > { %v9262_v0 = vpop.f32.mrb[43].mxu1  ;;  %v9322_v4 = vadd.f32 %v9321_v19, %v9320_v14  ;;  %10445 = vmatprep.subr.bf16.mxu1 %v10444_v22  ;;  %v3719_v14 = vld [vmem:[%s14871_s3 + $0x198] sm:$0xff] }
 0x37a   : > { %v9263_v52 = vadd.f32 %v9262_v0, %v9261_v31  ;;  %v10446_v31 = vpack.c.bf16 %v3701_v27, %v3700_v3 }
 0x37b   : > { %v9323_v21 = vpop.f32.mrb[62].mxu0  ;;  %v12347_v5 = vadd.f32 %v9322_v4, %v2815_v39 }
 0x37c   : > { %v12345_v8 = vadd.f32 %v9263_v52, %v12274_v63  ;;  %v9264_v49 = vpop.f32.mrb[44].mxu1  ;;  %v9324_v29 = vpop.f32.mrb[63].mxu0  ;;  %v10448_v52 = vpack.c.bf16 %v3719_v14, %v3718_v33  ;;  %10447 = vmatpush3.bf16.msra.mxu1 %v10446_v31  ;;  %v3705_v14 = vld [vmem:[%s14871_s3 + $0x128] sm:$0xff] }
 0x37d   : > { %v9265_v36 = vpop.f32.mrb[45].mxu1  ;;  %v9325_v42 = vadd.f32 %v9324_v29, %v9323_v21  ;;  %v12371_v31 = vpop.permute.xlu1 %4662 }
 0x37e   : > { %v9266_v40 = vadd.f32 %v9265_v36, %v9264_v49  ;;  %10449 = vmatprep.subr.bf16.mxu1 %v10448_v52  ;;  %v3702_v49 = vld [vmem:[%s14871_s3 + $0x110] sm:$0xff] }
 0x37f   : > { %v9326_v39 = vpop.f32.mrb[64].mxu0  ;;  %v12357_v60 = vadd.f32 %v9325_v42, %v2820_v9  ;;  %v3721_v42 = vld [vmem:[%s14871_s3 + $0x1a8] sm:$0xff] }
 0x380   : > { %v12355_v63 = vadd.f32 %v9266_v40, %v12277_v26  ;;  %v9267_v44 = vpop.f32.mrb[46].mxu1  ;;  %v9327_v19 = vpop.f32.mrb[65].mxu0  ;;  %v3703_v26 = vld [vmem:[%s14871_s3 + $0x118] sm:$0xff]  ;;  %v3720_v40 = vld [vmem:[%s14871_s3 + $0x1a0] sm:$0xff] }
 0x381   : > { %v9268_v0 = vpop.f32.mrb[47].mxu1  ;;  %v9328_v11 = vadd.f32 %v9327_v19, %v9326_v39  ;;  %v10450_v29 = vpack.c.bf16 %v3703_v26, %v3702_v49  ;;  %v10452_v33 = vpack.c.bf16 %v3721_v42, %v3720_v40  ;;  %v3723_v49 = vld [vmem:[%s14871_s3 + $0x1b8] sm:$0xff]  ;;  %v12382_v42 = vpop.permute.xlu0 %4822 }
 0x382   : > { %v9269_v4 = vadd.f32 %v9268_v0, %v9267_v44 }
 0x383   : > { %v9329_v22 = vpop.f32.mrb[66].mxu0  ;;  %v12367_v36 = vadd.f32 %v9328_v11, %v2825_v51  ;;  %10451 = vmatpush3.bf16.msra.mxu1 %v10450_v29  ;;  %v3722_v11 = vld [vmem:[%s14871_s3 + $0x1b0] sm:$0xff] }
 0x384   : > { %v12365_v21 = vadd.f32 %v9269_v4, %v12286_v58  ;;  %v9270_v9 = vpop.f32.mrb[48].mxu1  ;;  %v9330_v27 = vpop.f32.mrb[67].mxu0  ;;  %10453 = vmatprep.subr.bf16.mxu1 %v10452_v33  ;;  %v3704_v58 = vld [vmem:[%s14871_s3 + $0x120] sm:$0xff] }
 0x385   : > { %v9271_v3 = vpop.f32.mrb[49].mxu1  ;;  %v9331_v39 = vadd.f32 %v9330_v27, %v9329_v22  ;;  %v10454_v4 = vpack.c.bf16 %v3705_v14, %v3704_v58  ;;  %v10456_v22 = vpack.c.bf16 %v3723_v49, %v3722_v11  ;;  %v12393_v11 = vpop.permute.xlu1 %4742 }
 0x386   : > { %v9272_v44 = vadd.f32 %v9271_v3, %v9270_v9  ;;  %v3706_v3 = vld [vmem:[%s14871_s3 + $0x130] sm:$0xff] }
 0x387   : > { %v9332_v19 = vpop.f32.mrb[68].mxu0  ;;  %v12378_v52 = vadd.f32 %v9331_v39, %v2830_v16  ;;  %10455 = vmatpush3.bf16.msra.mxu1 %v10454_v4 }
 0x388   : > { %v12376_v51 = vadd.f32 %v9272_v44, %v12295_v43  ;;  %v9273_v0 = vpop.f32.mrb[50].mxu1  ;;  %v9333_v9 = vpop.f32.mrb[69].mxu0  ;;  %10457 = vmatprep.subr.bf16.mxu1 %v10456_v22  ;;  %v3707_v43 = vld [vmem:[%s14871_s3 + $0x138] sm:$0xff] }
 0x389   : > { %v9274_v26 = vpop.f32.mrb[51].mxu1  ;;  %v9334_v40 = vadd.f32 %v9333_v9, %v9332_v19  ;;  %v10458_v39 = vpack.c.bf16 %v3707_v43, %v3706_v3  ;;  %v3724_v9 = vld [vmem:[%s14871_s3 + $0x1c0] sm:$0xff] }
 0x38a   : > { %v9275_v29 = vadd.f32 %v9274_v26, %v9273_v0  ;;  %v3708_v43 = vld [vmem:[%s14871_s3 + $0x140] sm:$0xff] }
 0x38b   : > { %v9335_v16 = vpop.f32.mrb[70].mxu0  ;;  %v12390_v44 = vadd.f32 %v9334_v40, %v12345_v8  ;;  %10459 = vmatpush3.bf16.msra.mxu1 %v10458_v39  ;;  %v3725_v8 = vld [vmem:[%s14871_s3 + $0x1c8] sm:$0xff] }
 0x38c   : > { %v12387_v27 = vadd.f32 %v9275_v29, %v12317_v45  ;;  %v3054_v33 = vpop.f32.mrb[52].mxu1  ;;  %v9336_v14 = vpop.f32.mrb[71].mxu0  ;;  %v10460_v3 = vpack.c.bf16 %v3725_v8, %v3724_v9 }
 0x38d   : > { %v3055_v58 = vadd.f32 %v3054_v33, %v12323_v56  ;;  %v9767_v0 = vpop.f32.mrb[53].mxu1  ;;  %v9337_v19 = vadd.f32 %v9336_v14, %v9335_v16  ;;  %v3709_v16 = vld [vmem:[%s14871_s3 + $0x148] sm:$0xff] }
 0x38e   : > { %v10462_v39 = vpack.c.bf16 %v3709_v16, %v3708_v43  ;;  %10461 = vmatprep.subr.bf16.mxu1 %v10460_v3  ;;  %v12417_v43 = vpop.permute.xlu1 %4504 }
 0x38f   : > { %v3118_v4 = vmax.f32 %v3055_v58, 0.0  ;;  %v9338_v45 = vpop.f32.mrb[72].mxu0  ;;  %v12396_v26 = vadd.f32 %v9337_v19, %v12355_v63  ;;  %v12405_v58 = vpop.permute.xlu0 %4584  ;;  %v3726_v19 = vld [vmem:[%s14871_s3 + $0x1d0] sm:$0xff] }
 0x390   : > { %v3059_v49 = vpop.f32.mrb[54].mxu1  ;;  %v9339_v29 = vpop.f32.mrb[73].mxu0  ;;  %10463 = vmatpush3.bf16.msra.mxu1 %v10462_v39  ;;  %v3728_v39 = vld [vmem:[%s14871_s3 + $0x1e0] sm:$0xff] }
 0x391   : > { %v3131_v22 = vmul.f32 %v3118_v4, %v11716_v20  ;;  %v3060_v56 = vadd.f32 %v3059_v49, %v12328_v57  ;;  %v9770_v40 = vpop.f32.mrb[55].mxu1  ;;  %v9340_v33 = vadd.f32 %v9339_v29, %v9338_v45  ;;  %v3727_v4 = vld [vmem:[%s14871_s3 + $0x1d8] sm:$0xff] }
 0x392   : > { %v3711_v29 = vld [vmem:[%s14871_s3 + $0x158] sm:$0xff] }
 0x393   : > { %3145 = vst.msk [vmem:[#allocation2 + $0xb] sm:$0xff] %vm3144_vm13, %v3131_v22  ;;  %v3119_v63 = vmax.f32 %v3060_v56, 0.0  ;;  %v9341_v14 = vpop.f32.mrb[74].mxu0  ;;  %v12408_v57 = vadd.f32 %v9340_v33, %v12365_v21  ;;  %v10464_v22 = vpack.c.bf16 %v3727_v4, %v3726_v19  ;;  %v3710_v56 = vld [vmem:[%s14871_s3 + $0x150] sm:$0xff] }
 0x394   : > { %v3064_v0 = vpop.f32.mrb[56].mxu1  ;;  %v9342_v9 = vpop.f32.mrb[75].mxu0  ;;  %v10466_v3 = vpack.c.bf16 %v3711_v29, %v3710_v56 }
 0x395   : > { %v3132_v49 = vmul.f32 %v3119_v63, %v11725_v35  ;;  %v3065_v45 = vadd.f32 %v3064_v0, %v12333_v12  ;;  %v9773_v8 = vpop.f32.mrb[57].mxu1  ;;  %v9343_v40 = vadd.f32 %v9342_v9, %v9341_v14  ;;  %10465 = vmatprep.subr.bf16.mxu1 %v10464_v22  ;;  %v3729_v63 = vld [vmem:[%s14871_s3 + $0x1e8] sm:$0xff]  ;;  %v3712_v9 = vld [vmem:[%s14871_s3 + $0x160] sm:$0xff] }
 0x396   : > { %10467 = vmatpush3.bf16.msra.mxu1 %v10466_v3  ;;  %v12430_v3 = vpop.permute.xlu0 %4664 }
 0x397   : > { %3146 = vst.msk [vmem:[#allocation2 + $0x13] sm:$0xff] %vm3144_vm13, %v3132_v49  ;;  %v3120_v21 = vmax.f32 %v3065_v45, 0.0  ;;  %v9344_v16 = vpop.f32.mrb[76].mxu0  ;;  %v12420_v12 = vadd.f32 %v9343_v40, %v12376_v51  ;;  %v10468_v49 = vpack.c.bf16 %v3729_v63, %v3728_v39  ;;  %v3713_v45 = vld [vmem:[%s14871_s3 + $0x168] sm:$0xff]  ;;  %v3731_v39 = vld [vmem:[%s14871_s3 + $0x1f8] sm:$0xff] }
 0x398   : > { %v3069_v33 = vpop.f32.mrb[58].mxu1  ;;  %v9345_v19 = vpop.f32.mrb[77].mxu0  ;;  %v10470_v51 = vpack.c.bf16 %v3713_v45, %v3712_v9 }
 0x399   : > { %v3133_v0 = vmul.f32 %v3120_v21, %v11747_v62  ;;  %v3070_v14 = vadd.f32 %v3069_v33, %v12338_v7  ;;  %v9776_v4 = vpop.f32.mrb[59].mxu1  ;;  %v9346_v8 = vadd.f32 %v9345_v19, %v9344_v16  ;;  %10469 = vmatprep.subr.bf16.mxu1 %v10468_v49  ;;  %v3730_v33 = vld [vmem:[%s14871_s3 + $0x1f0] sm:$0xff]  ;;  %v3715_v49 = vld [vmem:[%s14871_s3 + $0x178] sm:$0xff] }
 0x39a   : > { %v3186_v22 = vld [vmem:[#allocation2 + $0x9] sm:$0xff]  ;;  %10471 = vmatpush3.bf16.msra.mxu1 %v10470_v51  ;;  %v10472_v19 = vpack.c.bf16 %v3731_v39, %v3730_v33  ;;  %v12457_v39 = vpop.permute.xlu0 %4744 }
 0x39b   : > { %v3160_v56 = vld [vmem:[#allocation2 + $0x8] sm:$0xff]  ;;  %3147 = vst.msk [vmem:[#allocation2 + $0x1b] sm:$0xff] %vm3144_vm13, %v3133_v0  ;;  %v3121_v40 = vmax.f32 %v3070_v14, 0.0  ;;  %3213 = vrot.lane.b32.xlu0 %v3186_v22, %s14910_s21  ;;  %v12437_v16 = vadd.f32 %v9346_v8, %v12387_v27  ;;  %v3714_v4 = vld [vmem:[%s14871_s3 + $0x170] sm:$0xff]  ;;  %v12449_v8 = vpop.permute.xlu1 %4266 }
 0x39c   : > { %v3369_v29 = vld [vmem:[#allocation2 + $0xb] sm:$0xff]  ;;  %3173 = vst.msk [vmem:[#allocation4 + $0x48] sm:$0xff] %vm3144_vm13, %v3160_v56  ;;  %v3074_v21 = vpop.f32.mrb[60].mxu1  ;;  %v10474_v45 = vpack.c.bf16 %v3715_v49, %v3714_v4  ;;  %10473 = vmatprep.subr.bf16.mxu1 %v10472_v19 }
 0x39d   : > { %3382 = vst.msk [vmem:[#allocation4 + $0x10] sm:$0xff] %vm3144_vm13, %v3369_v29  ;;  %v12434_v7 = vld [vmem:[#allocation2 + $0xa] sm:$0xff]  ;;  %v3134_v63 = vmul.f32 %v3121_v40, %v11768_v18  ;;  %v3075_v0 = vadd.f32 %v3074_v21, %v12347_v5  ;;  %v9779_v14 = vpop.f32.mrb[61].mxu1 }
 0x39e   : > { %3279 = vst.msk [vmem:[#allocation4 + $0x50] sm:$0xff] %vm3144_vm13, %v12434_v7  ;;  %v3395_v9 = vld [vmem:[#allocation2 + $0xc] sm:$0xff]  ;;  %10475 = vmatpush3.bf16.msra.mxu1 %v10474_v45 }
 0x39f   : > { %3148 = vst.msk [vmem:[#allocation2 + $0x23] sm:$0xff] %vm3144_vm13, %v3134_v63  ;;  %v3122_v27 = vmax.f32 %v3075_v0, 0.0  ;;  %3421 = vrot.lane.b32.xlu1 %v3395_v9, %s14910_s21  ;;  %v3161_v22 = vld [vmem:[#allocation2 + $0x10] sm:$0xff]  ;;  %10488 = vmatprep.subr.bf16.mxu1 %v14904_v48 }
 0x3a0   : > { %v3370_v56 = vld [vmem:[#allocation2 + $0x13] sm:$0xff]  ;;  %v3079_v29 = vpop.f32.mrb[62].mxu1  ;;  %3174 = vst.msk [vmem:[#allocation4 + $0x90] sm:$0xff] %vm3144_vm13, %v3161_v22  ;;  %v14911_v51 = vld [vmem:[#allocation36_spill] sm:$0xff] }
 0x3a1   : > { %3383 = vst.msk [vmem:[#allocation4 + $0x58] sm:$0xff] %vm3144_vm13, %v3370_v56  ;;  %v12453_v5 = vld [vmem:[#allocation2 + $0x12] sm:$0xff]  ;;  %v3135_v40 = vmul.f32 %v3122_v27, %v14911_v51  ;;  %v3080_v21 = vadd.f32 %v3079_v29, %v12357_v60  ;;  %v9782_v33 = vpop.f32.mrb[63].mxu1 }
 0x3a2   : > { %3280 = vst.msk [vmem:[#allocation4 + $0x98] sm:$0xff] %vm3144_vm13, %v12453_v5  ;;  %v3187_v63 = vld [vmem:[#allocation2 + $0x11] sm:$0xff]  ;;  %v3371_v4 = vld [vmem:[#allocation2 + $0x1b] sm:$0xff] }
 0x3a3   : > { %v3499_v0 = vld [vmem:[#allocation2 + $0x15] sm:$0xff]  ;;  %3149 = vst.msk [vmem:[#allocation2 + $0x2b] sm:$0xff] %vm3144_vm13, %v3135_v40  ;;  %v3123_v19 = vmax.f32 %v3080_v21, 0.0  ;;  %3215 = vrot.lane.b32.xlu1 %v3187_v63, %s14910_s21  ;;  %3384 = vst.msk [vmem:[#allocation4 + $0xa0] sm:$0xff] %vm3144_vm13, %v3371_v4  ;;  %v12472_v40 = vpop.permute.xlu1 %4346 }
 0x3a4   : > { %v3396_v14 = vld [vmem:[#allocation2 + $0x14] sm:$0xff]  ;;  %3525 = vrot.lane.b32.xlu0 %v3499_v0, %s14910_s21  ;;  %v3084_v49 = vpop.f32.mrb[64].mxu1  ;;  %v12480_v0 = vpop.permute.xlu0 %4506 }
 0x3a5   : > { %3486 = vst.msk [vmem:[#allocation4 + $0x18] sm:$0xff] %vm3144_vm13, %v3396_v14  ;;  %v3162_v60 = vld [vmem:[#allocation2 + $0x18] sm:$0xff]  ;;  %v3085_v56 = vadd.f32 %v3084_v49, %v12367_v36  ;;  %v9785_v29 = vpop.f32.mrb[65].mxu1 }
 0x3a6   : > { %3175 = vst.msk [vmem:[#allocation4 + $0xd8] sm:$0xff] %vm3144_vm13, %v3162_v60  ;;  %v12468_v9 = vld [vmem:[#allocation2 + $0x1a] sm:$0xff]  ;;  %v14912_v27 = vld [vmem:[#allocation37_spill] sm:$0xff]  ;;  %v12483_v60 = vld [vmem:[#allocation2 + $0x22] sm:$0xff] }
 0x3a7   : > { %v3577_v45 = vld [vmem:[#allocation2 + $0x16] sm:$0xff]  ;;  %v3136_v22 = vmul.f32 %v3123_v19, %v14912_v27  ;;  %3281 = vst.msk [vmem:[#allocation4 + $0xe0] sm:$0xff] %vm3144_vm13, %v12468_v9  ;;  %v3124_v63 = vmax.f32 %v3085_v56, 0.0  ;;  %3423 = vrot.lane.b32.xlu1 %v3396_v14, %s14910_s21  ;;  %v3163_v36 = vld [vmem:[#allocation2 + $0x20] sm:$0xff]  ;;  %3282 = vst.msk [vmem:[#allocation4 + $0x128] sm:$0xff] %vm3144_vm13, %v12483_v60 }
 0x3a8   : > { %3590 = vst.msk [vmem:[#allocation4 + $0x20] sm:$0xff] %vm3144_vm13, %v3577_v45  ;;  %v3188_v21 = vld [vmem:[#allocation2 + $0x19] sm:$0xff]  ;;  %v3372_v19 = vld [vmem:[#allocation2 + $0x23] sm:$0xff]  ;;  %v3089_v4 = vpop.f32.mrb[66].mxu1  ;;  %3176 = vst.msk [vmem:[#allocation4 + $0x120] sm:$0xff] %vm3144_vm13, %v3163_v36  ;;  %v12495_v36 = vpop.permute.xlu1 %4426 }
 0x3a9   : > { %v3397_v33 = vld [vmem:[#allocation2 + $0x1c] sm:$0xff]  ;;  %3150 = vst.msk [vmem:[#allocation2 + $0x33] sm:$0xff] %vm3144_vm13, %v3136_v22  ;;  %3217 = vrot.lane.b32.xlu0 %v3188_v21, %s14910_s21  ;;  %3385 = vst.msk [vmem:[#allocation4 + $0xe8] sm:$0xff] %vm3144_vm13, %v3372_v19  ;;  %v3090_v22 = vadd.f32 %v3089_v4, %v12378_v52  ;;  %v9788_v56 = vpop.f32.mrb[67].mxu1 }
 0x3aa   : > { %3487 = vst.msk [vmem:[#allocation4 + $0x60] sm:$0xff] %vm3144_vm13, %v3397_v33  ;;  %v3578_v49 = vld [vmem:[#allocation2 + $0x1e] sm:$0xff]  ;;  %v3164_v19 = vld [vmem:[#allocation2 + $0x28] sm:$0xff]  ;;  %v12504_v56 = vpop.permute.xlu0 %4268 }
 0x3ab   : > { %v14913_v14 = vld [vmem:[#allocation38_spill] sm:$0xff]  ;;  %3591 = vst.msk [vmem:[#allocation4 + $0x68] sm:$0xff] %vm3144_vm13, %v3578_v49  ;;  %v3398_v21 = vld [vmem:[#allocation2 + $0x24] sm:$0xff]  ;;  %v3125_v27 = vmax.f32 %v3090_v22, 0.0  ;;  %3425 = vrot.lane.b32.xlu1 %v3397_v33, %s14910_s21  ;;  %3177 = vst.msk [vmem:[#allocation4 + $0x168] sm:$0xff] %vm3144_vm13, %v3164_v19 }
 0x3ac   : > { %v3137_v45 = vmul.f32 %v3124_v63, %v14913_v14  ;;  %v3500_v29 = vld [vmem:[#allocation2 + $0x1d] sm:$0xff]  ;;  %3488 = vst.msk [vmem:[#allocation4 + $0xa8] sm:$0xff] %vm3144_vm13, %v3398_v21  ;;  %v3373_v63 = vld [vmem:[#allocation2 + $0x2b] sm:$0xff]  ;;  %v3094_v14 = vpop.f32.mrb[68].mxu1  ;;  %14915 = vst [vmem:[#allocation46_spill] sm:$0xff] %v12504_v56 }
 0x3ad   : > { %3527 = vrot.lane.b32.xlu0 %v3500_v29, %s14910_s21  ;;  %3386 = vst.msk [vmem:[#allocation4 + $0x130] sm:$0xff] %vm3144_vm13, %v3373_v63  ;;  %v12500_v52 = vld [vmem:[#allocation2 + $0x2a] sm:$0xff]  ;;  %v14914_v49 = vld [vmem:[#allocation39_spill] sm:$0xff]  ;;  %v3095_v33 = vadd.f32 %v3094_v14, %v12390_v44  ;;  %v9791_v22 = vpop.f32.mrb[69].mxu1 }
 0x3ae   : > { %3151 = vst.msk [vmem:[#allocation2 + $0x3b] sm:$0xff] %vm3144_vm13, %v3137_v45  ;;  %v3579_v4 = vld [vmem:[#allocation2 + $0x26] sm:$0xff]  ;;  %v3138_v45 = vmul.f32 %v3125_v27, %v14914_v49  ;;  %3283 = vst.msk [vmem:[#allocation4 + $0x170] sm:$0xff] %vm3144_vm13, %v12500_v52  ;;  %v12521_v49 = vpop.permute.xlu1 %4824 }
 0x3af   : > { %3592 = vst.msk [vmem:[#allocation4 + $0xb0] sm:$0xff] %vm3144_vm13, %v3579_v4  ;;  %v3189_v29 = vld [vmem:[#allocation2 + $0x21] sm:$0xff]  ;;  %v3126_v63 = vmax.f32 %v3095_v33, 0.0  ;;  %v3190_v18 = vld [vmem:[#allocation2 + $0x29] sm:$0xff] }
 0x3b0   : > { %v3501_v51 = vld [vmem:[#allocation2 + $0x25] sm:$0xff]  ;;  %3152 = vst.msk [vmem:[#allocation2 + $0x43] sm:$0xff] %vm3144_vm13, %v3138_v45  ;;  %3219 = vrot.lane.b32.xlu1 %v3189_v29, %s14910_s21  ;;  %v12513_v44 = vld [vmem:[#allocation2 + $0x32] sm:$0xff]  ;;  %v3099_v22 = vpop.f32.mrb[70].mxu1 }
 0x3b1   : > { %v3399_v19 = vld [vmem:[#allocation2 + $0x2c] sm:$0xff]  ;;  %3529 = vrot.lane.b32.xlu0 %v3501_v51, %s14910_s21  ;;  %3284 = vst.msk [vmem:[#allocation4 + $0x1b8] sm:$0xff] %vm3144_vm13, %v12513_v44  ;;  %v3100_v29 = vadd.f32 %v3099_v22, %v12396_v26  ;;  %v9794_v51 = vpop.f32.mrb[71].mxu1 }
 0x3b2   : > { %3489 = vst.msk [vmem:[#allocation4 + $0xf0] sm:$0xff] %vm3144_vm13, %v3399_v19  ;;  %v3165_v27 = vld [vmem:[#allocation2 + $0x30] sm:$0xff] }
 0x3b3   : > { %v3374_v14 = vld [vmem:[#allocation2 + $0x33] sm:$0xff]  ;;  %3178 = vst.msk [vmem:[#allocation4 + $0x1b0] sm:$0xff] %vm3144_vm13, %v3165_v27  ;;  %v14916_v45 = vld [vmem:[#allocation40_spill] sm:$0xff]  ;;  %v3127_v27 = vmax.f32 %v3100_v29, 0.0 }
 0x3b4   : > { %3387 = vst.msk [vmem:[#allocation4 + $0x178] sm:$0xff] %vm3144_vm13, %v3374_v14  ;;  %v3580_v4 = vld [vmem:[#allocation2 + $0x2e] sm:$0xff]  ;;  %v3139_v33 = vmul.f32 %v3126_v63, %v14916_v45  ;;  %3427 = vrot.lane.b32.xlu1 %v3398_v21, %s14910_s21  ;;  %v12529_v14 = vpop.permute.xlu0 %4348 }
 0x3b5   : > { %3593 = vst.msk [vmem:[#allocation4 + $0xf8] sm:$0xff] %vm3144_vm13, %v3580_v4  ;;  %v12524_v62 = vld [vmem:[#allocation2 + $0x34] sm:$0xff]  ;;  %3221 = vrot.lane.b32.xlu0 %v3190_v18, %s14910_s21  ;;  %14917 = vst [vmem:[#allocation47_spill] sm:$0xff] %v12529_v14  ;;  %v3104_v4 = vpop.f32.mrb[72].mxu1 }
 0x3b6   : > { %3153 = vst.msk [vmem:[#allocation2 + $0x4b] sm:$0xff] %vm3144_vm13, %v3139_v33  ;;  %3490 = vst.msk [vmem:[#allocation4 + $0x138] sm:$0xff] %vm3144_vm13, %v12524_v62  ;;  %v12533_v26 = vld [vmem:[#allocation2 + $0x3a] sm:$0xff]  ;;  %v14918_v33 = vld [vmem:[#allocation41_spill] sm:$0xff]  ;;  %v3105_v29 = vadd.f32 %v3104_v4, %v12408_v57  ;;  %v9797_v51 = vpop.f32.mrb[73].mxu1 }
 0x3b7   : > { %v3166_v63 = vld [vmem:[#allocation2 + $0x38] sm:$0xff]  ;;  %3285 = vst.msk [vmem:[#allocation4 + $0x200] sm:$0xff] %vm3144_vm13, %v12533_v26  ;;  %v3140_v18 = vmul.f32 %v3127_v27, %v14918_v33  ;;  %v3502_v45 = vld [vmem:[#allocation2 + $0x2d] sm:$0xff]  ;;  %v12549_v20 = vld [vmem:[#allocation2 + $0x42] sm:$0xff] }
 0x3b8   : > { %v3375_v22 = vld [vmem:[#allocation2 + $0x3b] sm:$0xff]  ;;  %3179 = vst.msk [vmem:[#allocation4 + $0x1f8] sm:$0xff] %vm3144_vm13, %v3166_v63  ;;  %v3128_v63 = vmax.f32 %v3105_v29, 0.0  ;;  %3429 = vrot.lane.b32.xlu1 %v3399_v19, %s14910_s21  ;;  %v3109_v19 = vpop.f32.mrb[74].mxu1  ;;  %3286 = vst.msk [vmem:[#allocation4 + $0x248] sm:$0xff] %vm3144_vm13, %v12549_v20  ;;  %v12590_v33 = vpop.permute.xlu0 %4428  ;;  %v3191_v23 = vld [vmem:[#allocation2 + $0x31] sm:$0xff] }
 0x3b9   : > { %3388 = vst.msk [vmem:[#allocation4 + $0x1c0] sm:$0xff] %vm3144_vm13, %v3375_v22  ;;  %v3581_v21 = vld [vmem:[#allocation2 + $0x36] sm:$0xff]  ;;  %3154 = vst.msk [vmem:[#allocation2 + $0x53] sm:$0xff] %vm3144_vm13, %v3140_v18  ;;  %3531 = vrot.lane.b32.xlu0 %v3502_v45, %s14910_s21  ;;  %v12547_v22 = vpop.permute.xlu1 %4586  ;;  %v3167_v57 = vld [vmem:[#allocation2 + $0x40] sm:$0xff]  ;;  %v3110_v29 = vadd.f32 %v3109_v19, %v12420_v12  ;;  %v9800_v51 = vpop.f32.mrb[75].mxu1 }
 0x3ba   : > { %3594 = vst.msk [vmem:[#allocation4 + $0x140] sm:$0xff] %vm3144_vm13, %v3581_v21  ;;  %v12542_v35 = vld [vmem:[#allocation2 + $0x3c] sm:$0xff]  ;;  %3180 = vst.msk [vmem:[#allocation4 + $0x240] sm:$0xff] %vm3144_vm13, %v3167_v57 }
 0x3bb   : > { %3491 = vst.msk [vmem:[#allocation4 + $0x180] sm:$0xff] %vm3144_vm13, %v12542_v35  ;;  %v12553_v27 = vld [vmem:[#allocation2] sm:$0xff]  ;;  %14920 = vst [vmem:[#allocation48_spill] sm:$0xff] %v12590_v33  ;;  %v3503_v14 = vld [vmem:[#allocation2 + $0x35] sm:$0xff]  ;;  %v3129_v57 = vmax.f32 %v3110_v29, 0.0 }
 0x3bc   : > { %978 = vst.msk [vmem:[#allocation3] sm:$0xff] %vm977_vm5, %v12553_v27  ;;  %979 = vst.msk [vmem:[#allocation3 + $0x8] sm:$0xff] %vm977_vm5, %v12553_v27  ;;  %v3376_v45 = vld [vmem:[#allocation2 + $0x43] sm:$0xff]  ;;  %v14919_v21 = vld [vmem:[#allocation42_spill] sm:$0xff]  ;;  %3223 = vrot.lane.b32.xlu1 %v3191_v23, %s14910_s21 }
 0x3bd   : > { %980 = vst.msk [vmem:[#allocation3 + $0x10] sm:$0xff] %vm977_vm5, %v12553_v27  ;;  %981 = vst.msk [vmem:[#allocation3 + $0x18] sm:$0xff] %vm977_vm5, %v12553_v27  ;;  %v3582_v4 = vld [vmem:[#allocation2 + $0x3e] sm:$0xff]  ;;  %v3141_v18 = vmul.f32 %v3128_v63, %v14919_v21  ;;  %3533 = vrot.lane.b32.xlu0 %v3503_v14, %s14910_s21  ;;  %v12599_v63 = vld [vmem:[#allocation2 + $0x4a] sm:$0xff]  ;;  %v12609_v51 = vpop.permute.xlu1 %4666 }
 0x3be   : > { %982 = vst.msk [vmem:[#allocation3 + $0x20] sm:$0xff] %vm977_vm5, %v12553_v27  ;;  %983 = vst.msk [vmem:[#allocation3 + $0x28] sm:$0xff] %vm977_vm5, %v12553_v27  ;;  %v12594_v56 = vld [vmem:[#allocation2 + $0x44] sm:$0xff]  ;;  %v3192_v21 = vld [vmem:[#allocation2 + $0x39] sm:$0xff] }
 0x3bf   : > { %984 = vst.msk [vmem:[#allocation3 + $0x30] sm:$0xff] %vm977_vm5, %v12553_v27  ;;  %985 = vst.msk [vmem:[#allocation3 + $0x38] sm:$0xff] %vm977_vm5, %v12553_v27  ;;  %v3168_v12 = vld [vmem:[#allocation2 + $0x48] sm:$0xff] }
 0x3c0   : > { %986 = vst.msk [vmem:[#allocation3 + $0x40] sm:$0xff] %vm977_vm5, %v12553_v27  ;;  %987 = vst.msk [vmem:[#allocation3 + $0x48] sm:$0xff] %vm977_vm5, %v12553_v27  ;;  %v3377_v19 = vld [vmem:[#allocation2 + $0x4b] sm:$0xff]  ;;  %3431 = vrot.lane.b32.xlu1 %v12524_v62, %s14910_s21  ;;  %v3504_v62 = vld [vmem:[#allocation2 + $0x3d] sm:$0xff] }
 0x3c1   : > { %988 = vst.msk [vmem:[#allocation3 + $0x50] sm:$0xff] %vm977_vm5, %v12553_v27  ;;  %989 = vst.msk [vmem:[#allocation3 + $0x58] sm:$0xff] %vm977_vm5, %v12553_v27  ;;  %v3403_v33 = vld [vmem:[#allocation2 + $0x4c] sm:$0xff]  ;;  %3225 = vrot.lane.b32.xlu0 %v3192_v21, %s14910_s21 }
 0x3c2   : > { %990 = vst.msk [vmem:[#allocation3 + $0x60] sm:$0xff] %vm977_vm5, %v12553_v27  ;;  %991 = vst.msk [vmem:[#allocation3 + $0x68] sm:$0xff] %vm977_vm5, %v12553_v27 }
 0x3c3   : > { %992 = vst.msk [vmem:[#allocation3 + $0x70] sm:$0xff] %vm977_vm5, %v12553_v27 }
 0x3c4   : > { %3389 = vst.msk [vmem:[#allocation4 + $0x208] sm:$0xff] %vm3144_vm13, %v3376_v45  ;;  %3595 = vst.msk [vmem:[#allocation4 + $0x188] sm:$0xff] %vm3144_vm13, %v3582_v4  ;;  %v3114_v45 = vpop.f32.mrb[76].mxu1  ;;  %v3583_v4 = vld [vmem:[#allocation2 + $0x46] sm:$0xff]  ;;  %3433 = vrot.lane.b32.xlu1 %v12542_v35, %s14910_s21 }
 0x3c5   : > { %3155 = vst.msk [vmem:[#allocation2 + $0x5b] sm:$0xff] %vm3144_vm13, %v3141_v18  ;;  %3492 = vst.msk [vmem:[#allocation4 + $0x1c8] sm:$0xff] %vm3144_vm13, %v12594_v56  ;;  %v14921_v18 = vld [vmem:[#allocation43_spill] sm:$0xff]  ;;  %v3115_v14 = vadd.f32 %v3114_v45, %v12437_v16  ;;  %v9803_v29 = vpop.f32.mrb[77].mxu1  ;;  %v3169_v16 = vld [vmem:[#allocation2 + $0x50] sm:$0xff]  ;;  %3535 = vrot.lane.b32.xlu0 %v3504_v62, %s14910_s21 }
 0x3c6   : > { %3181 = vst.msk [vmem:[#allocation4 + $0x288] sm:$0xff] %vm3144_vm13, %v3168_v12  ;;  %3390 = vst.msk [vmem:[#allocation4 + $0x250] sm:$0xff] %vm3144_vm13, %v3377_v19  ;;  %v3142_v23 = vmul.f32 %v3129_v57, %v14921_v18  ;;  %v12616_v19 = vpop.permute.xlu0 %4826  ;;  %v12618_v57 = vld [vmem:[#allocation2 + $0x52] sm:$0xff]  ;;  %v12631_v29 = vpop.permute.xlu1 %4746  ;;  %v3505_v35 = vld [vmem:[#allocation2 + $0x45] sm:$0xff] }
 0x3c7   : > { %3287 = vst.msk [vmem:[#allocation4 + $0x290] sm:$0xff] %vm3144_vm13, %v12599_v63  ;;  %3596 = vst.msk [vmem:[#allocation4 + $0x1d0] sm:$0xff] %vm3144_vm13, %v3583_v4  ;;  %v3130_v12 = vmax.f32 %v3115_v14, 0.0  ;;  %v3378_v45 = vld [vmem:[#allocation2 + $0x53] sm:$0xff] }
 0x3c8   : > { %3156 = vst.msk [vmem:[#allocation2 + $0x63] sm:$0xff] %vm3144_vm13, %v3142_v23  ;;  %14922 = vst [vmem:[#allocation49_spill] sm:$0xff] %v12616_v19  ;;  %v3584_v4 = vld [vmem:[#allocation2 + $0x4e] sm:$0xff] }
 0x3c9   : > { %3493 = vst.msk [vmem:[#allocation4 + $0x210] sm:$0xff] %vm3144_vm13, %v3403_v33  ;;  %3182 = vst.msk [vmem:[#allocation4 + $0x2d0] sm:$0xff] %vm3144_vm13, %v3169_v16  ;;  %v14923_v23 = vld [vmem:[#allocation44_spill] sm:$0xff]  ;;  %3537 = vrot.lane.b32.xlu0 %v3505_v35, %s14910_s21 }
 0x3ca   : > { %3288 = vst.msk [vmem:[#allocation4 + $0x2d8] sm:$0xff] %vm3144_vm13, %v12618_v57  ;;  %v3143_v14 = vmul.f32 %v3130_v12, %v14923_v23  ;;  %3391 = vst.msk [vmem:[#allocation4 + $0x298] sm:$0xff] %vm3144_vm13, %v3378_v45  ;;  %v12638_v45 = vpop.permute.xlu0 %4588  ;;  %v3193_v23 = vld [vmem:[#allocation2 + $0x41] sm:$0xff]  ;;  %v12648_v19 = vpop.permute.xlu1 %4508 }
 0x3cb   : > { %3597 = vst.msk [vmem:[#allocation4 + $0x218] sm:$0xff] %vm3144_vm13, %v3584_v4  ;;  %14924 = vst [vmem:[#allocation50_spill] sm:$0xff] %v12631_v29  ;;  %3227 = vrot.lane.b32.xlu1 %v3193_v23, %s14910_s21  ;;  %v4800_v29 = vld [vmem:[%s11949_s1 + $0x66] sm:$0xff] }
 0x3cc   : > { %v3404_v21 = vld [vmem:[#allocation2 + $0x54] sm:$0xff]  ;;  %3158 = vst.msk [vmem:[#allocation2 + $0x6b] sm:$0xf] %vm3157_vm7, %v3143_v14  ;;  %14926 = vst [vmem:[#allocation52_spill] sm:$0xff] %v12638_v45 }
 0x3cd   : > { %v12633_v16 = vld [vmem:[#allocation2 + $0x5a] sm:$0xff]  ;;  %3494 = vst.msk [vmem:[#allocation4 + $0x258] sm:$0xff] %vm3144_vm13, %v3404_v21  ;;  %14927 = vst [vmem:[#allocation53_spill] sm:$0xff] %v12648_v19 }
 0x3ce   : > { %14925 = vst [vmem:[#allocation51_spill] sm:$0xff] %v12633_v16  ;;  %v3379_v12 = vld [vmem:[#allocation2 + $0x5b] sm:$0xff]  ;;  %3289 = vst.msk [vmem:[#allocation4 + $0x320] sm:$0xff] %vm3144_vm13, %v12633_v16 }
 0x3cf   : > { %3392 = vst.msk [vmem:[#allocation4 + $0x2e0] sm:$0xff] %vm3144_vm13, %v3379_v12  ;;  %v3170_v4 = vld [vmem:[#allocation2 + $0x58] sm:$0xff]  ;;  %v3171_v62 = vld [vmem:[#allocation2 + $0x60] sm:$0xf]  ;;  %3435 = vrot.lane.b32.xlu1 %v12594_v56, %s14910_s21  ;;  %v12664_v56 = vpop.permute.xlu1 %4270 }
 0x3d0   : > { %v3585_v14 = vld [vmem:[#allocation2 + $0x56] sm:$0xff]  ;;  %3183 = vst.msk [vmem:[#allocation4 + $0x318] sm:$0xff] %vm3144_vm13, %v3170_v4  ;;  %v3380_v16 = vld [vmem:[#allocation2 + $0x63] sm:$0xff]  ;;  %14929 = vst [vmem:[#allocation55_spill] sm:$0xff] %v12664_v56 }
 0x3d1   : > { %v3405_v18 = vld [vmem:[#allocation2 + $0x5c] sm:$0xff]  ;;  %3598 = vst.msk [vmem:[#allocation4 + $0x260] sm:$0xff] %vm3144_vm13, %v3585_v14  ;;  %3393 = vst.msk [vmem:[#allocation4 + $0x328] sm:$0xff] %vm3144_vm13, %v3380_v16  ;;  %v3194_v4 = vld [vmem:[#allocation2 + $0x49] sm:$0xff]  ;;  %v12655_v14 = vpop.permute.xlu0 %4668 }
 0x3d2   : > { %3495 = vst.msk [vmem:[#allocation4 + $0x2a0] sm:$0xff] %vm3144_vm13, %v3405_v18  ;;  %v3277_v12 = vld [vmem:[#allocation2 + $0x62] sm:$0xf]  ;;  %3229 = vrot.lane.b32.xlu0 %v3194_v4, %s14910_s21  ;;  %14928 = vst [vmem:[#allocation54_spill] sm:$0xff] %v12655_v14  ;;  %v3195_v14 = vld [vmem:[#allocation2 + $0x51] sm:$0xff] }
 0x3d3   : > { %3184 = vst.msk [vmem:[#allocation4 + $0x360] sm:$0xf] %vm3157_vm7, %v3171_v62  ;;  %v3586_v45 = vld [vmem:[#allocation2 + $0x5e] sm:$0xff]  ;;  %3290 = vst.msk [vmem:[#allocation4 + $0x368] sm:$0xf] %vm3157_vm7, %v3277_v12  ;;  %v3484_v16 = vld [vmem:[#allocation2 + $0x6c] sm:$0xff]  ;;  %3437 = vrot.lane.b32.xlu1 %v3403_v33, %s14910_s21 }
 0x3d4   : > { %3599 = vst.msk [vmem:[#allocation4 + $0x2a8] sm:$0xff] %vm3144_vm13, %v3586_v45  ;;  %v3406_v23 = vld [vmem:[#allocation2 + $0x64] sm:$0xff]  ;;  %3497 = vst.msk [vmem:[#allocation4 + $0x330] sm:$0xff] %vm3144_vm13, %v3484_v16  ;;  %v3588_v45 = vld [vmem:[#allocation2 + $0x6e] sm:$0xff]  ;;  %v12670_v16 = vpop.permute.xlu1 %4350 }
 0x3d5   : > { %3496 = vst.msk [vmem:[#allocation4 + $0x2e8] sm:$0xff] %vm3144_vm13, %v3406_v23  ;;  %v3381_v35 = vld [vmem:[#allocation2 + $0x6b] sm:$0xf]  ;;  %3601 = vst.msk [vmem:[#allocation4 + $0x338] sm:$0xff] %vm3144_vm13, %v3588_v45  ;;  %v12666_v4 = vpop.permute.xlu0 %4748  ;;  %v3507_v19 = vld [vmem:[#allocation2 + $0x55] sm:$0xff] }
 0x3d6   : > { %v3587_v62 = vld [vmem:[#allocation2 + $0x66] sm:$0xff]  ;;  %3394 = vst.msk [vmem:[#allocation4 + $0x370] sm:$0xf] %vm3157_vm7, %v3381_v35  ;;  %14930 = vst [vmem:[#allocation56_spill] sm:$0xff] %v12666_v4  ;;  %v3197_v35 = vld [vmem:[#allocation2 + $0x61] sm:$0xf] }
 0x3d7   : > { %3600 = vst.msk [vmem:[#allocation4 + $0x2f0] sm:$0xff] %vm3144_vm13, %v3587_v62  ;;  %v3506_v12 = vld [vmem:[#allocation2 + $0x4d] sm:$0xff]  ;;  %3231 = vrot.lane.b32.xlu1 %v3195_v14, %s14910_s21  ;;  %14931 = vst [vmem:[#allocation57_spill] sm:$0xff] %v12670_v16  ;;  %v3196_v62 = vld [vmem:[#allocation2 + $0x59] sm:$0xff]  ;;  %vm993_vm7 = vcmask 123904  }
 0x3d8   : > { %3539 = vrot.lane.b32.xlu0 %v3506_v12, %s14910_s21  ;;  %v12678_v45 = vpop.permute.xlu1 %4430  ;;  %v3508_v12 = vld [vmem:[#allocation2 + $0x5d] sm:$0xff]  ;;  %v3686_v56 = vld [vmem:[%s14871_s3 + $0x90] sm:$0xff]  ;;  %994 = vst.msk [vmem:[#allocation3 + $0x78] sm:$0x3] %vm993_vm7, %v12553_v27  ;;  %vm4868_vm7 = vcmask 142464  }
 0x3d9   : > { %v12674_v33 = vpop.permute.xlu0 %4510  ;;  %14933 = vst [vmem:[#allocation59_spill] sm:$0xff] %v12678_v45  ;;  %v3685_v45 = vld [vmem:[%s14871_s3 + $0x88] sm:$0xff] }
 0x3da   : > { %14932 = vst [vmem:[#allocation58_spill] sm:$0xff] %v12674_v33  ;;  %v3510_v33 = vld [vmem:[#allocation2 + $0x6d] sm:$0xff] }
 0x3db   : > { %3441 = vrot.lane.b32.xlu1 %v3405_v18, %s14910_s21  ;;  %v4798_v18 = vld [vmem:[%s11949_s1 + $0x56] sm:$0xff] }
 0x3dc   : > { %3541 = vrot.lane.b32.xlu0 %v3507_v19, %s14910_s21  ;;  %v3509_v19 = vld [vmem:[#allocation2 + $0x65] sm:$0xff] }
 0x3dd   : > { %v12680_v14 = vpop.permute.xlu0 %4272 }
 0x3de   : > { %14934 = vst [vmem:[#allocation60_spill] sm:$0xff] %v12680_v14 }
 0x3df   : > { %3235 = vrot.lane.b32.xlu1 %v3197_v35, %s14910_s21 }
 0x3e0   : > { %3439 = vrot.lane.b32.xlu0 %v3404_v21, %s14910_s21  ;;  %v12685_v21 = vpop.permute.xlu1 %4828 }
 0x3e1   : > { %14935 = vst [vmem:[#allocation61_spill] sm:$0xff] %v12685_v21  ;;  %v12689_v35 = vpop.permute.xlu0 %4352  ;;  %v3407_v21 = vld [vmem:[#allocation2 + $0x6c] sm:$0xf] }
 0x3e2   : > { %14936 = vst [vmem:[#allocation62_spill] sm:$0xff] %v12689_v35  ;;  %v4719_v35 = vld [vmem:[%s11949_s1 + $0x5d] sm:$0xff] }
 0x3e3   : > { %3545 = vrot.lane.b32.xlu1 %v3509_v19, %s14910_s21 }
 0x3e4   : > { %3233 = vrot.lane.b32.xlu0 %v3196_v62, %s14910_s21  ;;  %v10901_v62 = vld [vmem:[%s11949_s1 + $0x54] sm:$0xff]  ;;  %v12694_v19 = vpop.permute.xlu1 %4590 }
 0x3e5   : > { %14937 = vst [vmem:[#allocation63_spill] sm:$0xff] %v12694_v19  ;;  %v12697_v14 = vpop.permute.xlu0 %4432 }
 0x3e6   : > { %14938 = vst [vmem:[#allocation64_spill] sm:$0xff] %v12697_v14  ;;  %v4400_v14 = vld [vmem:[%s11949_s1 + $0x5a] sm:$0xff] }
 0x3e7   : > { %4832 = vrot.lane.b32.xlu1 %v4798_v18, %s14886_s26 }
 0x3e8   : > { %3543 = vrot.lane.b32.xlu0 %v3508_v12, %s14910_s21  ;;  %v4240_v12 = vld [vmem:[%s11949_s1 + $0x51] sm:$0xff]  ;;  %v12702_v18 = vpop.permute.xlu1 %4670 }
 0x3e9   : > { %14939 = vst [vmem:[#allocation65_spill] sm:$0xff] %v12702_v18  ;;  %v4480_v18 = vld [vmem:[%s11949_s1 + $0x5b] sm:$0xff] }
 0x3eb   : > { %4594 = vrot.lane.b32.xlu1 %v10901_v62, %s14905_s11  ;;  %v10902_v62 = vld [vmem:[%s11949_s1 + $0x52] sm:$0xff] }
 0x3ec   : > { %3547 = vrot.lane.b32.xlu0 %v3510_v33, %s14910_s21  ;;  %v4639_v33 = vld [vmem:[%s11949_s1 + $0x5c] sm:$0xff] }
 0x3ef   : > { %3445 = vrot.lane.b32.xlu1 %v3407_v21, %s14910_s21  ;;  %v12713_v21 = vpop.permute.xlu1 %4750 }
 0x3f0   : > { %3443 = vrot.lane.b32.xlu0 %v3406_v23, %s14910_s21  ;;  %v12707_v23 = vpop.permute.xlu0 %4830  ;;  %14941 = vst [vmem:[#allocation67_spill] sm:$0xff] %v12713_v21  ;;  %v4640_v21 = vld [vmem:[%s11949_s1 + $0x64] sm:$0xff] }
 0x3f1   : > { %14940 = vst [vmem:[#allocation66_spill] sm:$0xff] %v12707_v23 }
 0x3f3   : > { %4674 = vrot.lane.b32.xlu1 %v4639_v33, %s14880_s18  ;;  %v12722_v23 = vpop.permute.xlu1 %4512 }
 0x3f4   : > { %4276 = vrot.lane.b32.xlu0 %v4240_v12, %s14906_s28  ;;  %v4799_v12 = vld [vmem:[%s11949_s1 + $0x5e] sm:$0xff]  ;;  %v12717_v19 = vpop.permute.xlu0 %4592  ;;  %14943 = vst [vmem:[#allocation69_spill] sm:$0xff] %v12722_v23 }
 0x3f5   : > { %14942 = vst [vmem:[#allocation68_spill] sm:$0xff] %v12717_v19  ;;  %v3684_v19 = vld [vmem:[%s14871_s3 + $0x80] sm:$0xff] }
 0x3f6   : > { %v4720_v23 = vld [vmem:[%s11949_s1 + $0x65] sm:$0xff] }
 0x3f7   : > { %4754 = vrot.lane.b32.xlu1 %v4719_v35, %s14908_s9 }
 0x3f8   : > { %4356 = vrot.lane.b32.xlu0 %v10902_v62, %s14881_s5  ;;  %v4241_v62 = vld [vmem:[%s11949_s1 + $0x59] sm:$0xff]  ;;  %v12726_v35 = vpop.permute.xlu0 %4672 }
 0x3f9   : > { %14944 = vst [vmem:[#allocation70_spill] sm:$0xff] %v12726_v35  ;;  %v4401_v35 = vld [vmem:[%s11949_s1 + $0x62] sm:$0xff] }
 0x3fb   : > { %4834 = vrot.lane.b32.xlu1 %v4799_v12, %s14886_s26  ;;  %v10412_v12 = vpack.c.bf16 %v3685_v45, %v3684_v19  ;;  %v3670_v19 = vld [vmem:[%s14871_s3 + $0x10] sm:$0xff] }
 0x3fc   : > { %4436 = vrot.lane.b32.xlu0 %v4400_v14, %s14907_s10  ;;  %v12739_v16 = vpop.permute.xlu0 %4752 }
 0x3fd   : > { %14946 = vst [vmem:[#allocation72_spill] sm:$0xff] %v12739_v16  ;;  %10413 = vmatprep.subr.bf16.mxu0 %v10412_v12  ;;  %v3689_v12 = vld [vmem:[%s14871_s3 + $0xa8] sm:$0xff] }
 0x3ff   : > { %4596 = vrot.lane.b32.xlu1 %v4639_v33, %s14905_s11  ;;  %v3668_v33 = vld [vmem:[%s14871_s3] sm:$0xff] }
 0x400   : > { %4516 = vrot.lane.b32.xlu0 %v4480_v18, %s14883_s2  ;;  %v12733_v18 = vpop.permute.xlu1 %4274 }
 0x401   : > { %14945 = vst [vmem:[#allocation71_spill] sm:$0xff] %v12733_v18  ;;  %v3671_v18 = vld [vmem:[%s14871_s3 + $0x18] sm:$0xff] }
 0x403   : > { %4676 = vrot.lane.b32.xlu1 %v4640_v21, %s14880_s18 }
 0x404   : > { %4278 = vrot.lane.b32.xlu0 %v4241_v62, %s14906_s28  ;;  %v3669_v62 = vld [vmem:[%s14871_s3 + $0x8] sm:$0xff]  ;;  %v12749_v16 = vpop.permute.xlu1 %4354 }
 0x405   : > { %v10414_v4 = vpack.c.bf16 %v3669_v62, %v3668_v33  ;;  %v4481_v33 = vld [vmem:[%s11949_s1 + $0x63] sm:$0xff]  ;;  %v10418_v62 = vpack.c.bf16 %v3671_v18, %v3670_v19 }
 0x406   : > { %v3673_v18 = vld [vmem:[%s14871_s3 + $0x28] sm:$0xff] }
 0x407   : > { %10415 = vmatpush3.bf16.msra.mxu0 %v10414_v4  ;;  %4756 = vrot.lane.b32.xlu1 %v4720_v23, %s14908_s9  ;;  %v3688_v4 = vld [vmem:[%s14871_s3 + $0xa0] sm:$0xff] }
 0x408   : > { %4358 = vrot.lane.b32.xlu0 %v4400_v14, %s14881_s5  ;;  %v3687_v14 = vld [vmem:[%s14871_s3 + $0x98] sm:$0xff]  ;;  %v10420_v23 = vpack.c.bf16 %v3689_v12, %v3688_v4  ;;  %v3674_v4 = vld [vmem:[%s14871_s3 + $0x30] sm:$0xff] }
 0x409   : > { %v10416_v45 = vpack.c.bf16 %v3687_v14, %v3686_v56  ;;  %v12755_v56 = vpop.permute.xlu0 %4514  ;;  %v4242_v14 = vld [vmem:[%s11949_s1 + $0x61] sm:$0xf]  ;;  %v3675_v12 = vld [vmem:[%s14871_s3 + $0x38] sm:$0xff] }
 0x40a   : > { %14947 = vst [vmem:[#allocation73_spill] sm:$0xff] %v12755_v56  ;;  %v3677_v56 = vld [vmem:[%s14871_s3 + $0x48] sm:$0xff] }
 0x40b   : > { %10417 = vmatprep.subr.bf16.mxu0 %v10416_v45  ;;  %4836 = vrot.lane.b32.xlu1 %v4800_v29, %s14886_s26  ;;  %v3690_v45 = vld [vmem:[%s14871_s3 + $0xb0] sm:$0xff]  ;;  %v12764_v29 = vpop.permute.xlu1 %4434 }
 0x40c   : > { %4438 = vrot.lane.b32.xlu0 %v4401_v35, %s14907_s10  ;;  %10419 = vmatpush3.bf16.msra.mxu0 %v10418_v62  ;;  %v3672_v35 = vld [vmem:[%s14871_s3 + $0x20] sm:$0xff]  ;;  %v3691_v62 = vld [vmem:[%s14871_s3 + $0xb8] sm:$0xff]  ;;  %14948 = vst [vmem:[#allocation74_spill] sm:$0xff] %v12764_v29 }
 0x40d   : > { %v10422_v19 = vpack.c.bf16 %v3673_v18, %v3672_v35  ;;  %10421 = vmatprep.subr.bf16.mxu0 %v10420_v23  ;;  %v4641_v35 = vld [vmem:[%s11949_s1 + $0x6c] sm:$0xff]  ;;  %v4322_v23 = vld [vmem:[%s11949_s1 + $0x62] sm:$0xf]  ;;  %v10426_v18 = vpack.c.bf16 %v3675_v12, %v3674_v4 }
 0x40e   : > { %v4721_v4 = vld [vmem:[%s11949_s1 + $0x6d] sm:$0xff] }
 0x40f   : > { %4598 = vrot.lane.b32.xlu1 %v4640_v21, %s14905_s11  ;;  %v3692_v21 = vld [vmem:[%s14871_s3 + $0xc0] sm:$0xff]  ;;  %v4402_v12 = vld [vmem:[%s11949_s1 + $0x6a] sm:$0xf] }
 0x410   : > { %4518 = vrot.lane.b32.xlu0 %v4481_v33, %s14883_s2  ;;  %10423 = vmatpush3.bf16.msra.mxu0 %v10422_v19  ;;  %v10424_v33 = vpack.c.bf16 %v3691_v62, %v3690_v45  ;;  %v3214_v19 = vpop.permute.xlu0 %3213  ;;  %v3676_v62 = vld [vmem:[%s14871_s3 + $0x40] sm:$0xff] }
 0x411   : > { %3252 = vst.msk [vmem:[#allocation4 + $0x48] sm:$0xff] %vm3250_vm8, %v3214_v19  ;;  %v3422_v19 = vpop.permute.xlu1 %3421 }
 0x412   : > { %10425 = vmatprep.subr.bf16.mxu0 %v10424_v33  ;;  %v10430_v33 = vpack.c.bf16 %v3677_v56, %v3676_v62  ;;  %3460 = vst.msk [vmem:[#allocation4 + $0x10] sm:$0xff] %vm3250_vm8, %v3422_v19  ;;  %v3678_v19 = vld [vmem:[%s14871_s3 + $0x50] sm:$0xff] }
 0x413   : > { %4678 = vrot.lane.b32.xlu1 %v4641_v35, %s14880_s18  ;;  %v4801_v35 = vld [vmem:[%s11949_s1 + $0x6e] sm:$0xff] }
 0x414   : > { %4280 = vrot.lane.b32.xlu0 %v4242_v14, %s14906_s28  ;;  %10427 = vmatpush3.bf16.msra.mxu0 %v10426_v18  ;;  %v3693_v14 = vld [vmem:[%s14871_s3 + $0xc8] sm:$0xff]  ;;  %s15004_s28 = sld [smem:[#allocation22_spill]] }
 0x415   : > { %v10428_v45 = vpack.c.bf16 %v3693_v14, %v3692_v21  ;;  %v4203_v18 = vld [vmem:[%s11949_s1 + $0x8] sm:$0xff]  ;;  %v3694_v21 = vld [vmem:[%s14871_s3 + $0xd0] sm:$0xff]  ;;  %v3695_v14 = vld [vmem:[%s14871_s3 + $0xd8] sm:$0xff]  ;;  %v3216_v56 = vpop.permute.xlu1 %3215 }
 0x416   : > { %v3526_v62 = vpop.permute.xlu0 %3525  ;;  %3253 = vst.msk [vmem:[#allocation4 + $0x90] sm:$0xff] %vm3250_vm8, %v3216_v56  ;;  %v3697_v56 = vld [vmem:[%s14871_s3 + $0xe8] sm:$0xff] }
 0x417   : > { %10429 = vmatprep.subr.bf16.mxu0 %v10428_v45  ;;  %4758 = vrot.lane.b32.xlu1 %v4721_v4, %s14908_s9  ;;  %v10432_v45 = vpack.c.bf16 %v3695_v14, %v3694_v21  ;;  %3564 = vst.msk [vmem:[#allocation4 + $0x18] sm:$0xff] %vm3250_vm8, %v3526_v62  ;;  %v4562_v21 = vld [vmem:[%s11949_s1 + $0x6c] sm:$0xf]  ;;  %v3696_v14 = vld [vmem:[%s14871_s3 + $0xe0] sm:$0xff] }
 0x418   : > { %4360 = vrot.lane.b32.xlu0 %v4322_v23, %s14881_s5  ;;  %10431 = vmatpush3.bf16.msra.mxu0 %v10430_v33  ;;  %v4482_v23 = vld [vmem:[%s11949_s1 + $0x6b] sm:$0xf]  ;;  %v3679_v33 = vld [vmem:[%s14871_s3 + $0x58] sm:$0xff]  ;;  %v4883_v62 = vld [vmem:[%s11091_s14] sm:$0xff]  ;;  %s11031_s5 = smov 48  }
 0x419   : > { %v12787_v29 = vld [vmem:[#allocation4 + $0x48] sm:$0xff]  ;;  %v10434_v4 = vpack.c.bf16 %v3679_v33, %v3678_v19  ;;  %10433 = vmatprep.subr.bf16.mxu0 %v10432_v45  ;;  %v3680_v45 = vld [vmem:[%s14871_s3 + $0x60] sm:$0xff] }
 0x41a   : > { %14949 = vst [vmem:[#allocation75_spill] sm:$0xff] %v12787_v29  ;;  %4217 = vst.msk [vmem:[#allocation4 + $0x48] sm:$0xff] %vm4215_vm9, %v4203_v18  ;;  %v3265_v18 = vld [vmem:[#allocation2 + $0x2] sm:$0xff]  ;;  %v3698_v29 = vld [vmem:[%s14871_s3 + $0xf0] sm:$0xff] }
 0x41b   : > { %4297 = vst.msk [vmem:[#allocation4 + $0x48] sm:$0xff] %vm4295_vm10, %v12239_v1  ;;  %4838 = vrot.lane.b32.xlu1 %v4801_v35, %s14886_s26  ;;  %v4204_v1 = vld [vmem:[%s11949_s1 + $0x10] sm:$0xff]  ;;  %v3424_v35 = vpop.permute.xlu1 %3423  ;;  %v3681_v19 = vld [vmem:[%s14871_s3 + $0x68] sm:$0xff] }
 0x41c   : > { %4440 = vrot.lane.b32.xlu0 %v4402_v12, %s14907_s10  ;;  %v4642_v12 = vld [vmem:[%s11949_s1 + $0x74] sm:$0xf]  ;;  %4377 = vst.msk [vmem:[#allocation4 + $0x48] sm:$0xff] %vm4375_vm11, %v12249_v53  ;;  %10435 = vmatpush3.bf16.msra.mxu0 %v10434_v4  ;;  %v10436_v53 = vpack.c.bf16 %v3697_v56, %v3696_v14  ;;  %v10438_v33 = vpack.c.bf16 %v3681_v19, %v3680_v45  ;;  %v3699_v4 = vld [vmem:[%s14871_s3 + $0xf8] sm:$0xff]  ;;  %s11036_s10 = smov 112  }
 0x41d   : > { %4457 = vst.msk [vmem:[#allocation4 + $0x48] sm:$0xff] %vm4455_vm12, %v12254_v54  ;;  %v4884_v54 = vld [vmem:[%s11091_s14 + $0x8] sm:$0xff]  ;;  %v3682_v14 = vld [vmem:[%s14871_s3 + $0x70] sm:$0xff]  ;;  %v3683_v56 = vld [vmem:[%s14871_s3 + $0x78] sm:$0xff] }
 0x41e   : > { %3278 = vst.msk [vmem:[#allocation4 + $0x8] sm:$0xff] %vm3144_vm13, %v3265_v18  ;;  %v10440_v18 = vpack.c.bf16 %v3699_v4, %v3698_v29  ;;  %10437 = vmatprep.subr.bf16.mxu0 %v10436_v53  ;;  %v10489_v19 = vpack.c.bf16 %v4884_v54, %v4883_v62  ;;  %v10442_v29 = vpack.c.bf16 %v3683_v56, %v3682_v14  ;;  %v14959_v62 = vld [vmem:[#allocation54_spill] sm:$0xff]  ;;  %v14960_v53 = vld [vmem:[#allocation57_spill] sm:$0xff]  ;;  %v14962_v4 = vld [vmem:[#allocation59_spill] sm:$0xff] }
 0x41f   : > { %4537 = vst.msk [vmem:[#allocation4 + $0x48] sm:$0xff] %vm4535_vm14, %v12279_v6  ;;  %4680 = vrot.lane.b32.xlu1 %v4642_v12, %s14880_s18  ;;  %v4802_v6 = vld [vmem:[%s11949_s1 + $0x76] sm:$0xf]  ;;  %s11033_s18 = smov 56  }
 0x420   : > { %4520 = vrot.lane.b32.xlu0 %v4482_v23, %s14883_s2  ;;  %v3218_v23 = vpop.permute.xlu0 %3217  ;;  %3461 = vst.msk [vmem:[#allocation4 + $0x58] sm:$0xff] %vm3250_vm8, %v3424_v35  ;;  %v4722_v35 = vld [vmem:[%s11949_s1 + $0x75] sm:$0xf]  ;;  %10439 = vmatpush3.bf16.msra.mxu0 %v10438_v33  ;;  %v14961_v33 = vld [vmem:[#allocation56_spill] sm:$0xff] }
 0x421   : > { %3254 = vst.msk [vmem:[#allocation4 + $0xd8] sm:$0xff] %vm3250_vm8, %v3218_v23  ;;  %v12830_v23 = vld [vmem:[#allocation4 + $0x90] sm:$0xff]  ;;  %v3606_v12 = vld [vmem:[#allocation4 + $0x18] sm:$0xff]  ;;  %10441 = vmatprep.subr.bf16.mxu0 %v10440_v18 }
 0x422   : > { %4617 = vst.msk [vmem:[#allocation4 + $0x48] sm:$0xff] %vm4615_vm15, %v12288_v2  ;;  %v3426_v2 = vpop.permute.xlu1 %3425  ;;  %3980 = vmatprep.mubr.f32.mxu1 %v3606_v12  ;;  %v5546_v54 = vld [vmem:[#allocation3 + $0x74] sm:$0xf]  ;;  %v4210_v12 = vld [vmem:[%s11949_s1 + $0x40] sm:$0xff] }
 0x423   : > { %4697 = vst.msk [vmem:[#allocation4 + $0x48] sm:$0xff] %vm4695_vm0, %v12293_v17  ;;  %v4205_v17 = vld [vmem:[%s11949_s1 + $0x18] sm:$0xff]  ;;  %4840 = vrot.lane.b32.xlu1 %v4802_v6, %s14886_s26 }
 0x424   : > { %4600 = vrot.lane.b32.xlu0 %v4562_v21, %s14905_s11  ;;  %4777 = vst.msk [vmem:[#allocation4 + $0x48] sm:$0xff] %vm4775_vm3, %v12299_v61  ;;  %v3528_v45 = vpop.permute.xlu0 %3527  ;;  %v3605_v61 = vld [vmem:[#allocation4 + $0x10] sm:$0xff]  ;;  %10443 = vmatpush3.bf16.msra.mxu0 %v10442_v29  ;;  %v14967_v29 = vld [vmem:[#allocation67_spill] sm:$0xff]  ;;  %s15003_s11 = sld [smem:[#allocation14_spill]] }
 0x425   : > { %4857 = vst.msk [vmem:[#allocation4 + $0x48] sm:$0xff] %vm4855_vm4, %v12297_v15  ;;  %3981 = vmatmul.mubr.f32.vlgmr.msra.gmra.mrb[78].mxu1 %v3605_v61  ;;  %10476 = vmatprep.subr.bf16.mxu0 %v14904_v48  ;;  %v14963_v6 = vld [vmem:[#allocation61_spill] sm:$0xff] }
 0x426   : > { %4218 = vst.msk [vmem:[#allocation4 + $0x90] sm:$0xff] %vm4215_vm9, %v4204_v1  ;;  %v3220_v21 = vpop.permute.xlu1 %3219  ;;  %10490 = vmatpush3.bf16.msra.mxu1 %v10489_v19  ;;  %v14966_v19 = vld [vmem:[#allocation65_spill] sm:$0xff] }
 0x427   : > { %3462 = vst.msk [vmem:[#allocation4 + $0xa0] sm:$0xff] %vm3250_vm8, %v3426_v2  ;;  %3565 = vst.msk [vmem:[#allocation4 + $0x60] sm:$0xff] %vm3250_vm8, %v3528_v45  ;;  %9863 = vmatprep.subr.mxu1 %v12553_v27  ;;  %3319 = vrot.lane.b32.xlu1 %v12453_v5, %s14910_s21  ;;  %v14951_v5 = vld [vmem:[#allocation49_spill] sm:$0xff]  ;;  %v14965_v45 = vld [vmem:[#allocation63_spill] sm:$0xff] }
 0x428   : > { %4298 = vst.msk [vmem:[#allocation4 + $0x90] sm:$0xff] %vm4295_vm10, %v12281_v59  ;;  %4760 = vrot.lane.b32.xlu0 %v4722_v35, %s14908_s9  ;;  %v12846_v15 = vld [vmem:[#allocation4 + $0xd8] sm:$0xff]  ;;  %v3530_v1 = vpop.permute.xlu0 %3529  ;;  %v4885_v59 = vld [vmem:[%s11091_s14 + $0x10] sm:$0x3]  ;;  %v4214_v27 = vld [vmem:[%s11949_s1 + $0x60] sm:$0xf] }
 0x429   : > { %4378 = vst.msk [vmem:[#allocation4 + $0x90] sm:$0xff] %vm4375_vm11, %v12284_v25  ;;  %v14964_v35 = vld [vmem:[#allocation58_spill] sm:$0xff]  ;;  %s11032_s9 = smov 40  }
 0x42a   : > { %4458 = vst.msk [vmem:[#allocation4 + $0x90] sm:$0xff] %vm4455_vm12, %v12290_v32  ;;  %v3428_v25 = vpop.permute.xlu1 %3427  ;;  %9864 = vmatpush3.msk.msra.mxu1 %vm4933_vm6, %v4885_v59  ;;  %v14968_v59 = vld [vmem:[#allocation66_spill] sm:$0xff]  ;;  %vm4228_vm6 = vcmask 11264  }
 0x42b   : > { %4538 = vst.msk [vmem:[#allocation4 + $0x90] sm:$0xff] %vm4535_vm14, %v12303_v41  ;;  %10572 = vmatprep.subr.bf16.mxu1 %v14904_v48  ;;  %v4206_v41 = vld [vmem:[%s11949_s1 + $0x20] sm:$0xff]  ;;  %3323 = vrot.lane.b32.xlu1 %v12483_v60, %s14910_s21 }
 0x42c   : > { %4219 = vst.msk [vmem:[#allocation4 + $0xd8] sm:$0xff] %vm4215_vm9, %v4205_v17  ;;  %3317 = vrot.lane.b32.xlu0 %v12434_v7, %s14910_s21  ;;  %v3222_v32 = vpop.permute.xlu0 %3221 }
 0x42d   : > { %3255 = vst.msk [vmem:[#allocation4 + $0x120] sm:$0xff] %vm3250_vm8, %v3220_v21  ;;  %3566 = vst.msk [vmem:[#allocation4 + $0xa8] sm:$0xff] %vm3250_vm8, %v3530_v1 }
 0x42e   : > { %4618 = vst.msk [vmem:[#allocation4 + $0x90] sm:$0xff] %vm4615_vm15, %v12301_v55  ;;  %v3611_v55 = vld [vmem:[#allocation4 + $0x60] sm:$0xff] }
 0x42f   : > { %4299 = vst.msk [vmem:[#allocation4 + $0xd8] sm:$0xff] %vm4295_vm10, %v12309_v46  ;;  %3985 = vmatprep.mubr.f32.mxu1 %v3611_v55  ;;  %3327 = vrot.lane.b32.xlu1 %v12513_v44, %s14910_s21  ;;  %v14969_v55 = vld [vmem:[#allocation60_spill] sm:$0xff] }
 0x430   : > { %4698 = vst.msk [vmem:[#allocation4 + $0x90] sm:$0xff] %vm4695_vm0, %v12306_v30  ;;  %3321 = vrot.lane.b32.xlu0 %v12468_v9, %s14910_s21  ;;  %v3610_v30 = vld [vmem:[#allocation4 + $0x58] sm:$0xff] }
 0x431   : > { %4379 = vst.msk [vmem:[#allocation4 + $0xd8] sm:$0xff] %vm4375_vm11, %v12315_v10  ;;  %3986 = vmatmul.mubr.f32.gmra.mrb[80].mxu1 %v3610_v30  ;;  %v3532_v10 = vpop.permute.xlu0 %3531  ;;  %v14952_v9 = vld [vmem:[#allocation46_spill] sm:$0xff] }
 0x432   : > { %4778 = vst.msk [vmem:[#allocation4 + $0x90] sm:$0xff] %vm4775_vm3, %v12311_v28  ;;  %v3430_v28 = vpop.permute.xlu1 %3429  ;;  %v14970_v30 = vld [vmem:[#allocation62_spill] sm:$0xff] }
 0x433   : > { %4459 = vst.msk [vmem:[#allocation4 + $0xd8] sm:$0xff] %vm4455_vm12, %v12325_v37  ;;  %v4207_v37 = vld [vmem:[%s11949_s1 + $0x28] sm:$0xff]  ;;  %3331 = vrot.lane.b32.xlu1 %v12549_v20, %s14910_s21  ;;  %v4208_v20 = vld [vmem:[%s11949_s1 + $0x30] sm:$0xff] }
 0x434   : > { %4858 = vst.msk [vmem:[#allocation4 + $0x90] sm:$0xff] %vm4855_vm4, %v12335_v47  ;;  %v12890_v46 = vld [vmem:[#allocation4 + $0x120] sm:$0xff]  ;;  %3325 = vrot.lane.b32.xlu0 %v12500_v52, %s14910_s21 }
 0x435   : > { %4539 = vst.msk [vmem:[#allocation4 + $0xd8] sm:$0xff] %vm4535_vm14, %v12320_v50  ;;  %v3616_v50 = vld [vmem:[#allocation4 + $0xa8] sm:$0xff]  ;;  %v3615_v47 = vld [vmem:[#allocation4 + $0xa0] sm:$0xff] }
 0x436   : > { %3463 = vst.msk [vmem:[#allocation4 + $0xe8] sm:$0xff] %vm3250_vm8, %v3428_v25  ;;  %3256 = vst.msk [vmem:[#allocation4 + $0x168] sm:$0xff] %vm3250_vm8, %v3222_v32  ;;  %3990 = vmatprep.mubr.f32.mxu1 %v3616_v50  ;;  %v5214_v52 = vld [vmem:[#allocation3 + $0x2] sm:$0xff]  ;;  %v3303_v25 = vld [vmem:[#allocation2 + $0x6a] sm:$0xf] }
 0x437   : > { %4619 = vst.msk [vmem:[#allocation4 + $0xd8] sm:$0xff] %vm4615_vm15, %v12349_v38  ;;  %3991 = vmatmul.mubr.f32.gmra.mrb[82].mxu1 %v3615_v47  ;;  %3335 = vrot.lane.b32.xlu1 %v12618_v57, %s14910_s21  ;;  %v14958_v57 = vld [vmem:[#allocation55_spill] sm:$0xff]  ;;  %v14972_v47 = vld [vmem:[#allocation69_spill] sm:$0xff] }
 0x438   : > { %4699 = vst.msk [vmem:[#allocation4 + $0xd8] sm:$0xff] %vm4695_vm0, %v12371_v31  ;;  %v3224_v31 = vpop.permute.xlu1 %3223  ;;  %3329 = vrot.lane.b32.xlu0 %v12533_v26, %s14910_s21 }
 0x439   : > { %4779 = vst.msk [vmem:[#allocation4 + $0xd8] sm:$0xff] %vm4775_vm3, %v12393_v11 }
 0x43a   : > { %4859 = vst.msk [vmem:[#allocation4 + $0xd8] sm:$0xff] %vm4855_vm4, %v12382_v42  ;;  %v3534_v42 = vpop.permute.xlu0 %3533 }
 0x43b   : > { %4220 = vst.msk [vmem:[#allocation4 + $0x120] sm:$0xff] %vm4215_vm9, %v4206_v41  ;;  %v4211_v41 = vld [vmem:[%s11949_s1 + $0x48] sm:$0xff] }
 0x43c   : > { %3464 = vst.msk [vmem:[#allocation4 + $0x130] sm:$0xff] %vm3250_vm8, %v3430_v28  ;;  %3567 = vst.msk [vmem:[#allocation4 + $0xf0] sm:$0xff] %vm3250_vm8, %v3532_v10  ;;  %3333 = vrot.lane.b32.xlu0 %v12599_v63, %s14910_s21  ;;  %v14956_v63 = vld [vmem:[#allocation53_spill] sm:$0xff]  ;;  %v14971_v28 = vld [vmem:[#allocation64_spill] sm:$0xff] }
 0x43d   : > { %4300 = vst.msk [vmem:[#allocation4 + $0x120] sm:$0xff] %vm4295_vm10, %v12330_v13  ;;  %v12908_v38 = vld [vmem:[#allocation4 + $0x168] sm:$0xff]  ;;  %v3432_v13 = vpop.permute.xlu1 %3431 }
 0x43e   : > { %4380 = vst.msk [vmem:[#allocation4 + $0x120] sm:$0xff] %vm4375_vm11, %v12340_v34  ;;  %v3226_v34 = vpop.permute.xlu0 %3225  ;;  %v3620_v11 = vld [vmem:[#allocation4 + $0xe8] sm:$0xff] }
 0x43f   : > { %4460 = vst.msk [vmem:[#allocation4 + $0x120] sm:$0xff] %vm4455_vm12, %v12360_v24 }
 0x440   : > { %4540 = vst.msk [vmem:[#allocation4 + $0x120] sm:$0xff] %vm4535_vm14, %v12417_v43 }
 0x441   : > { %4221 = vst.msk [vmem:[#allocation4 + $0x168] sm:$0xff] %vm4215_vm9, %v4207_v37 }
 0x442   : > { %3257 = vst.msk [vmem:[#allocation4 + $0x1b0] sm:$0xff] %vm3250_vm8, %v3224_v31  ;;  %3568 = vst.msk [vmem:[#allocation4 + $0x138] sm:$0xff] %vm3250_vm8, %v3534_v42  ;;  %v3536_v7 = vpop.permute.xlu0 %3535  ;;  %v14973_v31 = vld [vmem:[#allocation68_spill] sm:$0xff]  ;;  %v14974_v42 = vld [vmem:[#allocation71_spill] sm:$0xff] }
 0x443   : > { %4620 = vst.msk [vmem:[#allocation4 + $0x120] sm:$0xff] %vm4615_vm15, %v12405_v58  ;;  %v3621_v24 = vld [vmem:[#allocation4 + $0xf0] sm:$0xff]  ;;  %v14950_v58 = vld [vmem:[#allocation50_spill] sm:$0xff] }
 0x444   : > { %4301 = vst.msk [vmem:[#allocation4 + $0x168] sm:$0xff] %vm4295_vm10, %v12449_v8  ;;  %3995 = vmatprep.mubr.f32.mxu1 %v3621_v24  ;;  %v3625_v60 = vld [vmem:[#allocation4 + $0x130] sm:$0xff]  ;;  %v14977_v24 = vld [vmem:[#allocation74_spill] sm:$0xff] }
 0x445   : > { %4700 = vst.msk [vmem:[#allocation4 + $0x120] sm:$0xff] %vm4695_vm0, %v12430_v3  ;;  %3996 = vmatmul.mubr.f32.gmra.mrb[84].mxu1 %v3620_v11  ;;  %v3434_v3 = vpop.permute.xlu1 %3433 }
 0x446   : > { %4381 = vst.msk [vmem:[#allocation4 + $0x168] sm:$0xff] %vm4375_vm11, %v12472_v40  ;;  %v4209_v40 = vld [vmem:[%s11949_s1 + $0x38] sm:$0xff] }
 0x447   : > { %4780 = vst.msk [vmem:[#allocation4 + $0x120] sm:$0xff] %vm4775_vm3, %v12457_v39  ;;  %v3302_v39 = vld [vmem:[#allocation2 + $0x62] sm:$0xff] }
 0x448   : > { %4461 = vst.msk [vmem:[#allocation4 + $0x168] sm:$0xff] %vm4455_vm12, %v12495_v36  ;;  %3339 = vrot.lane.b32.xlu1 %v3302_v39, %s14910_s21  ;;  %v14954_v36 = vld [vmem:[#allocation47_spill] sm:$0xff] }
 0x449   : > { %4860 = vst.msk [vmem:[#allocation4 + $0x120] sm:$0xff] %vm4855_vm4, %v12521_v49  ;;  %v12948_v43 = vld [vmem:[#allocation4 + $0x1b0] sm:$0xff]  ;;  %v3626_v8 = vld [vmem:[#allocation4 + $0x138] sm:$0xff]  ;;  %v3228_v26 = vpop.permute.xlu1 %3227 }
 0x44a   : > { %4541 = vst.msk [vmem:[#allocation4 + $0x168] sm:$0xff] %vm4535_vm14, %v12480_v0  ;;  %4000 = vmatprep.mubr.f32.mxu1 %v3626_v8  ;;  %v14953_v0 = vld [vmem:[#allocation51_spill] sm:$0xff]  ;;  %v14955_v49 = vld [vmem:[#allocation48_spill] sm:$0xff] }
 0x44b   : > { %3465 = vst.msk [vmem:[#allocation4 + $0x178] sm:$0xff] %vm3250_vm8, %v3432_v13  ;;  %3258 = vst.msk [vmem:[#allocation4 + $0x1f8] sm:$0xff] %vm3250_vm8, %v3226_v34  ;;  %3337 = vrot.lane.b32.xlu0 %v14953_v0, %s14910_s21  ;;  %4001 = vmatmul.mubr.f32.gmra.mrb[86].mxu1 %v3625_v60  ;;  %v14975_v13 = vld [vmem:[#allocation70_spill] sm:$0xff]  ;;  %v14976_v34 = vld [vmem:[#allocation72_spill] sm:$0xff] }
 0x44c   : > { %4621 = vst.msk [vmem:[#allocation4 + $0x168] sm:$0xff] %vm4615_vm15, %v12547_v22  ;;  %v3538_v22 = vpop.permute.xlu0 %3537 }
 0x44d   : > { %4701 = vst.msk [vmem:[#allocation4 + $0x168] sm:$0xff] %vm4695_vm0, %v12609_v51  ;;  %v14957_v51 = vld [vmem:[#allocation52_spill] sm:$0xff]  ;;  %v3436_v18 = vpop.permute.xlu1 %3435 }
 0x44e   : > { %4781 = vst.msk [vmem:[#allocation4 + $0x168] sm:$0xff] %vm4775_vm3, %v14950_v58 }
 0x44f   : > { %4861 = vst.msk [vmem:[#allocation4 + $0x168] sm:$0xff] %vm4855_vm4, %v14951_v5  ;;  %5240 = vrot.lane.b32.xlu0 %v5214_v52, %s14886_s26 }
 0x450   : > { %4222 = vst.msk [vmem:[#allocation4 + $0x1b0] sm:$0xff] %vm4215_vm9, %v4208_v20  ;;  %v3230_v14 = vpop.permute.xlu0 %3229 }
 0x451   : > { %3466 = vst.msk [vmem:[#allocation4 + $0x1c0] sm:$0xff] %vm3250_vm8, %v3434_v3  ;;  %3569 = vst.msk [vmem:[#allocation4 + $0x180] sm:$0xff] %vm3250_vm8, %v3536_v7  ;;  %v3438_v61 = vpop.permute.xlu1 %3437  ;;  %v14978_v3 = vld [vmem:[#allocation73_spill] sm:$0xff] }
 0x452   : > { %4302 = vst.msk [vmem:[#allocation4 + $0x1b0] sm:$0xff] %vm4295_vm10, %v14952_v9  ;;  %v12965_v44 = vld [vmem:[#allocation4 + $0x1f8] sm:$0xff] }
 0x453   : > { %4382 = vst.msk [vmem:[#allocation4 + $0x1b0] sm:$0xff] %vm4375_vm11, %v14954_v36  ;;  %v3630_v2 = vld [vmem:[#allocation4 + $0x178] sm:$0xff]  ;;  %5584 = vrot.lane.b32.xlu0 %v5546_v54, %s11031_s5 }
 0x454   : > { %4462 = vst.msk [vmem:[#allocation4 + $0x1b0] sm:$0xff] %vm4455_vm12, %v14955_v49  ;;  %v3540_v21 = vpop.permute.xlu0 %3539  ;;  %v4213_v36 = vld [vmem:[%s11949_s1 + $0x58] sm:$0xff] }
 0x455   : > { %4542 = vst.msk [vmem:[#allocation4 + $0x1b0] sm:$0xff] %vm4535_vm14, %v14956_v63  ;;  %v3232_v50 = vpop.permute.xlu1 %3231 }
 0x456   : > { %4223 = vst.msk [vmem:[#allocation4 + $0x1f8] sm:$0xff] %vm4215_vm9, %v4209_v40 }
 0x457   : > { %3259 = vst.msk [vmem:[#allocation4 + $0x240] sm:$0xff] %vm3250_vm8, %v3228_v26  ;;  %3570 = vst.msk [vmem:[#allocation4 + $0x1c8] sm:$0xff] %vm3250_vm8, %v3538_v22  ;;  %3341 = vrot.lane.b32.xlu0 %v3303_v25, %s14910_s21  ;;  %v4871_v25 = vld [vmem:[#allocation4 + $0x48] sm:$0xff] }
 0x458   : > { %4622 = vst.msk [vmem:[#allocation4 + $0x1b0] sm:$0xff] %vm4615_vm15, %v14957_v51  ;;  %v3631_v56 = vld [vmem:[#allocation4 + $0x180] sm:$0xff]  ;;  %v3542_v37 = vpop.permute.xlu0 %3541 }
 0x459   : > { %4303 = vst.msk [vmem:[#allocation4 + $0x1f8] sm:$0xff] %vm4295_vm10, %v14958_v57  ;;  %4005 = vmatprep.mubr.f32.mxu1 %v3631_v56  ;;  %v3635_v32 = vld [vmem:[#allocation4 + $0x1c0] sm:$0xff]  ;;  %v3442_v20 = vpop.permute.xlu1 %3441 }
 0x45a   : > { %4702 = vst.msk [vmem:[#allocation4 + $0x1b0] sm:$0xff] %vm4695_vm0, %v14959_v62  ;;  %4006 = vmatmul.mubr.f32.gmra.mrb[88].mxu1 %v3630_v2 }
 0x45b   : > { %4383 = vst.msk [vmem:[#allocation4 + $0x1f8] sm:$0xff] %vm4375_vm11, %v14960_v53 }
 0x45c   : > { %4782 = vst.msk [vmem:[#allocation4 + $0x1b0] sm:$0xff] %vm4775_vm3, %v14961_v33  ;;  %v3440_v11 = vpop.permute.xlu0 %3439 }
 0x45d   : > { %4463 = vst.msk [vmem:[#allocation4 + $0x1f8] sm:$0xff] %vm4455_vm12, %v14962_v4  ;;  %v3236_v8 = vpop.permute.xlu1 %3235 }
 0x45e   : > { %4862 = vst.msk [vmem:[#allocation4 + $0x1b0] sm:$0xff] %vm4855_vm4, %v14963_v6  ;;  %v12999_v17 = vld [vmem:[#allocation4 + $0x240] sm:$0xff]  ;;  %v3636_v1 = vld [vmem:[#allocation4 + $0x1c8] sm:$0xff] }
 0x45f   : > { %4543 = vst.msk [vmem:[#allocation4 + $0x1f8] sm:$0xff] %vm4535_vm14, %v14964_v35  ;;  %4010 = vmatprep.mubr.f32.mxu1 %v3636_v1  ;;  %v3666_v35 = vld [vmem:[#allocation4 + $0x378] sm:$0xf] }
 0x460   : > { %3467 = vst.msk [vmem:[#allocation4 + $0x208] sm:$0xff] %vm3250_vm8, %v3436_v18  ;;  %3260 = vst.msk [vmem:[#allocation4 + $0x288] sm:$0xff] %vm3250_vm8, %v3230_v14  ;;  %4011 = vmatmul.mubr.f32.gmra.mrb[90].mxu1 %v3635_v32  ;;  %v3234_v5 = vpop.permute.xlu0 %3233 }
 0x461   : > { %4623 = vst.msk [vmem:[#allocation4 + $0x1f8] sm:$0xff] %vm4615_vm15, %v14965_v45  ;;  %v3546_v0 = vpop.permute.xlu1 %3545 }
 0x462   : > { %4703 = vst.msk [vmem:[#allocation4 + $0x1f8] sm:$0xff] %vm4695_vm0, %v14966_v19  ;;  %v13063_v19 = vld [vmem:[#allocation2] sm:$0xff] }
 0x463   : > { %4783 = vst.msk [vmem:[#allocation4 + $0x1f8] sm:$0xff] %vm4775_vm3, %v14967_v29 }
 0x464   : > { %4863 = vst.msk [vmem:[#allocation4 + $0x1f8] sm:$0xff] %vm4855_vm4, %v14968_v59  ;;  %v3544_v60 = vpop.permute.xlu0 %3543 }
 0x465   : > { %4224 = vst.msk [vmem:[#allocation4 + $0x240] sm:$0xff] %vm4215_vm9, %v4210_v12  ;;  %v4833_v49 = vpop.permute.xlu1 %4832 }
 0x466   : > { %3468 = vst.msk [vmem:[#allocation4 + $0x250] sm:$0xff] %vm3250_vm8, %v3438_v61  ;;  %3571 = vst.msk [vmem:[#allocation4 + $0x210] sm:$0xff] %vm3250_vm8, %v3540_v21  ;;  %v4870_v21 = vld [vmem:[#allocation4] sm:$0xff] }
 0x467   : > { %4304 = vst.msk [vmem:[#allocation4 + $0x240] sm:$0xff] %vm4295_vm10, %v14969_v55  ;;  %v13014_v10 = vld [vmem:[#allocation4 + $0x288] sm:$0xff] }
 0x468   : > { %4384 = vst.msk [vmem:[#allocation4 + $0x240] sm:$0xff] %vm4375_vm11, %v14970_v30  ;;  %v3640_v7 = vld [vmem:[#allocation4 + $0x208] sm:$0xff]  ;;  %v3548_v26 = vpop.permute.xlu0 %3547 }
 0x469   : > { %4464 = vst.msk [vmem:[#allocation4 + $0x240] sm:$0xff] %vm4455_vm12, %v14971_v28  ;;  %v4595_v63 = vpop.permute.xlu1 %4594 }
 0x46a   : > { %4544 = vst.msk [vmem:[#allocation4 + $0x240] sm:$0xff] %vm4535_vm14, %v14972_v47 }
 0x46b   : > { %4225 = vst.msk [vmem:[#allocation4 + $0x288] sm:$0xff] %vm4215_vm9, %v4211_v41  ;;  %v4872_v41 = vld [vmem:[#allocation4 + $0x90] sm:$0xff] }
 0x46c   : > { %3261 = vst.msk [vmem:[#allocation4 + $0x2d0] sm:$0xff] %vm3250_vm8, %v3232_v50  ;;  %3572 = vst.msk [vmem:[#allocation4 + $0x258] sm:$0xff] %vm3250_vm8, %v3542_v37  ;;  %v3444_v51 = vpop.permute.xlu0 %3443  ;;  %v4873_v50 = vld [vmem:[#allocation4 + $0xd8] sm:$0xff] }
 0x46d   : > { %4624 = vst.msk [vmem:[#allocation4 + $0x240] sm:$0xff] %vm4615_vm15, %v14973_v31  ;;  %v3641_v58 = vld [vmem:[#allocation4 + $0x210] sm:$0xff]  ;;  %v3446_v54 = vpop.permute.xlu1 %3445  ;;  %v4874_v31 = vld [vmem:[#allocation4 + $0x120] sm:$0xff] }
 0x46e   : > { %4305 = vst.msk [vmem:[#allocation4 + $0x288] sm:$0xff] %vm4295_vm10, %v14974_v42  ;;  %4015 = vmatprep.mubr.f32.mxu1 %v3641_v58  ;;  %v3645_v40 = vld [vmem:[#allocation4 + $0x250] sm:$0xff] }
 0x46f   : > { %4704 = vst.msk [vmem:[#allocation4 + $0x240] sm:$0xff] %vm4695_vm0, %v14975_v13  ;;  %4016 = vmatmul.mubr.f32.gmra.mrb[92].mxu1 %v3640_v7  ;;  %v4877_v7 = vld [vmem:[#allocation4 + $0x1f8] sm:$0xff] }
 0x470   : > { %4385 = vst.msk [vmem:[#allocation4 + $0x288] sm:$0xff] %vm4375_vm11, %v12749_v16  ;;  %v4212_v16 = vld [vmem:[%s11949_s1 + $0x50] sm:$0xff]  ;;  %v4277_v33 = vpop.permute.xlu0 %4276  ;;  %s14994_s1 = sld [smem:[#allocation15_spill]] }
 0x471   : > { %4784 = vst.msk [vmem:[#allocation4 + $0x240] sm:$0xff] %vm4775_vm3, %v14976_v34  ;;  %v4675_v14 = vpop.permute.xlu1 %4674  ;;  %v4875_v34 = vld [vmem:[#allocation4 + $0x168] sm:$0xff] }
 0x472   : > { %4465 = vst.msk [vmem:[#allocation4 + $0x288] sm:$0xff] %vm4455_vm12, %v14977_v24 }
 0x473   : > { %4545 = vst.msk [vmem:[#allocation4 + $0x288] sm:$0xff] %vm4535_vm14, %v14978_v3  ;;  %v3646_v39 = vld [vmem:[#allocation4 + $0x258] sm:$0xff]  ;;  %v13039_v9 = vld [vmem:[#allocation4 + $0x2d0] sm:$0xff] }
 0x474   : > { %3470 = vst.msk [vmem:[#allocation4 + $0x2e0] sm:$0xff] %vm3250_vm8, %v3442_v20  ;;  %3469 = vst.msk [vmem:[#allocation4 + $0x298] sm:$0xff] %vm3250_vm8, %v3440_v11  ;;  %4020 = vmatprep.mubr.f32.mxu1 %v3646_v39  ;;  %v4357_v56 = vpop.permute.xlu0 %4356  ;;  %v4876_v11 = vld [vmem:[#allocation4 + $0x1b0] sm:$0xff] }
 0x475   : > { %3264 = vst.msk [vmem:[#allocation4 + $0x360] sm:$0xf] %vm3263_vm2, %v3236_v8  ;;  %4021 = vmatmul.mubr.f32.gmra.mrb[94].mxu1 %v3645_v40  ;;  %3472 = vst.msk [vmem:[#allocation4 + $0x370] sm:$0xf] %vm3263_vm2, %v3446_v54  ;;  %v4755_v2 = vpop.permute.xlu1 %4754 }
 0x476   : > { %3262 = vst.msk [vmem:[#allocation4 + $0x318] sm:$0xff] %vm3250_vm8, %v3234_v5  ;;  %3574 = vst.msk [vmem:[#allocation4 + $0x2e8] sm:$0xff] %vm3250_vm8, %v3546_v0 }
 0x477   : > { %4226 = vst.msk [vmem:[#allocation4 + $0x2d0] sm:$0xff] %vm4215_vm9, %v4212_v16 }
 0x478   : > { %3573 = vst.msk [vmem:[#allocation4 + $0x2a0] sm:$0xff] %vm3250_vm8, %v3544_v60  ;;  %3575 = vst.msk [vmem:[#allocation4 + $0x330] sm:$0xff] %vm3250_vm8, %v3548_v26  ;;  %v4437_v45 = vpop.permute.xlu0 %4436 }
 0x479   : > { %4864 = vst.msk [vmem:[#allocation4 + $0x240] sm:$0xff] %vm4855_vm4, %v4833_v49  ;;  %v4835_v29 = vpop.permute.xlu1 %4834 }
 0x47a   : > { %4625 = vst.msk [vmem:[#allocation4 + $0x288] sm:$0xff] %vm4615_vm15, %v4595_v63 }
 0x47b   : > { %3471 = vst.msk [vmem:[#allocation4 + $0x328] sm:$0xff] %vm3250_vm8, %v3444_v51  ;;  %v3650_v62 = vld [vmem:[#allocation4 + $0x298] sm:$0xff]  ;;  %v3655_v4 = vld [vmem:[#allocation4 + $0x2e0] sm:$0xff] }
 0x47c   : > { %v13048_v52 = vld [vmem:[#allocation4 + $0x360] sm:$0xf]  ;;  %4306 = vst.msk [vmem:[#allocation4 + $0x2d0] sm:$0xff] %vm4295_vm10, %v4277_v33  ;;  %v3665_v12 = vld [vmem:[#allocation4 + $0x370] sm:$0xf]  ;;  %v4517_v61 = vpop.permute.xlu0 %4516 }
 0x47d   : > { %v13050_v22 = vld [vmem:[#allocation4 + $0x318] sm:$0xff]  ;;  %4229 = vst.msk [vmem:[#allocation4 + $0x360] sm:$0xf] %vm4228_vm6, %v4214_v27  ;;  %v3656_v53 = vld [vmem:[#allocation4 + $0x2e8] sm:$0xff]  ;;  %v4597_v1 = vpop.permute.xlu1 %4596  ;;  %vm5106_vm6 = vcmask 60416  }
 0x47e   : > { %4227 = vst.msk [vmem:[#allocation4 + $0x318] sm:$0xff] %vm4215_vm9, %v4213_v36  ;;  %vm4893_vm9 = vcmask 146432  }
 0x47f   : > { %v3651_v57 = vld [vmem:[#allocation4 + $0x2a0] sm:$0xff]  ;;  %v3661_v18 = vld [vmem:[#allocation4 + $0x330] sm:$0xff]  ;;  %4705 = vst.msk [vmem:[#allocation4 + $0x288] sm:$0xff] %vm4695_vm0, %v4675_v14 }
 0x480   : > { %4025 = vmatprep.mubr.f32.mxu1 %v3651_v57  ;;  %4386 = vst.msk [vmem:[#allocation4 + $0x2d0] sm:$0xff] %vm4375_vm11, %v4357_v56  ;;  %v4279_v59 = vpop.permute.xlu0 %4278  ;;  %v4878_v5 = vld [vmem:[#allocation4 + $0x240] sm:$0xff]  ;;  %v3734_v56 = vld [vmem:[%s14871_s3 + $0x210] sm:$0xff] }
 0x481   : > { %4026 = vmatmul.mubr.f32.gmra.mrb[96].mxu1 %v3650_v62  ;;  %4785 = vst.msk [vmem:[#allocation4 + $0x288] sm:$0xff] %vm4775_vm3, %v4755_v2  ;;  %v4677_v32 = vpop.permute.xlu1 %4676  ;;  %v3732_v62 = vld [vmem:[%s14871_s3 + $0x200] sm:$0xff] }
 0x482   : > { %4030 = vmatprep.mubr.f32.mxu1 %v3656_v53  ;;  %v3660_v6 = vld [vmem:[#allocation4 + $0x328] sm:$0xff]  ;;  %4466 = vst.msk [vmem:[#allocation4 + $0x2d0] sm:$0xff] %vm4455_vm12, %v4437_v45 }
 0x483   : > { %4865 = vst.msk [vmem:[#allocation4 + $0x288] sm:$0xff] %vm4855_vm4, %v4835_v29  ;;  %v3733_v53 = vld [vmem:[%s14871_s3 + $0x208] sm:$0xff] }
 0x484   : > { %4546 = vst.msk [vmem:[#allocation4 + $0x2d0] sm:$0xff] %vm4535_vm14, %v4517_v61  ;;  %v4359_v55 = vpop.permute.xlu0 %4358  ;;  %v10477_v33 = vpack.c.bf16 %v3733_v53, %v3732_v62  ;;  %v3736_v61 = vld [vmem:[%s14871_s3 + $0x220] sm:$0xff] }
 0x485   : > { %4031 = vmatmul.mubr.f32.gmra.mrb[98].mxu1 %v3655_v4  ;;  %4626 = vst.msk [vmem:[#allocation4 + $0x2d0] sm:$0xff] %vm4615_vm15, %v4597_v1  ;;  %v4757_v30 = vpop.permute.xlu1 %4756  ;;  %v14980_v1 = vld [vmem:[#allocation75_spill] sm:$0xff] }
 0x486   : > { %4035 = vmatprep.mubr.f32.mxu1 %v3661_v18  ;;  %4307 = vst.msk [vmem:[#allocation4 + $0x318] sm:$0xff] %vm4295_vm10, %v4279_v59  ;;  %vm4308_vm10 = vcmask 27664  }
 0x487   : > { %4706 = vst.msk [vmem:[#allocation4 + $0x2d0] sm:$0xff] %vm4695_vm0, %v4677_v32 }
 0x488   : > { %4387 = vst.msk [vmem:[#allocation4 + $0x318] sm:$0xff] %vm4375_vm11, %v4359_v55  ;;  %v4439_v28 = vpop.permute.xlu0 %4438  ;;  %vm4388_vm11 = vcmask 44064  }
 0x489   : > { %4036 = vmatmul.mubr.f32.gmra.mrb[100].mxu1 %v3660_v6  ;;  %4786 = vst.msk [vmem:[#allocation4 + $0x2d0] sm:$0xff] %vm4775_vm3, %v4757_v30  ;;  %v4837_v37 = vpop.permute.xlu1 %4836  ;;  %v3735_v6 = vld [vmem:[%s14871_s3 + $0x218] sm:$0xff] }
 0x48a   : > { %4040 = vmatprep.mubr.f32.mxu1 %v3666_v35  ;;  %4467 = vst.msk [vmem:[#allocation4 + $0x318] sm:$0xff] %vm4455_vm12, %v4439_v28  ;;  %vm4468_vm12 = vcmask 60464   ;;  %v4879_v39 = vld [vmem:[#allocation4 + $0x288] sm:$0xff]  ;;  %v14979_v35 = vld [vmem:[#allocation45_spill] sm:$0xff]  ;;  %v10480_v45 = vpack.c.bf16 %v3735_v6, %v3734_v56 }
 0x48b   : > { %4866 = vst.msk [vmem:[#allocation4 + $0x2d0] sm:$0xff] %vm4855_vm4, %v4837_v37  ;;  %v3739_v30 = vld [vmem:[%s14871_s3 + $0x238] sm:$0xff] }
 0x48c   : > { %v4519_v47 = vpop.permute.xlu0 %4518 }
 0x48d   : > { %4041 = vmatmul.mubr.f32.gmra.mrb[102].mxu1 %v3665_v12  ;;  %4547 = vst.msk [vmem:[#allocation4 + $0x318] sm:$0xff] %vm4535_vm14, %v4519_v47  ;;  %v4599_v42 = vpop.permute.xlu1 %4598  ;;  %vm4548_vm14 = vcmask 76864  }
 0x48e   : > { %9865 = vmatprep.mubr.msk.f32.mxu1 %vm11022_vm1, %v13063_v19  ;;  %4627 = vst.msk [vmem:[#allocation4 + $0x318] sm:$0xff] %vm4615_vm15, %v4599_v42  ;;  %vm4628_vm15 = vcmask 93264  }
 0x490   : > { %v4281_v13 = vpop.permute.xlu0 %4280 }
 0x491   : > { %9866 = vmatmul.mubr.msk.f32.vlgmr.msra.gmra.mrb[104].mxu1 %vm4893_vm9, %v4870_v21  ;;  %4309 = vst.msk [vmem:[#allocation4 + $0x360] sm:$0xf] %vm4308_vm10, %v4281_v13  ;;  %v4679_v24 = vpop.permute.xlu1 %4678  ;;  %v3737_v21 = vld [vmem:[%s14871_s3 + $0x228] sm:$0xff]  ;;  %vm5439_vm10 = vcmask 326912  }
 0x492   : > { %9868 = vmatprep.mubr.msk.f32.mxu1 %vm11022_vm1, %v13063_v19  ;;  %4707 = vst.msk [vmem:[#allocation4 + $0x318] sm:$0xff] %vm4695_vm0, %v4679_v24  ;;  %vm4708_vm0 = vcmask 109664   ;;  %v4880_v60 = vld [vmem:[#allocation4 + $0x2d0] sm:$0xff] }
 0x494   : > { %v4361_v20 = vpop.permute.xlu0 %4360 }
 0x495   : > { %9869 = vmatmul.mubr.msk.f32.gmra.mrb[106].mxu1 %vm4893_vm9, %v4871_v25  ;;  %4389 = vst.msk [vmem:[#allocation4 + $0x360] sm:$0xf] %vm4388_vm11, %v4361_v20  ;;  %v4759_v58 = vpop.permute.xlu1 %4758  ;;  %v10483_v25 = vpack.c.bf16 %v3737_v21, %v3736_v61  ;;  %v5134_v20 = vld [vmem:[#allocation3 + $0x1] sm:$0xff]  ;;  %vm5519_vm11 = vcmask 392512  }
 0x496   : > { %9871 = vmatprep.mubr.msk.f32.mxu1 %vm11022_vm1, %v13063_v19  ;;  %4787 = vst.msk [vmem:[#allocation4 + $0x318] sm:$0xff] %vm4775_vm3, %v4759_v58  ;;  %vm4788_vm3 = vcmask 126064   ;;  %5160 = vrot.lane.b32.xlu1 %v5134_v20, %s14883_s2 }
 0x498   : > { %v4441_v3 = vpop.permute.xlu0 %4440 }
 0x499   : > { %9872 = vmatmul.mubr.msk.f32.gmra.mrb[108].mxu1 %vm4893_vm9, %v4872_v41  ;;  %4469 = vst.msk [vmem:[#allocation4 + $0x360] sm:$0xf] %vm4468_vm12, %v4441_v3  ;;  %v4839_v16 = vpop.permute.xlu1 %4838  ;;  %v3738_v41 = vld [vmem:[%s14871_s3 + $0x230] sm:$0xff]  ;;  %v3607_v3 = vld [vmem:[#allocation4 + $0x20] sm:$0xff]  ;;  %vm5599_vm12 = vcmask 458112  }
 0x49a   : > { %9874 = vmatprep.mubr.msk.f32.mxu1 %vm11022_vm1, %v13063_v19  ;;  %4867 = vst.msk [vmem:[#allocation4 + $0x318] sm:$0xff] %vm4855_vm4, %v4839_v16  ;;  %v3642_v16 = vld [vmem:[#allocation4 + $0x218] sm:$0xff]  ;;  %vm5279_vm4 = vcmask 195712  }
 0x49c   : > { %v4521_v8 = vpop.permute.xlu0 %4520 }
 0x49d   : > { %9875 = vmatmul.mubr.msk.f32.gmra.mrb[110].mxu1 %vm4893_vm9, %v4873_v50  ;;  %4549 = vst.msk [vmem:[#allocation4 + $0x360] sm:$0xf] %vm4548_vm14, %v4521_v8  ;;  %v4681_v40 = vpop.permute.xlu1 %4680  ;;  %v10486_v50 = vpack.c.bf16 %v3739_v30, %v3738_v41  ;;  %v3647_v8 = vld [vmem:[#allocation4 + $0x260] sm:$0xff]  ;;  %vm5679_vm14 = vcmask 523712  }
 0x49e   : > { %9877 = vmatprep.mubr.msk.f32.mxu1 %vm11022_vm1, %v13063_v19  ;;  %v5108_v41 = vld [vmem:[#allocation3] sm:$0xff] }
 0x4a0   : > { %v4601_v0 = vpop.permute.xlu0 %4600 }
 0x4a1   : > { %9878 = vmatmul.mubr.msk.f32.gmra.mrb[112].mxu1 %vm4893_vm9, %v4874_v31  ;;  %4629 = vst.msk [vmem:[#allocation4 + $0x360] sm:$0xf] %vm4628_vm15, %v4601_v0  ;;  %v4841_v27 = vpop.permute.xlu1 %4840  ;;  %v4881_v49 = vld [vmem:[#allocation4 + $0x318] sm:$0xff]  ;;  %v3652_v0 = vld [vmem:[#allocation4 + $0x2a8] sm:$0xff]  ;;  %vm5759_vm15 = vcmask 589312  }
 0x4a2   : > { %9880 = vmatprep.mubr.msk.f32.mxu1 %vm11022_vm1, %v13063_v19  ;;  %4709 = vst.msk [vmem:[#allocation4 + $0x360] sm:$0xf] %vm4708_vm0, %v4681_v40  ;;  %vm5803_vm0 = vcmask 588800  }
 0x4a4   : > { %v4761_v36 = vpop.permute.xlu0 %4760 }
 0x4a5   : > { %9881 = vmatmul.mubr.msk.f32.gmra.mrb[114].mxu1 %vm4893_vm9, %v4875_v34  ;;  %4789 = vst.msk [vmem:[#allocation4 + $0x360] sm:$0xf] %vm4788_vm3, %v4761_v36  ;;  %v3320_v26 = vpop.permute.xlu1 %3319  ;;  %vm5212_vm3 = vcmask 126016  }
 0x4a6   : > { %9883 = vmatprep.mubr.msk.f32.mxu1 %vm11022_vm1, %v13063_v19  ;;  %4869 = vst.msk [vmem:[#allocation4 + $0x360] sm:$0xf] %vm4868_vm7, %v4841_v27  ;;  %vm5292_vm7 = vcmask 191616  }
 0x4a7   : > { %3357 = vst.msk [vmem:[#allocation4 + $0x50] sm:$0xff] %vm3250_vm8, %v3320_v26  ;;  %v3662_v26 = vld [vmem:[#allocation4 + $0x338] sm:$0xff] }
 0x4a8   : > { %v3318_v63 = vpop.permute.xlu0 %3317 }
 0x4a9   : > { %9884 = vmatmul.mubr.msk.f32.gmra.mrb[116].mxu1 %vm4893_vm9, %v4876_v11  ;;  %3356 = vst.msk [vmem:[#allocation4 + $0x8] sm:$0xff] %vm3250_vm8, %v3318_v63  ;;  %v3324_v51 = vpop.permute.xlu1 %3323 }
 0x4aa   : > { %9886 = vmatprep.mubr.msk.f32.mxu1 %vm11022_vm1, %v13063_v19  ;;  %3359 = vst.msk [vmem:[#allocation4 + $0xe0] sm:$0xff] %vm3250_vm8, %v3324_v51 }
 0x4ac   : > { %v3322_v57 = vpop.permute.xlu0 %3321 }
 0x4ad   : > { %9887 = vmatmul.mubr.msk.f32.gmra.mrb[118].mxu1 %vm4893_vm9, %v4877_v7  ;;  %v4882_v54 = vld [vmem:[#allocation4 + $0x360] sm:$0xf]  ;;  %3358 = vst.msk [vmem:[#allocation4 + $0x98] sm:$0xff] %vm3250_vm8, %v3322_v57  ;;  %v3328_v4 = vpop.permute.xlu1 %3327  ;;  %v3637_v7 = vld [vmem:[#allocation4 + $0x1d0] sm:$0xff] }
 0x4ae   : > { %9889 = vmatprep.mubr.msk.f32.mxu1 %vm11022_vm1, %v13063_v19  ;;  %3361 = vst.msk [vmem:[#allocation4 + $0x170] sm:$0xff] %vm3250_vm8, %v3328_v4  ;;  %v3609_v2 = vld [vmem:[#allocation4 + $0x50] sm:$0xff]  ;;  %v3667_v57 = vld [vmem:[#allocation4 + $0x380] sm:$0xf] }
 0x4b0   : > { %v3326_v18 = vpop.permute.xlu0 %3325  ;;  %v3604_v14 = vld [vmem:[#allocation4 + $0x8] sm:$0xff] }
 0x4b1   : > { %9890 = vmatmul.mubr.msk.f32.gmra.mrb[120].mxu1 %vm4893_vm9, %v4878_v5  ;;  %3360 = vst.msk [vmem:[#allocation4 + $0x128] sm:$0xff] %vm3250_vm8, %v3326_v18  ;;  %3850 = vmatprep.mubr.f32.mxu0 %v3604_v14  ;;  %v3332_v12 = vpop.permute.xlu1 %3331  ;;  %v3619_v28 = vld [vmem:[#allocation4 + $0xe0] sm:$0xff] }
 0x4b2   : > { %9892 = vmatprep.mubr.msk.f32.mxu1 %vm11022_vm1, %v13063_v19  ;;  %3851 = vmatmul.mubr.f32.vlgmr.msra.gmra.mrb[78].mxu0 %v14979_v35  ;;  %3363 = vst.msk [vmem:[#allocation4 + $0x200] sm:$0xff] %vm3250_vm8, %v3332_v12 }
 0x4b3   : > { %3855 = vmatprep.mubr.f32.mxu0 %v3609_v2  ;;  %10478 = vmatpush3.bf16.msra.mxu0 %v10477_v33 }
 0x4b4   : > { %v3330_v29 = vpop.permute.xlu0 %3329  ;;  %10479 = vmatprep.subr.bf16.mxu0 %v14904_v48  ;;  %v3614_v59 = vld [vmem:[#allocation4 + $0x98] sm:$0xff] }
 0x4b5   : > { %9893 = vmatmul.mubr.msk.f32.gmra.mrb[122].mxu1 %vm4893_vm9, %v4879_v39  ;;  %3362 = vst.msk [vmem:[#allocation4 + $0x1b8] sm:$0xff] %vm3250_vm8, %v3330_v29  ;;  %v3336_v32 = vpop.permute.xlu1 %3335 }
 0x4b6   : > { %9895 = vmatprep.mubr.msk.f32.mxu1 %vm11022_vm1, %v13063_v19  ;;  %3856 = vmatmul.mubr.f32.gmra.mrb[80].mxu0 %v14980_v1  ;;  %3365 = vst.msk [vmem:[#allocation4 + $0x290] sm:$0xff] %vm3250_vm8, %v3336_v32 }
 0x4b7   : > { %3860 = vmatprep.mubr.f32.mxu0 %v3614_v59  ;;  %10481 = vmatpush3.bf16.msra.mxu0 %v10480_v45 }
 0x4b8   : > { %v3334_v55 = vpop.permute.xlu0 %3333  ;;  %10482 = vmatprep.subr.bf16.mxu0 %v14904_v48  ;;  %v3624_v31 = vld [vmem:[#allocation4 + $0x128] sm:$0xff] }
 0x4b9   : > { %9896 = vmatmul.mubr.msk.f32.gmra.mrb[124].mxu1 %vm4893_vm9, %v4880_v60  ;;  %3364 = vst.msk [vmem:[#allocation4 + $0x248] sm:$0xff] %vm3250_vm8, %v3334_v55  ;;  %v3657_v60 = vld [vmem:[#allocation4 + $0x2f0] sm:$0xff] }
 0x4ba   : > { %9898 = vmatprep.mubr.msk.f32.mxu1 %vm11022_vm1, %v13063_v19  ;;  %3861 = vmatmul.mubr.f32.gmra.mrb[82].mxu0 %v12830_v23  ;;  %v3340_v37 = vpop.permute.xlu1 %3339  ;;  %v3629_v23 = vld [vmem:[#allocation4 + $0x170] sm:$0xff] }
 0x4bb   : > { %3865 = vmatprep.mubr.f32.mxu0 %v3619_v28  ;;  %10484 = vmatpush3.bf16.msra.mxu0 %v10483_v25  ;;  %3367 = vst.msk [vmem:[#allocation4 + $0x320] sm:$0xff] %vm3250_vm8, %v3340_v37 }
 0x4bc   : > { %10485 = vmatprep.subr.bf16.mxu0 %v14904_v48  ;;  %v3634_v34 = vld [vmem:[#allocation4 + $0x1b8] sm:$0xff] }
 0x4bd   : > { %9899 = vmatmul.mubr.msk.f32.gmra.mrb[126].mxu1 %vm4893_vm9, %v4881_v49  ;;  %v3338_v47 = vpop.permute.xlu0 %3337 }
 0x4be   : > { %9901 = vmatprep.mubr.msk.f32.mxu1 %vm11022_vm1, %v13063_v19  ;;  %3366 = vst.msk [vmem:[#allocation4 + $0x2d8] sm:$0xff] %vm3250_vm8, %v3338_v47  ;;  %3866 = vmatmul.mubr.f32.gmra.mrb[84].mxu0 %v12846_v15  ;;  %v3639_v15 = vld [vmem:[#allocation4 + $0x200] sm:$0xff]  ;;  %vm6011_vm8 = vcmask 125952  }
 0x4bf   : > { %3870 = vmatprep.mubr.f32.mxu0 %v3624_v31  ;;  %10487 = vmatpush3.bf16.msra.mxu0 %v10486_v50 }
 0x4c0   : > { %10491 = vmatprep.subr.bf16.mxu0 %v14904_v48  ;;  %v3644_v11 = vld [vmem:[#allocation4 + $0x248] sm:$0xff] }
 0x4c1   : > { %9902 = vmatmul.mubr.msk.f32.gmra.mrb[128].mxu1 %vm4893_vm9, %v4882_v54  ;;  %v13145_v42 = vpop.permute.xlu0 %5240  ;;  %vm5359_vm9 = vcmask 261312  }
 0x4c2   : > { %3871 = vmatmul.mubr.f32.gmra.mrb[86].mxu0 %v12890_v46  ;;  %v6611_v46 = vld [vmem:[#allocation3 + $0x76] sm:$0xf] }
 0x4c3   : > { %3875 = vmatprep.mubr.f32.mxu0 %v3629_v23 }
 0x4c5   : > { %v13149_v13 = vpop.permute.xlu0 %5584 }
 0x4c6   : > { %3876 = vmatmul.mubr.f32.gmra.mrb[88].mxu0 %v12908_v38  ;;  %v3649_v38 = vld [vmem:[#allocation4 + $0x290] sm:$0xff] }
 0x4c7   : > { %3880 = vmatprep.mubr.f32.mxu0 %v3634_v34 }
 0x4c9   : > { %v3342_v24 = vpop.permute.xlu0 %3341 }
 0x4ca   : > { %3368 = vst.msk [vmem:[#allocation4 + $0x368] sm:$0xf] %vm3263_vm2, %v3342_v24  ;;  %3881 = vmatmul.mubr.f32.gmra.mrb[90].mxu0 %v12948_v43  ;;  %v3654_v43 = vld [vmem:[#allocation4 + $0x2d8] sm:$0xff]  ;;  %vm5199_vm2 = vcmask 130112  }
 0x4cb   : > { %3885 = vmatprep.mubr.f32.mxu0 %v3639_v15 }
 0x4ce   : > { %3886 = vmatmul.mubr.f32.gmra.mrb[92].mxu0 %v12965_v44  ;;  %v3659_v44 = vld [vmem:[#allocation4 + $0x320] sm:$0xff] }
 0x4cf   : > { %3890 = vmatprep.mubr.f32.mxu0 %v3644_v11  ;;  %v13234_v11 = vld [vmem:[%s11096_s19] ss:$0 sm:$0xff] }
 0x4d1   : > { %v3664_v58 = vld [vmem:[#allocation4 + $0x368] sm:$0xf] }
 0x4d2   : > { %6624 = vst.msk [vmem:[#allocation4 + $0x368] sm:$0xf] %vm6011_vm8, %v6611_v46  ;;  %3891 = vmatmul.mubr.f32.gmra.mrb[94].mxu0 %v12999_v17  ;;  %v3612_v17 = vld [vmem:[#allocation4 + $0x68] sm:$0xff] }
 0x4d3   : > { %3895 = vmatprep.mubr.f32.mxu0 %v3649_v38 }
 0x4d6   : > { %3896 = vmatmul.mubr.f32.gmra.mrb[96].mxu0 %v13014_v10  ;;  %v3617_v10 = vld [vmem:[#allocation4 + $0xb0] sm:$0xff] }
 0x4d7   : > { %3900 = vmatprep.mubr.f32.mxu0 %v3654_v43 }
 0x4da   : > { %3901 = vmatmul.mubr.f32.gmra.mrb[98].mxu0 %v13039_v9  ;;  %v3622_v9 = vld [vmem:[#allocation4 + $0xf8] sm:$0xff] }
 0x4db   : > { %3905 = vmatprep.mubr.f32.mxu0 %v3659_v44  ;;  %v14981_v44 = vld [vmem:[#allocation32_spill] sm:$0xff] }
 0x4de   : > { %3906 = vmatmul.mubr.f32.gmra.mrb[100].mxu0 %v13050_v22  ;;  %v3632_v22 = vld [vmem:[#allocation4 + $0x188] sm:$0xff] }
 0x4df   : > { %3910 = vmatprep.mubr.f32.mxu0 %v3664_v58 }
 0x4e2   : > { %3911 = vmatmul.mubr.f32.gmra.mrb[102].mxu0 %v13048_v52  ;;  %v3627_v52 = vld [vmem:[#allocation4 + $0x140] sm:$0xff] }
 0x4e3   : > { %9820 = vmatprep.mubr.msk.f32.mxu0 %vm11022_vm1, %v13063_v19 }
 0x4e6   : > { %9821 = vmatmul.mubr.msk.f32.vlgmr.msra.gmra.mrb[104].mxu0 %vm3144_vm13, %v3607_v3 }
 0x4e7   : > { %9823 = vmatprep.mubr.msk.f32.mxu0 %vm11022_vm1, %v13063_v19 }
 0x4ea   : > { %9824 = vmatmul.mubr.msk.f32.gmra.mrb[106].mxu0 %vm3144_vm13, %v3612_v17 }
 0x4eb   : > { %9826 = vmatprep.mubr.msk.f32.mxu0 %vm11022_vm1, %v13063_v19 }
 0x4ee   : > { %9827 = vmatmul.mubr.msk.f32.gmra.mrb[108].mxu0 %vm3144_vm13, %v3617_v10 }
 0x4ef   : > { %9829 = vmatprep.mubr.msk.f32.mxu0 %vm11022_vm1, %v13063_v19 }
 0x4f2   : > { %9830 = vmatmul.mubr.msk.f32.gmra.mrb[110].mxu0 %vm3144_vm13, %v3622_v9 }
 0x4f3   : > { %9832 = vmatprep.mubr.msk.f32.mxu0 %vm11022_vm1, %v13063_v19 }
 0x4f6   : > { %9833 = vmatmul.mubr.msk.f32.gmra.mrb[112].mxu0 %vm3144_vm13, %v3627_v52 }
 0x4f7   : > { %9835 = vmatprep.mubr.msk.f32.mxu0 %vm11022_vm1, %v13063_v19 }
 0x4f8   : > { %v9479_v5 = vpop.f32.mrb[78].mxu1 }
 0x4f9   : > { %v9480_v39 = vpop.f32.mrb[79].mxu1 }
 0x4fa   : > { %9836 = vmatmul.mubr.msk.f32.gmra.mrb[114].mxu0 %vm3144_vm13, %v3632_v22  ;;  %v13191_v40 = vadd.f32 %v9480_v39, %v9479_v5  ;;  %v14982_v22 = vld [vmem:[#allocation33_spill] sm:$0xff]  ;;  %v5787_v5 = vld [vmem:[%s11101_s24] sm:$0xff]  ;;  %v5788_v39 = vld [vmem:[%s11101_s24 + $0x8] sm:$0xff] }
 0x4fb   : > { %9838 = vmatprep.mubr.msk.f32.mxu0 %vm11022_vm1, %v13063_v19 }
 0x4fe   : > { %9839 = vmatmul.mubr.msk.f32.gmra.mrb[116].mxu0 %vm3144_vm13, %v3637_v7 }
 0x4ff   : > { %9841 = vmatprep.mubr.msk.f32.mxu0 %vm11022_vm1, %v13063_v19 }
 0x502   : > { %9842 = vmatmul.mubr.msk.f32.gmra.mrb[118].mxu0 %vm3144_vm13, %v3642_v16 }
 0x503   : > { %9844 = vmatprep.mubr.msk.f32.mxu0 %vm11022_vm1, %v13063_v19 }
 0x504   : > { %v9482_v27 = vpop.f32.mrb[80].mxu1 }
 0x505   : > { %v9483_v36 = vpop.f32.mrb[81].mxu1 }
 0x506   : > { %9845 = vmatmul.mubr.msk.f32.gmra.mrb[120].mxu0 %vm3144_vm13, %v3647_v8  ;;  %v13199_v49 = vadd.f32 %v9483_v36, %v9482_v27  ;;  %v14983_v36 = vld [vmem:[#allocation34_spill] sm:$0xff] }
 0x507   : > { %9847 = vmatprep.mubr.msk.f32.mxu0 %vm11022_vm1, %v13063_v19 }
 0x508   : > { %v5161_v30 = vpop.permute.xlu1 %5160 }
 0x50a   : > { %9848 = vmatmul.mubr.msk.f32.gmra.mrb[122].mxu0 %vm3144_vm13, %v3652_v0  ;;  %v9485_v63 = vpop.f32.mrb[82].mxu1  ;;  %v10492_v0 = vpack.c.bf16 %v5788_v39, %v5787_v5 }
 0x50b   : > { %9850 = vmatprep.mubr.msk.f32.mxu0 %vm11022_vm1, %v13063_v19  ;;  %v9486_v51 = vpop.f32.mrb[83].mxu1 }
 0x50c   : > { %v13204_v62 = vadd.f32 %v9486_v51, %v9485_v63  ;;  %10493 = vmatpush3.bf16.msra.mxu0 %v10492_v0 }
 0x50d   : > { %10494 = vmatprep.subr.bf16.mxu0 %v14904_v48 }
 0x50e   : > { %9851 = vmatmul.mubr.msk.f32.gmra.mrb[124].mxu0 %vm3144_vm13, %v3657_v60 }
 0x50f   : > { %9853 = vmatprep.mubr.msk.f32.mxu0 %vm11022_vm1, %v13063_v19 }
 0x512   : > { %9854 = vmatmul.mubr.msk.f32.gmra.mrb[126].mxu0 %vm3144_vm13, %v3662_v26 }
 0x513   : > { %9856 = vmatprep.mubr.msk.f32.mxu0 %vm11022_vm1, %v13063_v19 }
 0x516   : > { %9857 = vmatmul.mubr.msk.f32.gmra.mrb[128].mxu0 %vm3144_vm13, %v3667_v57  ;;  %vm5093_vm13 = vcmask 64512  }
 0x517   : > { %9922 = vmatprep.mubr.msk.f32.mxu0 %vm11022_vm1, %v13063_v19  ;;  %5121 = vst.msk [vmem:[#allocation4] sm:$0xff] %vm5093_vm13, %v5108_v41  ;;  %v5791_v41 = vld [vmem:[%s11101_s24 + $0x20] sm:$0xff] }
 0x518   : > { %v9488_v53 = vpop.f32.mrb[84].mxu1  ;;  %5200 = vst.msk [vmem:[#allocation4] sm:$0xff] %vm5199_vm2, %v5161_v30  ;;  %v5792_v30 = vld [vmem:[%s11101_s24 + $0x28] sm:$0xff] }
 0x519   : > { %v9489_v54 = vpop.f32.mrb[85].mxu1  ;;  %5280 = vst.msk [vmem:[#allocation4] sm:$0xff] %vm5279_vm4, %v13145_v42 }
 0x51a   : > { %v13209_v33 = vadd.f32 %v9489_v54, %v9488_v53 }
 0x51e   : > { %v9491_v4 = vpop.f32.mrb[86].mxu1 }
 0x51f   : > { %v9492_v18 = vpop.f32.mrb[87].mxu1 }
 0x520   : > { %v13211_v14 = vadd.f32 %v9492_v18, %v9491_v4  ;;  %v5789_v18 = vld [vmem:[%s11101_s24 + $0x10] sm:$0xff] }
 0x52d   : > { %v9494_v56 = vpop.f32.mrb[88].mxu1 }
 0x52e   : > { %v9495_v6 = vpop.f32.mrb[89].mxu1 }
 0x52f   : > { %v13213_v35 = vadd.f32 %v9495_v6, %v9494_v56  ;;  %v5790_v56 = vld [vmem:[%s11101_s24 + $0x18] sm:$0xff] }
 0x533   : > { %v9497_v2 = vpop.f32.mrb[90].mxu1 }
 0x534   : > { %v9498_v45 = vpop.f32.mrb[91].mxu1 }
 0x535   : > { %v13215_v12 = vadd.f32 %v9498_v45, %v9497_v2  ;;  %v10495_v2 = vpack.c.bf16 %v5790_v56, %v5789_v18  ;;  %v14984_v45 = vld [vmem:[#allocation35_spill] sm:$0xff] }
 0x537   : > { %10496 = vmatpush3.bf16.msra.mxu0 %v10495_v2 }
 0x538   : > { %10497 = vmatprep.subr.bf16.mxu0 %v14904_v48 }
 0x542   : > { %v9500_v29 = vpop.f32.mrb[92].mxu1 }
 0x543   : > { %v9501_v61 = vpop.f32.mrb[93].mxu1 }
 0x544   : > { %v13217_v21 = vadd.f32 %v9501_v61, %v9500_v29 }
 0x548   : > { %v9503_v1 = vpop.f32.mrb[94].mxu1 }
 0x549   : > { %v9504_v59 = vpop.f32.mrb[95].mxu1 }
 0x54a   : > { %v13219_v25 = vadd.f32 %v9504_v59, %v9503_v1 }
 0x554   : > { %v9506_v32 = vpop.f32.mrb[96].mxu1 }
 0x555   : > { %v9507_v55 = vpop.f32.mrb[97].mxu1 }
 0x556   : > { %v13221_v28 = vadd.f32 %v9507_v55, %v9506_v32 }
 0x558   : > { %v9509_v50 = vpop.f32.mrb[98].mxu1 }
 0x559   : > { %v9510_v37 = vpop.f32.mrb[99].mxu1 }
 0x55a   : > { %v13227_v47 = vadd.f32 %v9510_v37, %v9509_v50  ;;  %v10498_v37 = vpack.c.bf16 %v5792_v30, %v5791_v41 }
 0x55c   : > { %v9512_v31 = vpop.f32.mrb[100].mxu1  ;;  %10499 = vmatpush3.bf16.msra.mxu0 %v10498_v37 }
 0x55d   : > { %v9513_v23 = vpop.f32.mrb[101].mxu1  ;;  %10500 = vmatprep.subr.bf16.mxu0 %v14904_v48 }
 0x55e   : > { %v13229_v34 = vadd.f32 %v9513_v23, %v9512_v31  ;;  %v14985_v23 = vld [vmem:[#allocation36_spill] sm:$0xff] }
 0x560   : > { %v9515_v24 = vpop.f32.mrb[102].mxu1 }
 0x561   : > { %v9516_v15 = vpop.f32.mrb[103].mxu1 }
 0x562   : > { %v13231_v20 = vadd.f32 %v9516_v15, %v9515_v24 }
 0x564   : > { %v5003_v46 = vpop.f32.mrb[104].mxu1 }
 0x565   : > { %v5004_v58 = vadd.f32 %v13234_v11, %v5003_v46  ;;  %v9867_v38 = vpop.f32.mrb[105].mxu1 }
 0x567   : > { %v5067_v43 = vmax.f32 %v5004_v58, 0.0 }
 0x568   : > { %v5008_v42 = vpop.f32.mrb[106].mxu1 }
 0x569   : > { %v5080_v3 = vmul.f32 %v5067_v43, %v14981_v44  ;;  %v5009_v17 = vadd.f32 %v13234_v11, %v5008_v42  ;;  %v9870_v10 = vpop.f32.mrb[107].mxu1  ;;  %v5793_v42 = vld [vmem:[%s11101_s24 + $0x30] sm:$0xff] }
 0x56a   : > { %v14986_v10 = vld [vmem:[#allocation37_spill] sm:$0xff] }
 0x56b   : > { %5094 = vst.msk [vmem:[#allocation3 + $0xb] sm:$0xff] %vm5093_vm13, %v5080_v3  ;;  %v5068_v9 = vmax.f32 %v5009_v17, 0.0  ;;  %v5794_v3 = vld [vmem:[%s11101_s24 + $0x38] sm:$0xff] }
 0x56c   : > { %v5013_v52 = vpop.f32.mrb[108].mxu1 }
 0x56d   : > { %v5081_v7 = vmul.f32 %v5068_v9, %v14982_v22  ;;  %v5014_v16 = vadd.f32 %v13234_v11, %v5013_v52  ;;  %v9873_v8 = vpop.f32.mrb[109].mxu1 }
 0x56f   : > { %5095 = vst.msk [vmem:[#allocation3 + $0x13] sm:$0xff] %vm5093_vm13, %v5081_v7  ;;  %v5069_v60 = vmax.f32 %v5014_v16, 0.0  ;;  %v10501_v16 = vpack.c.bf16 %v5794_v3, %v5793_v42 }
 0x570   : > { %v5018_v27 = vpop.f32.mrb[110].mxu1 }
 0x571   : > { %v5082_v26 = vmul.f32 %v5069_v60, %v14983_v36  ;;  %v5019_v63 = vadd.f32 %v13234_v11, %v5018_v27  ;;  %v9876_v51 = vpop.f32.mrb[111].mxu1  ;;  %10502 = vmatpush3.bf16.msra.mxu0 %v10501_v16  ;;  %v14987_v27 = vld [vmem:[#allocation38_spill] sm:$0xff] }
 0x572   : > { %v5374_v57 = vld [vmem:[#allocation3 + $0xb] sm:$0xff]  ;;  %9920 = vmatprep.subr.mxu0 %v13063_v19 }
 0x573   : > { %v5294_v53 = vld [vmem:[#allocation3 + $0xa] sm:$0xff]  ;;  %5096 = vst.msk [vmem:[#allocation3 + $0x1b] sm:$0xff] %vm5093_vm13, %v5082_v26  ;;  %v5070_v54 = vmax.f32 %v5019_v63, 0.0  ;;  %5400 = vrot.lane.b32.xlu0 %v5374_v57, %s14885_s17  ;;  %v5795_v57 = vld [vmem:[%s11101_s24 + $0x40] sm:$0xff] }
 0x574   : > { %5320 = vrot.lane.b32.xlu1 %v5294_v53, %s14882_s23  ;;  %v5109_v4 = vld [vmem:[#allocation3 + $0x8] sm:$0xff]  ;;  %v5023_v6 = vpop.f32.mrb[112].mxu1 }
 0x575   : > { %5122 = vst.msk [vmem:[#allocation4 + $0x48] sm:$0xff] %vm5093_vm13, %v5109_v4  ;;  %v5083_v29 = vmul.f32 %v5070_v54, %v14984_v45  ;;  %v5024_v61 = vadd.f32 %v13234_v11, %v5023_v6  ;;  %v9879_v1 = vpop.f32.mrb[113].mxu1  ;;  %v5135_v59 = vld [vmem:[#allocation3 + $0x9] sm:$0xff]  ;;  %9921 = vmatpush3.msra.mxu0 %v5795_v57 }
 0x576   : > { %v5454_v32 = vld [vmem:[#allocation3 + $0xc] sm:$0xff]  ;;  %v14988_v6 = vld [vmem:[#allocation39_spill] sm:$0xff]  ;;  %10503 = vmatprep.subr.bf16.mxu0 %v14904_v48 }
 0x577   : > { %5097 = vst.msk [vmem:[#allocation3 + $0x23] sm:$0xff] %vm5093_vm13, %v5083_v29  ;;  %v5071_v55 = vmax.f32 %v5024_v61, 0.0  ;;  %5480 = vrot.lane.b32.xlu0 %v5454_v32, %s11032_s9  ;;  %v5110_v31 = vld [vmem:[#allocation3 + $0x10] sm:$0xff] }
 0x578   : > { %5162 = vrot.lane.b32.xlu1 %v5135_v59, %s14883_s2  ;;  %v5028_v50 = vpop.f32.mrb[114].mxu1  ;;  %5123 = vst.msk [vmem:[#allocation4 + $0x90] sm:$0xff] %vm5093_vm13, %v5110_v31  ;;  %v5295_v8 = vld [vmem:[#allocation3 + $0x12] sm:$0xff] }
 0x579   : > { %v5084_v24 = vmul.f32 %v5071_v55, %v14985_v23  ;;  %v5029_v15 = vadd.f32 %v13234_v11, %v5028_v50  ;;  %v9882_v46 = vpop.f32.mrb[115].mxu1  ;;  %v5136_v61 = vld [vmem:[#allocation3 + $0x11] sm:$0xff] }
 0x57a   : > { %v5534_v58 = vld [vmem:[#allocation3 + $0x14] sm:$0xff]  ;;  %v14989_v55 = vld [vmem:[#allocation40_spill] sm:$0xff] }
 0x57b   : > { %5098 = vst.msk [vmem:[#allocation3 + $0x2b] sm:$0xff] %vm5093_vm13, %v5084_v24  ;;  %v5072_v38 = vmax.f32 %v5029_v15, 0.0  ;;  %5560 = vrot.lane.b32.xlu0 %v5534_v58, %s11031_s5  ;;  %v5111_v17 = vld [vmem:[#allocation3 + $0x18] sm:$0xff] }
 0x57c   : > { %5242 = vrot.lane.b32.xlu1 %v5294_v53, %s14886_s26  ;;  %v5033_v43 = vpop.f32.mrb[116].mxu1  ;;  %5124 = vst.msk [vmem:[#allocation4 + $0xd8] sm:$0xff] %vm5093_vm13, %v5111_v17  ;;  %v5614_v5 = vld [vmem:[#allocation3 + $0x15] sm:$0xff] }
 0x57d   : > { %v5085_v9 = vmul.f32 %v5072_v38, %v14986_v10  ;;  %v5034_v52 = vadd.f32 %v13234_v11, %v5033_v43  ;;  %v9885_v7 = vpop.f32.mrb[117].mxu1  ;;  %v5375_v53 = vld [vmem:[#allocation3 + $0x13] sm:$0xff] }
 0x57e   : > { %v5112_v60 = vld [vmem:[#allocation3 + $0x20] sm:$0xff]  ;;  %v5694_v54 = vld [vmem:[#allocation3 + $0x16] sm:$0xff] }
 0x57f   : > { %5099 = vst.msk [vmem:[#allocation3 + $0x33] sm:$0xff] %vm5093_vm13, %v5085_v9  ;;  %v5073_v39 = vmax.f32 %v5034_v52, 0.0  ;;  %5640 = vrot.lane.b32.xlu0 %v5614_v5, %s11033_s18  ;;  %5125 = vst.msk [vmem:[#allocation4 + $0x120] sm:$0xff] %vm5093_vm13, %v5112_v60  ;;  %v5535_v37 = vld [vmem:[#allocation3 + $0x1c] sm:$0xff]  ;;  %v14990_v46 = vld [vmem:[#allocation41_spill] sm:$0xff] }
 0x580   : > { %5322 = vrot.lane.b32.xlu1 %v5295_v8, %s14882_s23  ;;  %v5038_v0 = vpop.f32.mrb[118].mxu1  ;;  %v5296_v42 = vld [vmem:[#allocation3 + $0x1a] sm:$0xff] }
 0x581   : > { %v5086_v26 = vmul.f32 %v5073_v39, %v14987_v27  ;;  %v5039_v63 = vadd.f32 %v13234_v11, %v5038_v0  ;;  %v9888_v51 = vpop.f32.mrb[119].mxu1  ;;  %v5615_v3 = vld [vmem:[#allocation3 + $0x1d] sm:$0xff] }
 0x582   : > { %v5113_v56 = vld [vmem:[#allocation3 + $0x28] sm:$0xff]  ;;  %v14991_v7 = vld [vmem:[#allocation42_spill] sm:$0xff] }
 0x583   : > { %5100 = vst.msk [vmem:[#allocation3 + $0x3b] sm:$0xff] %vm5093_vm13, %v5086_v26  ;;  %v5074_v4 = vmax.f32 %v5039_v63, 0.0  ;;  %5720 = vrot.lane.b32.xlu0 %v5694_v54, %s14910_s21  ;;  %5126 = vst.msk [vmem:[#allocation4 + $0x168] sm:$0xff] %vm5093_vm13, %v5113_v56  ;;  %v5376_v39 = vld [vmem:[#allocation3 + $0x1b] sm:$0xff] }
 0x584   : > { %5402 = vrot.lane.b32.xlu1 %v5375_v53, %s14885_s17  ;;  %v5043_v18 = vpop.f32.mrb[120].mxu1  ;;  %v5695_v0 = vld [vmem:[#allocation3 + $0x1e] sm:$0xff] }
 0x585   : > { %v5087_v2 = vmul.f32 %v5074_v4, %v14988_v6  ;;  %v5044_v29 = vadd.f32 %v13234_v11, %v5043_v18  ;;  %v9891_v19 = vpop.f32.mrb[121].mxu1  ;;  %v14992_v51 = vld [vmem:[#allocation43_spill] sm:$0xff]  ;;  %v5137_v4 = vld [vmem:[#allocation3 + $0x19] sm:$0xff]  ;;  %v9408_v56 = vpop.f32.mrb[78].mxu0 }
 0x586   : > { %v5114_v32 = vld [vmem:[#allocation3 + $0x30] sm:$0xff] }
 0x587   : > { %5101 = vst.msk [vmem:[#allocation3 + $0x43] sm:$0xff] %vm5093_vm13, %v5087_v2  ;;  %v5075_v1 = vmax.f32 %v5044_v29, 0.0  ;;  %5482 = vrot.lane.b32.xlu0 %v5534_v58, %s11032_s9  ;;  %5127 = vst.msk [vmem:[#allocation4 + $0x1b0] sm:$0xff] %vm5093_vm13, %v5114_v32  ;;  %v14993_v29 = vld [vmem:[#allocation44_spill] sm:$0xff] }
 0x588   : > { %5164 = vrot.lane.b32.xlu1 %v5136_v61, %s14883_s2  ;;  %v5048_v59 = vpop.f32.mrb[122].mxu1  ;;  %v13318_v61 = vld [vmem:[%s11086_s8] ss:$0 sm:$0xff] }
 0x589   : > { %v5088_v41 = vmul.f32 %v5075_v1, %v14989_v55  ;;  %v5049_v30 = vadd.f32 %v13234_v11, %v5048_v59  ;;  %v9894_v50 = vpop.f32.mrb[123].mxu1  ;;  %v9409_v1 = vpop.f32.mrb[79].mxu0  ;;  %v5536_v59 = vld [vmem:[#allocation3 + $0x24] sm:$0xff] }
 0x58a   : > { %v5115_v15 = vld [vmem:[#allocation3 + $0x38] sm:$0xff] }
 0x58b   : > { %5102 = vst.msk [vmem:[#allocation3 + $0x4b] sm:$0xff] %vm5093_vm13, %v5088_v41  ;;  %v5076_v31 = vmax.f32 %v5049_v30, 0.0  ;;  %5562 = vrot.lane.b32.xlu0 %v5535_v37, %s11031_s5  ;;  %5128 = vst.msk [vmem:[#allocation4 + $0x1f8] sm:$0xff] %vm5093_vm13, %v5115_v15  ;;  %v9411_v41 = vpop.f32.mrb[80].mxu0  ;;  %v5616_v15 = vld [vmem:[#allocation3 + $0x25] sm:$0xff] }
 0x58c   : > { %5244 = vrot.lane.b32.xlu1 %v5295_v8, %s14886_s26  ;;  %v5053_v24 = vpop.f32.mrb[124].mxu1  ;;  %v9412_v50 = vpop.f32.mrb[81].mxu0 }
 0x58d   : > { %v5089_v58 = vmul.f32 %v5076_v31, %v14990_v46  ;;  %v5054_v38 = vadd.f32 %v13234_v11, %v5053_v24  ;;  %v9897_v43 = vpop.f32.mrb[125].mxu1  ;;  %v9413_v31 = vadd.f32 %v9412_v50, %v9411_v41  ;;  %v5297_v24 = vld [vmem:[#allocation3 + $0x22] sm:$0xff]  ;;  %v5697_v41 = vld [vmem:[#allocation3 + $0x2e] sm:$0xff] }
 0x58e   : > { %v5116_v52 = vld [vmem:[#allocation3 + $0x40] sm:$0xff]  ;;  %v9414_v43 = vpop.f32.mrb[82].mxu0 }
 0x58f   : > { %5103 = vst.msk [vmem:[#allocation3 + $0x53] sm:$0xff] %vm5093_vm13, %v5089_v58  ;;  %v5077_v17 = vmax.f32 %v5054_v38, 0.0  ;;  %5642 = vrot.lane.b32.xlu0 %v5615_v3, %s11033_s18  ;;  %5129 = vst.msk [vmem:[#allocation4 + $0x240] sm:$0xff] %vm5093_vm13, %v5116_v52  ;;  %v3858_v38 = vadd.f32 %v9413_v31, %v13318_v61 }
 0x590   : > { %5324 = vrot.lane.b32.xlu1 %v5296_v42, %s14882_s23  ;;  %v5058_v9 = vpop.f32.mrb[126].mxu1 }
 0x591   : > { %v5090_v16 = vmul.f32 %v5077_v17, %v14991_v7  ;;  %v5059_v8 = vadd.f32 %v13234_v11, %v5058_v9  ;;  %v9900_v5 = vpop.f32.mrb[127].mxu1  ;;  %v5377_v17 = vld [vmem:[#allocation3 + $0x23] sm:$0xff]  ;;  %v13334_v52 = vadd.f32 %v13199_v49, %v3858_v38 }
 0x592   : > { %v5117_v63 = vld [vmem:[#allocation3 + $0x48] sm:$0xff] }
 0x593   : > { %5104 = vst.msk [vmem:[#allocation3 + $0x5b] sm:$0xff] %vm5093_vm13, %v5090_v16  ;;  %v5078_v60 = vmax.f32 %v5059_v8, 0.0  ;;  %5722 = vrot.lane.b32.xlu0 %v5695_v0, %s14910_s21  ;;  %5130 = vst.msk [vmem:[#allocation4 + $0x288] sm:$0xff] %vm5093_vm13, %v5117_v63  ;;  %v5696_v9 = vld [vmem:[#allocation3 + $0x26] sm:$0xff] }
 0x594   : > { %5404 = vrot.lane.b32.xlu1 %v5376_v39, %s14885_s17  ;;  %v5063_v26 = vpop.f32.mrb[128].mxu1  ;;  %v5138_v39 = vld [vmem:[#allocation3 + $0x21] sm:$0xff] }
 0x595   : > { %v5091_v57 = vmul.f32 %v5078_v60, %v14992_v51  ;;  %v5064_v53 = vadd.f32 %v13234_v11, %v5063_v26  ;;  %v9903_v54 = vpop.f32.mrb[129].mxu1  ;;  %v9410_v11 = vadd.f32 %v9409_v1, %v9408_v56  ;;  %v5298_v56 = vld [vmem:[#allocation3 + $0x2a] sm:$0xff] }
 0x596   : > { %v5118_v2 = vld [vmem:[#allocation3 + $0x50] sm:$0xff] }
 0x597   : > { %5105 = vst.msk [vmem:[#allocation3 + $0x63] sm:$0xff] %vm5093_vm13, %v5091_v57  ;;  %v5079_v18 = vmax.f32 %v5064_v53, 0.0  ;;  %5484 = vrot.lane.b32.xlu0 %v5535_v37, %s11032_s9  ;;  %5131 = vst.msk [vmem:[#allocation4 + $0x2d0] sm:$0xff] %vm5093_vm13, %v5118_v2  ;;  %v3853_v32 = vadd.f32 %v9410_v11, %v13318_v61  ;;  %v5537_v57 = vld [vmem:[#allocation3 + $0x2c] sm:$0xff] }
 0x598   : > { %5166 = vrot.lane.b32.xlu1 %v5137_v4, %s14883_s2  ;;  %v5617_v2 = vld [vmem:[#allocation3 + $0x2d] sm:$0xff] }
 0x599   : > { %v5092_v19 = vmul.f32 %v5079_v18, %v14993_v29  ;;  %v13327_v58 = vadd.f32 %v13191_v40, %v3853_v32  ;;  %v5378_v32 = vld [vmem:[#allocation3 + $0x2b] sm:$0xff] }
 0x59a   : > { %v5119_v30 = vld [vmem:[#allocation3 + $0x58] sm:$0xff] }
 0x59b   : > { %5107 = vst.msk [vmem:[#allocation3 + $0x6b] sm:$0xf] %vm5106_vm6, %v5092_v19  ;;  %5564 = vrot.lane.b32.xlu0 %v5536_v59, %s11031_s5 }
 0x59c   : > { %5246 = vrot.lane.b32.xlu1 %v5296_v42, %s14886_s26  ;;  %5132 = vst.msk [vmem:[#allocation4 + $0x318] sm:$0xff] %vm5093_vm13, %v5119_v30  ;;  %v9415_v42 = vpop.f32.mrb[83].mxu0  ;;  %vm5372_vm13 = vcmask 257216  }
 0x59d   : > { %v9416_v3 = vadd.f32 %v9415_v42, %v9414_v43  ;;  %v9417_v16 = vpop.f32.mrb[84].mxu0 }
 0x59e   : > { %v5120_v37 = vld [vmem:[#allocation3 + $0x60] sm:$0xf]  ;;  %v9418_v8 = vpop.f32.mrb[85].mxu0 }
 0x59f   : > { %5133 = vst.msk [vmem:[#allocation4 + $0x360] sm:$0xf] %vm5106_vm6, %v5120_v37  ;;  %5644 = vrot.lane.b32.xlu0 %v5616_v15, %s11033_s18  ;;  %v3863_v40 = vadd.f32 %v9416_v3, %v13318_v61  ;;  %v9419_v5 = vadd.f32 %v9418_v8, %v9417_v16  ;;  %v9420_v60 = vpop.f32.mrb[86].mxu0  ;;  %v5538_v3 = vld [vmem:[#allocation3 + $0x34] sm:$0xff]  ;;  %vm5612_vm6 = vcmask 454016  }
 0x5a0   : > { %5326 = vrot.lane.b32.xlu1 %v5297_v24, %s14882_s23  ;;  %v9421_v26 = vpop.f32.mrb[87].mxu0  ;;  %v5299_v8 = vld [vmem:[#allocation3 + $0x32] sm:$0xff] }
 0x5a1   : > { %v13340_v0 = vadd.f32 %v13204_v62, %v3863_v40  ;;  %v3868_v49 = vadd.f32 %v9419_v5, %v13318_v61  ;;  %v9422_v63 = vadd.f32 %v9421_v26, %v9420_v60  ;;  %v9423_v54 = vpop.f32.mrb[88].mxu0  ;;  %v5618_v5 = vld [vmem:[#allocation3 + $0x35] sm:$0xff] }
 0x5a2   : > { %v9424_v4 = vpop.f32.mrb[89].mxu0 }
 0x5a3   : > { %5724 = vrot.lane.b32.xlu0 %v5696_v9, %s14910_s21  ;;  %v13346_v53 = vadd.f32 %v13209_v33, %v3868_v49  ;;  %v3873_v62 = vadd.f32 %v9422_v63, %v13318_v61  ;;  %v9425_v18 = vadd.f32 %v9424_v4, %v9423_v54  ;;  %v9426_v1 = vpop.f32.mrb[90].mxu0  ;;  %v5379_v63 = vld [vmem:[#allocation3 + $0x33] sm:$0xff] }
 0x5a4   : > { %5406 = vrot.lane.b32.xlu1 %v5377_v17, %s14885_s17  ;;  %v9427_v11 = vpop.f32.mrb[91].mxu0 }
 0x5a5   : > { %v13352_v19 = vadd.f32 %v13211_v14, %v3873_v62  ;;  %v3878_v33 = vadd.f32 %v9425_v18, %v13318_v61  ;;  %v9429_v50 = vpop.f32.mrb[92].mxu0 }
 0x5a6   : > { %v9430_v37 = vpop.f32.mrb[93].mxu0 }
 0x5a7   : > { %5486 = vrot.lane.b32.xlu0 %v5536_v59, %s11032_s9  ;;  %v9428_v59 = vadd.f32 %v9427_v11, %v9426_v1  ;;  %v13358_v30 = vadd.f32 %v13213_v35, %v3878_v33  ;;  %v9431_v31 = vadd.f32 %v9430_v37, %v9429_v50  ;;  %v9432_v38 = vpop.f32.mrb[94].mxu0  ;;  %v5300_v37 = vld [vmem:[#allocation3 + $0x3a] sm:$0xff] }
 0x5a8   : > { %5168 = vrot.lane.b32.xlu1 %v5138_v39, %s14883_s2  ;;  %v9433_v43 = vpop.f32.mrb[95].mxu0 }
 0x5a9   : > { %v3883_v14 = vadd.f32 %v9428_v59, %v13318_v61  ;;  %v3888_v35 = vadd.f32 %v9431_v31, %v13318_v61  ;;  %v9434_v42 = vadd.f32 %v9433_v43, %v9432_v38  ;;  %v9435_v9 = vpop.f32.mrb[96].mxu0  ;;  %v5539_v59 = vld [vmem:[#allocation3 + $0x3c] sm:$0xff] }
 0x5aa   : > { %v9436_v40 = vpop.f32.mrb[97].mxu0  ;;  %v5619_v31 = vld [vmem:[#allocation3 + $0x3d] sm:$0xff] }
 0x5ab   : > { %5566 = vrot.lane.b32.xlu0 %v5537_v57, %s11031_s5  ;;  %v13364_v15 = vadd.f32 %v13215_v12, %v3883_v14  ;;  %v13370_v17 = vadd.f32 %v13217_v21, %v3888_v35  ;;  %v3893_v12 = vadd.f32 %v9434_v42, %v13318_v61  ;;  %v9437_v16 = vadd.f32 %v9436_v40, %v9435_v9  ;;  %v5699_v43 = vld [vmem:[#allocation3 + $0x3e] sm:$0xff] }
 0x5ac   : > { %5248 = vrot.lane.b32.xlu1 %v5297_v24, %s14886_s26  ;;  %v5139_v24 = vld [vmem:[#allocation3 + $0x29] sm:$0xff] }
 0x5ad   : > { %v13376_v39 = vadd.f32 %v13219_v25, %v3893_v12  ;;  %v3898_v21 = vadd.f32 %v9437_v16, %v13318_v61  ;;  %v9438_v49 = vpop.f32.mrb[98].mxu0  ;;  %v5540_v40 = vld [vmem:[#allocation3 + $0x44] sm:$0xff] }
 0x5ae   : > { %v9439_v60 = vpop.f32.mrb[99].mxu0 }
 0x5af   : > { %5646 = vrot.lane.b32.xlu0 %v5617_v2, %s11033_s18  ;;  %v9440_v26 = vadd.f32 %v9439_v60, %v9438_v49  ;;  %v13382_v62 = vadd.f32 %v13221_v28, %v3898_v21  ;;  %v5620_v21 = vld [vmem:[#allocation3 + $0x45] sm:$0xff] }
 0x5b0   : > { %5328 = vrot.lane.b32.xlu1 %v5298_v56, %s14882_s23 }
 0x5b1   : > { %v3903_v25 = vadd.f32 %v9440_v26, %v13318_v61  ;;  %v9441_v54 = vpop.f32.mrb[100].mxu0  ;;  %v5381_v26 = vld [vmem:[#allocation3 + $0x43] sm:$0xff] }
 0x5b2   : > { %v9442_v4 = vpop.f32.mrb[101].mxu0 }
 0x5b3   : > { %5726 = vrot.lane.b32.xlu0 %v5697_v41, %s14910_s21  ;;  %v9443_v18 = vadd.f32 %v9442_v4, %v9441_v54  ;;  %v13388_v2 = vadd.f32 %v13227_v47, %v3903_v25 }
 0x5b4   : > { %5408 = vrot.lane.b32.xlu1 %v5378_v32, %s14885_s17 }
 0x5b5   : > { %v3908_v28 = vadd.f32 %v9443_v18, %v13318_v61  ;;  %v9444_v33 = vpop.f32.mrb[102].mxu0 }
 0x5b6   : > { %v9445_v1 = vpop.f32.mrb[103].mxu0 }
 0x5b7   : > { %5488 = vrot.lane.b32.xlu0 %v5537_v57, %s11032_s9  ;;  %v5698_v57 = vld [vmem:[#allocation3 + $0x36] sm:$0xff]  ;;  %v9446_v11 = vadd.f32 %v9445_v1, %v9444_v33  ;;  %v13394_v32 = vadd.f32 %v13229_v34, %v3908_v28  ;;  %v5541_v1 = vld [vmem:[#allocation3 + $0x4c] sm:$0xff] }
 0x5b8   : > { %5170 = vrot.lane.b32.xlu1 %v5139_v24, %s14883_s2 }
 0x5b9   : > { %v3913_v47 = vadd.f32 %v9446_v11, %v13318_v61  ;;  %v4112_v41 = vpop.f32.mrb[104].mxu0  ;;  %v5380_v61 = vld [vmem:[#allocation3 + $0x3b] sm:$0xff] }
 0x5ba   : > { %v13400_v14 = vadd.f32 %v4112_v41, %v13327_v58  ;;  %v9822_v50 = vpop.f32.mrb[105].mxu0 }
 0x5bb   : > { %5568 = vrot.lane.b32.xlu0 %v5538_v3, %s11031_s5  ;;  %v13403_v24 = vadd.f32 %v13231_v20, %v3913_v47  ;;  %v5302_v50 = vld [vmem:[#allocation3 + $0x4a] sm:$0xff] }
 0x5bc   : > { %5250 = vrot.lane.b32.xlu1 %v5298_v56, %s14886_s26  ;;  %v5140_v56 = vld [vmem:[#allocation3 + $0x31] sm:$0xff] }
 0x5bd   : > { %v4117_v34 = vpop.f32.mrb[106].mxu0 }
 0x5be   : > { %v13408_v35 = vadd.f32 %v4117_v34, %v13334_v52  ;;  %v9825_v38 = vpop.f32.mrb[107].mxu0 }
 0x5bf   : > { %5648 = vrot.lane.b32.xlu0 %v5618_v5, %s11033_s18  ;;  %v5301_v5 = vld [vmem:[#allocation3 + $0x42] sm:$0xff] }
 0x5c0   : > { %5330 = vrot.lane.b32.xlu1 %v5299_v8, %s14882_s23 }
 0x5c1   : > { %v4122_v58 = vpop.f32.mrb[108].mxu0 }
 0x5c2   : > { %v13413_v42 = vadd.f32 %v4122_v58, %v13340_v0  ;;  %v9828_v20 = vpop.f32.mrb[109].mxu0  ;;  %v5701_v58 = vld [vmem:[#allocation3 + $0x4e] sm:$0xff] }
 0x5c3   : > { %5728 = vrot.lane.b32.xlu0 %v5698_v57, %s14910_s21 }
 0x5c4   : > { %5410 = vrot.lane.b32.xlu1 %v5379_v63, %s14885_s17  ;;  %v5700_v63 = vld [vmem:[#allocation3 + $0x46] sm:$0xff] }
 0x5c5   : > { %v4127_v12 = vpop.f32.mrb[110].mxu0 }
 0x5c6   : > { %v13418_v52 = vadd.f32 %v4127_v12, %v13346_v53  ;;  %v9831_v9 = vpop.f32.mrb[111].mxu0 }
 0x5c7   : > { %5490 = vrot.lane.b32.xlu0 %v5538_v3, %s11032_s9  ;;  %v5141_v3 = vld [vmem:[#allocation3 + $0x39] sm:$0xff] }
 0x5c8   : > { %5172 = vrot.lane.b32.xlu1 %v5140_v56, %s14883_s2 }
 0x5c9   : > { %v4132_v16 = vpop.f32.mrb[112].mxu0 }
 0x5ca   : > { %v13423_v0 = vadd.f32 %v4132_v16, %v13352_v19 }
 0x5cb   : > { %5570 = vrot.lane.b32.xlu0 %v5539_v59, %s11031_s5 }
 0x5cc   : > { %5252 = vrot.lane.b32.xlu1 %v5299_v8, %s14886_s26  ;;  %v9834_v8 = vpop.f32.mrb[113].mxu0 }
 0x5cd   : > { %v4137_v49 = vpop.f32.mrb[114].mxu0 }
 0x5ce   : > { %v13428_v53 = vadd.f32 %v4137_v49, %v13358_v30  ;;  %v9837_v60 = vpop.f32.mrb[115].mxu0  ;;  %v5142_v30 = vld [vmem:[#allocation3 + $0x41] sm:$0xff]  ;;  %v5542_v49 = vld [vmem:[#allocation3 + $0x54] sm:$0xff] }
 0x5cf   : > { %5650 = vrot.lane.b32.xlu0 %v5619_v31, %s11033_s18 }
 0x5d0   : > { %5332 = vrot.lane.b32.xlu1 %v5300_v37, %s14882_s23 }
 0x5d1   : > { %v4142_v19 = vpop.f32.mrb[116].mxu0 }
 0x5d2   : > { %v13433_v57 = vadd.f32 %v4142_v19, %v13364_v15  ;;  %v9840_v4 = vpop.f32.mrb[117].mxu0 }
 0x5d3   : > { %5730 = vrot.lane.b32.xlu0 %v5699_v43, %s14910_s21  ;;  %v5382_v43 = vld [vmem:[#allocation3 + $0x4b] sm:$0xff] }
 0x5d4   : > { %5412 = vrot.lane.b32.xlu1 %v5380_v61, %s14885_s17 }
 0x5d5   : > { %v4147_v18 = vpop.f32.mrb[118].mxu0 }
 0x5d6   : > { %v13440_v56 = vadd.f32 %v4147_v18, %v13370_v17  ;;  %v9843_v33 = vpop.f32.mrb[119].mxu0 }
 0x5d7   : > { %5492 = vrot.lane.b32.xlu0 %v5539_v59, %s11032_s9 }
 0x5d8   : > { %5174 = vrot.lane.b32.xlu1 %v5141_v3, %s14883_s2 }
 0x5d9   : > { %v4152_v11 = vpop.f32.mrb[120].mxu0 }
 0x5da   : > { %v13447_v59 = vadd.f32 %v4152_v11, %v13376_v39  ;;  %v9846_v41 = vpop.f32.mrb[121].mxu0  ;;  %v5144_v11 = vld [vmem:[#allocation3 + $0x51] sm:$0xff] }
 0x5db   : > { %5572 = vrot.lane.b32.xlu0 %v5540_v40, %s11031_s5  ;;  %v5543_v41 = vld [vmem:[#allocation3 + $0x5c] sm:$0xff] }
 0x5dc   : > { %5254 = vrot.lane.b32.xlu1 %v5300_v37, %s14886_s26  ;;  %v5621_v37 = vld [vmem:[#allocation3 + $0x4d] sm:$0xff] }
 0x5dd   : > { %v4157_v31 = vpop.f32.mrb[122].mxu0 }
 0x5de   : > { %v13454_v34 = vadd.f32 %v4157_v31, %v13382_v62  ;;  %v9849_v61 = vpop.f32.mrb[123].mxu0 }
 0x5df   : > { %5652 = vrot.lane.b32.xlu0 %v5620_v21, %s11033_s18 }
 0x5e0   : > { %5334 = vrot.lane.b32.xlu1 %v5301_v5, %s14882_s23 }
 0x5e1   : > { %v4162_v20 = vpop.f32.mrb[124].mxu0 }
 0x5e2   : > { %v13461_v3 = vadd.f32 %v4162_v20, %v13388_v2  ;;  %v9852_v9 = vpop.f32.mrb[125].mxu0  ;;  %v5703_v20 = vld [vmem:[#allocation3 + $0x5e] sm:$0xff] }
 0x5e3   : > { %5732 = vrot.lane.b32.xlu0 %v5700_v63, %s14910_s21  ;;  %v5145_v9 = vld [vmem:[#allocation3 + $0x59] sm:$0xff] }
 0x5e4   : > { %5414 = vrot.lane.b32.xlu1 %v5381_v26, %s14885_s17 }
 0x5e5   : > { %v5401_v54 = vpop.permute.xlu0 %5400  ;;  %v4167_v16 = vpop.f32.mrb[126].mxu0 }
 0x5e6   : > { %v5321_v25 = vpop.permute.xlu1 %5320  ;;  %v13468_v8 = vadd.f32 %v4167_v16, %v13394_v32  ;;  %v9855_v2 = vpop.f32.mrb[127].mxu0 }
 0x5e7   : > { %5360 = vst.msk [vmem:[#allocation4] sm:$0xff] %vm5359_vm9, %v5321_v25  ;;  %5494 = vrot.lane.b32.xlu0 %v5540_v40, %s11032_s9  ;;  %v5143_v40 = vld [vmem:[#allocation3 + $0x49] sm:$0xff]  ;;  %v5303_v25 = vld [vmem:[#allocation3 + $0x52] sm:$0xff] }
 0x5e8   : > { %5440 = vst.msk [vmem:[#allocation4] sm:$0xff] %vm5439_vm10, %v5401_v54  ;;  %5176 = vrot.lane.b32.xlu1 %v5142_v30, %s14883_s2  ;;  %v5622_v54 = vld [vmem:[#allocation3 + $0x55] sm:$0xff]  ;;  %v13482_v30 = vld [vmem:[#allocation2] sm:$0xff] }
 0x5e9   : > { %v5481_v15 = vpop.permute.xlu0 %5480  ;;  %v4172_v60 = vpop.f32.mrb[128].mxu0 }
 0x5ea   : > { %v5163_v28 = vpop.permute.xlu1 %5162  ;;  %5520 = vst.msk [vmem:[#allocation4] sm:$0xff] %vm5519_vm11, %v5481_v15  ;;  %v13475_v26 = vadd.f32 %v4172_v60, %v13403_v24  ;;  %v9858_v4 = vpop.f32.mrb[129].mxu0  ;;  %v5702_v15 = vld [vmem:[#allocation3 + $0x56] sm:$0xff]  ;;  %v5305_v60 = vld [vmem:[#allocation3 + $0x62] sm:$0xff] }
 0x5eb   : > { %5201 = vst.msk [vmem:[#allocation4 + $0x48] sm:$0xff] %vm5199_vm2, %v5163_v28  ;;  %5574 = vrot.lane.b32.xlu0 %v5541_v1, %s11031_s5  ;;  %v5383_v28 = vld [vmem:[#allocation3 + $0x53] sm:$0xff] }
 0x5ec   : > { %5256 = vrot.lane.b32.xlu1 %v5301_v5, %s14886_s26 }
 0x5ed   : > { %v5561_v17 = vpop.permute.xlu0 %5560 }
 0x5ee   : > { %v5243_v47 = vpop.permute.xlu1 %5242  ;;  %5600 = vst.msk [vmem:[#allocation4] sm:$0xff] %vm5599_vm12, %v5561_v17 }
 0x5ef   : > { %5281 = vst.msk [vmem:[#allocation4 + $0x48] sm:$0xff] %vm5279_vm4, %v5243_v47  ;;  %5654 = vrot.lane.b32.xlu0 %v5621_v37, %s11033_s18 }
 0x5f0   : > { %5336 = vrot.lane.b32.xlu1 %v5302_v50, %s14882_s23 }
 0x5f1   : > { %v5641_v38 = vpop.permute.xlu0 %5640 }
 0x5f2   : > { %v5323_v39 = vpop.permute.xlu1 %5322  ;;  %5680 = vst.msk [vmem:[#allocation4] sm:$0xff] %vm5679_vm14, %v5641_v38  ;;  %v5623_v38 = vld [vmem:[#allocation3 + $0x5d] sm:$0xff] }
 0x5f3   : > { %5361 = vst.msk [vmem:[#allocation4 + $0x48] sm:$0xff] %vm5359_vm9, %v5323_v39  ;;  %5734 = vrot.lane.b32.xlu0 %v5701_v58, %s14910_s21  ;;  %v5304_v39 = vld [vmem:[#allocation3 + $0x5a] sm:$0xff] }
 0x5f4   : > { %5416 = vrot.lane.b32.xlu1 %v5382_v43, %s14885_s17  ;;  %v5384_v58 = vld [vmem:[#allocation3 + $0x5b] sm:$0xff] }
 0x5f5   : > { %v5721_v12 = vpop.permute.xlu0 %5720 }
 0x5f6   : > { %v5403_v62 = vpop.permute.xlu1 %5402  ;;  %5760 = vst.msk [vmem:[#allocation4] sm:$0xff] %vm5759_vm15, %v5721_v12 }
 0x5f7   : > { %5441 = vst.msk [vmem:[#allocation4 + $0x48] sm:$0xff] %vm5439_vm10, %v5403_v62  ;;  %5496 = vrot.lane.b32.xlu0 %v5541_v1, %s11032_s9 }
 0x5f8   : > { %5178 = vrot.lane.b32.xlu1 %v5143_v40, %s14883_s2 }
 0x5f9   : > { %v5483_v21 = vpop.permute.xlu0 %5482 }
 0x5fa   : > { %v5165_v5 = vpop.permute.xlu1 %5164  ;;  %5521 = vst.msk [vmem:[#allocation4 + $0x48] sm:$0xff] %vm5519_vm11, %v5483_v21 }
 0x5fb   : > { %5202 = vst.msk [vmem:[#allocation4 + $0x90] sm:$0xff] %vm5199_vm2, %v5165_v5  ;;  %5576 = vrot.lane.b32.xlu0 %v5542_v49, %s11031_s5  ;;  %v5544_v5 = vld [vmem:[#allocation3 + $0x64] sm:$0xff] }
 0x5fc   : > { %5258 = vrot.lane.b32.xlu1 %v5302_v50, %s14886_s26 }
 0x5fd   : > { %v5563_v32 = vpop.permute.xlu0 %5562  ;;  %v5774_v19 = vld [vmem:[#allocation4] sm:$0xff] }
 0x5fe   : > { %v5245_v63 = vpop.permute.xlu1 %5244  ;;  %5601 = vst.msk [vmem:[#allocation4 + $0x48] sm:$0xff] %vm5599_vm12, %v5563_v32  ;;  %9923 = vmatmul.mubr.msk.f32.vlgmr.msra.gmra.mrb[130].mxu0 %vm5803_vm0, %v5774_v19 }
 0x5ff   : > { %5282 = vst.msk [vmem:[#allocation4 + $0x90] sm:$0xff] %vm5279_vm4, %v5245_v63  ;;  %5656 = vrot.lane.b32.xlu0 %v5622_v54, %s11033_s18  ;;  %9925 = vmatprep.mubr.msk.f32.mxu0 %vm11022_vm1, %v13482_v30  ;;  %v5624_v63 = vld [vmem:[#allocation3 + $0x65] sm:$0xff] }
 0x600   : > { %5338 = vrot.lane.b32.xlu1 %v5303_v25, %s14882_s23  ;;  %v5704_v54 = vld [vmem:[#allocation3 + $0x66] sm:$0xff] }
 0x601   : > { %v5643_v18 = vpop.permute.xlu0 %5642 }
 0x602   : > { %v5325_v24 = vpop.permute.xlu1 %5324  ;;  %5681 = vst.msk [vmem:[#allocation4 + $0x48] sm:$0xff] %vm5679_vm14, %v5643_v18  ;;  %v5146_v18 = vld [vmem:[#allocation3 + $0x61] sm:$0xf] }
 0x603   : > { %5362 = vst.msk [vmem:[#allocation4 + $0x90] sm:$0xff] %vm5359_vm9, %v5325_v24  ;;  %5736 = vrot.lane.b32.xlu0 %v5702_v15, %s14910_s21 }
 0x604   : > { %5418 = vrot.lane.b32.xlu1 %v5383_v28, %s14885_s17 }
 0x605   : > { %v5723_v1 = vpop.permute.xlu0 %5722 }
 0x606   : > { %v5405_v33 = vpop.permute.xlu1 %5404  ;;  %5761 = vst.msk [vmem:[#allocation4 + $0x48] sm:$0xff] %vm5759_vm15, %v5723_v1  ;;  %v5545_v1 = vld [vmem:[#allocation3 + $0x6c] sm:$0xff] }
 0x607   : > { %5442 = vst.msk [vmem:[#allocation4 + $0x90] sm:$0xff] %vm5439_vm10, %v5405_v33  ;;  %5498 = vrot.lane.b32.xlu0 %v5542_v49, %s11032_s9  ;;  %v5226_v33 = vld [vmem:[#allocation3 + $0x62] sm:$0xf] }
 0x608   : > { %5180 = vrot.lane.b32.xlu1 %v5144_v11, %s14883_s2 }
 0x609   : > { %v5485_v17 = vpop.permute.xlu0 %5484 }
 0x60a   : > { %v5167_v47 = vpop.permute.xlu1 %5166  ;;  %5522 = vst.msk [vmem:[#allocation4 + $0x90] sm:$0xff] %vm5519_vm11, %v5485_v17 }
 0x60b   : > { %5203 = vst.msk [vmem:[#allocation4 + $0xd8] sm:$0xff] %vm5199_vm2, %v5167_v47  ;;  %5578 = vrot.lane.b32.xlu0 %v5543_v41, %s11031_s5 }
 0x60c   : > { %5260 = vrot.lane.b32.xlu1 %v5303_v25, %s14886_s26  ;;  %v5385_v25 = vld [vmem:[#allocation3 + $0x63] sm:$0xff] }
 0x60d   : > { %v5565_v37 = vpop.permute.xlu0 %5564  ;;  %v5775_v31 = vld [vmem:[#allocation4 + $0x48] sm:$0xff] }
 0x60e   : > { %v5247_v50 = vpop.permute.xlu1 %5246  ;;  %5602 = vst.msk [vmem:[#allocation4 + $0x90] sm:$0xff] %vm5599_vm12, %v5565_v37  ;;  %9926 = vmatmul.mubr.msk.f32.gmra.mrb[132].mxu0 %vm5803_vm0, %v5775_v31 }
 0x60f   : > { %5283 = vst.msk [vmem:[#allocation4 + $0xd8] sm:$0xff] %vm5279_vm4, %v5247_v50  ;;  %5658 = vrot.lane.b32.xlu0 %v5623_v38, %s11033_s18  ;;  %9928 = vmatprep.mubr.msk.f32.mxu0 %vm11022_vm1, %v13482_v30  ;;  %v5306_v50 = vld [vmem:[#allocation3 + $0x6a] sm:$0xf] }
 0x610   : > { %5340 = vrot.lane.b32.xlu1 %v5304_v39, %s14882_s23  ;;  %v5386_v38 = vld [vmem:[#allocation3 + $0x6b] sm:$0xf] }
 0x611   : > { %v5645_v43 = vpop.permute.xlu0 %5644 }
 0x612   : > { %v5327_v61 = vpop.permute.xlu1 %5326  ;;  %5682 = vst.msk [vmem:[#allocation4 + $0x90] sm:$0xff] %vm5679_vm14, %v5645_v43 }
 0x613   : > { %5363 = vst.msk [vmem:[#allocation4 + $0xd8] sm:$0xff] %vm5359_vm9, %v5327_v61  ;;  %5738 = vrot.lane.b32.xlu0 %v5703_v20, %s14910_s21  ;;  %v5706_v61 = vld [vmem:[#allocation3 + $0x76] sm:$0xf]  ;;  %v5466_v20 = vld [vmem:[#allocation3 + $0x6c] sm:$0xf] }
 0x614   : > { %5420 = vrot.lane.b32.xlu1 %v5384_v58, %s14885_s17 }
 0x615   : > { %v5725_v12 = vpop.permute.xlu0 %5724 }
 0x616   : > { %v5407_v62 = vpop.permute.xlu1 %5406  ;;  %5762 = vst.msk [vmem:[#allocation4 + $0x90] sm:$0xff] %vm5759_vm15, %v5725_v12 }
 0x617   : > { %5443 = vst.msk [vmem:[#allocation4 + $0xd8] sm:$0xff] %vm5439_vm10, %v5407_v62  ;;  %5500 = vrot.lane.b32.xlu0 %v5543_v41, %s11032_s9  ;;  %v5625_v41 = vld [vmem:[#allocation3 + $0x6d] sm:$0xff]  ;;  %v5626_v62 = vld [vmem:[#allocation3 + $0x75] sm:$0xf] }
 0x618   : > { %5182 = vrot.lane.b32.xlu1 %v5145_v9, %s14883_s2 }
 0x619   : > { %v5487_v16 = vpop.permute.xlu0 %5486 }
 0x61a   : > { %v5169_v40 = vpop.permute.xlu1 %5168  ;;  %5523 = vst.msk [vmem:[#allocation4 + $0xd8] sm:$0xff] %vm5519_vm11, %v5487_v16 }
 0x61b   : > { %5204 = vst.msk [vmem:[#allocation4 + $0x120] sm:$0xff] %vm5199_vm2, %v5169_v40  ;;  %5580 = vrot.lane.b32.xlu0 %v5544_v5, %s11031_s5 }
 0x61c   : > { %5262 = vrot.lane.b32.xlu1 %v5304_v39, %s14886_s26  ;;  %v5705_v39 = vld [vmem:[#allocation3 + $0x6e] sm:$0xff] }
 0x61d   : > { %v5567_v2 = vpop.permute.xlu0 %5566  ;;  %v5776_v49 = vld [vmem:[#allocation4 + $0x90] sm:$0xff] }
 0x61e   : > { %v5249_v21 = vpop.permute.xlu1 %5248  ;;  %5603 = vst.msk [vmem:[#allocation4 + $0xd8] sm:$0xff] %vm5599_vm12, %v5567_v2  ;;  %9929 = vmatmul.mubr.msk.f32.gmra.mrb[134].mxu0 %vm5803_vm0, %v5776_v49 }
 0x61f   : > { %5284 = vst.msk [vmem:[#allocation4 + $0x120] sm:$0xff] %vm5279_vm4, %v5249_v21  ;;  %5660 = vrot.lane.b32.xlu0 %v5624_v63, %s11033_s18  ;;  %9931 = vmatprep.mubr.msk.f32.mxu0 %vm11022_vm1, %v13482_v30 }
 0x620   : > { %5342 = vrot.lane.b32.xlu1 %v5305_v60, %s14882_s23 }
 0x621   : > { %v5647_v19 = vpop.permute.xlu0 %5646 }
 0x622   : > { %v5329_v32 = vpop.permute.xlu1 %5328  ;;  %5683 = vst.msk [vmem:[#allocation4 + $0xd8] sm:$0xff] %vm5679_vm14, %v5647_v19 }
 0x623   : > { %5364 = vst.msk [vmem:[#allocation4 + $0x120] sm:$0xff] %vm5359_vm9, %v5329_v32  ;;  %5740 = vrot.lane.b32.xlu0 %v5704_v54, %s14910_s21 }
 0x624   : > { %5422 = vrot.lane.b32.xlu1 %v5385_v25, %s14885_s17 }
 0x625   : > { %v5727_v24 = vpop.permute.xlu0 %5726 }
 0x626   : > { %v5409_v4 = vpop.permute.xlu1 %5408  ;;  %5763 = vst.msk [vmem:[#allocation4 + $0xd8] sm:$0xff] %vm5759_vm15, %v5727_v24 }
 0x627   : > { %5444 = vst.msk [vmem:[#allocation4 + $0x120] sm:$0xff] %vm5439_vm10, %v5409_v4  ;;  %5502 = vrot.lane.b32.xlu0 %v5544_v5, %s11032_s9 }
 0x628   : > { %5184 = vrot.lane.b32.xlu1 %v5146_v18, %s14883_s2  ;;  %s11034_s2 = smov 80  }
 0x629   : > { %v5489_v15 = vpop.permute.xlu0 %5488 }
 0x62a   : > { %v5171_v28 = vpop.permute.xlu1 %5170  ;;  %5524 = vst.msk [vmem:[#allocation4 + $0x120] sm:$0xff] %vm5519_vm11, %v5489_v15  ;;  %v6119_v15 = vld [vmem:[#allocation3 + $0x2] sm:$0xff] }
 0x62b   : > { %5205 = vst.msk [vmem:[#allocation4 + $0x168] sm:$0xff] %vm5199_vm2, %v5171_v28  ;;  %5582 = vrot.lane.b32.xlu0 %v5545_v1, %s11031_s5 }
 0x62c   : > { %5264 = vrot.lane.b32.xlu1 %v5226_v33, %s14886_s26  ;;  %v6039_v33 = vld [vmem:[#allocation3 + $0x1] sm:$0xff] }
 0x62d   : > { %v5569_v47 = vpop.permute.xlu0 %5568  ;;  %v5777_v17 = vld [vmem:[#allocation4 + $0xd8] sm:$0xff] }
 0x62e   : > { %v5251_v11 = vpop.permute.xlu1 %5250  ;;  %5604 = vst.msk [vmem:[#allocation4 + $0x120] sm:$0xff] %vm5599_vm12, %v5569_v47  ;;  %9932 = vmatmul.mubr.msk.f32.gmra.mrb[136].mxu0 %vm5803_vm0, %v5777_v17 }
 0x62f   : > { %5285 = vst.msk [vmem:[#allocation4 + $0x168] sm:$0xff] %vm5279_vm4, %v5251_v11  ;;  %5662 = vrot.lane.b32.xlu0 %v5625_v41, %s11033_s18  ;;  %9934 = vmatprep.mubr.msk.f32.mxu0 %vm11022_vm1, %v13482_v30 }
 0x630   : > { %5344 = vrot.lane.b32.xlu1 %v5306_v50, %s14882_s23  ;;  %s11035_s23 = smov 96  }
 0x631   : > { %v5649_v31 = vpop.permute.xlu0 %5648 }
 0x632   : > { %v5331_v37 = vpop.permute.xlu1 %5330  ;;  %5684 = vst.msk [vmem:[#allocation4 + $0x120] sm:$0xff] %vm5679_vm14, %v5649_v31 }
 0x633   : > { %5365 = vst.msk [vmem:[#allocation4 + $0x168] sm:$0xff] %vm5359_vm9, %v5331_v37  ;;  %5742 = vrot.lane.b32.xlu0 %v5705_v39, %s14910_s21 }
 0x634   : > { %5424 = vrot.lane.b32.xlu1 %v5386_v38, %s14885_s17 }
 0x635   : > { %v5729_v58 = vpop.permute.xlu0 %5728 }
 0x636   : > { %v5411_v43 = vpop.permute.xlu1 %5410  ;;  %5764 = vst.msk [vmem:[#allocation4 + $0x120] sm:$0xff] %vm5759_vm15, %v5729_v58 }
 0x637   : > { %5445 = vst.msk [vmem:[#allocation4 + $0x168] sm:$0xff] %vm5439_vm10, %v5411_v43  ;;  %5744 = vrot.lane.b32.xlu0 %v5706_v61, %s14910_s21 }
 0x638   : > { %5504 = vrot.lane.b32.xlu1 %v5466_v20, %s11032_s9  ;;  %s15014_s9 = sld [smem:[#allocation18_spill]] }
 0x639   : > { %v5491_v9 = vpop.permute.xlu0 %5490 }
 0x63a   : > { %v5173_v12 = vpop.permute.xlu1 %5172  ;;  %5525 = vst.msk [vmem:[#allocation4 + $0x168] sm:$0xff] %vm5519_vm11, %v5491_v9 }
 0x63b   : > { %5206 = vst.msk [vmem:[#allocation4 + $0x1b0] sm:$0xff] %vm5199_vm2, %v5173_v12  ;;  %6145 = vrot.lane.b32.xlu0 %v6119_v15, %s14885_s17 }
 0x63c   : > { %5664 = vrot.lane.b32.xlu1 %v5626_v62, %s11033_s18  ;;  %s15015_s18 = sld [smem:[#allocation23_spill]] }
 0x63d   : > { %v5571_v16 = vpop.permute.xlu0 %5570  ;;  %v5778_v5 = vld [vmem:[#allocation4 + $0x120] sm:$0xff] }
 0x63e   : > { %v5253_v40 = vpop.permute.xlu1 %5252  ;;  %5605 = vst.msk [vmem:[#allocation4 + $0x168] sm:$0xff] %vm5599_vm12, %v5571_v16  ;;  %9935 = vmatmul.mubr.msk.f32.gmra.mrb[138].mxu0 %vm5803_vm0, %v5778_v5 }
 0x63f   : > { %5286 = vst.msk [vmem:[#allocation4 + $0x1b0] sm:$0xff] %vm5279_vm4, %v5253_v40  ;;  %9937 = vmatprep.mubr.msk.f32.mxu0 %vm11022_vm1, %v13482_v30 }
 0x640   : > { %6065 = vrot.lane.b32.xlu1 %v6039_v33, %s14886_s26 }
 0x641   : > { %v5651_v2 = vpop.permute.xlu0 %5650 }
 0x642   : > { %v5333_v21 = vpop.permute.xlu1 %5332  ;;  %5685 = vst.msk [vmem:[#allocation4 + $0x168] sm:$0xff] %vm5679_vm14, %v5651_v2 }
 0x643   : > { %5366 = vst.msk [vmem:[#allocation4 + $0x1b0] sm:$0xff] %vm5359_vm9, %v5333_v21 }
 0x645   : > { %v5731_v60 = vpop.permute.xlu0 %5730 }
 0x646   : > { %v5413_v49 = vpop.permute.xlu1 %5412  ;;  %5765 = vst.msk [vmem:[#allocation4 + $0x168] sm:$0xff] %vm5759_vm15, %v5731_v60 }
 0x647   : > { %5446 = vst.msk [vmem:[#allocation4 + $0x1b0] sm:$0xff] %vm5439_vm10, %v5413_v49 }
 0x649   : > { %v5493_v32 = vpop.permute.xlu0 %5492 }
 0x64a   : > { %v5175_v63 = vpop.permute.xlu1 %5174  ;;  %5526 = vst.msk [vmem:[#allocation4 + $0x1b0] sm:$0xff] %vm5519_vm11, %v5493_v32 }
 0x64b   : > { %5207 = vst.msk [vmem:[#allocation4 + $0x1f8] sm:$0xff] %vm5199_vm2, %v5175_v63 }
 0x64d   : > { %v5573_v25 = vpop.permute.xlu0 %5572  ;;  %v5779_v54 = vld [vmem:[#allocation4 + $0x168] sm:$0xff] }
 0x64e   : > { %v5255_v19 = vpop.permute.xlu1 %5254  ;;  %5606 = vst.msk [vmem:[#allocation4 + $0x1b0] sm:$0xff] %vm5599_vm12, %v5573_v25  ;;  %9938 = vmatmul.mubr.msk.f32.gmra.mrb[140].mxu0 %vm5803_vm0, %v5779_v54 }
 0x64f   : > { %5287 = vst.msk [vmem:[#allocation4 + $0x1f8] sm:$0xff] %vm5279_vm4, %v5255_v19  ;;  %9940 = vmatprep.mubr.msk.f32.mxu0 %vm11022_vm1, %v13482_v30 }
 0x651   : > { %v5653_v24 = vpop.permute.xlu0 %5652 }
 0x652   : > { %v5335_v4 = vpop.permute.xlu1 %5334  ;;  %5686 = vst.msk [vmem:[#allocation4 + $0x1b0] sm:$0xff] %vm5679_vm14, %v5653_v24 }
 0x653   : > { %5367 = vst.msk [vmem:[#allocation4 + $0x1f8] sm:$0xff] %vm5359_vm9, %v5335_v4 }
 0x655   : > { %v5733_v28 = vpop.permute.xlu0 %5732 }
 0x656   : > { %v5415_v18 = vpop.permute.xlu1 %5414  ;;  %5766 = vst.msk [vmem:[#allocation4 + $0x1b0] sm:$0xff] %vm5759_vm15, %v5733_v28 }
 0x657   : > { %5447 = vst.msk [vmem:[#allocation4 + $0x1f8] sm:$0xff] %vm5439_vm10, %v5415_v18 }
 0x659   : > { %v5495_v11 = vpop.permute.xlu0 %5494 }
 0x65a   : > { %v5177_v1 = vpop.permute.xlu1 %5176  ;;  %5527 = vst.msk [vmem:[#allocation4 + $0x1f8] sm:$0xff] %vm5519_vm11, %v5495_v11 }
 0x65b   : > { %5208 = vst.msk [vmem:[#allocation4 + $0x240] sm:$0xff] %vm5199_vm2, %v5177_v1 }
 0x65d   : > { %v5575_v17 = vpop.permute.xlu0 %5574  ;;  %v5780_v41 = vld [vmem:[#allocation4 + $0x1b0] sm:$0xff] }
 0x65e   : > { %v5257_v47 = vpop.permute.xlu1 %5256  ;;  %5607 = vst.msk [vmem:[#allocation4 + $0x1f8] sm:$0xff] %vm5599_vm12, %v5575_v17  ;;  %9941 = vmatmul.mubr.msk.f32.gmra.mrb[142].mxu0 %vm5803_vm0, %v5780_v41 }
 0x65f   : > { %5288 = vst.msk [vmem:[#allocation4 + $0x240] sm:$0xff] %vm5279_vm4, %v5257_v47  ;;  %9943 = vmatprep.mubr.msk.f32.mxu0 %vm11022_vm1, %v13482_v30 }
 0x661   : > { %v5655_v37 = vpop.permute.xlu0 %5654 }
 0x662   : > { %v5337_v50 = vpop.permute.xlu1 %5336  ;;  %5687 = vst.msk [vmem:[#allocation4 + $0x1f8] sm:$0xff] %vm5679_vm14, %v5655_v37 }
 0x663   : > { %5368 = vst.msk [vmem:[#allocation4 + $0x240] sm:$0xff] %vm5359_vm9, %v5337_v50 }
 0x665   : > { %v5735_v39 = vpop.permute.xlu0 %5734 }
 0x666   : > { %v5417_v31 = vpop.permute.xlu1 %5416  ;;  %5767 = vst.msk [vmem:[#allocation4 + $0x1f8] sm:$0xff] %vm5759_vm15, %v5735_v39 }
 0x667   : > { %5448 = vst.msk [vmem:[#allocation4 + $0x240] sm:$0xff] %vm5439_vm10, %v5417_v31 }
 0x669   : > { %v5497_v61 = vpop.permute.xlu0 %5496 }
 0x66a   : > { %v5179_v38 = vpop.permute.xlu1 %5178  ;;  %5528 = vst.msk [vmem:[#allocation4 + $0x240] sm:$0xff] %vm5519_vm11, %v5497_v61 }
 0x66b   : > { %5209 = vst.msk [vmem:[#allocation4 + $0x288] sm:$0xff] %vm5199_vm2, %v5179_v38 }
 0x66d   : > { %v5577_v58 = vpop.permute.xlu0 %5576  ;;  %v5781_v20 = vld [vmem:[#allocation4 + $0x1f8] sm:$0xff] }
 0x66e   : > { %v5259_v43 = vpop.permute.xlu1 %5258  ;;  %5608 = vst.msk [vmem:[#allocation4 + $0x240] sm:$0xff] %vm5599_vm12, %v5577_v58  ;;  %9944 = vmatmul.mubr.msk.f32.gmra.mrb[144].mxu0 %vm5803_vm0, %v5781_v20 }
 0x66f   : > { %5289 = vst.msk [vmem:[#allocation4 + $0x288] sm:$0xff] %vm5279_vm4, %v5259_v43  ;;  %9946 = vmatprep.mubr.msk.f32.mxu0 %vm11022_vm1, %v13482_v30 }
 0x671   : > { %v5657_v12 = vpop.permute.xlu0 %5656 }
 0x672   : > { %v5339_v62 = vpop.permute.xlu1 %5338  ;;  %5688 = vst.msk [vmem:[#allocation4 + $0x240] sm:$0xff] %vm5679_vm14, %v5657_v12  ;;  %v6013_v12 = vld [vmem:[#allocation3] sm:$0xff] }
 0x673   : > { %5369 = vst.msk [vmem:[#allocation4 + $0x288] sm:$0xff] %vm5359_vm9, %v5339_v62 }
 0x674   : > { %6026 = vst.msk [vmem:[#allocation4] sm:$0xff] %vm977_vm5, %v6013_v12 }
 0x675   : > { %v5737_v40 = vpop.permute.xlu0 %5736 }
 0x676   : > { %v5419_v9 = vpop.permute.xlu1 %5418  ;;  %5768 = vst.msk [vmem:[#allocation4 + $0x240] sm:$0xff] %vm5759_vm15, %v5737_v40 }
 0x677   : > { %5449 = vst.msk [vmem:[#allocation4 + $0x288] sm:$0xff] %vm5439_vm10, %v5419_v9  ;;  %v13635_v9 = vld [vmem:[%s11106_s30] ss:$0 sm:$0xff] }
 0x679   : > { %v5499_v5 = vpop.permute.xlu0 %5498 }
 0x67a   : > { %v5181_v16 = vpop.permute.xlu1 %5180  ;;  %5529 = vst.msk [vmem:[#allocation4 + $0x288] sm:$0xff] %vm5519_vm11, %v5499_v5 }
 0x67b   : > { %5210 = vst.msk [vmem:[#allocation4 + $0x2d0] sm:$0xff] %vm5199_vm2, %v5181_v16 }
 0x67d   : > { %v5579_v2 = vpop.permute.xlu0 %5578  ;;  %v5782_v49 = vld [vmem:[#allocation4 + $0x240] sm:$0xff] }
 0x67e   : > { %v5261_v21 = vpop.permute.xlu1 %5260  ;;  %5609 = vst.msk [vmem:[#allocation4 + $0x288] sm:$0xff] %vm5599_vm12, %v5579_v2  ;;  %9947 = vmatmul.mubr.msk.f32.gmra.mrb[146].mxu0 %vm5803_vm0, %v5782_v49  ;;  %v6651_v49 = vld [vmem:[%s14870_s6] sm:$0xff] }
 0x67f   : > { %5290 = vst.msk [vmem:[#allocation4 + $0x2d0] sm:$0xff] %vm5279_vm4, %v5261_v21  ;;  %9949 = vmatprep.mubr.msk.f32.mxu0 %vm11022_vm1, %v13482_v30 }
 0x681   : > { %v5659_v63 = vpop.permute.xlu0 %5658 }
 0x682   : > { %v5341_v60 = vpop.permute.xlu1 %5340  ;;  %5689 = vst.msk [vmem:[#allocation4 + $0x288] sm:$0xff] %vm5679_vm14, %v5659_v63 }
 0x683   : > { %5370 = vst.msk [vmem:[#allocation4 + $0x2d0] sm:$0xff] %vm5359_vm9, %v5341_v60  ;;  %v6652_v60 = vld [vmem:[%s14870_s6 + $0x8] sm:$0xff] }
 0x684   : > { %v10504_v63 = vpack.c.bf16 %v6652_v60, %v6651_v49  ;;  %v6663_v49 = vld [vmem:[%s14870_s6 + $0x60] sm:$0xff]  ;;  %v6664_v60 = vld [vmem:[%s14870_s6 + $0x68] sm:$0xff] }
 0x685   : > { %v5739_v19 = vpop.permute.xlu0 %5738 }
 0x686   : > { %v5421_v32 = vpop.permute.xlu1 %5420  ;;  %5769 = vst.msk [vmem:[#allocation4 + $0x288] sm:$0xff] %vm5759_vm15, %v5739_v19  ;;  %v6654_v19 = vld [vmem:[%s14870_s6 + $0x18] sm:$0xff]  ;;  %10505 = vmatpush1.bf16.msra.mxu0 %v10504_v63  ;;  %10581 = vmatpush1.bf16.msra.mxu1 %v10504_v63 }
 0x687   : > { %5450 = vst.msk [vmem:[#allocation4 + $0x2d0] sm:$0xff] %vm5439_vm10, %v5421_v32  ;;  %v6653_v32 = vld [vmem:[%s14870_s6 + $0x10] sm:$0xff]  ;;  %10506 = vmatprep.subr.bf16.mxu0 %v14904_v48  ;;  %10573 = vmatprep.subr.bf16.mxu1 %v14904_v48 }
 0x689   : > { %v5501_v54 = vpop.permute.xlu0 %5500 }
 0x68a   : > { %v5183_v25 = vpop.permute.xlu1 %5182  ;;  %5530 = vst.msk [vmem:[#allocation4 + $0x2d0] sm:$0xff] %vm5519_vm11, %v5501_v54 }
 0x68b   : > { %5211 = vst.msk [vmem:[#allocation4 + $0x318] sm:$0xff] %vm5199_vm2, %v5183_v25  ;;  %vm5452_vm2 = vcmask 322816   ;;  %v10507_v25 = vpack.c.bf16 %v6654_v19, %v6653_v32  ;;  %v10522_v32 = vpack.c.bf16 %v6664_v60, %v6663_v49  ;;  %v6665_v19 = vld [vmem:[%s14870_s6 + $0x70] sm:$0xff] }
 0x68d   : > { %v5581_v24 = vpop.permute.xlu0 %5580  ;;  %v5783_v18 = vld [vmem:[#allocation4 + $0x288] sm:$0xff]  ;;  %10508 = vmatpush1.bf16.msra.mxu0 %v10507_v25  ;;  %10582 = vmatpush1.bf16.msra.mxu1 %v10507_v25  ;;  %v6666_v25 = vld [vmem:[%s14870_s6 + $0x78] sm:$0xff] }
 0x68e   : > { %v5263_v4 = vpop.permute.xlu1 %5262  ;;  %5610 = vst.msk [vmem:[#allocation4 + $0x2d0] sm:$0xff] %vm5599_vm12, %v5581_v24  ;;  %9950 = vmatmul.mubr.msk.f32.gmra.mrb[148].mxu0 %vm5803_vm0, %v5783_v18  ;;  %10509 = vmatprep.subr.bf16.mxu0 %v14904_v48 }
 0x68f   : > { %5291 = vst.msk [vmem:[#allocation4 + $0x318] sm:$0xff] %vm5279_vm4, %v5263_v4  ;;  %9952 = vmatprep.mubr.msk.f32.mxu0 %vm11022_vm1, %v13482_v30  ;;  %vm5532_vm4 = vcmask 388416   ;;  %10574 = vmatprep.subr.bf16.mxu1 %v14904_v48 }
 0x691   : > { %v5661_v15 = vpop.permute.xlu0 %5660 }
 0x692   : > { %v5343_v28 = vpop.permute.xlu1 %5342  ;;  %5690 = vst.msk [vmem:[#allocation4 + $0x2d0] sm:$0xff] %vm5679_vm14, %v5661_v15 }
 0x693   : > { %5371 = vst.msk [vmem:[#allocation4 + $0x318] sm:$0xff] %vm5359_vm9, %v5343_v28  ;;  %vm5692_vm9 = vcmask 519616  }
 0x695   : > { %v5741_v1 = vpop.permute.xlu0 %5740 }
 0x696   : > { %v5423_v33 = vpop.permute.xlu1 %5422  ;;  %5770 = vst.msk [vmem:[#allocation4 + $0x2d0] sm:$0xff] %vm5759_vm15, %v5741_v1 }
 0x697   : > { %5451 = vst.msk [vmem:[#allocation4 + $0x318] sm:$0xff] %vm5439_vm10, %v5423_v33  ;;  %vm5772_vm10 = vcmask 585216  }
 0x699   : > { %v5503_v47 = vpop.permute.xlu0 %5502 }
 0x69a   : > { %v5185_v11 = vpop.permute.xlu1 %5184  ;;  %5531 = vst.msk [vmem:[#allocation4 + $0x318] sm:$0xff] %vm5519_vm11, %v5503_v47  ;;  %vm6104_vm11 = vcmask 261248   ;;  %v6656_v47 = vld [vmem:[%s14870_s6 + $0x28] sm:$0xff] }
 0x69b   : > { %5213 = vst.msk [vmem:[#allocation4 + $0x360] sm:$0xf] %vm5212_vm3, %v5185_v11  ;;  %v6655_v11 = vld [vmem:[%s14870_s6 + $0x20] sm:$0xff]  ;;  %vm6504_vm3 = vcmask 917248  }
 0x69d   : > { %v5583_v41 = vpop.permute.xlu0 %5582  ;;  %v5784_v50 = vld [vmem:[#allocation4 + $0x2d0] sm:$0xff] }
 0x69e   : > { %v5265_v17 = vpop.permute.xlu1 %5264  ;;  %5611 = vst.msk [vmem:[#allocation4 + $0x318] sm:$0xff] %vm5599_vm12, %v5583_v41  ;;  %9953 = vmatmul.mubr.msk.f32.gmra.mrb[150].mxu0 %vm5803_vm0, %v5784_v50  ;;  %vm6184_vm12 = vcmask 392448   ;;  %v10510_v41 = vpack.c.bf16 %v6656_v47, %v6655_v11  ;;  %v6657_v50 = vld [vmem:[%s14870_s6 + $0x30] sm:$0xff] }
 0x69f   : > { %5293 = vst.msk [vmem:[#allocation4 + $0x360] sm:$0xf] %vm5292_vm7, %v5265_v17  ;;  %9955 = vmatprep.mubr.msk.f32.mxu0 %vm11022_vm1, %v13482_v30  ;;  %vm6584_vm7 = vcmask 1048448  }
 0x6a0   : > { %10511 = vmatpush1.bf16.msra.mxu0 %v10510_v41  ;;  %10583 = vmatpush1.bf16.msra.mxu1 %v10510_v41 }
 0x6a1   : > { %v5663_v37 = vpop.permute.xlu0 %5662  ;;  %10512 = vmatprep.subr.bf16.mxu0 %v14904_v48  ;;  %10575 = vmatprep.subr.bf16.mxu1 %v14904_v48 }
 0x6a2   : > { %v5345_v31 = vpop.permute.xlu1 %5344  ;;  %5691 = vst.msk [vmem:[#allocation4 + $0x318] sm:$0xff] %vm5679_vm14, %v5663_v37  ;;  %v6658_v37 = vld [vmem:[%s14870_s6 + $0x38] sm:$0xff]  ;;  %vm6264_vm14 = vcmask 523648  }
 0x6a3   : > { %5373 = vst.msk [vmem:[#allocation4 + $0x360] sm:$0xf] %vm5372_vm13, %v5345_v31  ;;  %v10513_v31 = vpack.c.bf16 %v6658_v37, %v6657_v50  ;;  %vm6882_vm13 = vcmask 261120  }
 0x6a5   : > { %v5743_v39 = vpop.permute.xlu0 %5742  ;;  %10514 = vmatpush1.bf16.msra.mxu0 %v10513_v31  ;;  %10584 = vmatpush1.bf16.msra.mxu1 %v10513_v31 }
 0x6a6   : > { %v5425_v38 = vpop.permute.xlu1 %5424  ;;  %5771 = vst.msk [vmem:[#allocation4 + $0x318] sm:$0xff] %vm5759_vm15, %v5743_v39  ;;  %v6659_v39 = vld [vmem:[%s14870_s6 + $0x40] sm:$0xff]  ;;  %10515 = vmatprep.subr.bf16.mxu0 %v14904_v48  ;;  %10576 = vmatprep.subr.bf16.mxu1 %v14904_v48  ;;  %vm6344_vm15 = vcmask 654848  }
 0x6a7   : > { %5453 = vst.msk [vmem:[#allocation4 + $0x360] sm:$0xf] %vm5452_vm2, %v5425_v38  ;;  %v6660_v38 = vld [vmem:[%s14870_s6 + $0x48] sm:$0xff]  ;;  %vm6117_vm2 = vcmask 257152  }
 0x6a9   : > { %v5745_v43 = vpop.permute.xlu0 %5744 }
 0x6aa   : > { %v5505_v61 = vpop.permute.xlu1 %5504 }
 0x6ab   : > { %5533 = vst.msk [vmem:[#allocation4 + $0x360] sm:$0xf] %vm5532_vm4, %v5505_v61  ;;  %v10516_v61 = vpack.c.bf16 %v6660_v38, %v6659_v39  ;;  %vm6197_vm4 = vcmask 388352  }
 0x6ac   : > { %5613 = vst.msk [vmem:[#allocation4 + $0x360] sm:$0xf] %vm5612_vm6, %v13149_v13  ;;  %vm6277_vm6 = vcmask 519552  }
 0x6ad   : > { %v5785_v20 = vld [vmem:[#allocation4 + $0x318] sm:$0xff]  ;;  %v6146_v21 = vpop.permute.xlu0 %6145  ;;  %10517 = vmatpush1.bf16.msra.mxu0 %v10516_v61  ;;  %10585 = vmatpush1.bf16.msra.mxu1 %v10516_v61 }
 0x6ae   : > { %v5665_v58 = vpop.permute.xlu1 %5664  ;;  %9956 = vmatmul.mubr.msk.f32.gmra.mrb[152].mxu0 %vm5803_vm0, %v5785_v20  ;;  %10518 = vmatprep.subr.bf16.mxu0 %v14904_v48 }
 0x6af   : > { %5693 = vst.msk [vmem:[#allocation4 + $0x360] sm:$0xf] %vm5692_vm9, %v5665_v58  ;;  %9958 = vmatprep.mubr.msk.f32.mxu0 %vm11022_vm1, %v13482_v30  ;;  %v6662_v58 = vld [vmem:[%s14870_s6 + $0x58] sm:$0xff]  ;;  %10577 = vmatprep.subr.bf16.mxu1 %v14904_v48  ;;  %vm6357_vm9 = vcmask 650752  }
 0x6b0   : > { %5773 = vst.msk [vmem:[#allocation4 + $0x360] sm:$0xf] %vm5772_vm10, %v5745_v43  ;;  %v6661_v43 = vld [vmem:[%s14870_s6 + $0x50] sm:$0xff]  ;;  %vm6437_vm10 = vcmask 781952  }
 0x6b2   : > { %v6066_v13 = vpop.permute.xlu1 %6065 }
 0x6b3   : > { %6105 = vst.msk [vmem:[#allocation4] sm:$0xff] %vm6104_vm11, %v6066_v13 }
 0x6b4   : > { %6185 = vst.msk [vmem:[#allocation4] sm:$0xff] %vm6184_vm12, %v6146_v21 }
 0x6b7   : > { %v5786_v62 = vld [vmem:[#allocation4 + $0x360] sm:$0xf] }
 0x6b8   : > { %9959 = vmatmul.mubr.msk.f32.gmra.mrb[154].mxu0 %vm5803_vm0, %v5786_v62  ;;  %vm6424_vm0 = vcmask 786048  }
 0x6d1   : > { %v5909_v40 = vpop.f32.mrb[130].mxu0 }
 0x6d2   : > { %v5910_v16 = vadd.f32 %v13635_v9, %v5909_v40  ;;  %v9924_v30 = vpop.f32.mrb[131].mxu0  ;;  %v10519_v40 = vpack.c.bf16 %v6662_v58, %v6661_v43 }
 0x6d4   : > { %v5973_v5 = vmax.f32 %v5910_v16, 0.0  ;;  %10520 = vmatpush1.bf16.msra.mxu0 %v10519_v40  ;;  %10586 = vmatpush1.bf16.msra.mxu1 %v10519_v40 }
 0x6d5   : > { %10521 = vmatprep.subr.bf16.mxu0 %v14904_v48  ;;  %10578 = vmatprep.subr.bf16.mxu1 %v14904_v48 }
 0x6d6   : > { %v5986_v2 = vmul.f32 %v5973_v5, %v14981_v44 }
 0x6d8   : > { %5999 = vst.msk [vmem:[#allocation3 + $0xb] sm:$0xff] %vm977_vm5, %v5986_v2  ;;  %10523 = vmatpush1.bf16.msra.mxu0 %v10522_v32  ;;  %10587 = vmatpush1.bf16.msra.mxu1 %v10522_v32 }
 0x6d9   : > { %10524 = vmatprep.subr.bf16.mxu0 %v14904_v48  ;;  %10579 = vmatprep.subr.bf16.mxu1 %v14904_v48 }
 0x6df   : > { %v6279_v54 = vld [vmem:[#allocation3 + $0xb] sm:$0xff] }
 0x6e0   : > { %v6199_v4 = vld [vmem:[#allocation3 + $0xa] sm:$0xff]  ;;  %6305 = vrot.lane.b32.xlu0 %v6279_v54, %s14910_s21  ;;  %v10525_v54 = vpack.c.bf16 %v6666_v25, %v6665_v19 }
 0x6e1   : > { %6225 = vrot.lane.b32.xlu1 %v6199_v4, %s11031_s5  ;;  %v6014_v24 = vld [vmem:[#allocation3 + $0x8] sm:$0xff]  ;;  %v5914_v18 = vpop.f32.mrb[132].mxu0 }
 0x6e2   : > { %6027 = vst.msk [vmem:[#allocation4 + $0x48] sm:$0xff] %vm977_vm5, %v6014_v24  ;;  %v5915_v28 = vadd.f32 %v13635_v9, %v5914_v18  ;;  %v9927_v15 = vpop.f32.mrb[133].mxu0  ;;  %v6040_v33 = vld [vmem:[#allocation3 + $0x9] sm:$0xff]  ;;  %10526 = vmatpush1.bf16.msra.mxu0 %v10525_v54  ;;  %10588 = vmatpush1.bf16.msra.mxu1 %v10525_v54 }
 0x6e3   : > { %v6668_v24 = vld [vmem:[%s14870_s6 + $0x88] sm:$0xff]  ;;  %10527 = vmatprep.subr.bf16.mxu0 %v14904_v48  ;;  %10580 = vmatprep.subr.bf16.mxu1 %v14904_v48 }
 0x6e4   : > { %v5974_v1 = vmax.f32 %v5915_v28, 0.0 }
 0x6e5   : > { %6067 = vrot.lane.b32.xlu1 %v6040_v33, %s14886_s26 }
 0x6e6   : > { %v5987_v17 = vmul.f32 %v5974_v1, %v14982_v22 }
 0x6e8   : > { %6000 = vst.msk [vmem:[#allocation3 + $0x13] sm:$0xff] %vm977_vm5, %v5987_v17 }
 0x6e9   : > { %6147 = vrot.lane.b32.xlu1 %v6199_v4, %s14885_s17  ;;  %v6667_v4 = vld [vmem:[%s14870_s6 + $0x80] sm:$0xff] }
 0x6ea   : > { %v10528_v18 = vpack.c.bf16 %v6668_v24, %v6667_v4 }
 0x6ec   : > { %10529 = vmatpush1.bf16.msra.mxu0 %v10528_v18  ;;  %10589 = vmatpush1.bf16.msra.mxu1 %v10528_v18 }
 0x6ed   : > { %10530 = vmatprep.subr.bf16.mxu0 %v14904_v48  ;;  %10536 = vmatprep.subr.bf16.mxu1 %v14904_v48 }
 0x6ef   : > { %v6359_v20 = vld [vmem:[#allocation3 + $0xc] sm:$0xff] }
 0x6f0   : > { %v6200_v62 = vld [vmem:[#allocation3 + $0x12] sm:$0xff]  ;;  %6385 = vrot.lane.b32.xlu0 %v6359_v20, %s11034_s2 }
 0x6f1   : > { %6227 = vrot.lane.b32.xlu1 %v6200_v62, %s11031_s5  ;;  %v6015_v12 = vld [vmem:[#allocation3 + $0x10] sm:$0xff]  ;;  %v5919_v13 = vpop.f32.mrb[134].mxu0 }
 0x6f2   : > { %6028 = vst.msk [vmem:[#allocation4 + $0x90] sm:$0xff] %vm977_vm5, %v6015_v12  ;;  %v5920_v16 = vadd.f32 %v13635_v9, %v5919_v13  ;;  %v9930_v30 = vpop.f32.mrb[135].mxu0  ;;  %v6280_v5 = vld [vmem:[#allocation3 + $0x13] sm:$0xff] }
 0x6f3   : > { %v6041_v21 = vld [vmem:[#allocation3 + $0x11] sm:$0xff] }
 0x6f4   : > { %v5975_v2 = vmax.f32 %v5920_v16, 0.0  ;;  %6069 = vrot.lane.b32.xlu0 %v6041_v21, %s14886_s26 }
 0x6f5   : > { %6307 = vrot.lane.b32.xlu1 %v6280_v5, %s14910_s21 }
 0x6f6   : > { %v5988_v63 = vmul.f32 %v5975_v2, %v14983_v36 }
 0x6f8   : > { %6001 = vst.msk [vmem:[#allocation3 + $0x1b] sm:$0xff] %vm977_vm5, %v5988_v63  ;;  %6149 = vrot.lane.b32.xlu0 %v6200_v62, %s14885_s17 }
 0x6ff   : > { %v6439_v28 = vld [vmem:[#allocation3 + $0x14] sm:$0xff] }
 0x700   : > { %6465 = vrot.lane.b32.xlu0 %v6439_v28, %s11035_s23  ;;  %6387 = vrot.lane.b32.xlu1 %v6439_v28, %s11034_s2  ;;  %v6599_v15 = vld [vmem:[#allocation3 + $0x16] sm:$0xff] }
 0x701   : > { %v5924_v33 = vpop.f32.mrb[136].mxu0  ;;  %6612 = vst.msk [vmem:[#allocation4 + $0x8] sm:$0xff] %vm977_vm5, %v6599_v15  ;;  %v6016_v1 = vld [vmem:[#allocation3 + $0x18] sm:$0xff] }
 0x702   : > { %v5925_v11 = vadd.f32 %v13635_v9, %v5924_v33  ;;  %v9933_v47 = vpop.f32.mrb[137].mxu0  ;;  %6029 = vst.msk [vmem:[#allocation4 + $0xd8] sm:$0xff] %vm977_vm5, %v6016_v1  ;;  %v6519_v17 = vld [vmem:[#allocation3 + $0x15] sm:$0xff] }
 0x703   : > { %v6042_v41 = vld [vmem:[#allocation3 + $0x19] sm:$0xff] }
 0x704   : > { %v5976_v50 = vmax.f32 %v5925_v11, 0.0  ;;  %6545 = vrot.lane.b32.xlu0 %v6519_v17, %s11036_s10  ;;  %6071 = vrot.lane.b32.xlu1 %v6042_v41, %s14886_s26  ;;  %v6201_v31 = vld [vmem:[#allocation3 + $0x1a] sm:$0xff] }
 0x705   : > { %v6281_v38 = vld [vmem:[#allocation3 + $0x1b] sm:$0xff] }
 0x706   : > { %v5989_v37 = vmul.f32 %v5976_v50, %v14984_v45 }
 0x708   : > { %6002 = vst.msk [vmem:[#allocation3 + $0x23] sm:$0xff] %vm977_vm5, %v5989_v37  ;;  %v6626_v39 = vld [vmem:[#allocation4 + $0x8] sm:$0xff]  ;;  %6229 = vrot.lane.b32.xlu0 %v6201_v31, %s11031_s5  ;;  %6151 = vrot.lane.b32.xlu1 %v6201_v31, %s14885_s17 }
 0x709   : > { %8890 = vmatprep.mubr.msk.f32.mxu0 %vm977_vm5, %v6626_v39 }
 0x70c   : > { %6309 = vrot.lane.b32.xlu0 %v6281_v38, %s14910_s21 }
 0x70f   : > { %v6440_v61 = vld [vmem:[#allocation3 + $0x1c] sm:$0xff] }
 0x710   : > { %6467 = vrot.lane.b32.xlu1 %v6440_v61, %s11035_s23  ;;  %6389 = vrot.lane.b32.xlu0 %v6440_v61, %s11034_s2  ;;  %v6600_v43 = vld [vmem:[#allocation3 + $0x1e] sm:$0xff] }
 0x711   : > { %v5929_v58 = vpop.f32.mrb[138].mxu0  ;;  %6613 = vst.msk [vmem:[#allocation4 + $0x50] sm:$0xff] %vm977_vm5, %v6600_v43  ;;  %v6017_v20 = vld [vmem:[#allocation3 + $0x20] sm:$0xff] }
 0x712   : > { %v5930_v62 = vadd.f32 %v13635_v9, %v5929_v58  ;;  %v9936_v12 = vpop.f32.mrb[139].mxu0  ;;  %6030 = vst.msk [vmem:[#allocation4 + $0x120] sm:$0xff] %vm977_vm5, %v6017_v20  ;;  %v6520_v13 = vld [vmem:[#allocation3 + $0x1d] sm:$0xff] }
 0x713   : > { %v6043_v40 = vld [vmem:[#allocation3 + $0x21] sm:$0xff] }
 0x714   : > { %v5977_v16 = vmax.f32 %v5930_v62, 0.0  ;;  %6547 = vrot.lane.b32.xlu1 %v6520_v13, %s11036_s10  ;;  %6073 = vrot.lane.b32.xlu0 %v6043_v40, %s14886_s26  ;;  %v6202_v5 = vld [vmem:[#allocation3 + $0x22] sm:$0xff] }
 0x715   : > { %v6282_v21 = vld [vmem:[#allocation3 + $0x23] sm:$0xff] }
 0x716   : > { %v5990_v30 = vmul.f32 %v5977_v16, %v14985_v23 }
 0x718   : > { %6003 = vst.msk [vmem:[#allocation3 + $0x2b] sm:$0xff] %vm977_vm5, %v5990_v30  ;;  %6231 = vrot.lane.b32.xlu1 %v6202_v5, %s11031_s5  ;;  %6153 = vrot.lane.b32.xlu0 %v6202_v5, %s14885_s17 }
 0x71c   : > { %6311 = vrot.lane.b32.xlu1 %v6282_v21, %s14910_s21 }
 0x71f   : > { %v6441_v2 = vld [vmem:[#allocation3 + $0x24] sm:$0xff] }
 0x720   : > { %6469 = vrot.lane.b32.xlu0 %v6441_v2, %s11035_s23  ;;  %6391 = vrot.lane.b32.xlu1 %v6441_v2, %s11034_s2  ;;  %v6601_v49 = vld [vmem:[#allocation3 + $0x26] sm:$0xff] }
 0x721   : > { %v5934_v60 = vpop.f32.mrb[140].mxu0  ;;  %6614 = vst.msk [vmem:[#allocation4 + $0x98] sm:$0xff] %vm977_vm5, %v6601_v49  ;;  %v6018_v63 = vld [vmem:[#allocation3 + $0x28] sm:$0xff] }
 0x722   : > { %v5935_v32 = vadd.f32 %v13635_v9, %v5934_v60  ;;  %v9939_v19 = vpop.f32.mrb[141].mxu0  ;;  %6031 = vst.msk [vmem:[#allocation4 + $0x168] sm:$0xff] %vm977_vm5, %v6018_v63  ;;  %v6521_v25 = vld [vmem:[#allocation3 + $0x25] sm:$0xff] }
 0x723   : > { %v6044_v54 = vld [vmem:[#allocation3 + $0x29] sm:$0xff] }
 0x724   : > { %v5978_v4 = vmax.f32 %v5935_v32, 0.0  ;;  %6549 = vrot.lane.b32.xlu0 %v6521_v25, %s11036_s10  ;;  %6075 = vrot.lane.b32.xlu1 %v6044_v54, %s14886_s26  ;;  %v6203_v18 = vld [vmem:[#allocation3 + $0x2a] sm:$0xff] }
 0x725   : > { %v6283_v15 = vld [vmem:[#allocation3 + $0x2b] sm:$0xff] }
 0x726   : > { %v5991_v24 = vmul.f32 %v5978_v4, %v14986_v10 }
 0x728   : > { %6004 = vst.msk [vmem:[#allocation3 + $0x33] sm:$0xff] %vm977_vm5, %v5991_v24  ;;  %v6630_v28 = vld [vmem:[#allocation4 + $0x98] sm:$0xff]  ;;  %6233 = vrot.lane.b32.xlu0 %v6203_v18, %s11031_s5  ;;  %6155 = vrot.lane.b32.xlu1 %v6203_v18, %s14885_s17 }
 0x729   : > { %8892 = vmatprep.mubr.msk.f32.mxu1 %vm977_vm5, %v6630_v28 }
 0x72c   : > { %6313 = vrot.lane.b32.xlu0 %v6283_v15, %s14910_s21 }
 0x72f   : > { %v6442_v33 = vld [vmem:[#allocation3 + $0x2c] sm:$0xff] }
 0x730   : > { %6471 = vrot.lane.b32.xlu1 %v6442_v33, %s11035_s23  ;;  %6393 = vrot.lane.b32.xlu0 %v6442_v33, %s11034_s2  ;;  %v6602_v1 = vld [vmem:[#allocation3 + $0x2e] sm:$0xff] }
 0x731   : > { %v5939_v11 = vpop.f32.mrb[142].mxu0  ;;  %6615 = vst.msk [vmem:[#allocation4 + $0xe0] sm:$0xff] %vm977_vm5, %v6602_v1  ;;  %v6019_v47 = vld [vmem:[#allocation3 + $0x30] sm:$0xff] }
 0x732   : > { %v5940_v17 = vadd.f32 %v13635_v9, %v5939_v11  ;;  %v9942_v41 = vpop.f32.mrb[143].mxu0  ;;  %6032 = vst.msk [vmem:[#allocation4 + $0x1b0] sm:$0xff] %vm977_vm5, %v6019_v47  ;;  %v6522_v50 = vld [vmem:[#allocation3 + $0x2d] sm:$0xff] }
 0x733   : > { %v6045_v37 = vld [vmem:[#allocation3 + $0x31] sm:$0xff] }
 0x734   : > { %v5979_v31 = vmax.f32 %v5940_v17, 0.0  ;;  %6551 = vrot.lane.b32.xlu1 %v6522_v50, %s11036_s10  ;;  %6077 = vrot.lane.b32.xlu0 %v6045_v37, %s14886_s26  ;;  %v6204_v38 = vld [vmem:[#allocation3 + $0x32] sm:$0xff] }
 0x735   : > { %v6284_v61 = vld [vmem:[#allocation3 + $0x33] sm:$0xff] }
 0x736   : > { %v5992_v39 = vmul.f32 %v5979_v31, %v14987_v27 }
 0x738   : > { %6005 = vst.msk [vmem:[#allocation3 + $0x3b] sm:$0xff] %vm977_vm5, %v5992_v39  ;;  %6235 = vrot.lane.b32.xlu1 %v6204_v38, %s11031_s5  ;;  %6157 = vrot.lane.b32.xlu0 %v6204_v38, %s14885_s17 }
 0x73c   : > { %6315 = vrot.lane.b32.xlu1 %v6284_v61, %s14910_s21 }
 0x73f   : > { %v6443_v43 = vld [vmem:[#allocation3 + $0x34] sm:$0xff] }
 0x740   : > { %6473 = vrot.lane.b32.xlu0 %v6443_v43, %s11035_s23  ;;  %6395 = vrot.lane.b32.xlu1 %v6443_v43, %s11034_s2  ;;  %v6603_v58 = vld [vmem:[#allocation3 + $0x36] sm:$0xff] }
 0x741   : > { %v5944_v20 = vpop.f32.mrb[144].mxu0  ;;  %6616 = vst.msk [vmem:[#allocation4 + $0x128] sm:$0xff] %vm977_vm5, %v6603_v58  ;;  %v6020_v62 = vld [vmem:[#allocation3 + $0x38] sm:$0xff] }
 0x742   : > { %v5945_v12 = vadd.f32 %v13635_v9, %v5944_v20  ;;  %v9945_v13 = vpop.f32.mrb[145].mxu0  ;;  %6033 = vst.msk [vmem:[#allocation4 + $0x1f8] sm:$0xff] %vm977_vm5, %v6020_v62  ;;  %v6523_v40 = vld [vmem:[#allocation3 + $0x35] sm:$0xff] }
 0x743   : > { %v6046_v16 = vld [vmem:[#allocation3 + $0x39] sm:$0xff] }
 0x744   : > { %v5980_v30 = vmax.f32 %v5945_v12, 0.0  ;;  %6553 = vrot.lane.b32.xlu0 %v6523_v40, %s11036_s10  ;;  %6079 = vrot.lane.b32.xlu1 %v6046_v16, %s14886_s26  ;;  %v6205_v21 = vld [vmem:[#allocation3 + $0x3a] sm:$0xff] }
 0x745   : > { %v6285_v2 = vld [vmem:[#allocation3 + $0x3b] sm:$0xff] }
 0x746   : > { %v5993_v5 = vmul.f32 %v5980_v30, %v14988_v6 }
 0x748   : > { %6006 = vst.msk [vmem:[#allocation3 + $0x43] sm:$0xff] %vm977_vm5, %v5993_v5  ;;  %6237 = vrot.lane.b32.xlu0 %v6205_v21, %s11031_s5  ;;  %6159 = vrot.lane.b32.xlu1 %v6205_v21, %s14885_s17 }
 0x74c   : > { %6317 = vrot.lane.b32.xlu0 %v6285_v2, %s14910_s21 }
 0x74f   : > { %v6444_v49 = vld [vmem:[#allocation3 + $0x3c] sm:$0xff] }
 0x750   : > { %6475 = vrot.lane.b32.xlu1 %v6444_v49, %s11035_s23  ;;  %6397 = vrot.lane.b32.xlu0 %v6444_v49, %s11034_s2  ;;  %v6604_v60 = vld [vmem:[#allocation3 + $0x3e] sm:$0xff] }
 0x751   : > { %v5949_v63 = vpop.f32.mrb[146].mxu0  ;;  %6617 = vst.msk [vmem:[#allocation4 + $0x170] sm:$0xff] %vm977_vm5, %v6604_v60  ;;  %v6021_v32 = vld [vmem:[#allocation3 + $0x40] sm:$0xff] }
 0x752   : > { %v5950_v19 = vadd.f32 %v13635_v9, %v5949_v63  ;;  %v6306_v25 = vpop.permute.xlu0 %6305  ;;  %6034 = vst.msk [vmem:[#allocation4 + $0x240] sm:$0xff] %vm977_vm5, %v6021_v32  ;;  %v9948_v4 = vpop.f32.mrb[147].mxu0  ;;  %v6524_v24 = vld [vmem:[#allocation3 + $0x3d] sm:$0xff] }
 0x753   : > { %v6226_v54 = vpop.permute.xlu1 %6225  ;;  %v6047_v18 = vld [vmem:[#allocation3 + $0x41] sm:$0xff] }
 0x754   : > { %6265 = vst.msk [vmem:[#allocation4] sm:$0xff] %vm6264_vm14, %v6226_v54  ;;  %v5981_v28 = vmax.f32 %v5950_v19, 0.0  ;;  %6555 = vrot.lane.b32.xlu1 %v6524_v24, %s11036_s10  ;;  %6081 = vrot.lane.b32.xlu0 %v6047_v18, %s14886_s26  ;;  %v6206_v1 = vld [vmem:[#allocation3 + $0x42] sm:$0xff] }
 0x755   : > { %6345 = vst.msk [vmem:[#allocation4] sm:$0xff] %vm6344_vm15, %v6306_v25  ;;  %v6286_v47 = vld [vmem:[#allocation3 + $0x43] sm:$0xff] }
 0x756   : > { %v5994_v15 = vmul.f32 %v5981_v28, %v14989_v55 }
 0x757   : > { %v6068_v33 = vpop.permute.xlu1 %6067 }
 0x758   : > { %6106 = vst.msk [vmem:[#allocation4 + $0x48] sm:$0xff] %vm6104_vm11, %v6068_v33  ;;  %6239 = vrot.lane.b32.xlu1 %v6206_v1, %s11031_s5  ;;  %6161 = vrot.lane.b32.xlu0 %v6206_v1, %s14885_s17 }
 0x759   : > { %6007 = vst.msk [vmem:[#allocation3 + $0x4b] sm:$0xff] %vm977_vm5, %v5994_v15 }
 0x75b   : > { %v6148_v11 = vpop.permute.xlu1 %6147 }
 0x75c   : > { %6186 = vst.msk [vmem:[#allocation4 + $0x48] sm:$0xff] %vm6184_vm12, %v6148_v11  ;;  %6319 = vrot.lane.b32.xlu1 %v6286_v47, %s14910_s21  ;;  %v6871_v11 = vld [vmem:[%s14994_s1] sm:$0xff]  ;;  %v6872_v47 = vld [vmem:[%s14994_s1 + $0x8] sm:$0xff] }
 0x760   : > { %v6445_v17 = vld [vmem:[#allocation3 + $0x44] sm:$0xff] }
 0x761   : > { %6477 = vrot.lane.b32.xlu0 %v6445_v17, %s11035_s23  ;;  %6399 = vrot.lane.b32.xlu1 %v6445_v17, %s11034_s2  ;;  %v6605_v41 = vld [vmem:[#allocation3 + $0x46] sm:$0xff]  ;;  %v5954_v50 = vpop.f32.mrb[148].mxu0 }
 0x762   : > { %6618 = vst.msk [vmem:[#allocation4 + $0x1b8] sm:$0xff] %vm977_vm5, %v6605_v41  ;;  %v6022_v37 = vld [vmem:[#allocation3 + $0x48] sm:$0xff]  ;;  %v5955_v31 = vadd.f32 %v13635_v9, %v5954_v50  ;;  %v6386_v39 = vpop.permute.xlu0 %6385  ;;  %v9951_v61 = vpop.f32.mrb[149].mxu0  ;;  %v10531_v41 = vpack.c.bf16 %v6872_v47, %v6871_v11  ;;  %v4177_v47 = vmax.f32 %v13408_v35, 0.0 }
 0x763   : > { %v6228_v38 = vpop.permute.xlu1 %6227  ;;  %6035 = vst.msk [vmem:[#allocation4 + $0x288] sm:$0xff] %vm977_vm5, %v6022_v37  ;;  %v6525_v43 = vld [vmem:[#allocation3 + $0x45] sm:$0xff] }
 0x764   : > { %6425 = vst.msk [vmem:[#allocation4] sm:$0xff] %vm6424_vm0, %v6386_v39  ;;  %v6048_v58 = vld [vmem:[#allocation3 + $0x49] sm:$0xff]  ;;  %v5982_v20 = vmax.f32 %v5955_v31, 0.0  ;;  %v6874_v39 = vld [vmem:[%s14994_s1 + $0x18] sm:$0xff] }
 0x765   : > { %6266 = vst.msk [vmem:[#allocation4 + $0x48] sm:$0xff] %vm6264_vm14, %v6228_v38  ;;  %6557 = vrot.lane.b32.xlu0 %v6525_v43, %s11036_s10  ;;  %6083 = vrot.lane.b32.xlu1 %v6048_v58, %s14886_s26  ;;  %v6207_v40 = vld [vmem:[#allocation3 + $0x4a] sm:$0xff] }
 0x766   : > { %v5995_v62 = vmul.f32 %v5982_v20, %v14990_v46  ;;  %v6070_v13 = vpop.permute.xlu0 %6069  ;;  %v6287_v30 = vld [vmem:[#allocation3 + $0x4b] sm:$0xff] }
 0x767   : > { %v6308_v12 = vpop.permute.xlu1 %6307  ;;  %6107 = vst.msk [vmem:[#allocation4 + $0x90] sm:$0xff] %vm6104_vm11, %v6070_v13  ;;  %v6873_v31 = vld [vmem:[%s14994_s1 + $0x10] sm:$0xff] }
 0x768   : > { %6346 = vst.msk [vmem:[#allocation4 + $0x48] sm:$0xff] %vm6344_vm15, %v6308_v12  ;;  %v6628_v38 = vld [vmem:[#allocation4 + $0x50] sm:$0xff]  ;;  %v10534_v20 = vpack.c.bf16 %v6874_v39, %v6873_v31  ;;  %v13857_v39 = vmul.f32 %v4177_v47, %v14982_v22 }
 0x769   : > { %6008 = vst.msk [vmem:[#allocation3 + $0x53] sm:$0xff] %vm977_vm5, %v5995_v62  ;;  %6241 = vrot.lane.b32.xlu0 %v6207_v40, %s11031_s5  ;;  %6163 = vrot.lane.b32.xlu1 %v6207_v40, %s14885_s17 }
 0x76a   : > { %v6150_v16 = vpop.permute.xlu0 %6149 }
 0x76b   : > { %6187 = vst.msk [vmem:[#allocation4 + $0x90] sm:$0xff] %vm6184_vm12, %v6150_v16 }
 0x76d   : > { %6321 = vrot.lane.b32.xlu0 %v6287_v30, %s14910_s21 }
 0x770   : > { %v6446_v5 = vld [vmem:[#allocation3 + $0x4c] sm:$0xff] }
 0x771   : > { %6479 = vrot.lane.b32.xlu1 %v6446_v5, %s11035_s23  ;;  %6401 = vrot.lane.b32.xlu0 %v6446_v5, %s11034_s2  ;;  %v6606_v21 = vld [vmem:[#allocation3 + $0x4e] sm:$0xff]  ;;  %v5959_v2 = vpop.f32.mrb[150].mxu0 }
 0x772   : > { %6619 = vst.msk [vmem:[#allocation4 + $0x200] sm:$0xff] %vm977_vm5, %v6606_v21  ;;  %v6023_v49 = vld [vmem:[#allocation3 + $0x50] sm:$0xff]  ;;  %v5960_v60 = vadd.f32 %v13635_v9, %v5959_v2  ;;  %v6466_v63 = vpop.permute.xlu0 %6465  ;;  %v6388_v32 = vpop.permute.xlu1 %6387 }
 0x773   : > { %6036 = vst.msk [vmem:[#allocation4 + $0x2d0] sm:$0xff] %vm977_vm5, %v6023_v49  ;;  %v9954_v19 = vpop.f32.mrb[151].mxu0  ;;  %v6526_v25 = vld [vmem:[#allocation3 + $0x4d] sm:$0xff] }
 0x774   : > { %6505 = vst.msk [vmem:[#allocation4] sm:$0xff] %vm6504_vm3, %v6466_v63  ;;  %v6049_v54 = vld [vmem:[#allocation3 + $0x51] sm:$0xff]  ;;  %v5983_v4 = vmax.f32 %v5960_v60, 0.0 }
 0x775   : > { %6426 = vst.msk [vmem:[#allocation4 + $0x48] sm:$0xff] %vm6424_vm0, %v6388_v32  ;;  %6559 = vrot.lane.b32.xlu1 %v6526_v25, %s11036_s10  ;;  %6085 = vrot.lane.b32.xlu0 %v6049_v54, %s14886_s26  ;;  %v6208_v15 = vld [vmem:[#allocation3 + $0x52] sm:$0xff] }
 0x776   : > { %v5996_v24 = vmul.f32 %v5983_v4, %v14991_v7  ;;  %v6546_v18 = vpop.permute.xlu0 %6545  ;;  %v6072_v28 = vpop.permute.xlu1 %6071  ;;  %v6288_v17 = vld [vmem:[#allocation3 + $0x53] sm:$0xff] }
 0x777   : > { %6585 = vst.msk [vmem:[#allocation4] sm:$0xff] %vm6584_vm7, %v6546_v18  ;;  %v4176_v18 = vmax.f32 %v13400_v14, 0.0  ;;  %v13843_v14 = vld [vmem:[#allocation2] sm:$0xff] }
 0x778   : > { %6108 = vst.msk [vmem:[#allocation4 + $0xd8] sm:$0xff] %vm6104_vm11, %v6072_v28 }
 0x779   : > { %6009 = vst.msk [vmem:[#allocation3 + $0x5b] sm:$0xff] %vm977_vm5, %v5996_v24  ;;  %6243 = vrot.lane.b32.xlu1 %v6208_v15, %s11031_s5  ;;  %6165 = vrot.lane.b32.xlu0 %v6208_v15, %s14885_s17 }
 0x77a   : > { %v6230_v33 = vpop.permute.xlu0 %6229  ;;  %v6152_v1 = vpop.permute.xlu1 %6151 }
 0x77b   : > { %6267 = vst.msk [vmem:[#allocation4 + $0x90] sm:$0xff] %vm6264_vm14, %v6230_v33 }
 0x77c   : > { %6188 = vst.msk [vmem:[#allocation4 + $0xd8] sm:$0xff] %vm6184_vm12, %v6152_v1 }
 0x77d   : > { %6323 = vrot.lane.b32.xlu1 %v6288_v17, %s14910_s21 }
 0x77e   : > { %v6310_v50 = vpop.permute.xlu0 %6309  ;;  %v6625_v37 = vld [vmem:[#allocation4] sm:$0xff] }
 0x77f   : > { %6347 = vst.msk [vmem:[#allocation4 + $0x90] sm:$0xff] %vm6344_vm15, %v6310_v50  ;;  %6780 = vmatmul.mubr.f32.vlgmr.msra.gmra.mrb[156].mxu0 %v6625_v37 }
 0x780   : > { %v6447_v61 = vld [vmem:[#allocation3 + $0x54] sm:$0xff]  ;;  %8891 = vmatprep.mubr.msk.f32.mxu0 %vm977_vm5, %v6628_v38  ;;  %10532 = vmatpush3.bf16.msra.mxu0 %v10531_v41  ;;  %v4178_v38 = vmax.f32 %v13413_v42, 0.0 }
 0x781   : > { %6481 = vrot.lane.b32.xlu0 %v6447_v61, %s11035_s23  ;;  %v6607_v43 = vld [vmem:[#allocation3 + $0x56] sm:$0xff]  ;;  %6403 = vrot.lane.b32.xlu1 %v6447_v61, %s11034_s2  ;;  %v5964_v58 = vpop.f32.mrb[152].mxu0 }
 0x782   : > { %6620 = vst.msk [vmem:[#allocation4 + $0x248] sm:$0xff] %vm977_vm5, %v6607_v43  ;;  %v6024_v62 = vld [vmem:[#allocation3 + $0x58] sm:$0xff]  ;;  %v5965_v12 = vadd.f32 %v13635_v9, %v5964_v58  ;;  %v6468_v13 = vpop.permute.xlu1 %6467  ;;  %v6390_v40 = vpop.permute.xlu0 %6389  ;;  %10533 = vmatprep.subr.bf16.mxu0 %v14904_v48  ;;  %v13869_v42 = vmul.f32 %v4178_v38, %v14983_v36 }
 0x783   : > { %6037 = vst.msk [vmem:[#allocation4 + $0x318] sm:$0xff] %vm977_vm5, %v6024_v62  ;;  %v9957_v16 = vpop.f32.mrb[153].mxu0  ;;  %v6527_v30 = vld [vmem:[#allocation3 + $0x55] sm:$0xff]  ;;  %v4179_v62 = vmax.f32 %v13418_v52, 0.0 }
 0x784   : > { %6506 = vst.msk [vmem:[#allocation4 + $0x48] sm:$0xff] %vm6504_vm3, %v6468_v13  ;;  %v5984_v5 = vmax.f32 %v5965_v12, 0.0  ;;  %v6050_v21 = vld [vmem:[#allocation3 + $0x59] sm:$0xff]  ;;  %10535 = vmatpush3.bf16.msra.mxu0 %v10534_v20  ;;  %v6531_v38 = vld [vmem:[#allocation3 + $0x75] sm:$0xf] }
 0x785   : > { %6427 = vst.msk [vmem:[#allocation4 + $0x90] sm:$0xff] %vm6424_vm0, %v6390_v40  ;;  %6561 = vrot.lane.b32.xlu0 %v6527_v30, %s11036_s10  ;;  %6087 = vrot.lane.b32.xlu1 %v6050_v21, %s14886_s26  ;;  %v6209_v63 = vld [vmem:[#allocation3 + $0x5a] sm:$0xff]  ;;  %v4180_v21 = vmax.f32 %v13423_v0, 0.0 }
 0x786   : > { %v5997_v2 = vmul.f32 %v5984_v5, %v14992_v51  ;;  %v6548_v49 = vpop.permute.xlu1 %6547  ;;  %v6074_v60 = vpop.permute.xlu0 %6073  ;;  %10542 = vmatprep.subr.bf16.mxu0 %v14904_v48  ;;  %v6289_v54 = vld [vmem:[#allocation3 + $0x5b] sm:$0xff]  ;;  %v13882_v5 = vmul.f32 %v4179_v62, %v14984_v45 }
 0x787   : > { %6586 = vst.msk [vmem:[#allocation4 + $0x48] sm:$0xff] %vm6584_vm7, %v6548_v49  ;;  %v13894_v0 = vmul.f32 %v4180_v21, %v14985_v23  ;;  %v4187_v21 = vmax.f32 %v13468_v8, 0.0  ;;  %v4188_v8 = vmax.f32 %v13475_v26, 0.0 }
 0x788   : > { %6109 = vst.msk [vmem:[#allocation4 + $0x120] sm:$0xff] %vm6104_vm11, %v6074_v60  ;;  %v6632_v60 = vld [vmem:[#allocation4 + $0xe0] sm:$0xff] }
 0x789   : > { %6010 = vst.msk [vmem:[#allocation3 + $0x63] sm:$0xff] %vm977_vm5, %v5997_v2  ;;  %6245 = vrot.lane.b32.xlu0 %v6209_v63, %s11031_s5  ;;  %6167 = vrot.lane.b32.xlu1 %v6209_v63, %s14885_s17 }
 0x78a   : > { %v6232_v32 = vpop.permute.xlu1 %6231  ;;  %v6154_v19 = vpop.permute.xlu0 %6153 }
 0x78b   : > { %6268 = vst.msk [vmem:[#allocation4 + $0xd8] sm:$0xff] %vm6264_vm14, %v6232_v32  ;;  %v5969_v25 = vpop.f32.mrb[154].mxu0  ;;  %v4181_v32 = vmax.f32 %v13428_v53, 0.0 }
 0x78c   : > { %6189 = vst.msk [vmem:[#allocation4 + $0x120] sm:$0xff] %vm6184_vm12, %v6154_v19  ;;  %v5970_v4 = vadd.f32 %v13635_v9, %v5969_v25  ;;  %v9960_v24 = vpop.f32.mrb[155].mxu0  ;;  %v13840_v9 = vmul.f32 %v4176_v18, %v14981_v44 }
 0x78d   : > { %6325 = vrot.lane.b32.xlu0 %v6289_v54, %s14910_s21  ;;  %v13908_v53 = vmul.f32 %v4181_v32, %v14986_v10  ;;  %v4182_v24 = vmax.f32 %v13433_v57, 0.0  ;;  %v13981_v32 = vmul.f32 %v4187_v21, %v14992_v51 }
 0x78e   : > { %v5985_v28 = vmax.f32 %v5970_v4, 0.0  ;;  %v6312_v15 = vpop.permute.xlu1 %6311  ;;  %v6627_v33 = vld [vmem:[#allocation4 + $0x48] sm:$0xff] }
 0x78f   : > { %6348 = vst.msk [vmem:[#allocation4 + $0xd8] sm:$0xff] %vm6344_vm15, %v6312_v15  ;;  %6785 = vmatmul.mubr.f32.gmra.mrb[158].mxu0 %v6627_v33  ;;  %v13920_v57 = vmul.f32 %v4182_v24, %v14987_v27  ;;  %14999 = vst [vmem:[#allocation51_spill] sm:$0xff] %v13981_v32  ;;  %v6636_v24 = vld [vmem:[#allocation4 + $0x170] sm:$0xff] }
 0x790   : > { %v6448_v1 = vld [vmem:[#allocation3 + $0x5c] sm:$0xff]  ;;  %v5998_v11 = vmul.f32 %v5985_v28, %v14993_v29  ;;  %9969 = vmatprep.mubr.msk.f32.mxu0 %vm11022_vm1, %v13843_v14 }
 0x791   : > { %6483 = vrot.lane.b32.xlu1 %v6448_v1, %s11035_s23  ;;  %6405 = vrot.lane.b32.xlu0 %v6448_v1, %s11034_s2  ;;  %v6608_v17 = vld [vmem:[#allocation3 + $0x5e] sm:$0xff]  ;;  %v4183_v1 = vmax.f32 %v13440_v56, 0.0 }
 0x792   : > { %v6025_v41 = vld [vmem:[#allocation3 + $0x60] sm:$0xf]  ;;  %6012 = vst.msk [vmem:[#allocation3 + $0x6b] sm:$0xf] %vm6011_vm8, %v5998_v11  ;;  %v6470_v50 = vpop.permute.xlu0 %6469  ;;  %v6392_v37 = vpop.permute.xlu1 %6391  ;;  %v6451_v11 = vld [vmem:[#allocation3 + $0x74] sm:$0xf] }
 0x793   : > { %6621 = vst.msk [vmem:[#allocation4 + $0x290] sm:$0xff] %vm977_vm5, %v6608_v17  ;;  %9970 = vmatmul.mubr.msk.f32.vlgmr.msra.gmra.mrb[160].mxu0 %vm6882_vm13, %v13840_v9  ;;  %v6528_v35 = vld [vmem:[#allocation3 + $0x5d] sm:$0xff]  ;;  %v13932_v56 = vmul.f32 %v4183_v1, %v14988_v6 }
 0x794   : > { %6038 = vst.msk [vmem:[#allocation4 + $0x360] sm:$0xf] %vm6011_vm8, %v6025_v41  ;;  %v6051_v31 = vld [vmem:[#allocation3 + $0x61] sm:$0xf]  ;;  %9972 = vmatprep.mubr.msk.f32.mxu0 %vm11022_vm1, %v13843_v14 }
 0x795   : > { %6507 = vst.msk [vmem:[#allocation4 + $0x90] sm:$0xff] %vm6504_vm3, %v6470_v50  ;;  %6563 = vrot.lane.b32.xlu1 %v6528_v35, %s11036_s10  ;;  %6089 = vrot.lane.b32.xlu0 %v6051_v31, %s14886_s26  ;;  %v6210_v58 = vld [vmem:[#allocation3 + $0x62] sm:$0xff]  ;;  %v4184_v50 = vmax.f32 %v13447_v59, 0.0  ;;  %s15002_s26 = sld [smem:[#allocation20_spill]] }
 0x796   : > { %6428 = vst.msk [vmem:[#allocation4 + $0xd8] sm:$0xff] %vm6424_vm0, %v6392_v37  ;;  %v6550_v61 = vpop.permute.xlu0 %6549  ;;  %v6076_v43 = vpop.permute.xlu1 %6075  ;;  %v6131_v20 = vld [vmem:[#allocation3 + $0x62] sm:$0xf] }
 0x797   : > { %6587 = vst.msk [vmem:[#allocation4 + $0x90] sm:$0xff] %vm6584_vm7, %v6550_v61  ;;  %9973 = vmatmul.mubr.msk.f32.gmra.mrb[162].mxu0 %vm6882_vm13, %v13857_v39  ;;  %v6290_v40 = vld [vmem:[#allocation3 + $0x63] sm:$0xff]  ;;  %v13942_v59 = vmul.f32 %v4184_v50, %v14989_v55 }
 0x798   : > { %6110 = vst.msk [vmem:[#allocation4 + $0x168] sm:$0xff] %vm6104_vm11, %v6076_v43  ;;  %9975 = vmatprep.mubr.msk.f32.mxu0 %vm11022_vm1, %v13843_v14  ;;  %v6634_v61 = vld [vmem:[#allocation4 + $0x128] sm:$0xff]  ;;  %v4185_v43 = vmax.f32 %v13454_v34, 0.0 }
 0x799   : > { %6247 = vrot.lane.b32.xlu1 %v6210_v58, %s11031_s5  ;;  %6169 = vrot.lane.b32.xlu0 %v6131_v20, %s14885_s17  ;;  %v6449_v16 = vld [vmem:[#allocation3 + $0x64] sm:$0xff]  ;;  %v6610_v52 = vld [vmem:[#allocation3 + $0x6e] sm:$0xff]  ;;  %s14995_s17 = sld [smem:[#allocation19_spill]]  ;;  %14996 = vst [vmem:[#allocation50_spill] sm:$0xff] %v13942_v59 }
 0x79a   : > { %v6234_v12 = vpop.permute.xlu0 %6233  ;;  %v6156_v13 = vpop.permute.xlu1 %6155  ;;  %v6609_v30 = vld [vmem:[#allocation3 + $0x66] sm:$0xff]  ;;  %6623 = vst.msk [vmem:[#allocation4 + $0x320] sm:$0xff] %vm977_vm5, %v6610_v52  ;;  %v13957_v34 = vmul.f32 %v4185_v43, %v14990_v46 }
 0x79b   : > { %6269 = vst.msk [vmem:[#allocation4 + $0x120] sm:$0xff] %vm6264_vm14, %v6234_v12  ;;  %9976 = vmatmul.mubr.msk.f32.gmra.mrb[164].mxu0 %vm6882_vm13, %v13869_v42  ;;  %v6529_v63 = vld [vmem:[#allocation3 + $0x65] sm:$0xff]  ;;  %v6530_v33 = vld [vmem:[#allocation3 + $0x6d] sm:$0xff] }
 0x79c   : > { %6190 = vst.msk [vmem:[#allocation4 + $0x168] sm:$0xff] %vm6184_vm12, %v6156_v13  ;;  %9978 = vmatprep.mubr.msk.f32.mxu0 %vm11022_vm1, %v13843_v14  ;;  %v6211_v54 = vld [vmem:[#allocation3 + $0x6a] sm:$0xf]  ;;  %14997 = vst [vmem:[#allocation49_spill] sm:$0xff] %v13957_v34  ;;  %v4186_v13 = vmax.f32 %v13461_v3, 0.0 }
 0x79d   : > { %6327 = vrot.lane.b32.xlu1 %v6290_v40, %s14910_s21  ;;  %6485 = vrot.lane.b32.xlu0 %v6449_v16, %s11035_s23  ;;  %6622 = vst.msk [vmem:[#allocation4 + $0x2d8] sm:$0xff] %vm977_vm5, %v6609_v30  ;;  %v6450_v4 = vld [vmem:[#allocation3 + $0x6c] sm:$0xff] }
 0x79e   : > { %v6314_v2 = vpop.permute.xlu0 %6313  ;;  %v6629_v49 = vld [vmem:[#allocation4 + $0x90] sm:$0xff]  ;;  %v6291_v15 = vld [vmem:[#allocation3 + $0x6b] sm:$0xf]  ;;  %v13969_v3 = vmul.f32 %v4186_v13, %v14991_v7 }
 0x79f   : > { %6349 = vst.msk [vmem:[#allocation4 + $0x120] sm:$0xff] %vm6344_vm15, %v6314_v2  ;;  %6790 = vmatmul.mubr.f32.vlgmr.msra.gmra.mrb[130].mxu1 %v6629_v49  ;;  %9979 = vmatmul.mubr.msk.f32.gmra.mrb[166].mxu0 %vm6882_vm13, %v13882_v5  ;;  %v6371_v41 = vld [vmem:[#allocation3 + $0x6c] sm:$0xf]  ;;  %v7388_v37 = vld [vmem:[%s14995_s17] sm:$0xff]  ;;  %v7390_v58 = vld [vmem:[%s14995_s17 + $0x10] sm:$0xff] }
 0x7a0   : > { %8893 = vmatprep.mubr.msk.f32.mxu1 %vm977_vm5, %v6632_v60  ;;  %9981 = vmatprep.mubr.msk.f32.mxu0 %vm11022_vm1, %v13843_v14  ;;  %v7389_v12 = vld [vmem:[%s14995_s17 + $0x8] sm:$0xff]  ;;  %v7391_v52 = vld [vmem:[%s14995_s17 + $0x18] sm:$0xff]  ;;  %14998 = vst [vmem:[#allocation46_spill] sm:$0xff] %v13969_v3  ;;  %v7396_v2 = vld [vmem:[%s14995_s17 + $0x40] sm:$0xff] }
 0x7a1   : > { %6565 = vrot.lane.b32.xlu0 %v6529_v63, %s11036_s10  ;;  %6407 = vrot.lane.b32.xlu1 %v6449_v16, %s11034_s2  ;;  %v7393_v40 = vld [vmem:[%s14995_s17 + $0x28] sm:$0xff]  ;;  %v7392_v63 = vld [vmem:[%s14995_s17 + $0x20] sm:$0xff] }
 0x7a2   : > { %v6472_v19 = vpop.permute.xlu1 %6471  ;;  %v6394_v25 = vpop.permute.xlu0 %6393  ;;  %v7398_v26 = vld [vmem:[%s14995_s17 + $0x50] sm:$0xff]  ;;  %v7399_v1 = vld [vmem:[%s14995_s17 + $0x58] sm:$0xff] }
 0x7a3   : > { %6508 = vst.msk [vmem:[#allocation4 + $0xd8] sm:$0xff] %vm6504_vm3, %v6472_v19  ;;  %9982 = vmatmul.mubr.msk.f32.gmra.mrb[168].mxu0 %vm6882_vm13, %v13894_v0  ;;  %v7397_v19 = vld [vmem:[%s14995_s17 + $0x48] sm:$0xff] }
 0x7a4   : > { %6429 = vst.msk [vmem:[#allocation4 + $0x120] sm:$0xff] %vm6424_vm0, %v6394_v25  ;;  %9984 = vmatprep.mubr.msk.f32.mxu0 %vm11022_vm1, %v13843_v14 }
 0x7a5   : > { %6249 = vrot.lane.b32.xlu0 %v6211_v54, %s11031_s5  ;;  %6487 = vrot.lane.b32.xlu1 %v6450_v4, %s11035_s23  ;;  %v7394_v4 = vld [vmem:[%s14995_s17 + $0x30] sm:$0xff]  ;;  %s15005_s5 = sld [smem:[#allocation16_spill]] }
 0x7a6   : > { %v6552_v18 = vpop.permute.xlu1 %6551  ;;  %v6078_v28 = vpop.permute.xlu0 %6077 }
 0x7a7   : > { %6588 = vst.msk [vmem:[#allocation4 + $0xd8] sm:$0xff] %vm6584_vm7, %v6552_v18  ;;  %9985 = vmatmul.mubr.msk.f32.gmra.mrb[170].mxu0 %vm6882_vm13, %v13908_v53  ;;  %v13991_v18 = vmul.f32 %v4188_v8, %v14993_v29 }
 0x7a8   : > { %6111 = vst.msk [vmem:[#allocation4 + $0x1b0] sm:$0xff] %vm6104_vm11, %v6078_v28  ;;  %9987 = vmatprep.mubr.msk.f32.mxu0 %vm11022_vm1, %v13843_v14 }
 0x7a9   : > { %6329 = vrot.lane.b32.xlu0 %v6291_v15, %s14910_s21  ;;  %6567 = vrot.lane.b32.xlu1 %v6530_v33, %s11036_s10  ;;  %15000 = vst [vmem:[#allocation47_spill] sm:$0xff] %v13991_v18  ;;  %v7395_v33 = vld [vmem:[%s14995_s17 + $0x38] sm:$0xff]  ;;  %s15001_s21 = sld [smem:[#allocation17_spill]] }
 0x7aa   : > { %v6236_v47 = vpop.permute.xlu1 %6235  ;;  %v6158_v17 = vpop.permute.xlu0 %6157 }
 0x7ab   : > { %6270 = vst.msk [vmem:[#allocation4 + $0x168] sm:$0xff] %vm6264_vm14, %v6236_v47  ;;  %9988 = vmatmul.mubr.msk.f32.gmra.mrb[172].mxu0 %vm6882_vm13, %v13920_v57 }
 0x7ac   : > { %6191 = vst.msk [vmem:[#allocation4 + $0x1b0] sm:$0xff] %vm6184_vm12, %v6158_v17  ;;  %9990 = vmatprep.mubr.msk.f32.mxu0 %vm11022_vm1, %v13843_v14 }
 0x7ad   : > { %6489 = vrot.lane.b32.xlu0 %v6451_v11, %s11035_s23  ;;  %6409 = vrot.lane.b32.xlu1 %v6371_v41, %s11034_s2  ;;  %s15016_s2 = sld [smem:[#allocation24_spill]]  ;;  %s15017_s23 = sld [smem:[#allocation26_spill]] }
 0x7ae   : > { %v6316_v35 = vpop.permute.xlu1 %6315  ;;  %v6631_v31 = vld [vmem:[#allocation4 + $0xd8] sm:$0xff] }
 0x7af   : > { %6350 = vst.msk [vmem:[#allocation4 + $0x168] sm:$0xff] %vm6344_vm15, %v6316_v35  ;;  %6795 = vmatmul.mubr.f32.gmra.mrb[132].mxu1 %v6631_v31  ;;  %9991 = vmatmul.mubr.msk.f32.gmra.mrb[174].mxu0 %vm6882_vm13, %v13932_v56  ;;  %v6638_v35 = vld [vmem:[#allocation4 + $0x1b8] sm:$0xff]  ;;  %v7131_v43 = vld [vmem:[%s15001_s21 + $0x8] sm:$0xff] }
 0x7b0   : > { %8894 = vmatprep.mubr.msk.f32.mxu1 %vm977_vm5, %v6634_v61  ;;  %9993 = vmatprep.mubr.msk.f32.mxu0 %vm11022_vm1, %v13843_v14  ;;  %v7130_v61 = vld [vmem:[%s15001_s21] sm:$0xff] }
 0x7b1   : > { %7403 = vperm.xlu0 %10682, %v7388_v37   ;;  %6569 = vrot.lane.b32.xlu1 %v6531_v38, %s11036_s10  ;;  %s15018_s10 = sld [smem:[#allocation25_spill]] }
 0x7b2   : > { %v6474_v20 = vpop.permute.xlu0 %6473  ;;  %v6396_v62 = vpop.permute.xlu1 %6395 }
 0x7b3   : > { %6509 = vst.msk [vmem:[#allocation4 + $0x120] sm:$0xff] %vm6504_vm3, %v6474_v20  ;;  %9994 = vmatmul.mubr.msk.f32.gmra.mrb[176].mxu0 %vm6882_vm13, %v13942_v59  ;;  %v10537_v20 = vpack.c.bf16 %v7131_v43, %v7130_v61  ;;  %v6644_v61 = vld [vmem:[#allocation4 + $0x290] sm:$0xff] }
 0x7b4   : > { %6430 = vst.msk [vmem:[#allocation4 + $0x168] sm:$0xff] %vm6424_vm0, %v6396_v62  ;;  %9996 = vmatprep.mubr.msk.f32.mxu0 %vm11022_vm1, %v13843_v14  ;;  %v7576_v62 = vld [vmem:[%s15002_s26 + $0x8] sm:$0xff] }
 0x7b5   : > { %7413 = vperm.xlu0 %10682, %v7390_v58   ;;  %7408 = vperm.xlu1 %10683, %v7389_v12   ;;  %v7575_v58 = vld [vmem:[%s15002_s26] sm:$0xff] }
 0x7b6   : > { %v6554_v16 = vpop.permute.xlu0 %6553  ;;  %v6080_v30 = vpop.permute.xlu1 %6079  ;;  %v10543_v12 = vpack.c.bf16 %v7576_v62, %v7575_v58  ;;  %10538 = vmatpush3.bf16.msra.mxu1 %v10537_v20 }
 0x7b7   : > { %6589 = vst.msk [vmem:[#allocation4 + $0x120] sm:$0xff] %vm6584_vm7, %v6554_v16  ;;  %9997 = vmatmul.mubr.msk.f32.gmra.mrb[178].mxu0 %vm6882_vm13, %v13957_v34  ;;  %10539 = vmatprep.subr.bf16.mxu1 %v14904_v48  ;;  %v7132_v16 = vld [vmem:[%s15001_s21 + $0x10] sm:$0xff] }
 0x7b8   : > { %6112 = vst.msk [vmem:[#allocation4 + $0x1f8] sm:$0xff] %vm6104_vm11, %v6080_v30  ;;  %9999 = vmatprep.mubr.msk.f32.mxu0 %vm11022_vm1, %v13843_v14  ;;  %10544 = vmatpush3.bf16.msra.mxu0 %v10543_v12  ;;  %v7133_v30 = vld [vmem:[%s15001_s21 + $0x18] sm:$0xff] }
 0x7b9   : > { %7428 = vperm.xlu0 %10682, %v7393_v40   ;;  %7418 = vperm.xlu1 %10683, %v7391_v52   ;;  %v7577_v52 = vld [vmem:[%s15002_s26 + $0x10] sm:$0xff]  ;;  %v10540_v21 = vpack.c.bf16 %v7133_v30, %v7132_v16 }
 0x7ba   : > { %v6238_v49 = vpop.permute.xlu0 %6237  ;;  %v6160_v60 = vpop.permute.xlu1 %6159  ;;  %10545 = vmatprep.subr.bf16.mxu0 %v14904_v48 }
 0x7bb   : > { %6271 = vst.msk [vmem:[#allocation4 + $0x1b0] sm:$0xff] %vm6264_vm14, %v6238_v49  ;;  %10000 = vmatmul.mubr.msk.f32.gmra.mrb[180].mxu0 %vm6882_vm13, %v13969_v3  ;;  %10541 = vmatpush3.bf16.msra.mxu1 %v10540_v21 }
 0x7bc   : > { %6192 = vst.msk [vmem:[#allocation4 + $0x1f8] sm:$0xff] %vm6184_vm12, %v6160_v60  ;;  %10002 = vmatprep.mubr.msk.f32.mxu0 %vm11022_vm1, %v13843_v14  ;;  %10548 = vmatprep.subr.bf16.mxu1 %v14904_v48 }
 0x7bd   : > { %7443 = vperm.xlu0 %10682, %v7396_v2   ;;  %7423 = vperm.xlu1 %10683, %v7392_v63   ;;  %v7578_v2 = vld [vmem:[%s15002_s26 + $0x18] sm:$0xff] }
 0x7be   : > { %v6318_v25 = vpop.permute.xlu0 %6317  ;;  %v6633_v54 = vld [vmem:[#allocation4 + $0x120] sm:$0xff]  ;;  %v10546_v49 = vpack.c.bf16 %v7578_v2, %v7577_v52  ;;  %v6646_v52 = vld [vmem:[#allocation4 + $0x2d8] sm:$0xff] }
 0x7bf   : > { %6351 = vst.msk [vmem:[#allocation4 + $0x1b0] sm:$0xff] %vm6344_vm15, %v6318_v25  ;;  %6800 = vmatmul.mubr.f32.gmra.mrb[134].mxu1 %v6633_v54  ;;  %10003 = vmatmul.mubr.msk.f32.gmra.mrb[182].mxu0 %vm6882_vm13, %v13981_v32  ;;  %v6640_v25 = vld [vmem:[#allocation4 + $0x200] sm:$0xff] }
 0x7c0   : > { %8895 = vmatprep.mubr.msk.f32.mxu1 %vm977_vm5, %v6636_v24  ;;  %10005 = vmatprep.mubr.msk.f32.mxu0 %vm11022_vm1, %v13843_v14 }
 0x7c1   : > { %7448 = vperm.xlu0 %10682, %v7397_v19   ;;  %7433 = vperm.xlu1 %10683, %v7394_v4  }
 0x7c2   : > { %v6476_v28 = vpop.permute.xlu1 %6475  ;;  %v6398_v15 = vpop.permute.xlu0 %6397  ;;  %10547 = vmatpush3.bf16.msra.mxu0 %v10546_v49 }
 0x7c3   : > { %6510 = vst.msk [vmem:[#allocation4 + $0x168] sm:$0xff] %vm6504_vm3, %v6476_v28  ;;  %10006 = vmatmul.mubr.msk.f32.gmra.mrb[184].mxu0 %vm6882_vm13, %v13991_v18  ;;  %10554 = vmatprep.subr.bf16.mxu0 %v14904_v48 }
 0x7c4   : > { %6431 = vst.msk [vmem:[#allocation4 + $0x1b0] sm:$0xff] %vm6424_vm0, %v6398_v15  ;;  %10063 = vmatprep.mubr.msk.f32.mxu0 %vm11022_vm1, %v13843_v14 }
 0x7c5   : > { %7453 = vperm.xlu0 %10682, %v7398_v26   ;;  %7438 = vperm.xlu1 %10683, %v7395_v33  }
 0x7c6   : > { %v6556_v11 = vpop.permute.xlu1 %6555  ;;  %v6082_v47 = vpop.permute.xlu0 %6081 }
 0x7c7   : > { %6590 = vst.msk [vmem:[#allocation4 + $0x168] sm:$0xff] %vm6584_vm7, %v6556_v11  ;;  %v6642_v11 = vld [vmem:[#allocation4 + $0x248] sm:$0xff] }
 0x7c8   : > { %6113 = vst.msk [vmem:[#allocation4 + $0x240] sm:$0xff] %vm6104_vm11, %v6082_v47 }
 0x7c9   : > { %7458 = vperm.xlu0 %10682, %v7399_v1  }
 0x7ca   : > { %v6240_v17 = vpop.permute.xlu1 %6239  ;;  %v6162_v41 = vpop.permute.xlu0 %6161 }
 0x7cb   : > { %6272 = vst.msk [vmem:[#allocation4 + $0x1f8] sm:$0xff] %vm6264_vm14, %v6240_v17 }
 0x7cc   : > { %6193 = vst.msk [vmem:[#allocation4 + $0x240] sm:$0xff] %vm6184_vm12, %v6162_v41 }
 0x7ce   : > { %v6320_v50 = vpop.permute.xlu1 %6319  ;;  %v6635_v37 = vld [vmem:[#allocation4 + $0x168] sm:$0xff] }
 0x7cf   : > { %6352 = vst.msk [vmem:[#allocation4 + $0x1f8] sm:$0xff] %vm6344_vm15, %v6320_v50  ;;  %6805 = vmatmul.mubr.f32.gmra.mrb[136].mxu1 %v6635_v37 }
 0x7d0   : > { %8896 = vmatprep.mubr.msk.f32.mxu1 %vm977_vm5, %v6638_v35 }
 0x7d3   : > { %v6478_v31 = vpop.permute.xlu0 %6477  ;;  %v6400_v38 = vpop.permute.xlu1 %6399 }
 0x7d4   : > { %6511 = vst.msk [vmem:[#allocation4 + $0x1b0] sm:$0xff] %vm6504_vm3, %v6478_v31 }
 0x7d5   : > { %6432 = vst.msk [vmem:[#allocation4 + $0x1f8] sm:$0xff] %vm6424_vm0, %v6400_v38 }
 0x7d7   : > { %v6558_v13 = vpop.permute.xlu0 %6557  ;;  %v6084_v40 = vpop.permute.xlu1 %6083 }
 0x7d8   : > { %6591 = vst.msk [vmem:[#allocation4 + $0x1b0] sm:$0xff] %vm6584_vm7, %v6558_v13 }
 0x7d9   : > { %6114 = vst.msk [vmem:[#allocation4 + $0x288] sm:$0xff] %vm6104_vm11, %v6084_v40 }
 0x7db   : > { %v6242_v60 = vpop.permute.xlu0 %6241  ;;  %v6164_v63 = vpop.permute.xlu1 %6163 }
 0x7dc   : > { %6273 = vst.msk [vmem:[#allocation4 + $0x240] sm:$0xff] %vm6264_vm14, %v6242_v60 }
 0x7dd   : > { %6194 = vst.msk [vmem:[#allocation4 + $0x288] sm:$0xff] %vm6184_vm12, %v6164_v63 }
 0x7df   : > { %v6322_v8 = vpop.permute.xlu0 %6321  ;;  %v6637_v19 = vld [vmem:[#allocation4 + $0x1b0] sm:$0xff] }
 0x7e0   : > { %6353 = vst.msk [vmem:[#allocation4 + $0x240] sm:$0xff] %vm6344_vm15, %v6322_v8  ;;  %6810 = vmatmul.mubr.f32.gmra.mrb[138].mxu1 %v6637_v19 }
 0x7e1   : > { %8897 = vmatprep.mubr.msk.f32.mxu1 %vm977_vm5, %v6640_v25  ;;  %v6648_v25 = vld [vmem:[#allocation4 + $0x320] sm:$0xff] }
 0x7e3   : > { %v6480_v54 = vpop.permute.xlu1 %6479  ;;  %v6402_v4 = vpop.permute.xlu0 %6401 }
 0x7e4   : > { %6512 = vst.msk [vmem:[#allocation4 + $0x1f8] sm:$0xff] %vm6504_vm3, %v6480_v54 }
 0x7e5   : > { %6433 = vst.msk [vmem:[#allocation4 + $0x240] sm:$0xff] %vm6424_vm0, %v6402_v4 }
 0x7e7   : > { %v6560_v24 = vpop.permute.xlu1 %6559  ;;  %v6086_v26 = vpop.permute.xlu0 %6085 }
 0x7e8   : > { %6592 = vst.msk [vmem:[#allocation4 + $0x1f8] sm:$0xff] %vm6584_vm7, %v6560_v24  ;;  %v6650_v24 = vld [vmem:[#allocation4 + $0x368] sm:$0xf] }
 0x7e9   : > { %6115 = vst.msk [vmem:[#allocation4 + $0x2d0] sm:$0xff] %vm6104_vm11, %v6086_v26 }
 0x7eb   : > { %v6244_v28 = vpop.permute.xlu1 %6243  ;;  %v6166_v15 = vpop.permute.xlu0 %6165 }
 0x7ec   : > { %6274 = vst.msk [vmem:[#allocation4 + $0x288] sm:$0xff] %vm6264_vm14, %v6244_v28 }
 0x7ed   : > { %6195 = vst.msk [vmem:[#allocation4 + $0x2d0] sm:$0xff] %vm6184_vm12, %v6166_v15 }
 0x7ef   : > { %v6324_v33 = vpop.permute.xlu1 %6323  ;;  %v6639_v1 = vld [vmem:[#allocation4 + $0x1f8] sm:$0xff] }
 0x7f0   : > { %6354 = vst.msk [vmem:[#allocation4 + $0x288] sm:$0xff] %vm6344_vm15, %v6324_v33  ;;  %6815 = vmatmul.mubr.f32.gmra.mrb[140].mxu1 %v6639_v1  ;;  %v14062_v33 = vld [vmem:[%s15003_s11] ss:$0 sm:$0xff]  ;;  %s15019_s11 = sld [smem:[#allocation21_spill]] }
 0x7f1   : > { %8898 = vmatprep.mubr.msk.f32.mxu1 %vm977_vm5, %v6642_v11 }
 0x7f3   : > { %v6482_v47 = vpop.permute.xlu0 %6481  ;;  %v6404_v17 = vpop.permute.xlu1 %6403 }
 0x7f4   : > { %6513 = vst.msk [vmem:[#allocation4 + $0x240] sm:$0xff] %vm6504_vm3, %v6482_v47 }
 0x7f5   : > { %6434 = vst.msk [vmem:[#allocation4 + $0x288] sm:$0xff] %vm6424_vm0, %v6404_v17 }
 0x7f7   : > { %v6562_v41 = vpop.permute.xlu0 %6561  ;;  %v6088_v50 = vpop.permute.xlu1 %6087 }
 0x7f8   : > { %6593 = vst.msk [vmem:[#allocation4 + $0x240] sm:$0xff] %vm6584_vm7, %v6562_v41 }
 0x7f9   : > { %6116 = vst.msk [vmem:[#allocation4 + $0x318] sm:$0xff] %vm6104_vm11, %v6088_v50  ;;  %vm6517_vm11 = vcmask 913152   ;;  %v7794_v50 = vld [vmem:[%s15004_s28] sm:$0xff] }
 0x7fb   : > { %v6246_v37 = vpop.permute.xlu0 %6245  ;;  %v6168_v35 = vpop.permute.xlu1 %6167 }
 0x7fc   : > { %6275 = vst.msk [vmem:[#allocation4 + $0x2d0] sm:$0xff] %vm6264_vm14, %v6246_v37  ;;  %v7795_v37 = vld [vmem:[%s15004_s28 + $0x8] sm:$0xff] }
 0x7fd   : > { %6196 = vst.msk [vmem:[#allocation4 + $0x318] sm:$0xff] %vm6184_vm12, %v6168_v35  ;;  %vm6597_vm12 = vcmask 1044352   ;;  %v10549_v35 = vpack.c.bf16 %v7795_v37, %v7794_v50 }
 0x7ff   : > { %v6326_v31 = vpop.permute.xlu0 %6325  ;;  %v6641_v38 = vld [vmem:[#allocation4 + $0x240] sm:$0xff] }
 0x800   : > { %6355 = vst.msk [vmem:[#allocation4 + $0x2d0] sm:$0xff] %vm6344_vm15, %v6326_v31  ;;  %6820 = vmatmul.mubr.f32.gmra.mrb[142].mxu1 %v6641_v38 }
 0x801   : > { %8899 = vmatprep.mubr.msk.f32.mxu1 %vm977_vm5, %v6644_v61 }
 0x803   : > { %v6484_v43 = vpop.permute.xlu1 %6483  ;;  %v6406_v58 = vpop.permute.xlu0 %6405 }
 0x804   : > { %6514 = vst.msk [vmem:[#allocation4 + $0x288] sm:$0xff] %vm6504_vm3, %v6484_v43 }
 0x805   : > { %6435 = vst.msk [vmem:[#allocation4 + $0x2d0] sm:$0xff] %vm6424_vm0, %v6406_v58 }
 0x807   : > { %v6564_v20 = vpop.permute.xlu1 %6563  ;;  %v6090_v62 = vpop.permute.xlu0 %6089 }
 0x808   : > { %6594 = vst.msk [vmem:[#allocation4 + $0x288] sm:$0xff] %vm6584_vm7, %v6564_v20 }
 0x809   : > { %6118 = vst.msk [vmem:[#allocation4 + $0x360] sm:$0xf] %vm6117_vm2, %v6090_v62 }
 0x80b   : > { %v6248_v12 = vpop.permute.xlu1 %6247  ;;  %v6170_v13 = vpop.permute.xlu0 %6169 }
 0x80c   : > { %6276 = vst.msk [vmem:[#allocation4 + $0x318] sm:$0xff] %vm6264_vm14, %v6248_v12  ;;  %vm8069_vm14 = vcmask 257024  }
 0x80d   : > { %6198 = vst.msk [vmem:[#allocation4 + $0x360] sm:$0xf] %vm6197_vm4, %v6170_v13 }
 0x80f   : > { %v6328_v40 = vpop.permute.xlu1 %6327  ;;  %v6486_v16 = vpop.permute.xlu0 %6485  ;;  %v6643_v30 = vld [vmem:[#allocation4 + $0x288] sm:$0xff] }
 0x810   : > { %6356 = vst.msk [vmem:[#allocation4 + $0x318] sm:$0xff] %vm6344_vm15, %v6328_v40  ;;  %6825 = vmatmul.mubr.f32.gmra.mrb[144].mxu1 %v6643_v30 }
 0x811   : > { %6515 = vst.msk [vmem:[#allocation4 + $0x2d0] sm:$0xff] %vm6504_vm3, %v6486_v16  ;;  %8900 = vmatprep.mubr.msk.f32.mxu1 %vm977_vm5, %v6646_v52 }
 0x813   : > { %v6566_v21 = vpop.permute.xlu0 %6565  ;;  %v6408_v2 = vpop.permute.xlu1 %6407 }
 0x814   : > { %6595 = vst.msk [vmem:[#allocation4 + $0x2d0] sm:$0xff] %vm6584_vm7, %v6566_v21 }
 0x815   : > { %6436 = vst.msk [vmem:[#allocation4 + $0x318] sm:$0xff] %vm6424_vm0, %v6408_v2 }
 0x817   : > { %v6250_v49 = vpop.permute.xlu0 %6249  ;;  %v6488_v60 = vpop.permute.xlu1 %6487 }
 0x818   : > { %6278 = vst.msk [vmem:[#allocation4 + $0x360] sm:$0xf] %vm6277_vm6, %v6250_v49 }
 0x819   : > { %6516 = vst.msk [vmem:[#allocation4 + $0x318] sm:$0xff] %vm6504_vm3, %v6488_v60  ;;  %v7796_v60 = vld [vmem:[%s15004_s28 + $0x10] sm:$0xff] }
 0x81b   : > { %v6330_v63 = vpop.permute.xlu0 %6329  ;;  %v6645_v8 = vld [vmem:[#allocation4 + $0x2d0] sm:$0xff]  ;;  %v6568_v19 = vpop.permute.xlu1 %6567 }
 0x81c   : > { %6358 = vst.msk [vmem:[#allocation4 + $0x360] sm:$0xf] %vm6357_vm9, %v6330_v63  ;;  %6830 = vmatmul.mubr.f32.gmra.mrb[146].mxu1 %v6645_v8  ;;  %v7797_v63 = vld [vmem:[%s15004_s28 + $0x18] sm:$0xff] }
 0x81d   : > { %6596 = vst.msk [vmem:[#allocation4 + $0x318] sm:$0xff] %vm6584_vm7, %v6568_v19  ;;  %8901 = vmatprep.mubr.msk.f32.mxu1 %vm977_vm5, %v6648_v25  ;;  %v10552_v8 = vpack.c.bf16 %v7797_v63, %v7796_v60 }
 0x81f   : > { %v6490_v54 = vpop.permute.xlu0 %6489  ;;  %v6410_v4 = vpop.permute.xlu1 %6409 }
 0x820   : > { %6438 = vst.msk [vmem:[#allocation4 + $0x360] sm:$0xf] %vm6437_vm10, %v6410_v4 }
 0x821   : > { %6518 = vst.msk [vmem:[#allocation4 + $0x360] sm:$0xf] %vm6517_vm11, %v6490_v54 }
 0x823   : > { %v6570_v26 = vpop.permute.xlu1 %6569 }
 0x824   : > { %v6647_v28 = vld [vmem:[#allocation4 + $0x318] sm:$0xff]  ;;  %6598 = vst.msk [vmem:[#allocation4 + $0x360] sm:$0xf] %vm6597_vm12, %v6570_v26 }
 0x825   : > { %6835 = vmatmul.mubr.f32.gmra.mrb[148].mxu1 %v6647_v28 }
 0x826   : > { %8902 = vmatprep.mubr.msk.f32.mxu1 %vm977_vm5, %v6650_v24 }
 0x82b   : > { %v6649_v15 = vld [vmem:[#allocation4 + $0x360] sm:$0xf] }
 0x82c   : > { %6840 = vmatmul.mubr.f32.gmra.mrb[150].mxu1 %v6649_v15 }
 0x82d   : > { %10016 = vmatprep.mubr.msk.f32.mxu1 %vm11022_vm1, %v13843_v14 }
 0x852   : > { %v6781_v1 = vpop.f32.mrb[156].mxu0 }
 0x853   : > { %v6782_v11 = vadd.f32 %v14062_v33, %v6781_v1  ;;  %v6783_v47 = vpop.f32.mrb[157].mxu0 }
 0x855   : > { %v6845_v17 = vmax.f32 %v6782_v11, 0.0 }
 0x857   : > { %v14066_v41 = vmul.f32 %v6845_v17, %v14981_v44 }
 0x859   : > { %10017 = vmatmul.mubr.msk.f32.vlgmr.msra.gmra.mrb[152].mxu1 %vm6882_vm13, %v14066_v41  ;;  %10064 = vmatmul.mubr.msk.f32.vlgmr.msra.gmra.mrb[186].mxu0 %vm6882_vm13, %v14066_v41 }
 0x85a   : > { %10019 = vmatprep.mubr.msk.f32.mxu1 %vm11022_vm1, %v13843_v14  ;;  %10066 = vmatprep.mubr.msk.f32.mxu0 %vm11022_vm1, %v13843_v14 }
 0x85b   : > { %10550 = vmatpush3.bf16.msra.mxu1 %v10549_v35  ;;  %v14124_v35 = vld [vmem:[%s15005_s5] ss:$0 sm:$0xff]  ;;  %s936_s5 = sand.u32 1, %s10974_s16  }
 0x85c   : > { %10551 = vmatprep.subr.bf16.mxu1 %v14904_v48  ;;  %s8713_s1 = scalar_lea.sflag [#allocation6], %s936_s5 }
 0x85f   : > { %10553 = vmatpush3.bf16.msra.mxu1 %v10552_v8 }
 0x860   : > { %10560 = vmatprep.subr.bf16.mxu1 %v14904_v48 }
 0x862   : > { %v6786_v31 = vpop.f32.mrb[158].mxu0 }
 0x863   : > { %v6787_v38 = vadd.f32 %v14062_v33, %v6786_v31  ;;  %v6788_v61 = vpop.f32.mrb[159].mxu0 }
 0x865   : > { %v6846_v43 = vmax.f32 %v6787_v38, 0.0 }
 0x866   : > { %v14080_v58 = vpop.f32.mrb[160].mxu0 }
 0x867   : > { %v14083_v20 = vmul.f32 %v6846_v43, %v14982_v22  ;;  %v9971_v62 = vpop.f32.mrb[161].mxu0 }
 0x869   : > { %10020 = vmatmul.mubr.msk.f32.gmra.mrb[154].mxu1 %vm6882_vm13, %v14083_v20  ;;  %10067 = vmatmul.mubr.msk.f32.gmra.mrb[188].mxu0 %vm6882_vm13, %v14083_v20 }
 0x86a   : > { %v14089_v12 = vpop.f32.mrb[162].mxu0  ;;  %10022 = vmatprep.mubr.msk.f32.mxu1 %vm11022_vm1, %v13843_v14  ;;  %10069 = vmatprep.mubr.msk.f32.mxu0 %vm11022_vm1, %v13843_v14 }
 0x86b   : > { %v9974_v13 = vpop.f32.mrb[163].mxu0 }
 0x86e   : > { %v14095_v40 = vpop.f32.mrb[164].mxu0 }
 0x86f   : > { %v9977_v16 = vpop.f32.mrb[165].mxu0 }
 0x872   : > { %v6791_v30 = vpop.f32.mrb[130].mxu1  ;;  %v14097_v52 = vpop.f32.mrb[166].mxu0 }
 0x873   : > { %v6792_v21 = vadd.f32 %v14062_v33, %v6791_v30  ;;  %v6793_v2 = vpop.f32.mrb[131].mxu1  ;;  %v9980_v49 = vpop.f32.mrb[167].mxu0 }
 0x875   : > { %v6847_v19 = vmax.f32 %v6792_v21, 0.0 }
 0x876   : > { %v14102_v25 = vpop.f32.mrb[168].mxu0 }
 0x877   : > { %v14105_v54 = vmul.f32 %v6847_v19, %v14983_v36  ;;  %v9983_v4 = vpop.f32.mrb[169].mxu0 }
 0x879   : > { %10023 = vmatmul.mubr.msk.f32.gmra.mrb[156].mxu1 %vm6882_vm13, %v14105_v54  ;;  %10070 = vmatmul.mubr.msk.f32.gmra.mrb[190].mxu0 %vm6882_vm13, %v14105_v54 }
 0x87a   : > { %v14112_v24 = vpop.f32.mrb[170].mxu0  ;;  %10025 = vmatprep.mubr.msk.f32.mxu1 %vm11022_vm1, %v13843_v14  ;;  %10072 = vmatprep.mubr.msk.f32.mxu0 %vm11022_vm1, %v13843_v14 }
 0x87b   : > { %v9986_v26 = vpop.f32.mrb[171].mxu0 }
 0x87e   : > { %v14118_v28 = vpop.f32.mrb[172].mxu0 }
 0x87f   : > { %v9989_v15 = vpop.f32.mrb[173].mxu0 }
 0x882   : > { %v6796_v1 = vpop.f32.mrb[132].mxu1  ;;  %v14120_v11 = vpop.f32.mrb[174].mxu0 }
 0x883   : > { %v6797_v47 = vadd.f32 %v14062_v33, %v6796_v1  ;;  %v6798_v17 = vpop.f32.mrb[133].mxu1  ;;  %v9992_v50 = vpop.f32.mrb[175].mxu0 }
 0x885   : > { %v6848_v37 = vmax.f32 %v6797_v47, 0.0 }
 0x886   : > { %v7028_v31 = vpop.f32.mrb[176].mxu0 }
 0x887   : > { %v14127_v38 = vmul.f32 %v6848_v37, %v14984_v45  ;;  %v14130_v61 = vadd.f32 %v14124_v35, %v7028_v31  ;;  %v9995_v43 = vpop.f32.mrb[177].mxu0 }
 0x889   : > { %10026 = vmatmul.mubr.msk.f32.gmra.mrb[158].mxu1 %vm6882_vm13, %v14127_v38  ;;  %10073 = vmatmul.mubr.msk.f32.gmra.mrb[192].mxu0 %vm6882_vm13, %v14127_v38 }
 0x88a   : > { %v14136_v62 = vpop.f32.mrb[178].mxu0  ;;  %10028 = vmatprep.mubr.msk.f32.mxu1 %vm11022_vm1, %v13843_v14  ;;  %10075 = vmatprep.mubr.msk.f32.mxu0 %vm11022_vm1, %v13843_v14 }
 0x88b   : > { %v9998_v13 = vpop.f32.mrb[179].mxu0 }
 0x88e   : > { %v7038_v16 = vpop.f32.mrb[180].mxu0 }
 0x88f   : > { %v14143_v30 = vadd.f32 %v14124_v35, %v7038_v16  ;;  %v10001_v21 = vpop.f32.mrb[181].mxu0 }
 0x892   : > { %v6801_v2 = vpop.f32.mrb[134].mxu1  ;;  %v14145_v49 = vpop.f32.mrb[182].mxu0 }
 0x893   : > { %v6802_v60 = vadd.f32 %v14062_v33, %v6801_v2  ;;  %v6803_v63 = vpop.f32.mrb[135].mxu1  ;;  %v10004_v8 = vpop.f32.mrb[183].mxu0 }
 0x895   : > { %v6849_v19 = vmax.f32 %v6802_v60, 0.0 }
 0x896   : > { %v7048_v4 = vpop.f32.mrb[184].mxu0 }
 0x897   : > { %v14149_v26 = vmul.f32 %v6849_v19, %v14985_v23  ;;  %v14152_v15 = vadd.f32 %v14124_v35, %v7048_v4  ;;  %v10007_v1 = vpop.f32.mrb[185].mxu0 }
 0x899   : > { %10029 = vmatmul.mubr.msk.f32.gmra.mrb[160].mxu1 %vm6882_vm13, %v14149_v26  ;;  %10076 = vmatmul.mubr.msk.f32.gmra.mrb[194].mxu0 %vm6882_vm13, %v14149_v26 }
 0x89a   : > { %10031 = vmatprep.mubr.msk.f32.mxu1 %vm11022_vm1, %v13843_v14  ;;  %10078 = vmatprep.mubr.msk.f32.mxu0 %vm11022_vm1, %v13843_v14 }
 0x8a2   : > { %v6806_v47 = vpop.f32.mrb[136].mxu1 }
 0x8a3   : > { %v6807_v17 = vadd.f32 %v14062_v33, %v6806_v47  ;;  %v6808_v50 = vpop.f32.mrb[137].mxu1 }
 0x8a5   : > { %v6850_v37 = vmax.f32 %v6807_v17, 0.0 }
 0x8a7   : > { %v14164_v31 = vmul.f32 %v6850_v37, %v14986_v10 }
 0x8a9   : > { %15006 = vst [vmem:[#allocation48_spill] sm:$0xff] %v14164_v31  ;;  %10032 = vmatmul.mubr.msk.f32.gmra.mrb[162].mxu1 %vm6882_vm13, %v14164_v31  ;;  %10079 = vmatmul.mubr.msk.f32.gmra.mrb[196].mxu0 %vm6882_vm13, %v14164_v31 }
 0x8aa   : > { %10034 = vmatprep.mubr.msk.f32.mxu1 %vm11022_vm1, %v13843_v14  ;;  %10081 = vmatprep.mubr.msk.f32.mxu0 %vm11022_vm1, %v13843_v14 }
 0x8b3   : > { %v6811_v43 = vpop.f32.mrb[138].mxu1 }
 0x8b4   : > { %v6812_v13 = vadd.f32 %v14062_v33, %v6811_v43  ;;  %v6813_v16 = vpop.f32.mrb[139].mxu1 }
 0x8b6   : > { %v6851_v21 = vmax.f32 %v6812_v13, 0.0 }
 0x8b8   : > { %v14176_v2 = vmul.f32 %v6851_v21, %v14987_v27 }
 0x8ba   : > { %15007 = vst [vmem:[#allocation53_spill] sm:$0xff] %v14176_v2  ;;  %10035 = vmatmul.mubr.msk.f32.gmra.mrb[164].mxu1 %vm6882_vm13, %v14176_v2  ;;  %10082 = vmatmul.mubr.msk.f32.gmra.mrb[198].mxu0 %vm6882_vm13, %v14176_v2 }
 0x8bb   : > { %10037 = vmatprep.mubr.msk.f32.mxu1 %vm11022_vm1, %v13843_v14  ;;  %10084 = vmatprep.mubr.msk.f32.mxu0 %vm11022_vm1, %v13843_v14 }
 0x8c3   : > { %v6816_v60 = vpop.f32.mrb[140].mxu1 }
 0x8c4   : > { %v6817_v63 = vadd.f32 %v14062_v33, %v6816_v60  ;;  %v6818_v8 = vpop.f32.mrb[141].mxu1 }
 0x8c6   : > { %v6852_v19 = vmax.f32 %v6817_v63, 0.0 }
 0x8c8   : > { %v14188_v4 = vmul.f32 %v6852_v19, %v14988_v6 }
 0x8ca   : > { %15008 = vst [vmem:[#allocation52_spill] sm:$0xff] %v14188_v4  ;;  %10038 = vmatmul.mubr.msk.f32.gmra.mrb[166].mxu1 %vm6882_vm13, %v14188_v4  ;;  %10085 = vmatmul.mubr.msk.f32.gmra.mrb[200].mxu0 %vm6882_vm13, %v14188_v4 }
 0x8cb   : > { %10040 = vmatprep.mubr.msk.f32.mxu1 %vm11022_vm1, %v13843_v14  ;;  %10087 = vmatprep.mubr.msk.f32.mxu0 %vm11022_vm1, %v13843_v14 }
 0x8d3   : > { %v6821_v1 = vpop.f32.mrb[142].mxu1 }
 0x8d4   : > { %v6822_v47 = vadd.f32 %v14062_v33, %v6821_v1  ;;  %v6823_v17 = vpop.f32.mrb[143].mxu1 }
 0x8d6   : > { %v6853_v50 = vmax.f32 %v6822_v47, 0.0 }
 0x8d8   : > { %v14200_v37 = vmul.f32 %v6853_v50, %v14989_v55 }
 0x8da   : > { %15009 = vst [vmem:[#allocation55_spill] sm:$0xff] %v14200_v37  ;;  %10041 = vmatmul.mubr.msk.f32.gmra.mrb[168].mxu1 %vm6882_vm13, %v14200_v37  ;;  %10088 = vmatmul.mubr.msk.f32.gmra.mrb[202].mxu0 %vm6882_vm13, %v14200_v37 }
 0x8db   : > { %10043 = vmatprep.mubr.msk.f32.mxu1 %vm11022_vm1, %v13843_v14  ;;  %10090 = vmatprep.mubr.msk.f32.mxu0 %vm11022_vm1, %v13843_v14 }
 0x8e3   : > { %v6826_v43 = vpop.f32.mrb[144].mxu1 }
 0x8e4   : > { %v6827_v13 = vadd.f32 %v14062_v33, %v6826_v43  ;;  %v6828_v16 = vpop.f32.mrb[145].mxu1 }
 0x8e6   : > { %v6854_v21 = vmax.f32 %v6827_v13, 0.0 }
 0x8e8   : > { %v14212_v60 = vmul.f32 %v6854_v21, %v14990_v46 }
 0x8ea   : > { %15010 = vst [vmem:[#allocation54_spill] sm:$0xff] %v14212_v60  ;;  %10044 = vmatmul.mubr.msk.f32.gmra.mrb[170].mxu1 %vm6882_vm13, %v14212_v60  ;;  %10091 = vmatmul.mubr.msk.f32.gmra.mrb[204].mxu0 %vm6882_vm13, %v14212_v60 }
 0x8eb   : > { %10046 = vmatprep.mubr.msk.f32.mxu1 %vm11022_vm1, %v13843_v14  ;;  %10093 = vmatprep.mubr.msk.f32.mxu0 %vm11022_vm1, %v13843_v14 }
 0x8ef   : > { %v6831_v63 = vpop.f32.mrb[146].mxu1 }
 0x8f0   : > { %v6832_v8 = vadd.f32 %v14062_v33, %v6831_v63  ;;  %v6833_v19 = vpop.f32.mrb[147].mxu1 }
 0x8f2   : > { %v6855_v1 = vmax.f32 %v6832_v8, 0.0 }
 0x8f4   : > { %v14224_v47 = vmul.f32 %v6855_v1, %v14991_v7 }
 0x8f6   : > { %15011 = vst [vmem:[#allocation57_spill] sm:$0xff] %v14224_v47  ;;  %10047 = vmatmul.mubr.msk.f32.gmra.mrb[172].mxu1 %vm6882_vm13, %v14224_v47  ;;  %10094 = vmatmul.mubr.msk.f32.gmra.mrb[206].mxu0 %vm6882_vm13, %v14224_v47 }
 0x8f7   : > { %10049 = vmatprep.mubr.msk.f32.mxu1 %vm11022_vm1, %v13843_v14  ;;  %10096 = vmatprep.mubr.msk.f32.mxu0 %vm11022_vm1, %v13843_v14 }
 0x8f8   : > { %v6836_v17 = vpop.f32.mrb[148].mxu1 }
 0x8f9   : > { %v6837_v50 = vadd.f32 %v14062_v33, %v6836_v17  ;;  %v6838_v43 = vpop.f32.mrb[149].mxu1 }
 0x8fb   : > { %v6856_v13 = vmax.f32 %v6837_v50, 0.0 }
 0x8fd   : > { %v14236_v16 = vmul.f32 %v6856_v13, %v14992_v51  ;;  %v14297_v13 = vld [vmem:[%s15014_s9] ss:$0 sm:$0xff]  ;;  %s9040_s9 = sshll.u32 %s11219_s0, 4  ;;  %s11037_s0 = smov [#allocation5]  }
 0x8ff   : > { %15012 = vst [vmem:[#allocation56_spill] sm:$0xff] %v14236_v16  ;;  %10050 = vmatmul.mubr.msk.f32.gmra.mrb[174].mxu1 %vm6882_vm13, %v14236_v16  ;;  %10097 = vmatmul.mubr.msk.f32.gmra.mrb[208].mxu0 %vm6882_vm13, %v14236_v16  ;;  %v6841_v21 = vpop.f32.mrb[150].mxu1 }
 0x900   : > { %10052 = vmatprep.mubr.msk.f32.mxu1 %vm11022_vm1, %v13843_v14  ;;  %10099 = vmatprep.mubr.msk.f32.mxu0 %vm11022_vm1, %v13843_v14  ;;  %v6842_v63 = vadd.f32 %v14062_v33, %v6841_v21  ;;  %v6843_v8 = vpop.f32.mrb[151].mxu1 }
 0x902   : > { %v6857_v19 = vmax.f32 %v6842_v63, 0.0 }
 0x904   : > { %v14248_v1 = vmul.f32 %v6857_v19, %v14993_v29 }
 0x906   : > { %15013 = vst [vmem:[#allocation59_spill] sm:$0xff] %v14248_v1  ;;  %10053 = vmatmul.mubr.msk.f32.gmra.mrb[176].mxu1 %vm6882_vm13, %v14248_v1  ;;  %10100 = vmatmul.mubr.msk.f32.gmra.mrb[210].mxu0 %vm6882_vm13, %v14248_v1 }
 0x907   : > { %10110 = vmatprep.mubr.msk.f32.mxu1 %vm11022_vm1, %v13843_v14  ;;  %10157 = vmatprep.mubr.msk.f32.mxu0 %vm11022_vm1, %v13843_v14 }
 0x90a   : > { %10111 = vmatmul.mubr.msk.f32.vlgmr.msra.gmra.mrb[178].mxu1 %vm6882_vm13, %v13840_v9 }
 0x90b   : > { %10113 = vmatprep.mubr.msk.f32.mxu1 %vm11022_vm1, %v13843_v14 }
 0x90e   : > { %10114 = vmatmul.mubr.msk.f32.gmra.mrb[180].mxu1 %vm6882_vm13, %v13857_v39 }
 0x90f   : > { %10116 = vmatprep.mubr.msk.f32.mxu1 %vm11022_vm1, %v13843_v14 }
 0x912   : > { %10117 = vmatmul.mubr.msk.f32.gmra.mrb[182].mxu1 %vm6882_vm13, %v13869_v42 }
 0x913   : > { %10119 = vmatprep.mubr.msk.f32.mxu1 %vm11022_vm1, %v13843_v14 }
 0x916   : > { %10120 = vmatmul.mubr.msk.f32.gmra.mrb[184].mxu1 %vm6882_vm13, %v13882_v5 }
 0x917   : > { %10122 = vmatprep.mubr.msk.f32.mxu1 %vm11022_vm1, %v13843_v14 }
 0x91a   : > { %10123 = vmatmul.mubr.msk.f32.gmra.mrb[186].mxu1 %vm6882_vm13, %v13894_v0 }
 0x91b   : > { %10125 = vmatprep.mubr.msk.f32.mxu1 %vm11022_vm1, %v13843_v14 }
 0x91e   : > { %10126 = vmatmul.mubr.msk.f32.gmra.mrb[188].mxu1 %vm6882_vm13, %v13908_v53 }
 0x91f   : > { %10128 = vmatprep.mubr.msk.f32.mxu1 %vm11022_vm1, %v13843_v14 }
 0x922   : > { %10129 = vmatmul.mubr.msk.f32.gmra.mrb[190].mxu1 %vm6882_vm13, %v13920_v57 }
 0x923   : > { %10131 = vmatprep.mubr.msk.f32.mxu1 %vm11022_vm1, %v13843_v14 }
 0x926   : > { %10132 = vmatmul.mubr.msk.f32.gmra.mrb[192].mxu1 %vm6882_vm13, %v13932_v56 }
 0x927   : > { %10134 = vmatprep.mubr.msk.f32.mxu1 %vm11022_vm1, %v13843_v14 }
 0x92a   : > { %10135 = vmatmul.mubr.msk.f32.gmra.mrb[194].mxu1 %vm6882_vm13, %v13942_v59 }
 0x92b   : > { %10137 = vmatprep.mubr.msk.f32.mxu1 %vm11022_vm1, %v13843_v14 }
 0x92c   : > { %v7246_v33 = vpop.f32.mrb[152].mxu1  ;;  %v14294_v17 = vpop.f32.mrb[186].mxu0 }
 0x92d   : > { %v10018_v50 = vpop.f32.mrb[153].mxu1  ;;  %v10065_v43 = vpop.f32.mrb[187].mxu0  ;;  %v7247_v21 = vadd.f32 %v14297_v13, %v7246_v33 }
 0x92e   : > { %10138 = vmatmul.mubr.msk.f32.gmra.mrb[196].mxu1 %vm6882_vm13, %v13957_v34 }
 0x92f   : > { %10140 = vmatprep.mubr.msk.f32.mxu1 %vm11022_vm1, %v13843_v14  ;;  %v8944_v63 = vmul.f32 -1.442695, %v7247_v21 }
 0x931   : > { %10689 = vpow2.f32 %v8944_v63 }
 0x932   : > { %10141 = vmatmul.mubr.msk.f32.gmra.mrb[198].mxu1 %vm6882_vm13, %v13969_v3 }
 0x933   : > { %10143 = vmatprep.mubr.msk.f32.mxu1 %vm11022_vm1, %v13843_v14 }
 0x936   : > { %10144 = vmatmul.mubr.msk.f32.gmra.mrb[200].mxu1 %vm6882_vm13, %v13981_v32 }
 0x937   : > { %10146 = vmatprep.mubr.msk.f32.mxu1 %vm11022_vm1, %v13843_v14 }
 0x93a   : > { %10147 = vmatmul.mubr.msk.f32.gmra.mrb[202].mxu1 %vm6882_vm13, %v13991_v18 }
 0x93b   : > { %10204 = vmatprep.mubr.msk.f32.mxu1 %vm11022_vm1, %v13843_v14  ;;  %v10690_v29 = vpop.eup %10689 }
 0x93c   : > { %v7251_v8 = vpop.f32.mrb[154].mxu1  ;;  %v14316_v19 = vpop.f32.mrb[188].mxu0  ;;  %v7349_v51 = vadd.f32 1.0, %v10690_v29 }
 0x93d   : > { %v7252_v33 = vadd.f32 %v14297_v13, %v7251_v8  ;;  %v10021_v50 = vpop.f32.mrb[155].mxu1  ;;  %v10068_v43 = vpop.f32.mrb[189].mxu0 }
 0x93e   : > { %v7404_v50 = vpop.permute.xlu0 %7403 }
 0x93f   : > { %v8945_v21 = vmul.f32 -1.442695, %v7252_v33 }
 0x941   : > { %10691 = vpow2.f32 %v8945_v21  ;;  %v7409_v21 = vpop.permute.xlu1 %7408 }
 0x942   : > { %10693 = vrcp.f32 %v7349_v51 }
 0x94b   : > { %v10692_v7 = vpop.eup %10691 }
 0x94c   : > { %v7350_v63 = vadd.f32 1.0, %v10692_v7  ;;  %v7256_v46 = vpop.f32.mrb[156].mxu1  ;;  %v14319_v55 = vpop.f32.mrb[190].mxu0 }
 0x94d   : > { %v7257_v6 = vadd.f32 %v14297_v13, %v7256_v46  ;;  %v10024_v14 = vpop.f32.mrb[157].mxu1  ;;  %v10071_v27 = vpop.f32.mrb[191].mxu0 }
 0x94e   : > { %10695 = vrcp.f32 %v7350_v63  ;;  %v10694_v8 = vpop.eup %10693 }
 0x94f   : > { %v8946_v10 = vmul.f32 -1.442695, %v7257_v6  ;;  %v7466_v43 = vmul.f32 %v10694_v8, %v7404_v50  ;;  %v7414_v8 = vpop.permute.xlu0 %7413 }
 0x951   : > { %10697 = vpow2.f32 %v8946_v10  ;;  %v7479_v51 = vsel %vm977_vm5, %v7466_v43, 0.0 }
 0x958   : > { %v10696_v33 = vpop.eup %10695 }
 0x959   : > { %v7467_v23 = vmul.f32 %v10696_v33, %v7409_v21 }
 0x95b   : > { %v10698_v29 = vpop.eup %10697  ;;  %v7480_v7 = vsel %vm977_vm5, %v7467_v23, 0.0 }
 0x95c   : > { %v7481_v45 = vadd.f32 %v7480_v7, %v7479_v51  ;;  %v7351_v36 = vadd.f32 1.0, %v10698_v29  ;;  %v7261_v22 = vpop.f32.mrb[158].mxu1  ;;  %v14324_v46 = vpop.f32.mrb[192].mxu0 }
 0x95d   : > { %v7262_v27 = vadd.f32 %v14297_v13, %v7261_v22  ;;  %v10027_v6 = vpop.f32.mrb[159].mxu1  ;;  %v10074_v10 = vpop.f32.mrb[193].mxu0 }
 0x95e   : > { %10699 = vrcp.f32 %v7351_v36 }
 0x95f   : > { %v8947_v63 = vmul.f32 -1.442695, %v7262_v27  ;;  %v7419_v27 = vpop.permute.xlu1 %7418 }
 0x961   : > { %10701 = vpow2.f32 %v8947_v63 }
 0x968   : > { %v10700_v14 = vpop.eup %10699 }
 0x969   : > { %v7468_v50 = vmul.f32 %v10700_v14, %v7414_v8 }
 0x96b   : > { %v10702_v33 = vpop.eup %10701  ;;  %v7482_v43 = vsel %vm977_vm5, %v7468_v50, 0.0 }
 0x96c   : > { %v7483_v21 = vadd.f32 %v7482_v43, %v7481_v45  ;;  %v7352_v23 = vadd.f32 1.0, %v10702_v33  ;;  %v7266_v51 = vpop.f32.mrb[160].mxu1  ;;  %v14328_v29 = vpop.f32.mrb[194].mxu0 }
 0x96d   : > { %v7267_v7 = vadd.f32 %v14297_v13, %v7266_v51  ;;  %v10030_v44 = vpop.f32.mrb[161].mxu1  ;;  %v10077_v22 = vpop.f32.mrb[195].mxu0 }
 0x96e   : > { %10703 = vrcp.f32 %v7352_v23 }
 0x96f   : > { %v8948_v6 = vmul.f32 -1.442695, %v7267_v7  ;;  %v7424_v7 = vpop.permute.xlu1 %7423 }
 0x971   : > { %10705 = vpow2.f32 %v8948_v6 }
 0x978   : > { %v10704_v36 = vpop.eup %10703 }
 0x979   : > { %v7469_v10 = vmul.f32 %v10704_v36, %v7419_v27 }
 0x97b   : > { %v10706_v63 = vpop.eup %10705  ;;  %v7484_v14 = vsel %vm977_vm5, %v7469_v10, 0.0 }
 0x97c   : > { %v7485_v8 = vadd.f32 %v7484_v14, %v7483_v21  ;;  %v7353_v50 = vadd.f32 1.0, %v10706_v63  ;;  %v7271_v45 = vpop.f32.mrb[162].mxu1  ;;  %v14332_v33 = vpop.f32.mrb[196].mxu0 }
 0x97d   : > { %v7272_v43 = vadd.f32 %v14297_v13, %v7271_v45  ;;  %v10033_v1 = vpop.f32.mrb[163].mxu1  ;;  %v10080_v51 = vpop.f32.mrb[197].mxu0 }
 0x97e   : > { %10707 = vrcp.f32 %v7353_v50 }
 0x97f   : > { %v8949_v44 = vmul.f32 -1.442695, %v7272_v43  ;;  %v7429_v43 = vpop.permute.xlu0 %7428 }
 0x981   : > { %10709 = vpow2.f32 %v8949_v44 }
 0x988   : > { %v10708_v23 = vpop.eup %10707 }
 0x989   : > { %v7470_v22 = vmul.f32 %v10708_v23, %v7424_v7 }
 0x98b   : > { %v10710_v6 = vpop.eup %10709  ;;  %v7486_v36 = vsel %vm977_vm5, %v7470_v22, 0.0 }
 0x98c   : > { %v7487_v27 = vadd.f32 %v7486_v36, %v7485_v8  ;;  %v7354_v10 = vadd.f32 1.0, %v10710_v6 }
 0x98d   : > { %v7276_v21 = vpop.f32.mrb[164].mxu1  ;;  %v14336_v63 = vpop.f32.mrb[198].mxu0 }
 0x98e   : > { %v7277_v14 = vadd.f32 %v14297_v13, %v7276_v21  ;;  %v10036_v16 = vpop.f32.mrb[165].mxu1  ;;  %v10083_v45 = vpop.f32.mrb[199].mxu0  ;;  %10711 = vrcp.f32 %v7354_v10 }
 0x990   : > { %v8950_v1 = vmul.f32 -1.442695, %v7277_v14  ;;  %v7434_v14 = vpop.permute.xlu1 %7433 }
 0x992   : > { %10713 = vpow2.f32 %v8950_v1 }
 0x998   : > { %v10712_v50 = vpop.eup %10711 }
 0x999   : > { %v7471_v51 = vmul.f32 %v10712_v50, %v7429_v43 }
 0x99b   : > { %v7488_v23 = vsel %vm977_vm5, %v7471_v51, 0.0 }
 0x99c   : > { %v10714_v44 = vpop.eup %10713  ;;  %v7489_v6 = vadd.f32 %v7488_v23, %v7487_v27 }
 0x99d   : > { %v7355_v7 = vadd.f32 1.0, %v10714_v44  ;;  %v7281_v22 = vpop.f32.mrb[166].mxu1  ;;  %v14340_v8 = vpop.f32.mrb[200].mxu0 }
 0x99e   : > { %v7282_v36 = vadd.f32 %v14297_v13, %v7281_v22  ;;  %v10039_v18 = vpop.f32.mrb[167].mxu1  ;;  %v10086_v21 = vpop.f32.mrb[201].mxu0 }
 0x99f   : > { %10715 = vrcp.f32 %v7355_v7 }
 0x9a0   : > { %v8951_v16 = vmul.f32 -1.442695, %v7282_v36  ;;  %v7439_v36 = vpop.permute.xlu1 %7438 }
 0x9a2   : > { %10717 = vpow2.f32 %v8951_v16 }
 0x9a9   : > { %v10716_v10 = vpop.eup %10715 }
 0x9aa   : > { %v7472_v45 = vmul.f32 %v10716_v10, %v7434_v14 }
 0x9ac   : > { %v10718_v1 = vpop.eup %10717  ;;  %v7490_v50 = vsel %vm977_vm5, %v7472_v45, 0.0 }
 0x9ad   : > { %v7356_v43 = vadd.f32 1.0, %v10718_v1  ;;  %v7286_v51 = vpop.f32.mrb[168].mxu1  ;;  %v14344_v44 = vpop.f32.mrb[202].mxu0  ;;  %v7491_v47 = vadd.f32 %v7490_v50, %v7489_v6 }
 0x9ae   : > { %v7287_v27 = vadd.f32 %v14297_v13, %v7286_v51  ;;  %v10042_v23 = vpop.f32.mrb[169].mxu1  ;;  %v10089_v22 = vpop.f32.mrb[203].mxu0 }
 0x9af   : > { %10719 = vrcp.f32 %v7356_v43  ;;  %v7444_v43 = vpop.permute.xlu0 %7443 }
 0x9b0   : > { %v8952_v18 = vmul.f32 -1.442695, %v7287_v27 }
 0x9b2   : > { %10721 = vpow2.f32 %v8952_v18 }
 0x9b9   : > { %v10720_v7 = vpop.eup %10719 }
 0x9ba   : > { %v7473_v21 = vmul.f32 %v10720_v7, %v7439_v36 }
 0x9bc   : > { %v10722_v16 = vpop.eup %10721  ;;  %v7492_v10 = vsel %vm977_vm5, %v7473_v21, 0.0 }
 0x9bd   : > { %v7357_v14 = vadd.f32 1.0, %v10722_v16  ;;  %v7291_v45 = vpop.f32.mrb[170].mxu1  ;;  %v14348_v1 = vpop.f32.mrb[204].mxu0  ;;  %v7493_v32 = vadd.f32 %v7492_v10, %v7491_v47 }
 0x9be   : > { %v7292_v6 = vadd.f32 %v14297_v13, %v7291_v45  ;;  %v10045_v50 = vpop.f32.mrb[171].mxu1  ;;  %v10092_v51 = vpop.f32.mrb[205].mxu0 }
 0x9bf   : > { %10723 = vrcp.f32 %v7357_v14 }
 0x9c0   : > { %v8953_v23 = vmul.f32 -1.442695, %v7292_v6 }
 0x9c2   : > { %10725 = vpow2.f32 %v8953_v23 }
 0x9c9   : > { %v10724_v27 = vpop.eup %10723  ;;  %v7296_v22 = vpop.f32.mrb[172].mxu1 }
 0x9ca   : > { %v14351_v18 = vpop.f32.mrb[206].mxu0  ;;  %v7297_v7 = vadd.f32 %v14297_v13, %v7296_v22  ;;  %v10048_v36 = vpop.f32.mrb[173].mxu1  ;;  %v7474_v16 = vmul.f32 %v10724_v27, %v7444_v43 }
 0x9cb   : > { %v10095_v21 = vpop.f32.mrb[207].mxu0  ;;  %v7449_v27 = vpop.permute.xlu0 %7448 }
 0x9cc   : > { %v10726_v60 = vpop.eup %10725  ;;  %v8954_v3 = vmul.f32 -1.442695, %v7297_v7  ;;  %v7494_v47 = vsel %vm977_vm5, %v7474_v16, 0.0 }
 0x9cd   : > { %v7358_v10 = vadd.f32 1.0, %v10726_v60  ;;  %v7495_v45 = vadd.f32 %v7494_v47, %v7493_v32  ;;  %v14363_v47 = vld [vmem:[%s15015_s18] ss:$0 sm:$0xff]  ;;  %s937_s18 = scalar_lea.vmem [#allocation5], %s936_s5 }
 0x9ce   : > { %10727 = vpow2.f32 %v8954_v3 }
 0x9cf   : > { %10729 = vrcp.f32 %v7358_v10 }
 0x9d2   : > { %v7301_v14 = vpop.f32.mrb[174].mxu1  ;;  %v14355_v6 = vpop.f32.mrb[208].mxu0 }
 0x9d3   : > { %v7302_v50 = vadd.f32 %v14297_v13, %v7301_v14  ;;  %v10051_v51 = vpop.f32.mrb[175].mxu1  ;;  %v10098_v23 = vpop.f32.mrb[209].mxu0 }
 0x9d5   : > { %v8955_v22 = vmul.f32 -1.442695, %v7302_v50 }
 0x9d7   : > { %10731 = vpow2.f32 %v8955_v22 }
 0x9d8   : > { %v10728_v36 = vpop.eup %10727 }
 0x9d9   : > { %v10730_v43 = vpop.eup %10729  ;;  %v7359_v7 = vadd.f32 1.0, %v10728_v36  ;;  %v14358_v21 = vpop.f32.mrb[176].mxu1 }
 0x9da   : > { %v14360_v60 = vpop.f32.mrb[210].mxu0  ;;  %v7475_v3 = vmul.f32 %v10730_v43, %v7449_v27  ;;  %v10054_v32 = vpop.f32.mrb[177].mxu1 }
 0x9db   : > { %10733 = vrcp.f32 %v7359_v7  ;;  %v10101_v16 = vpop.f32.mrb[211].mxu0  ;;  %v7454_v7 = vpop.permute.xlu0 %7453 }
 0x9dc   : > { %v7496_v10 = vsel %vm977_vm5, %v7475_v3, 0.0 }
 0x9dd   : > { %v7497_v14 = vadd.f32 %v7496_v10, %v7495_v45  ;;  %v7871_v51 = vpop.f32.mrb[178].mxu1 }
 0x9de   : > { %v7872_v50 = vadd.f32 %v14363_v47, %v7871_v51  ;;  %v10112_v23 = vpop.f32.mrb[179].mxu1 }
 0x9df   : > { %v7459_v2 = vpop.permute.xlu0 %7458 }
 0x9e0   : > { %v8998_v37 = vmul.f32 -1.442695, %v7872_v50 }
 0x9e1   : > { %v10732_v22 = vpop.eup %10731  ;;  %v7876_v34 = vpop.f32.mrb[180].mxu1 }
 0x9e2   : > { %v7360_v36 = vadd.f32 1.0, %v10732_v22  ;;  %10735 = vpow2.f32 %v8998_v37  ;;  %v7877_v4 = vadd.f32 %v14363_v47, %v7876_v34  ;;  %v10115_v43 = vpop.f32.mrb[181].mxu1 }
 0x9e4   : > { %10737 = vrcp.f32 %v7360_v36  ;;  %v8999_v32 = vmul.f32 -1.442695, %v7877_v4 }
 0x9e5   : > { %v10734_v27 = vpop.eup %10733  ;;  %v7881_v16 = vpop.f32.mrb[182].mxu1 }
 0x9e6   : > { %v7476_v59 = vmul.f32 %v10734_v27, %v7454_v7  ;;  %10739 = vpow2.f32 %v8999_v32  ;;  %v7882_v45 = vadd.f32 %v14363_v47, %v7881_v16  ;;  %v10118_v3 = vpop.f32.mrb[183].mxu1 }
 0x9e8   : > { %v7498_v10 = vsel %vm977_vm5, %v7476_v59, 0.0  ;;  %v9000_v51 = vmul.f32 -1.442695, %v7882_v45 }
 0x9e9   : > { %v7499_v50 = vadd.f32 %v7498_v10, %v7497_v14  ;;  %v7886_v23 = vpop.f32.mrb[184].mxu1 }
 0x9ea   : > { %10741 = vpow2.f32 %v9000_v51  ;;  %v7887_v37 = vadd.f32 %v14363_v47, %v7886_v23  ;;  %v10121_v34 = vpop.f32.mrb[185].mxu1 }
 0x9ec   : > { %v10736_v22 = vpop.eup %10735  ;;  %v9001_v36 = vmul.f32 -1.442695, %v7887_v37 }
 0x9ed   : > { %v7974_v4 = vadd.f32 1.0, %v10736_v22  ;;  %v7891_v31 = vpop.f32.mrb[186].mxu1 }
 0x9ee   : > { %v10738_v43 = vpop.eup %10737  ;;  %10743 = vpow2.f32 %v9001_v36  ;;  %v7892_v27 = vadd.f32 %v14363_v47, %v7891_v31  ;;  %v10124_v7 = vpop.f32.mrb[187].mxu1 }
 0x9ef   : > { %v7477_v32 = vmul.f32 %v10738_v43, %v7459_v2  ;;  %10745 = vrcp.f32 %v7974_v4  ;;  %v14378_v43 = vld [vmem:[%s15016_s2] ss:$0 sm:$0xff]  ;;  %s8725_s2 = sshll.u32 %s937_s18, 4  ;;  %s14716_s2 = int_to_ptr.vmem [resolvable:$true] %s8725_s2 }
 0x9f0   : > { %v10740_v59 = vpop.eup %10739  ;;  %v9002_v16 = vmul.f32 -1.442695, %v7892_v27  ;;  %s10920_s3 = scalar_lea.vmem %s14716_s2, 16 }
 0x9f1   : > { %v7500_v14 = vsel %vm977_vm5, %v7477_v32, 0.0  ;;  %v7975_v45 = vadd.f32 1.0, %v10740_v59  ;;  %v7896_v3 = vpop.f32.mrb[188].mxu1  ;;  %p10921_p11 = scmp.ne.s32.totalorder %s14716_s2, %s10920_s3 }
 0x9f2   : > { %v14373_v10 = vadd.f32 %v7500_v14, %v7499_v50  ;;  %10747 = vpow2.f32 %v9002_v16  ;;  %v7897_v51 = vadd.f32 %v14363_v47, %v7896_v3  ;;  %v10127_v23 = vpop.f32.mrb[189].mxu1 }
 0x9f3   : > { %10749 = vrcp.f32 %v7975_v45  ;;  %p10922_p12 = pnand %p10921_p11, %p11236_p5 }
 0x9f4   : > { %v10742_v37 = vpop.eup %10741  ;;  %v9003_v34 = vmul.f32 -1.442695, %v7897_v51 }
 0x9f5   : > { %v7976_v31 = vadd.f32 1.0, %v10742_v37  ;;  %v7901_v22 = vpop.f32.mrb[190].mxu1  ;;  %p10923_p13 = pneg %p10922_p12 }
 0x9f6   : > { %10751 = vpow2.f32 %v9003_v34  ;;  %v7902_v2 = vadd.f32 %v14363_v47, %v7901_v22  ;;  %v10130_v36 = vpop.f32.mrb[191].mxu1 }
 0x9f7   : > { %10753 = vrcp.f32 %v7976_v31 }
 0x9f8   : > { %v10744_v4 = vpop.eup %10743  ;;  %v9004_v27 = vmul.f32 -1.442695, %v7902_v2 }
 0x9f9   : > { %v10746_v50 = vpop.eup %10745  ;;  %v7977_v7 = vadd.f32 1.0, %v10744_v4  ;;  %v7906_v32 = vpop.f32.mrb[192].mxu1 }
 0x9fa   : > { %10755 = vpow2.f32 %v9004_v27  ;;  %v7907_v59 = vadd.f32 %v14363_v47, %v7906_v32  ;;  %v10133_v16 = vpop.f32.mrb[193].mxu1  ;;  %v8020_v14 = vmul.f32 %v10746_v50, %v14378_v43 }
 0x9fb   : > { %10757 = vrcp.f32 %v7977_v7 }
 0x9fc   : > { %v10748_v45 = vpop.eup %10747  ;;  %v9005_v3 = vmul.f32 -1.442695, %v7907_v59  ;;  %v8033_v51 = vsel %vm6882_vm13, %v8020_v14, 0.0 }
 0x9fd   : > { %v10750_v23 = vpop.eup %10749  ;;  %v7978_v37 = vadd.f32 1.0, %v10748_v45  ;;  %8034 = vadd.xlane.f32.xlu0 %v8033_v51  ;;  %v7911_v34 = vpop.f32.mrb[194].mxu1 }
 0x9fe   : > { %10759 = vpow2.f32 %v9005_v3  ;;  %v7912_v31 = vadd.f32 %v14363_v47, %v7911_v34  ;;  %v10136_v22 = vpop.f32.mrb[195].mxu1  ;;  %v8021_v2 = vmul.f32 %v10750_v23, %v14378_v43 }
 0x9ff   : > { %10761 = vrcp.f32 %v7978_v37 }
 0xa00   : > { %v10752_v36 = vpop.eup %10751  ;;  %v9006_v4 = vmul.f32 -1.442695, %v7912_v31  ;;  %v8036_v27 = vsel %vm6882_vm13, %v8021_v2, 0.0 }
 0xa01   : > { %v10754_v50 = vpop.eup %10753  ;;  %v7979_v7 = vadd.f32 1.0, %v10752_v36  ;;  %8037 = vadd.xlane.f32.xlu1 %v8036_v27  ;;  %v7916_v32 = vpop.f32.mrb[196].mxu1 }
 0xa02   : > { %10763 = vpow2.f32 %v9006_v4  ;;  %v7917_v59 = vadd.f32 %v14363_v47, %v7916_v32  ;;  %v10139_v16 = vpop.f32.mrb[197].mxu1  ;;  %v8022_v14 = vmul.f32 %v10754_v50, %v14378_v43 }
 0xa03   : > { %10765 = vrcp.f32 %v7979_v7 }
 0xa04   : > { %v10756_v45 = vpop.eup %10755  ;;  %v9007_v3 = vmul.f32 -1.442695, %v7917_v59  ;;  %v8039_v51 = vsel %vm6882_vm13, %v8022_v14, 0.0 }
 0xa05   : > { %v10758_v23 = vpop.eup %10757  ;;  %v7980_v37 = vadd.f32 1.0, %v10756_v45  ;;  %8040 = vadd.xlane.f32.xlu1 %v8039_v51  ;;  %v7921_v34 = vpop.f32.mrb[198].mxu1 }
 0xa06   : > { %10767 = vpow2.f32 %v9007_v3  ;;  %v7922_v31 = vadd.f32 %v14363_v47, %v7921_v34  ;;  %v10142_v22 = vpop.f32.mrb[199].mxu1  ;;  %v8023_v2 = vmul.f32 %v10758_v23, %v14378_v43 }
 0xa07   : > { %10769 = vrcp.f32 %v7980_v37 }
 0xa08   : > { %v10760_v36 = vpop.eup %10759  ;;  %v9008_v4 = vmul.f32 -1.442695, %v7922_v31  ;;  %v8042_v27 = vsel %vm6882_vm13, %v8023_v2, 0.0 }
 0xa09   : > { %v10762_v50 = vpop.eup %10761  ;;  %v7981_v7 = vadd.f32 1.0, %v10760_v36  ;;  %8043 = vadd.xlane.f32.xlu0 %v8042_v27  ;;  %v7926_v32 = vpop.f32.mrb[200].mxu1 }
 0xa0a   : > { %10771 = vpow2.f32 %v9008_v4  ;;  %v7927_v59 = vadd.f32 %v14363_v47, %v7926_v32  ;;  %v10145_v16 = vpop.f32.mrb[201].mxu1  ;;  %v8024_v14 = vmul.f32 %v10762_v50, %v14378_v43 }
 0xa0b   : > { %10773 = vrcp.f32 %v7981_v7 }
 0xa0c   : > { %v10764_v45 = vpop.eup %10763  ;;  %v9009_v3 = vmul.f32 -1.442695, %v7927_v59  ;;  %v8045_v51 = vsel %vm6882_vm13, %v8024_v14, 0.0 }
 0xa0d   : > { %v10766_v23 = vpop.eup %10765  ;;  %v7982_v37 = vadd.f32 1.0, %v10764_v45  ;;  %8046 = vadd.xlane.f32.xlu1 %v8045_v51  ;;  %v7931_v34 = vpop.f32.mrb[202].mxu1 }
 0xa0e   : > { %10775 = vpow2.f32 %v9009_v3  ;;  %v7932_v31 = vadd.f32 %v14363_v47, %v7931_v34  ;;  %v10148_v22 = vpop.f32.mrb[203].mxu1  ;;  %v8025_v2 = vmul.f32 %v10766_v23, %v14378_v43 }
 0xa0f   : > { %10777 = vrcp.f32 %v7982_v37 }
 0xa10   : > { %v10768_v36 = vpop.eup %10767  ;;  %v9010_v4 = vmul.f32 -1.442695, %v7932_v31  ;;  %v8048_v27 = vsel %vm6882_vm13, %v8025_v2, 0.0 }
 0xa11   : > { %v10770_v50 = vpop.eup %10769  ;;  %v7983_v7 = vadd.f32 1.0, %v10768_v36  ;;  %8049 = vadd.xlane.f32.xlu1 %v8048_v27 }
 0xa12   : > { %10779 = vpow2.f32 %v9010_v4  ;;  %v8026_v32 = vmul.f32 %v10770_v50, %v14378_v43 }
 0xa13   : > { %10781 = vrcp.f32 %v7983_v7 }
 0xa14   : > { %v10772_v59 = vpop.eup %10771  ;;  %v8051_v16 = vsel %vm6882_vm13, %v8026_v32, 0.0 }
 0xa15   : > { %v10774_v14 = vpop.eup %10773  ;;  %v7984_v47 = vadd.f32 1.0, %v10772_v59  ;;  %8052 = vadd.xlane.f32.xlu0 %v8051_v16 }
 0xa16   : > { %v8027_v45 = vmul.f32 %v10774_v14, %v14378_v43 }
 0xa17   : > { %10783 = vrcp.f32 %v7984_v47  ;;  %v7400_v47 = vld [vmem:[%s14995_s17 + $0x60] sm:$0xf] }
 0xa18   : > { %v10776_v3 = vpop.eup %10775  ;;  %v8054_v51 = vsel %vm6882_vm13, %v8027_v45, 0.0 }
 0xa19   : > { %v10778_v23 = vpop.eup %10777  ;;  %v7985_v37 = vadd.f32 1.0, %v10776_v3  ;;  %8055 = vadd.xlane.f32.xlu1 %v8054_v51 }
 0xa1a   : > { %v8028_v34 = vmul.f32 %v10778_v23, %v14378_v43  ;;  %v7307_v23 = vadd.f32 %v14297_v13, %v14358_v21  ;;  %v7009_v13 = vadd.f32 %v14124_v35, %v14102_v25 }
 0xa1b   : > { %10785 = vrcp.f32 %v7985_v37 }
 0xa1c   : > { %v10780_v31 = vpop.eup %10779  ;;  %v8057_v22 = vsel %vm6882_vm13, %v8028_v34, 0.0  ;;  %v8956_v37 = vmul.f32 -1.442695, %v7307_v23  ;;  %v8927_v23 = vmul.f32 -1.442695, %v14143_v30 }
 0xa1d   : > { %v10782_v2 = vpop.eup %10781  ;;  %v7986_v36 = vadd.f32 1.0, %v10780_v31  ;;  %8058 = vadd.xlane.f32.xlu1 %v8057_v22  ;;  %v10906_v31 = vld [vmem:[%s11056_s13 + $0x8] sm:$0xff] }
 0xa1e   : > { %v8029_v4 = vmul.f32 %v10782_v2, %v14378_v43  ;;  %v6989_v2 = vadd.f32 %v14124_v35, %v14080_v58  ;;  %v7019_v58 = vadd.f32 %v14124_v35, %v14118_v28  ;;  %v7044_v28 = vadd.f32 %v14124_v35, %v14145_v49 }
 0xa1f   : > { %10787 = vrcp.f32 %v7986_v36  ;;  %v6994_v36 = vadd.f32 %v14124_v35, %v14089_v12 }
 0xa20   : > { %v8060_v27 = vsel %vm6882_vm13, %v8029_v4, 0.0  ;;  %10789 = vpow2.f32 %v8956_v37  ;;  %v7004_v4 = vadd.f32 %v14124_v35, %v14097_v52  ;;  %v8923_v25 = vmul.f32 -1.442695, %v7019_v58 }
 0xa21   : > { %v10784_v50 = vpop.eup %10783  ;;  %8061 = vadd.xlane.f32.xlu1 %v8060_v27  ;;  %v8917_v27 = vmul.f32 -1.442695, %v6989_v2  ;;  %v8918_v21 = vmul.f32 -1.442695, %v6994_v36  ;;  %v8929_v37 = vmul.f32 -1.442695, %v14152_v15 }
 0xa22   : > { %v8030_v7 = vmul.f32 %v10784_v50, %v14378_v43  ;;  %v7014_v50 = vadd.f32 %v14124_v35, %v14112_v24  ;;  %v8920_v12 = vmul.f32 -1.442695, %v7004_v4  ;;  %v7034_v24 = vadd.f32 %v14124_v35, %v14136_v62 }
 0xa23   : > { %10791 = vpow2.f32 %v8917_v27  ;;  %v8928_v62 = vmul.f32 -1.442695, %v7044_v28  ;;  %v10907_v27 = vld [vmem:[%s11056_s13 + $0x38] sm:$0xff] }
 0xa24   : > { %v8063_v32 = vsel %vm6882_vm13, %v8030_v7, 0.0  ;;  %10793 = vpow2.f32 %v8918_v21 }
 0xa25   : > { %v10786_v59 = vpop.eup %10785  ;;  %8064 = vadd.xlane.f32.xlu1 %v8063_v32  ;;  %v7024_v32 = vadd.f32 %v14124_v35, %v14120_v11 }
 0xa26   : > { %v8031_v16 = vmul.f32 %v10786_v59, %v14378_v43 }
 0xa28   : > { %v8066_v14 = vsel %vm6882_vm13, %v8031_v16, 0.0  ;;  %v8922_v16 = vmul.f32 -1.442695, %v7014_v50 }
 0xa29   : > { %v10788_v45 = vpop.eup %10787  ;;  %8067 = vadd.xlane.f32.xlu1 %v8066_v14  ;;  %v8924_v14 = vmul.f32 -1.442695, %v7024_v32 }
 0xa2a   : > { %v8032_v3 = vmul.f32 %v10788_v45, %v14378_v43  ;;  %v6999_v43 = vadd.f32 %v14124_v35, %v14095_v40  ;;  %v8921_v40 = vmul.f32 -1.442695, %v7009_v13  ;;  %v10790_v52 = vpop.eup %10789  ;;  %v8925_v45 = vmul.f32 -1.442695, %v14130_v61 }
 0xa2b   : > { %7463 = vperm.xlu0 %10682, %v7400_v47   ;;  %v7361_v47 = vadd.f32 1.0, %v10790_v52 }
 0xa2c   : > { %v8070_v51 = vsel %vm8069_vm14, %v8032_v3, 0.0  ;;  %v8919_v7 = vmul.f32 -1.442695, %v6999_v43  ;;  %v8926_v3 = vmul.f32 -1.442695, %v7034_v24 }
 0xa2d   : > { %8071 = vadd.xlane.f32.xlu1 %v8070_v51 }
 0xa2e   : > { %10795 = vpow2.f32 %v8919_v7 }
 0xa2f   : > { %10797 = vpow2.f32 %v8920_v12 }
 0xa30   : > { %10799 = vpow2.f32 %v8921_v40 }
 0xa31   : > { %10801 = vpow2.f32 %v8922_v16 }
 0xa32   : > { %10803 = vpow2.f32 %v8923_v25 }
 0xa33   : > { %10805 = vpow2.f32 %v8924_v14 }
 0xa34   : > { %10807 = vrcp.f32 %v7361_v47 }
 0xa35   : > { %10809 = vpow2.f32 %v8925_v45 }
 0xa36   : > { %10811 = vpow2.f32 %v8926_v3 }
 0xa37   : > { %10813 = vpow2.f32 %v8927_v23 }
 0xa38   : > { %10815 = vpow2.f32 %v8928_v62 }
 0xa39   : > { %10817 = vpow2.f32 %v8929_v37 }
 0xa8a   : > { %v14441_v51 = vpop.xlane.xlu0 %8034 }
 0xa8e   : > { %v8038_v34 = vpop.xlane.xlu1 %8037 }
 0xa8f   : > { %v8074_v22 = vmul.f32 %v10906_v31, %v8038_v34  ;;  %v10792_v34 = vpop.eup %10791 }
 0xa90   : > { %v10794_v61 = vpop.eup %10793  ;;  %v7091_v30 = vadd.f32 1.0, %v10792_v34 }
 0xa91   : > { %8093 = vperm.xlu1 %10683, %v8074_v22   ;;  %v10796_v31 = vpop.eup %10795  ;;  %v7092_v15 = vadd.f32 1.0, %v10794_v61 }
 0xa92   : > { %v14432_v59 = vpop.xlane.xlu1 %8040  ;;  %v10798_v22 = vpop.eup %10797  ;;  %v7093_v50 = vadd.f32 1.0, %v10796_v31  ;;  %10819 = vrcp.f32 %v7091_v30 }
 0xa93   : > { %v10800_v2 = vpop.eup %10799  ;;  %v7094_v58 = vadd.f32 1.0, %v10798_v22  ;;  %10821 = vrcp.f32 %v7092_v15  ;;  %v10908_v22 = vld [vmem:[%s11056_s13 + $0x48] sm:$0xff] }
 0xa94   : > { %v10802_v4 = vpop.eup %10801  ;;  %v7095_v32 = vadd.f32 1.0, %v10800_v2  ;;  %10823 = vrcp.f32 %v7093_v50 }
 0xa95   : > { %v10804_v21 = vpop.eup %10803  ;;  %v7096_v25 = vadd.f32 1.0, %v10802_v4  ;;  %10825 = vrcp.f32 %v7094_v58 }
 0xa96   : > { %v14445_v35 = vpop.xlane.xlu0 %8043  ;;  %v10806_v7 = vpop.eup %10805  ;;  %v7097_v28 = vadd.f32 1.0, %v10804_v21  ;;  %10827 = vrcp.f32 %v7095_v32 }
 0xa97   : > { %v10808_v12 = vpop.eup %10807  ;;  %v7098_v45 = vadd.f32 1.0, %v10806_v7  ;;  %10829 = vrcp.f32 %v7096_v25 }
 0xa98   : > { %v10810_v16 = vpop.eup %10809  ;;  %10831 = vrcp.f32 %v7097_v28 }
 0xa99   : > { %v10812_v14 = vpop.eup %10811  ;;  %v7099_v62 = vadd.f32 1.0, %v10810_v16  ;;  %10833 = vrcp.f32 %v7098_v45 }
 0xa9a   : > { %v14438_v11 = vpop.xlane.xlu1 %8046  ;;  %v10814_v47 = vpop.eup %10813  ;;  %v7100_v31 = vadd.f32 1.0, %v10812_v14 }
 0xa9b   : > { %v10816_v23 = vpop.eup %10815  ;;  %v7101_v30 = vadd.f32 1.0, %v10814_v47  ;;  %10835 = vrcp.f32 %v7099_v62 }
 0xa9c   : > { %v10818_v61 = vpop.eup %10817  ;;  %v7102_v4 = vadd.f32 1.0, %v10816_v23  ;;  %10837 = vrcp.f32 %v7100_v31 }
 0xa9d   : > { %v7103_v15 = vadd.f32 1.0, %v10818_v61  ;;  %10839 = vrcp.f32 %v7101_v30 }
 0xa9e   : > { %v14447_v49 = vpop.xlane.xlu1 %8049  ;;  %10841 = vrcp.f32 %v7102_v4 }
 0xa9f   : > { %10843 = vrcp.f32 %v7103_v15 }
 0xaa2   : > { %v14449_v36 = vpop.xlane.xlu0 %8052 }
 0xaa6   : > { %v8056_v43 = vpop.xlane.xlu1 %8055 }
 0xaa7   : > { %v8080_v13 = vmul.f32 %v10907_v27, %v8056_v43 }
 0xaa9   : > { %8123 = vperm.xlu1 %10683, %v8080_v13  }
 0xaaa   : > { %v7464_v40 = vpop.permute.xlu0 %7463  ;;  %v14452_v52 = vpop.xlane.xlu1 %8058 }
 0xaab   : > { %v7478_v24 = vmul.f32 %v10808_v12, %v7464_v40  ;;  %v10909_v40 = vld [vmem:[%s11056_s13 + $0x58] sm:$0xff] }
 0xaad   : > { %v7502_v3 = vsel %vm6011_vm8, %v7478_v24, 0.0 }
 0xaae   : > { %v7503_v37 = vadd.f32 %v7502_v3, %v14373_v10  ;;  %v8062_v34 = vpop.xlane.xlu1 %8061  ;;  %v10820_v10 = vpop.eup %10819 }
 0xaaf   : > { %v8082_v2 = vmul.f32 %v10908_v22, %v8062_v34  ;;  %v10822_v50 = vpop.eup %10821 }
 0xab0   : > { %v7504_v43 = vrot.slane %v7503_v37, 4  ;;  %v10824_v7 = vpop.eup %10823 }
 0xab1   : > { %8133 = vperm.xlu1 %10683, %v8082_v2   ;;  %v10826_v32 = vpop.eup %10825 }
 0xab2   : > { %v7505_v27 = vadd.f32 %v7504_v43, %v7503_v37  ;;  %v14457_v13 = vpop.xlane.xlu1 %8064  ;;  %v10828_v25 = vpop.eup %10827 }
 0xab3   : > { %v10830_v14 = vpop.eup %10829 }
 0xab4   : > { %v7506_v21 = vrot.slane %v7505_v27, 2  ;;  %v10832_v28 = vpop.eup %10831 }
 0xab5   : > { %v10834_v45 = vpop.eup %10833 }
 0xab6   : > { %v7507_v58 = vadd.f32 %v7506_v21, %v7505_v27  ;;  %v8068_v12 = vpop.xlane.xlu1 %8067  ;;  %v10836_v3 = vpop.eup %10835 }
 0xab7   : > { %v8084_v16 = vmul.f32 %v10909_v40, %v8068_v12  ;;  %v10838_v61 = vpop.eup %10837 }
 0xab8   : > { %v7508_v24 = vrot.slane %v7507_v58, 1  ;;  %v10840_v43 = vpop.eup %10839 }
 0xab9   : > { %8143 = vperm.xlu1 %10683, %v8084_v16   ;;  %v10842_v15 = vpop.eup %10841  ;;  %v8212_v16 = vld [vmem:[%s15017_s23] sm:$0xff] }
 0xaba   : > { %v7509_v47 = vadd.f32 %v7508_v24, %v7507_v58  ;;  %v10844_v27 = vpop.eup %10843  ;;  %v8208_v24 = vld [vmem:[%s15018_s10] sm:$0xff] }
 0xabc   : > { %v7511_v23 = vmul.f32 %v10822_v50, %v7509_v47  ;;  %v7512_v62 = vmul.f32 %v10824_v7, %v7509_v47  ;;  %v7514_v37 = vmul.f32 %v10828_v25, %v7509_v47  ;;  %v7516_v34 = vmul.f32 %v10832_v28, %v7509_v47  ;;  %v8213_v25 = vld [vmem:[%s15017_s23 + $0x8] sm:$0xff] }
 0xabd   : > { %v7510_v31 = vmul.f32 %v10820_v10, %v7509_v47  ;;  %v7513_v22 = vmul.f32 %v10826_v32, %v7509_v47  ;;  %v7515_v2 = vmul.f32 %v10830_v14, %v7509_v47  ;;  %v7517_v30 = vmul.f32 %v10834_v45, %v7509_v47  ;;  %v8209_v28 = vld [vmem:[%s15018_s10 + $0x8] sm:$0xff] }
 0xabe   : > { %v7526_v4 = vsel %vm977_vm5, %v7511_v23, 0.0  ;;  %v7519_v21 = vmul.f32 %v10838_v61, %v7509_v47  ;;  %v7521_v50 = vmul.f32 %v10842_v15, %v7509_v47  ;;  %v14461_v7 = vmul.f32 %v10836_v3, %v7509_v47  ;;  %v10910_v3 = vld [vmem:[%s11056_s13] sm:$0xff] }
 0xabf   : > { %7527 = vadd.xlane.f32.xlu0 %v7526_v4  ;;  %v14463_v58 = vmul.f32 %v10840_v43, %v7509_v47  ;;  %v14465_v10 = vmul.f32 %v10844_v27, %v7509_v47  ;;  %v7529_v12 = vsel %vm977_vm5, %v7512_v62, 0.0  ;;  %v7535_v32 = vsel %vm977_vm5, %v7514_v37, 0.0  ;;  %v10911_v37 = vld [vmem:[%s11056_s13 + $0x10] sm:$0xff]  ;;  %v8211_v27 = vld [vmem:[%s15018_s10 + $0x18] sm:$0xff] }
 0xac0   : > { %v7541_v40 = vsel %vm977_vm5, %v7516_v34, 0.0  ;;  %v10555_v14 = vpack.c.bf16 %v8213_v25, %v8212_v16  ;;  %v10561_v45 = vpack.c.bf16 %v8209_v28, %v8208_v24  ;;  %v7523_v47 = vsel %vm977_vm5, %v7510_v31, 0.0  ;;  %v10912_v31 = vld [vmem:[%s11056_s13 + $0x18] sm:$0xff]  ;;  %v10917_v16 = vld [vmem:[%s11056_s13 + $0x50] sm:$0xff]  ;;  %v8072_v24 = vpop.xlane.xlu1 %8071  ;;  %v10918_v28 = vld [vmem:[%s11056_s13 + $0x60] sm:$0xf] }
 0xac1   : > { %v8073_v23 = vmul.f32 %v10910_v3, %v14441_v51  ;;  %v7532_v62 = vsel %vm977_vm5, %v7513_v22, 0.0  ;;  %v8075_v34 = vmul.f32 %v10911_v37, %v14432_v59  ;;  %v7538_v61 = vsel %vm977_vm5, %v7515_v2, 0.0  ;;  %v10913_v51 = vld [vmem:[%s11056_s13 + $0x20] sm:$0xff]  ;;  %v8210_v59 = vld [vmem:[%s15018_s10 + $0x10] sm:$0xff] }
 0xac2   : > { %10556 = vmatpush3.bf16.msra.mxu0 %v10555_v14  ;;  %10562 = vmatpush3.bf16.msra.mxu1 %v10561_v45  ;;  %v8076_v43 = vmul.f32 %v10912_v31, %v14445_v35  ;;  %v7544_v4 = vsel %vm977_vm5, %v7517_v30, 0.0  ;;  %v8077_v22 = vmul.f32 %v10913_v51, %v14438_v11  ;;  %v7550_v15 = vsel %vm977_vm5, %v7519_v21, 0.0  ;;  %v10915_v11 = vld [vmem:[%s11056_s13 + $0x30] sm:$0xff]  ;;  %v8215_v14 = vld [vmem:[%s15017_s23 + $0x18] sm:$0xff] }
 0xac3   : > { %7530 = vadd.xlane.f32.xlu0 %v7529_v12  ;;  %10563 = vmatprep.subr.bf16.mxu1 %v14904_v48  ;;  %v10564_v2 = vpack.c.bf16 %v8211_v27, %v8210_v59  ;;  %v10914_v12 = vld [vmem:[%s11056_s13 + $0x28] sm:$0xff]  ;;  %v7556_v30 = vsel %vm977_vm5, %v7521_v50, 0.0  ;;  %v8079_v21 = vmul.f32 %v10915_v11, %v14449_v36  ;;  %v8083_v25 = vmul.f32 %v10917_v16, %v14457_v13 }
 0xac4   : > { %10557 = vmatprep.subr.bf16.mxu0 %v14904_v48  ;;  %v8078_v35 = vmul.f32 %v10914_v12, %v14447_v49  ;;  %v8214_v49 = vld [vmem:[%s15017_s23 + $0x10] sm:$0xff]  ;;  %v8085_v45 = vmul.f32 %v10918_v28, %v8072_v24  ;;  %v7547_v36 = vsel %vm977_vm5, %v14461_v7, 0.0  ;;  %v7559_v13 = vsel %vm6011_vm8, %v14465_v10, 0.0 }
 0xac5   : > { %v10558_v50 = vpack.c.bf16 %v8215_v14, %v8214_v49 }
 0xac6   : > { %10565 = vmatpush3.bf16.msra.mxu1 %v10564_v2 }
 0xac7   : > { %7536 = vadd.xlane.f32.xlu0 %v7535_v32  ;;  %v10916_v32 = vld [vmem:[%s11056_s13 + $0x40] sm:$0xff]  ;;  %10559 = vmatpush3.bf16.msra.mxu0 %v10558_v50 }
 0xac8   : > { %10566 = vmatprep.subr.bf16.mxu0 %v14904_v48 }
 0xacb   : > { %7542 = vadd.xlane.f32.xlu0 %v7541_v40  ;;  %v8081_v40 = vmul.f32 %v10916_v32, %v14452_v52  ;;  %v7553_v52 = vsel %vm977_vm5, %v14463_v58, 0.0 }
 0xadd   : > { %7524 = vadd.xlane.f32.xlu1 %v7523_v47  ;;  %v8957_v47 = vld [vmem:[%s15019_s11] ss:$0 sm:$0xff]  ;;  %s14714_s11 = scalar_lea.hbm %s11196_s12, %s9040_s9 }
 0xade   : > { %v7658_v3 = vadd.f32 %v8957_v47, %v14316_v19  ;;  %v7673_v31 = vadd.f32 %v8957_v47, %v14328_v29  ;;  %v7693_v2 = vadd.f32 %v8957_v47, %v14344_v44  ;;  %v7708_v32 = vadd.f32 %v8957_v47, %v14355_v6 }
 0xadf   : > { %v7713_v49 = vadd.f32 %v8957_v47, %v14360_v60 }
 0xae0   : > { %v8975_v19 = vmul.f32 -1.442695, %v7673_v31  ;;  %v8979_v11 = vmul.f32 -1.442695, %v7693_v2  ;;  %v8982_v24 = vmul.f32 -1.442695, %v7708_v32 }
 0xae1   : > { %7533 = vadd.xlane.f32.xlu1 %v7532_v62  ;;  %8088 = vperm.xlu0 %10682, %v8073_v23   ;;  %v7653_v23 = vadd.f32 %v8957_v47, %v14294_v17  ;;  %v8972_v62 = vmul.f32 -1.442695, %v7658_v3  ;;  %v7678_v17 = vadd.f32 %v8957_v47, %v14332_v33  ;;  %v7698_v33 = vadd.f32 %v8957_v47, %v14348_v1 }
 0xae3   : > { %v8971_v37 = vmul.f32 -1.442695, %v7653_v23  ;;  %10845 = vpow2.f32 %v8972_v62 }
 0xae5   : > { %7539 = vadd.xlane.f32.xlu1 %v7538_v61  ;;  %8098 = vperm.xlu0 %10682, %v8075_v34   ;;  %v7663_v34 = vadd.f32 %v8957_v47, %v14319_v55  ;;  %10847 = vpow2.f32 %v8971_v37  ;;  %v7668_v61 = vadd.f32 %v8957_v47, %v14324_v46  ;;  %v7683_v55 = vadd.f32 %v8957_v47, %v14336_v63 }
 0xae6   : > { %v7688_v46 = vadd.f32 %v8957_v47, %v14340_v8  ;;  %v8980_v8 = vmul.f32 -1.442695, %v7698_v33 }
 0xae7   : > { %v8973_v7 = vmul.f32 -1.442695, %v7663_v34  ;;  %v8974_v58 = vmul.f32 -1.442695, %v7668_v61  ;;  %v8977_v29 = vmul.f32 -1.442695, %v7683_v55 }
 0xae8   : > { %v8978_v12 = vmul.f32 -1.442695, %v7688_v46 }
 0xae9   : > { %8103 = vperm.xlu0 %10682, %v8076_v43   ;;  %7545 = vadd.xlane.f32.xlu1 %v7544_v4  ;;  %10849 = vpow2.f32 %v8973_v7 }
 0xaea   : > { %10851 = vpow2.f32 %v8974_v58 }
 0xaeb   : > { %10853 = vpow2.f32 %v8975_v19 }
 0xaed   : > { %8108 = vperm.xlu0 %10682, %v8077_v22   ;;  %7551 = vadd.xlane.f32.xlu1 %v7550_v15  ;;  %v10846_v43 = vpop.eup %10845  ;;  %v8976_v15 = vmul.f32 -1.442695, %v7678_v17 }
 0xaee   : > { %v7756_v51 = vadd.f32 1.0, %v10846_v43 }
 0xaef   : > { %v10848_v4 = vpop.eup %10847 }
 0xaf0   : > { %v7755_v59 = vadd.f32 1.0, %v10848_v4  ;;  %10855 = vrcp.f32 %v7756_v51 }
 0xaf1   : > { %8113 = vperm.xlu0 %10682, %v8078_v35   ;;  %7557 = vadd.xlane.f32.xlu1 %v7556_v30  ;;  %10857 = vpow2.f32 %v8976_v15 }
 0xaf2   : > { %10859 = vrcp.f32 %v7755_v59 }
 0xaf3   : > { %v10850_v27 = vpop.eup %10849  ;;  %10861 = vpow2.f32 %v8977_v29 }
 0xaf4   : > { %v7757_v35 = vadd.f32 1.0, %v10850_v27  ;;  %v10852_v63 = vpop.eup %10851  ;;  %10863 = vpow2.f32 %v8978_v12 }
 0xaf5   : > { %8118 = vperm.xlu0 %10682, %v8079_v21   ;;  %v7703_v21 = vadd.f32 %v8957_v47, %v14351_v18  ;;  %v10854_v16 = vpop.eup %10853 }
 0xaf6   : > { %10865 = vrcp.f32 %v7757_v35  ;;  %v7759_v50 = vadd.f32 1.0, %v10854_v16  ;;  %v14544_v16 = vld [vmem:[#allocation2] sm:$0xff] }
 0xaf7   : > { %10867 = vpow2.f32 %v8979_v11 }
 0xaf8   : > { %10869 = vpow2.f32 %v8980_v8 }
 0xaf9   : > { %8128 = vperm.xlu0 %10682, %v8081_v40   ;;  %v7758_v40 = vadd.f32 1.0, %v10852_v63 }
 0xafa   : > { %v10856_v14 = vpop.eup %10855 }
 0xafb   : > { %10871 = vrcp.f32 %v7758_v40  ;;  %v10858_v28 = vpop.eup %10857 }
 0xafc   : > { %v10860_v6 = vpop.eup %10859  ;;  %v7760_v23 = vadd.f32 1.0, %v10858_v28 }
 0xafd   : > { %8138 = vperm.xlu0 %10682, %v8083_v25   ;;  %v8981_v25 = vmul.f32 -1.442695, %v7703_v21  ;;  %v10862_v3 = vpop.eup %10861 }
 0xafe   : > { %v10864_v37 = vpop.eup %10863  ;;  %v7761_v58 = vadd.f32 1.0, %v10862_v3 }
 0xaff   : > { %10873 = vpow2.f32 %v8981_v25  ;;  %v7762_v19 = vadd.f32 1.0, %v10864_v37 }
 0xb00   : > { %10875 = vpow2.f32 %v8982_v24  ;;  %v10866_v34 = vpop.eup %10865 }
 0xb01   : > { %8148 = vperm.xlu0 %10682, %v8085_v45   ;;  %10877 = vrcp.f32 %v7759_v50  ;;  %v10868_v43 = vpop.eup %10867 }
 0xb02   : > { %v10870_v4 = vpop.eup %10869  ;;  %v7763_v59 = vadd.f32 1.0, %v10868_v43 }
 0xb03   : > { %v7764_v2 = vadd.f32 1.0, %v10870_v4 }
 0xb05   : > { %v10872_v55 = vpop.eup %10871 }
 0xb09   : > { %v10874_v29 = vpop.eup %10873 }
 0xb0a   : > { %v10876_v33 = vpop.eup %10875  ;;  %v7765_v32 = vadd.f32 1.0, %v10874_v29 }
 0xb0b   : > { %v10878_v11 = vpop.eup %10877 }
 0xb10   : > { %v8094_v44 = vpop.permute.xlu1 %8093 }
 0xb11   : > { %v8152_v45 = vmul.f32 %v10856_v14, %v8094_v44  ;;  %v7766_v44 = vadd.f32 1.0, %v10876_v33 }
 0xb13   : > { %v8165_v60 = vsel %vm6882_vm13, %v8152_v45, 0.0 }
 0xb20   : > { %7548 = vadd.xlane.f32.xlu0 %v7547_v36 }
 0xb24   : > { %7554 = vadd.xlane.f32.xlu0 %v7553_v52  ;;  %v8983_v52 = vmul.f32 -1.442695, %v7713_v49 }
 0xb26   : > { %10879 = vpow2.f32 %v8983_v52 }
 0xb27   : > { %10881 = vrcp.f32 %v7760_v23 }
 0xb28   : > { %7560 = vadd.xlane.f32.xlu0 %v7559_v13  ;;  %v14532_v18 = vpop.permute.xlu1 %8123  ;;  %10883 = vrcp.f32 %v7761_v58 }
 0xb29   : > { %10885 = vrcp.f32 %v7762_v19 }
 0xb2a   : > { %10887 = vrcp.f32 %v7763_v59 }
 0xb2b   : > { %10889 = vrcp.f32 %v7764_v2 }
 0xb2c   : > { %10891 = vrcp.f32 %v7765_v32 }
 0xb2d   : > { %10893 = vrcp.f32 %v7766_v44 }
 0xb30   : > { %v14534_v62 = vpop.permute.xlu1 %8133  ;;  %v10880_v25 = vpop.eup %10879 }
 0xb31   : > { %v10882_v49 = vpop.eup %10881  ;;  %v7767_v45 = vadd.f32 1.0, %v10880_v25 }
 0xb33   : > { %10895 = vrcp.f32 %v7767_v45  ;;  %v15023_v45 = vld [vmem:[#allocation52_spill] sm:$0xff] }
 0xb38   : > { %v14538_v17 = vpop.permute.xlu1 %8143 }
 0xb4c   : > { %v14516_v10 = vpop.xlane.xlu0 %7527 }
 0xb4d   : > { %v7563_v24 = vmul.f32 %v14516_v10, %v13857_v39 }
 0xb50   : > { %v14520_v22 = vpop.xlane.xlu0 %7530 }
 0xb54   : > { %v14525_v30 = vpop.xlane.xlu0 %7536 }
 0xb58   : > { %v14529_v1 = vpop.xlane.xlu0 %7542 }
 0xb60   : > { %v8089_v36 = vpop.permute.xlu0 %8088 }
 0xb61   : > { %v8151_v13 = vmul.f32 %v10860_v6, %v8089_v36  ;;  %v10884_v6 = vpop.eup %10883  ;;  %v7564_v36 = vmul.f32 %v14520_v22, %v13869_v42 }
 0xb62   : > { %v10886_v10 = vpop.eup %10885 }
 0xb63   : > { %v8164_v47 = vsel %vm6882_vm13, %v8151_v13, 0.0  ;;  %v8158_v23 = vmul.f32 %v10886_v10, %v14532_v18 }
 0xb64   : > { %v8166_v7 = vadd.f32 %v8165_v60, %v8164_v47  ;;  %v8099_v61 = vpop.permute.xlu0 %8098  ;;  %v10888_v60 = vpop.eup %10887 }
 0xb65   : > { %v8153_v31 = vmul.f32 %v10866_v34, %v8099_v61  ;;  %v10890_v22 = vpop.eup %10889  ;;  %v8177_v61 = vsel %vm6882_vm13, %v8158_v23, 0.0  ;;  %v15026_v23 = vld [vmem:[#allocation46_spill] sm:$0xff] }
 0xb66   : > { %v8160_v58 = vmul.f32 %v10890_v22, %v14534_v62  ;;  %v10892_v43 = vpop.eup %10891  ;;  %v15028_v22 = vld [vmem:[#allocation51_spill] sm:$0xff] }
 0xb67   : > { %v8167_v51 = vsel %vm6882_vm13, %v8153_v31, 0.0  ;;  %v10894_v4 = vpop.eup %10893 }
 0xb68   : > { %v8168_v15 = vadd.f32 %v8167_v51, %v8166_v7  ;;  %v8104_v46 = vpop.permute.xlu0 %8103  ;;  %v8162_v62 = vmul.f32 %v10894_v4, %v14538_v17 }
 0xb69   : > { %v8154_v27 = vmul.f32 %v10872_v55, %v8104_v46  ;;  %v8181_v46 = vsel %vm6882_vm13, %v8160_v58, 0.0 }
 0xb6a   : > { %v7525_v12 = vpop.xlane.xlu1 %7524  ;;  %v8185_v33 = vsel %vm6882_vm13, %v8162_v62, 0.0  ;;  %v8635_v62 = vld [vmem:[%s11186_s27 + $0x18] sm:$0xff] }
 0xb6b   : > { %v8169_v35 = vsel %vm6882_vm13, %v8154_v27, 0.0  ;;  %v7562_v63 = vmul.f32 %v7525_v12, %v13840_v9 }
 0xb6c   : > { %v8170_v21 = vadd.f32 %v8169_v35, %v8168_v15  ;;  %v8109_v8 = vpop.permute.xlu0 %8108 }
 0xb6d   : > { %v8155_v40 = vmul.f32 %v10878_v11, %v8109_v8  ;;  %10205 = vmatmul.mubr.msk.f32.vlgmr.msra.gmra.mrb[204].mxu1 %vm6882_vm13, %v7562_v63  ;;  %v7568_v63 = vmul.f32 %v14529_v1, %v13920_v57 }
 0xb6e   : > { %10207 = vmatprep.mubr.msk.f32.mxu1 %vm11022_vm1, %v14544_v16  ;;  %v7534_v52 = vpop.xlane.xlu1 %7533 }
 0xb6f   : > { %v8171_v9 = vsel %vm6882_vm13, %v8155_v40, 0.0  ;;  %v7565_v47 = vmul.f32 %v7534_v52, %v13882_v5  ;;  %v7566_v5 = vmul.f32 %v14525_v30, %v13894_v0  ;;  %v10896_v30 = vpop.eup %10895  ;;  %v15025_v52 = vld [vmem:[#allocation55_spill] sm:$0xff] }
 0xb70   : > { %v8172_v14 = vadd.f32 %v8171_v9, %v8170_v21  ;;  %v8114_v50 = vpop.permute.xlu0 %8113 }
 0xb71   : > { %v8156_v28 = vmul.f32 %v10882_v49, %v8114_v50  ;;  %10208 = vmatmul.mubr.msk.f32.gmra.mrb[206].mxu1 %vm6882_vm13, %v7563_v24 }
 0xb72   : > { %10210 = vmatprep.mubr.msk.f32.mxu1 %vm11022_vm1, %v14544_v16  ;;  %v7540_v51 = vpop.xlane.xlu1 %7539 }
 0xb73   : > { %v8173_v39 = vsel %vm6882_vm13, %v8156_v28, 0.0  ;;  %v7567_v29 = vmul.f32 %v7540_v51, %v13908_v53  ;;  %v8632_v51 = vld [vmem:[%s11186_s27] sm:$0xff] }
 0xb74   : > { %v8174_v13 = vadd.f32 %v8173_v39, %v8172_v14  ;;  %v8119_v3 = vpop.permute.xlu0 %8118  ;;  %v15024_v39 = vld [vmem:[#allocation49_spill] sm:$0xff] }
 0xb75   : > { %v8157_v37 = vmul.f32 %v10884_v6, %v8119_v3  ;;  %10211 = vmatmul.mubr.msk.f32.gmra.mrb[208].mxu1 %vm6882_vm13, %v7564_v36 }
 0xb76   : > { %10213 = vmatprep.mubr.msk.f32.mxu1 %vm11022_vm1, %v14544_v16  ;;  %v7546_v53 = vpop.xlane.xlu1 %7545 }
 0xb77   : > { %v8175_v42 = vsel %vm6882_vm13, %v8157_v37, 0.0  ;;  %v7569_v32 = vmul.f32 %v7546_v53, %v13932_v56 }
 0xb78   : > { %v8176_v34 = vadd.f32 %v8175_v42, %v8174_v13  ;;  %v8129_v7 = vpop.permute.xlu0 %8128 }
 0xb79   : > { %v8159_v18 = vmul.f32 %v10888_v60, %v8129_v7  ;;  %10214 = vmatmul.mubr.msk.f32.gmra.mrb[210].mxu1 %vm6882_vm13, %v7565_v47  ;;  %v15027_v60 = vld [vmem:[#allocation54_spill] sm:$0xff]  ;;  %v15029_v7 = vld [vmem:[#allocation57_spill] sm:$0xff] }
 0xb7a   : > { %v8178_v31 = vadd.f32 %v8177_v61, %v8176_v34  ;;  %10216 = vmatprep.mubr.msk.f32.mxu1 %vm11022_vm1, %v14544_v16  ;;  %v7552_v36 = vpop.xlane.xlu1 %7551 }
 0xb7b   : > { %v8179_v19 = vsel %vm6882_vm13, %v8159_v18, 0.0  ;;  %v7571_v10 = vmul.f32 %v7552_v36, %v15024_v39  ;;  %v15030_v18 = vld [vmem:[#allocation47_spill] sm:$0xff] }
 0xb7c   : > { %v8180_v55 = vadd.f32 %v8179_v19, %v8178_v31  ;;  %v8139_v15 = vpop.permute.xlu0 %8138  ;;  %v15032_v19 = vld [vmem:[#allocation59_spill] sm:$0xff] }
 0xb7d   : > { %v8161_v59 = vmul.f32 %v10892_v43, %v8139_v15  ;;  %10217 = vmatmul.mubr.msk.f32.gmra.mrb[212].mxu1 %vm6882_vm13, %v7566_v5  ;;  %v15031_v43 = vld [vmem:[#allocation56_spill] sm:$0xff] }
 0xb7e   : > { %v8182_v27 = vadd.f32 %v8181_v46, %v8180_v55  ;;  %10219 = vmatprep.mubr.msk.f32.mxu1 %vm11022_vm1, %v14544_v16  ;;  %v7558_v42 = vpop.xlane.xlu1 %7557  ;;  %v8633_v55 = vld [vmem:[%s11186_s27 + $0x8] sm:$0xff]  ;;  %v8634_v46 = vld [vmem:[%s11186_s27 + $0x10] sm:$0xff] }
 0xb7f   : > { %v8183_v0 = vsel %vm6882_vm13, %v8161_v59, 0.0  ;;  %v7573_v34 = vmul.f32 %v7558_v42, %v15028_v22  ;;  %v10567_v15 = vpack.c.bf16 %v8633_v55, %v8632_v51  ;;  %v10570_v59 = vpack.c.bf16 %v8635_v62, %v8634_v46 }
 0xb80   : > { %v8184_v2 = vadd.f32 %v8183_v0, %v8182_v27  ;;  %v8149_v12 = vpop.permute.xlu0 %8148 }
 0xb81   : > { %v8163_v35 = vmul.f32 %v10896_v30, %v8149_v12  ;;  %10220 = vmatmul.mubr.msk.f32.gmra.mrb[214].mxu1 %vm6882_vm13, %v7567_v29 }
 0xb82   : > { %v8186_v17 = vadd.f32 %v8185_v33, %v8184_v2  ;;  %10222 = vmatprep.mubr.msk.f32.mxu1 %vm11022_vm1, %v14544_v16 }
 0xb83   : > { %v8187_v11 = vsel %vm8069_vm14, %v8163_v35, 0.0 }
 0xb84   : > { %v8188_v21 = vadd.f32 %v8187_v11, %v8186_v17 }
 0xb85   : > { %10223 = vmatmul.mubr.msk.f32.gmra.mrb[216].mxu1 %vm6882_vm13, %v7568_v63 }
 0xb86   : > { %v8189_v8 = vrot.slane %v8188_v21, 4  ;;  %10225 = vmatprep.mubr.msk.f32.mxu1 %vm11022_vm1, %v14544_v16 }
 0xb88   : > { %v8190_v40 = vadd.f32 %v8189_v8, %v8188_v21 }
 0xb89   : > { %10226 = vmatmul.mubr.msk.f32.gmra.mrb[218].mxu1 %vm6882_vm13, %v7569_v32 }
 0xb8a   : > { %v8191_v44 = vrot.slane %v8190_v40, 2  ;;  %10228 = vmatprep.mubr.msk.f32.mxu1 %vm11022_vm1, %v14544_v16 }
 0xb8c   : > { %v8192_v57 = vadd.f32 %v8191_v44, %v8190_v40  ;;  %v14668_v40 = vld [vmem:[%s11181_s20] ss:$0 sm:$0xff] }
 0xb8e   : > { %v8193_v1 = vrot.slane %v8192_v57, 1 }
 0xb90   : > { %v8194_v25 = vadd.f32 %v8193_v1, %v8192_v57 }
 0xb92   : > { %v8195_v24 = vmul.f32 %v8194_v25, %v14066_v41  ;;  %v8196_v9 = vmul.f32 %v8194_v25, %v14083_v20  ;;  %v8197_v56 = vmul.f32 %v8194_v25, %v14105_v54  ;;  %v8198_v41 = vmul.f32 %v8194_v25, %v14127_v38  ;;  %v15020_v54 = vld [vmem:[#allocation48_spill] sm:$0xff]  ;;  %v15021_v38 = vld [vmem:[#allocation53_spill] sm:$0xff] }
 0xb93   : > { %v8199_v20 = vmul.f32 %v8194_v25, %v14149_v26  ;;  %v8200_v49 = vmul.f32 %v8194_v25, %v15020_v54  ;;  %v8201_v14 = vmul.f32 %v8194_v25, %v15021_v38  ;;  %v15022_v26 = vld [vmem:[#allocation50_spill] sm:$0xff]  ;;  %v8202_v6 = vmul.f32 %v8194_v25, %v15023_v45  ;;  %v15033_v54 = vld [vmem:[#allocation32_spill] sm:$0xff] }
 0xb94   : > { %10158 = vmatmul.mubr.msk.f32.vlgmr.msra.gmra.mrb[212].mxu0 %vm6882_vm13, %v8195_v24  ;;  %v8203_v13 = vmul.f32 %v8194_v25, %v15025_v52  ;;  %v8204_v47 = vmul.f32 %v8194_v25, %v15027_v60  ;;  %v8205_v61 = vmul.f32 %v8194_v25, %v15029_v7  ;;  %v8206_v5 = vmul.f32 %v8194_v25, %v15031_v43 }
 0xb95   : > { %10160 = vmatprep.mubr.msk.f32.mxu0 %vm11022_vm1, %v14544_v16  ;;  %v8207_v4 = vmul.f32 %v8194_v25, %v15032_v19  ;;  %10568 = vmatpush3.bf16.msra.mxu0 %v10567_v15  ;;  %v15037_v15 = vld [vmem:[#allocation36_spill] sm:$0xff] }
 0xb96   : > { %10569 = vmatprep.subr.bf16.mxu0 %v14904_v48 }
 0xb98   : > { %10161 = vmatmul.mubr.msk.f32.gmra.mrb[214].mxu0 %vm6882_vm13, %v8196_v9 }
 0xb99   : > { %10163 = vmatprep.mubr.msk.f32.mxu0 %vm11022_vm1, %v14544_v16  ;;  %10571 = vmatpush3.bf16.msra.mxu0 %v10570_v59 }
 0xb9c   : > { %10164 = vmatmul.mubr.msk.f32.gmra.mrb[216].mxu0 %vm6882_vm13, %v8197_v56 }
 0xb9d   : > { %10166 = vmatprep.mubr.msk.f32.mxu0 %vm11022_vm1, %v14544_v16 }
 0xba0   : > { %10167 = vmatmul.mubr.msk.f32.gmra.mrb[218].mxu0 %vm6882_vm13, %v8198_v41 }
 0xba1   : > { %10169 = vmatprep.mubr.msk.f32.mxu0 %vm11022_vm1, %v14544_v16 }
 0xba4   : > { %10170 = vmatmul.mubr.msk.f32.gmra.mrb[220].mxu0 %vm6882_vm13, %v8199_v20 }
 0xba5   : > { %10172 = vmatprep.mubr.msk.f32.mxu0 %vm11022_vm1, %v14544_v16 }
 0xba8   : > { %10173 = vmatmul.mubr.msk.f32.gmra.mrb[222].mxu0 %vm6882_vm13, %v8200_v49 }
 0xba9   : > { %10175 = vmatprep.mubr.msk.f32.mxu0 %vm11022_vm1, %v14544_v16 }
 0xbac   : > { %10176 = vmatmul.mubr.msk.f32.gmra.mrb[224].mxu0 %vm6882_vm13, %v8201_v14 }
 0xbad   : > { %v7549_v50 = vpop.xlane.xlu0 %7548  ;;  %10178 = vmatprep.mubr.msk.f32.mxu0 %vm11022_vm1, %v14544_v16 }
 0xbae   : > { %v7570_v28 = vmul.f32 %v7549_v50, %v15022_v26  ;;  %v15034_v26 = vld [vmem:[#allocation33_spill] sm:$0xff] }
 0xbb0   : > { %10179 = vmatmul.mubr.msk.f32.gmra.mrb[226].mxu0 %vm6882_vm13, %v8202_v6  ;;  %10229 = vmatmul.mubr.msk.f32.gmra.mrb[220].mxu1 %vm6882_vm13, %v7570_v28 }
 0xbb1   : > { %10181 = vmatprep.mubr.msk.f32.mxu0 %vm11022_vm1, %v14544_v16  ;;  %10231 = vmatprep.mubr.msk.f32.mxu1 %vm11022_vm1, %v14544_v16  ;;  %v7555_v3 = vpop.xlane.xlu0 %7554 }
 0xbb2   : > { %v7572_v37 = vmul.f32 %v7555_v3, %v15026_v23  ;;  %v15035_v23 = vld [vmem:[#allocation34_spill] sm:$0xff] }
 0xbb4   : > { %10182 = vmatmul.mubr.msk.f32.gmra.mrb[228].mxu0 %vm6882_vm13, %v8203_v13  ;;  %10232 = vmatmul.mubr.msk.f32.gmra.mrb[222].mxu1 %vm6882_vm13, %v7571_v10 }
 0xbb5   : > { %10184 = vmatprep.mubr.msk.f32.mxu0 %vm11022_vm1, %v14544_v16  ;;  %10234 = vmatprep.mubr.msk.f32.mxu1 %vm11022_vm1, %v14544_v16  ;;  %v7561_v58 = vpop.xlane.xlu0 %7560 }
 0xbb6   : > { %v7574_v31 = vmul.f32 %v7561_v58, %v15030_v18  ;;  %v15036_v58 = vld [vmem:[#allocation35_spill] sm:$0xff] }
 0xbb8   : > { %10185 = vmatmul.mubr.msk.f32.gmra.mrb[230].mxu0 %vm6882_vm13, %v8204_v47  ;;  %10235 = vmatmul.mubr.msk.f32.gmra.mrb[224].mxu1 %vm6882_vm13, %v7572_v37 }
 0xbb9   : > { %10187 = vmatprep.mubr.msk.f32.mxu0 %vm11022_vm1, %v14544_v16  ;;  %10237 = vmatprep.mubr.msk.f32.mxu1 %vm11022_vm1, %v14544_v16 }
 0xbbc   : > { %10188 = vmatmul.mubr.msk.f32.gmra.mrb[232].mxu0 %vm6882_vm13, %v8205_v61  ;;  %10238 = vmatmul.mubr.msk.f32.gmra.mrb[226].mxu1 %vm6882_vm13, %v7573_v34 }
 0xbbd   : > { %10190 = vmatprep.mubr.msk.f32.mxu0 %vm11022_vm1, %v14544_v16  ;;  %10240 = vmatprep.mubr.msk.f32.mxu1 %vm11022_vm1, %v14544_v16 }
 0xbc0   : > { %10191 = vmatmul.mubr.msk.f32.gmra.mrb[234].mxu0 %vm6882_vm13, %v8206_v5  ;;  %10241 = vmatmul.mubr.msk.f32.gmra.mrb[228].mxu1 %vm6882_vm13, %v7574_v31 }
 0xbc1   : > { %10193 = vmatprep.mubr.msk.f32.mxu0 %vm11022_vm1, %v14544_v16 }
 0xbc4   : > { %10194 = vmatmul.mubr.msk.f32.gmra.mrb[236].mxu0 %vm6882_vm13, %v8207_v4 }
 0xbc5   : > { %10251 = vmatprep.mubr.msk.f32.mxu0 %vm11022_vm1, %v14544_v16  ;;  %vm8710_vm1 = vcmask 40960  }
 0xc40   : > { %v8490_v27 = vpop.f32.mrb[204].mxu1 }
 0xc41   : > { %v10206_v29 = vpop.f32.mrb[205].mxu1 }
 0xc44   : > { %v8495_v0 = vpop.f32.mrb[206].mxu1 }
 0xc45   : > { %v10209_v30 = vpop.f32.mrb[207].mxu1 }
 0xc48   : > { %v8500_v2 = vpop.f32.mrb[208].mxu1 }
 0xc49   : > { %v10212_v12 = vpop.f32.mrb[209].mxu1 }
 0xc4a   : > { %v15038_v12 = vld [vmem:[#allocation37_spill] sm:$0xff] }
 0xc4c   : > { %v8505_v33 = vpop.f32.mrb[210].mxu1 }
 0xc4d   : > { %v10215_v35 = vpop.f32.mrb[211].mxu1 }
 0xc50   : > { %v8510_v16 = vpop.f32.mrb[212].mxu1 }
 0xc51   : > { %v10218_v17 = vpop.f32.mrb[213].mxu1 }
 0xc54   : > { %v8515_v63 = vpop.f32.mrb[214].mxu1 }
 0xc55   : > { %v10221_v11 = vpop.f32.mrb[215].mxu1 }
 0xc58   : > { %v8520_v53 = vpop.f32.mrb[216].mxu1 }
 0xc59   : > { %v10224_v21 = vpop.f32.mrb[217].mxu1 }
 0xc5c   : > { %v8525_v48 = vpop.f32.mrb[218].mxu1 }
 0xc5d   : > { %v10227_v8 = vpop.f32.mrb[219].mxu1 }
 0xc67   : > { %v8321_v32 = vpop.f32.mrb[212].mxu0 }
 0xc68   : > { %v8491_v44 = vadd.f32 %v8490_v27, %v8321_v32  ;;  %v10159_v57 = vpop.f32.mrb[213].mxu0 }
 0xc69   : > { %v15039_v57 = vld [vmem:[#allocation38_spill] sm:$0xff] }
 0xc6a   : > { %v8561_v1 = vadd.f32 %v14668_v40, %v8491_v44 }
 0xc6b   : > { %v8326_v25 = vpop.f32.mrb[214].mxu0 }
 0xc6c   : > { %v8574_v24 = vmax.f32 %v8561_v1, 0.0  ;;  %v8496_v9 = vadd.f32 %v8495_v0, %v8326_v25  ;;  %v10162_v56 = vpop.f32.mrb[215].mxu0 }
 0xc6e   : > { %v8562_v41 = vadd.f32 %v14668_v40, %v8496_v9  ;;  %v8587_v49 = vmul.f32 %v8574_v24, %v15033_v54 }
 0xc6f   : > { %v8331_v20 = vpop.f32.mrb[216].mxu0 }
 0xc70   : > { %v8575_v38 = vmax.f32 %v8562_v41, 0.0  ;;  %v8501_v14 = vadd.f32 %v8500_v2, %v8331_v20  ;;  %v10165_v50 = vpop.f32.mrb[217].mxu0  ;;  %v8600_v36 = vsel %vm6882_vm13, %v8587_v49, 0.0 }
 0xc72   : > { %v8588_v28 = vmul.f32 %v8575_v38, %v15034_v26  ;;  %v8563_v45 = vadd.f32 %v14668_v40, %v8501_v14  ;;  %v15040_v38 = vld [vmem:[#allocation39_spill] sm:$0xff] }
 0xc73   : > { %v8336_v6 = vpop.f32.mrb[218].mxu0 }
 0xc74   : > { %v8601_v39 = vsel %vm6882_vm13, %v8588_v28, 0.0  ;;  %v8576_v10 = vmax.f32 %v8563_v45, 0.0  ;;  %v8506_v52 = vadd.f32 %v8505_v33, %v8336_v6  ;;  %v10168_v13 = vpop.f32.mrb[219].mxu0 }
 0xc75   : > { %v8602_v3 = vadd.f32 %v8601_v39, %v8600_v36 }
 0xc76   : > { %v8589_v37 = vmul.f32 %v8576_v10, %v15035_v23  ;;  %v8564_v60 = vadd.f32 %v14668_v40, %v8506_v52  ;;  %v15041_v52 = vld [vmem:[#allocation40_spill] sm:$0xff] }
 0xc77   : > { %v8341_v47 = vpop.f32.mrb[220].mxu0 }
 0xc78   : > { %v8603_v42 = vsel %vm6882_vm13, %v8589_v37, 0.0  ;;  %v8577_v22 = vmax.f32 %v8564_v60, 0.0  ;;  %v8511_v34 = vadd.f32 %v8510_v16, %v8341_v47  ;;  %v10171_v7 = vpop.f32.mrb[221].mxu0 }
 0xc79   : > { %v8604_v61 = vadd.f32 %v8603_v42, %v8602_v3 }
 0xc7a   : > { %v8590_v18 = vmul.f32 %v8577_v22, %v15036_v58  ;;  %v8565_v31 = vadd.f32 %v14668_v40, %v8511_v34 }
 0xc7b   : > { %v8346_v43 = vpop.f32.mrb[222].mxu0 }
 0xc7c   : > { %v8605_v5 = vsel %vm6882_vm13, %v8590_v18, 0.0  ;;  %v8578_v19 = vmax.f32 %v8565_v31, 0.0  ;;  %v8516_v4 = vadd.f32 %v8515_v63, %v8346_v43  ;;  %v10174_v51 = vpop.f32.mrb[223].mxu0 }
 0xc7d   : > { %v8606_v55 = vadd.f32 %v8605_v5, %v8604_v61  ;;  %v15042_v61 = vld [vmem:[#allocation41_spill] sm:$0xff] }
 0xc7e   : > { %v8591_v46 = vmul.f32 %v8578_v19, %v15037_v15  ;;  %v8566_v62 = vadd.f32 %v14668_v40, %v8516_v4 }
 0xc7f   : > { %v8351_v59 = vpop.f32.mrb[224].mxu0 }
 0xc80   : > { %v8607_v27 = vsel %vm6882_vm13, %v8591_v46, 0.0  ;;  %v8579_v29 = vmax.f32 %v8566_v62, 0.0  ;;  %v8521_v0 = vadd.f32 %v8520_v53, %v8351_v59  ;;  %v10177_v30 = vpop.f32.mrb[225].mxu0  ;;  %v15043_v46 = vld [vmem:[#allocation42_spill] sm:$0xff] }
 0xc81   : > { %v8608_v2 = vadd.f32 %v8607_v27, %v8606_v55 }
 0xc82   : > { %v8592_v33 = vmul.f32 %v8579_v29, %v15038_v12  ;;  %v8567_v35 = vadd.f32 %v14668_v40, %v8521_v0 }
 0xc83   : > { %v8356_v16 = vpop.f32.mrb[226].mxu0  ;;  %v8530_v17 = vpop.f32.mrb[220].mxu1 }
 0xc84   : > { %v8609_v63 = vsel %vm6882_vm13, %v8592_v33, 0.0  ;;  %v8580_v11 = vmax.f32 %v8567_v35, 0.0  ;;  %v8526_v21 = vadd.f32 %v8525_v48, %v8356_v16  ;;  %v10180_v8 = vpop.f32.mrb[227].mxu0  ;;  %v10230_v32 = vpop.f32.mrb[221].mxu1  ;;  %v15044_v33 = vld [vmem:[#allocation43_spill] sm:$0xff] }
 0xc85   : > { %v8610_v44 = vadd.f32 %v8609_v63, %v8608_v2 }
 0xc86   : > { %v8593_v1 = vmul.f32 %v8580_v11, %v15039_v57  ;;  %v8568_v25 = vadd.f32 %v14668_v40, %v8526_v21  ;;  %v15046_v21 = vld [vmem:[#allocation44_spill] sm:$0xff] }
 0xc87   : > { %v8361_v53 = vpop.f32.mrb[228].mxu0  ;;  %v8535_v24 = vpop.f32.mrb[222].mxu1 }
 0xc88   : > { %v8611_v9 = vsel %vm6882_vm13, %v8593_v1, 0.0  ;;  %v8581_v56 = vmax.f32 %v8568_v25, 0.0  ;;  %v8531_v41 = vadd.f32 %v8530_v17, %v8361_v53  ;;  %v10183_v20 = vpop.f32.mrb[229].mxu0  ;;  %v10233_v54 = vpop.f32.mrb[223].mxu1 }
 0xc89   : > { %v8612_v49 = vadd.f32 %v8611_v9, %v8610_v44 }
 0xc8a   : > { %v8594_v14 = vmul.f32 %v8581_v56, %v15040_v38  ;;  %v8569_v48 = vadd.f32 %v14668_v40, %v8531_v41 }
 0xc8b   : > { %v8366_v50 = vpop.f32.mrb[230].mxu0  ;;  %v8540_v26 = vpop.f32.mrb[224].mxu1 }
 0xc8c   : > { %v8613_v28 = vsel %vm6882_vm13, %v8594_v14, 0.0  ;;  %v8582_v45 = vmax.f32 %v8569_v48, 0.0  ;;  %v8536_v6 = vadd.f32 %v8535_v24, %v8366_v50  ;;  %v10186_v36 = vpop.f32.mrb[231].mxu0  ;;  %v10236_v39 = vpop.f32.mrb[225].mxu1 }
 0xc8d   : > { %v8614_v10 = vadd.f32 %v8613_v28, %v8612_v49 }
 0xc8e   : > { %v8595_v13 = vmul.f32 %v8582_v45, %v15041_v52  ;;  %v8570_v3 = vadd.f32 %v14668_v40, %v8536_v6 }
 0xc8f   : > { %v8371_v23 = vpop.f32.mrb[232].mxu0  ;;  %v8545_v37 = vpop.f32.mrb[226].mxu1 }
 0xc90   : > { %v8615_v60 = vsel %vm6882_vm13, %v8595_v13, 0.0  ;;  %v8583_v47 = vmax.f32 %v8570_v3, 0.0  ;;  %v8541_v42 = vadd.f32 %v8540_v26, %v8371_v23  ;;  %v10189_v22 = vpop.f32.mrb[233].mxu0  ;;  %v10239_v34 = vpop.f32.mrb[227].mxu1 }
 0xc91   : > { %v8616_v7 = vadd.f32 %v8615_v60, %v8614_v10 }
 0xc92   : > { %v8596_v58 = vmul.f32 %v8583_v47, %v15042_v61  ;;  %v8571_v18 = vadd.f32 %v14668_v40, %v8541_v42 }
 0xc93   : > { %v8376_v31 = vpop.f32.mrb[234].mxu0  ;;  %v8550_v43 = vpop.f32.mrb[228].mxu1 }
 0xc94   : > { %v8617_v5 = vsel %vm6882_vm13, %v8596_v58, 0.0  ;;  %v8584_v19 = vmax.f32 %v8571_v18, 0.0  ;;  %v8546_v4 = vadd.f32 %v8545_v37, %v8376_v31  ;;  %v10192_v51 = vpop.f32.mrb[235].mxu0  ;;  %v10242_v55 = vpop.f32.mrb[229].mxu1 }
 0xc95   : > { %v8618_v15 = vadd.f32 %v8617_v5, %v8616_v7 }
 0xc96   : > { %v8597_v62 = vmul.f32 %v8584_v19, %v15043_v46  ;;  %v8572_v59 = vadd.f32 %v14668_v40, %v8546_v4 }
 0xc97   : > { %v8381_v27 = vpop.f32.mrb[236].mxu0 }
 0xc98   : > { %v8619_v29 = vsel %vm6882_vm13, %v8597_v62, 0.0  ;;  %v8585_v0 = vmax.f32 %v8572_v59, 0.0  ;;  %v8551_v30 = vadd.f32 %v8550_v43, %v8381_v27  ;;  %v10195_v2 = vpop.f32.mrb[237].mxu0 }
 0xc99   : > { %v8620_v12 = vadd.f32 %v8619_v29, %v8618_v15 }
 0xc9a   : > { %v8598_v35 = vmul.f32 %v8585_v0, %v15044_v33  ;;  %v8573_v16 = vadd.f32 %v14668_v40, %v8551_v30  ;;  %v8636_v40 = vld [vmem:[%s15045_s4] sm:$0x1]  ;;  %s10924_s4 = sshll.u32 %s11037_s0, 4  ;;  %s10925_s4 = int_to_ptr.vmem [resolvable:$false] %s10924_s4 }
 0xc9b   : > { %s10926_s6 = scalar_lea.vmem %s10925_s4, 32  ;;  %p10927_p0 = scmp.lt.s32.totalorder %s14716_s2, %s10925_s4 }
 0xc9c   : > { %v8621_v17 = vsel %vm6882_vm13, %v8598_v35, 0.0  ;;  %v8586_v63 = vmax.f32 %v8573_v16, 0.0  ;;  %p10928_p1 = scmp.lt.s32.totalorder %s10926_s6, %s10920_s3 }
 0xc9d   : > { %v8622_v11 = vadd.f32 %v8621_v17, %v8620_v12 }
 0xc9e   : > { %v8599_v8 = vmul.f32 %v8586_v63, %v15046_v21  ;;  %p10929_p2 = por %p10928_p1, %p10927_p0 }
 0xca0   : > { %v8623_v32 = vsel %vm8069_vm14, %v8599_v8, 0.0  ;;  %p10930_p3 = pnand %p10929_p2, %p10923_p13 }
 0xca1   : > { %v8624_v44 = vadd.f32 %v8623_v32, %v8622_v11 }
 0xca3   : > { %v8625_v57 = vrot.slane %v8624_v44, 4 }
 0xca5   : > { %v8626_v1 = vadd.f32 %v8625_v57, %v8624_v44 }
 0xca7   : > { %v8627_v25 = vrot.slane %v8626_v1, 2 }
 0xca9   : > { %v8628_v53 = vadd.f32 %v8627_v25, %v8626_v1 }
 0xcab   : > { %v8629_v24 = vrot.slane %v8628_v53, 1 }
 0xcad   : > { %v8630_v9 = vadd.f32 %v8629_v24, %v8628_v53 }
 0xcaf   : > { %v8631_v56 = vmul.f32 0.015625, %v8630_v9 }
 0xcb1   : > { %10252 = vmatmul.mubr.msk.f32.vlgmr.msra.gmra.mrb[238].mxu0 %vm6882_vm13, %v8631_v56 }
 0xd84   : > { %v8706_v41 = vpop.f32.mrb[238].mxu0 }
 0xd85   : > { %v8707_v20 = vadd.f32 %v8706_v41, %v8636_v40  ;;  %v10253_v54 = vpop.f32.mrb[239].mxu0 }
 0xd87   : > { %8711 = vst.msk [vmem:[%s937_s18] sm:$0x1] %vm8710_vm1, %v8707_v20 }
 0xd88   : > { %10933 = shalt.err (!%p10930_p3)
}
 0xd89   : > { %s10934_s5 = scalar_lea.hbm %s14714_s11, 16  ;;  %s10938_s9 = scalar_lea.hbm %s11196_s12, 32 }
 0xd8a   : > { %p10935_p4 = scmp.ne.s32.totalorder %s14714_s11, %s10934_s5  ;;  %p10939_p9 = scmp.lt.u32.totalorder %s14714_s11, %s11196_s12 }
 0xd8b   : > { %p10940_p10 = scmp.lt.u32.totalorder %s10938_s9, %s10934_s5  ;;  %p10942_p12 = scmp.lt.u32.totalorder %s10934_s5, %s14714_s11 }
 0xd8c   : > { %p10936_p7 = pnand %p10935_p4, %p11236_p5 }
 0xd8d   : > { %p10941_p11 = por %p10940_p10, %p10939_p9 }
 0xd8e   : > { %p10937_p8 = pneg %p10936_p7 }
 0xd8f   : > { %p10943_p0 = por %p10942_p12, %p10941_p11 }
 0xd91   : > { %p10944_p13 = pnand %p10943_p0, %p10937_p8 }
 0xd93   : > { %10947 = shalt.err (!%p10944_p13)
}
 0xd94   : > { %10590 = dma.vmem_to_hbm [thread:$0]  (%p11236_p5), %s14716_s2, 16, %s14714_s11, %s8713_s1  }
 0xd95 PF: > { %p10596_p1 = scmp.ge.s32.totalorder %s10982_s22, 2  ;;  %s8737_s6 = sand.u32 1, %s10970_s15  }
 0xd96   : > { %s8738_s4 = scalar_lea.sflag [#allocation6], %s8737_s6 }
 0xd97   : > { %p10593_p2 = pnand %p10596_p1, %p11240_p6 }
 0xd99   : > { %10965 = dma.done.wait (!%p10593_p2), %s8738_s4, 16  }
 0xd9a   : > { %10967 = vsyncadd (!%p10593_p2), %s8738_s4, 4294967280  ;;  %s15048_s22 = sld [smem:[#allocation29_spill]]  ;;  %s15049_s18 = sld [smem:[#allocation28_spill]] }
 0xd9b   : > { %s15050_s0 = sld [smem:[#allocation30_spill]]  ;;  %s15051_s15 = smov %s10974_s16 }
 0xda0   : > { %p71_p3 = scmp.ge.s32.totalorder %s15048_s22, 4   ;;  %s15052_s16 = smov %s15049_s18 }
 0xda1   : > { %s15053_s18 = smov %s15050_s0 }
 0xda2   :  { %73 = sbr.rel (!%p71_p3) target bundleno = 63 (0x3f), region = 208 }
 0xda9   :  { %8742 = vsyncpa [#allocation6], 1 }
 0xdaa   :  { %8744 = vsyncpa [#allocation6 + $0x1], 1 }

</bundles_post_ra>
